<compile_context>
chip_gen: v7x
topology: tpu7x:2x2x1
jax: 0.10.0
libtpu: 0.0.40
codegen_flags: <defaults>
</compile_context>

<pallas_src>
import functools

import jax
import jax.numpy as jnp
from jax import lax
from jax.experimental import pallas as pl
from jax.experimental.pallas import tpu as pltpu


# ----------------------------------------------------------------------------
# hardware-aware sizing helpers
# ----------------------------------------------------------------------------
K_CAP = 1024          # max K handled as a single full-dim block
N_CAP = 1024          # max N tile

_VMEM_BUDGET_CACHE = None


def _vmem_budget():
    """Half of physical VMEM, clamped to [32 MiB, 64 MiB] (v7x-safe)."""
    global _VMEM_BUDGET_CACHE
    if _VMEM_BUDGET_CACHE is None:
        try:
            cap = int(pltpu.get_tpu_info().vmem_capacity_bytes)
        except Exception:
            cap = 64 * 1024 * 1024          # assume the smallest (v7x) part
        _VMEM_BUDGET_CACHE = max(32 * 1024 * 1024,
                                 min(cap // 2, 64 * 1024 * 1024))
    return _VMEM_BUDGET_CACHE


def _m_cap():
    # Larger M tiles only on 128 MiB-VMEM parts (v5e/v6e); 256 on v7x.
    return 512 if _vmem_budget() >= 64 * 1024 * 1024 else 256


def _round_up(x, m):
    return ((x + m - 1) // m) * m


def _divisor_tile(dp, base, cap, floor):
    """Largest multiple of `base` in [floor, cap] that divides dp, else None."""
    t = (min(cap, dp) // base) * base
    floor = max(base, floor)
    while t >= floor:
        if dp % t == 0:
            return t
        t -= base
    return None


def _geom_m(M):
    cap = _m_cap()
    if M <= cap:
        Mp = _round_up(M, 8)
        return Mp, Mp
    Mp = _round_up(M, 16)
    t = _divisor_tile(Mp, 16, cap, 32)
    if t is None:
        Mp = _round_up(Mp, cap)
        t = cap
    return t, Mp


def _geom_k(K):
    if K <= K_CAP:
        return K, K                     # full-dim block, no padding
    Kp = _round_up(K, 128)
    t = _divisor_tile(Kp, 128, K_CAP, 512)
    if t is None:
        Kp = _round_up(Kp, 512)
        t = 512
    return t, Kp


def _geom_n(N):
    Np = _round_up(N, 128)              # lane-dense outputs
    if Np <= N_CAP:
        return Np, Np
    t = _divisor_tile(Np, 128, N_CAP, 512)
    if t is None:
        Np = _round_up(Np, 512)
        t = 512
    return t, Np


def _apply_act(x, act):
    if act == "linear":
        return x
    if act == "relu":
        return jnp.maximum(x, 0.0)
    if act == "lrelu":
        return jnp.where(x > 0, x, 0.1 * x)
    if act == "sigmoid":
        return jax.nn.sigmoid(x)
    raise ValueError(act)


# ----------------------------------------------------------------------------
# Pallas kernel 1: tiled matmul (bf16 x bf16 -> f32 acc) + bias + activation
# ----------------------------------------------------------------------------
def _mm_kernel_nk1(*refs, act, has_bias):
    # Single K block: no accumulator scratch, direct output write.
    if has_bias:
        a_ref, b_ref, bias_ref, o_ref = refs
    else:
        a_ref, b_ref, o_ref = refs
    r = jnp.dot(a_ref[...], b_ref[...], preferred_element_type=jnp.float32)
    if has_bias:
        r = r + bias_ref[...]
    o_ref[...] = _apply_act(r, act).astype(o_ref.dtype)


def _mm_kernel_nkN(*refs, act, has_bias):
    # K is tiled: accumulate in f32 scratch, epilogue on the last K step.
    if has_bias:
        a_ref, b_ref, bias_ref, o_ref, acc_ref = refs
    else:
        a_ref, b_ref, o_ref, acc_ref = refs
    k = pl.program_id(2)

    @pl.when(k == 0)
    def _():
        acc_ref[...] = jnp.zeros_like(acc_ref)

    acc_ref[...] += jnp.dot(a_ref[...], b_ref[...],
                            preferred_element_type=jnp.float32)

    @pl.when(k == pl.num_programs(2) - 1)
    def _():
        r = acc_ref[...]
        if has_bias:
            r = r + bias_ref[...]
        o_ref[...] = _apply_act(r, act).astype(o_ref.dtype)


def _mm_vmem_limit(tm, tk, tn, nk, has_bias, out_itemsize):
    b = 2 * 2 * (tm * tk + tk * tn)          # bf16 input tiles, double-buffered
    b += 2 * out_itemsize * tm * tn          # output tile, double-buffered
    if nk > 1:
        b += 4 * tm * tn                     # f32 accumulator scratch
    if has_bias:
        b += 2 * 4 * tn
    return int(min(_vmem_budget(), b + (8 << 20)))


def matmul_act(a, w_pad, n_out, bias_pad=None, act="linear",
               out_dtype=jnp.bfloat16):
    """act(A @ W + bias).

    a:        (M, K) any float dtype (cast to bf16 inside).
    w_pad:    pre-packed bf16 weight of shape (_geom_k(K)[1], _geom_n(n_out)[1]).
    bias_pad: pre-packed f32 bias of shape (1, _geom_n(n_out)[1]) or None.
    """
    M, K = a.shape
    tm, Mp = _geom_m(M)
    tk, Kp = _geom_k(K)
    tn, Np = _geom_n(n_out)
    assert w_pad.shape == (Kp, Np), (w_pad.shape, Kp, Np)
    has_bias = bias_pad is not None
    if has_bias:
        assert bias_pad.shape == (1, Np)

    gm, gn, gk = Mp // tm, Np // tn, Kp // tk
    # Give v7x's two TensorCores something to split when the grid is 1x1.
    if gm == 1 and gn == 1 and tn % 256 == 0:
        tn //= 2
        gn = 2

    a_p = a.astype(jnp.bfloat16)
    if Mp != M or Kp != K:
        a_p = jnp.pad(a_p, ((0, Mp - M), (0, Kp - K)))

    out_itemsize = jnp.dtype(out_dtype).itemsize
    operands = [a_p, w_pad]

    if gk == 1:
        in_specs = [pl.BlockSpec((tm, Kp), lambda i, j: (i, 0)),
                    pl.BlockSpec((Kp, tn), lambda i, j: (0, j))]
        if has_bias:
            in_specs.append(pl.BlockSpec((1, tn), lambda i, j: (0, j)))
            operands.append(bias_pad)
        grid = (gm, gn)
        out_spec = pl.BlockSpec((tm, tn), lambda i, j: (i, j))
        scratch = []
        kernel = functools.partial(_mm_kernel_nk1, act=act, has_bias=has_bias)
        dims = ("parallel", "parallel")
        k_block = Kp
    else:
        in_specs = [pl.BlockSpec((tm, tk), lambda i, j, k: (i, k)),
                    pl.BlockSpec((tk, tn), lambda i, j, k: (k, j))]
        if has_bias:
            in_specs.append(pl.BlockSpec((1, tn), lambda i, j, k: (0, j)))
            operands.append(bias_pad)
        grid = (gm, gn, gk)
        out_spec = pl.BlockSpec((tm, tn), lambda i, j, k: (i, j))
        scratch = [pltpu.VMEM((tm, tn), jnp.float32)]
        kernel = functools.partial(_mm_kernel_nkN, act=act, has_bias=has_bias)
        dims = ("parallel", "parallel", "arbitrary")
        k_block = tk
        # TODO(synk): consider pl.Buffered(3) on the B-matrix spec on 128 MiB
        #             VMEM parts to hide the wide-K DMA of d_w3.

    out = pl.pallas_call(
        kernel,
        out_shape=jax.ShapeDtypeStruct((Mp, Np), out_dtype),
        grid_spec=pltpu.PrefetchScalarGridSpec(
            num_scalar_prefetch=0,
            grid=grid,
            in_specs=in_specs,
            out_specs=out_spec,
            scratch_shapes=scratch,
        ),
        compiler_params=pltpu.CompilerParams(
            dimension_semantics=dims,
            vmem_limit_bytes=_mm_vmem_limit(tm, k_block, tn, gk, has_bias,
                                            out_itemsize),
        ),
    )(*operands)
    if Mp != M or Np != n_out:
        out = out[:M, :n_out]
    return out


# ----------------------------------------------------------------------------
# Pallas kernel 2: BatchNorm (training-mode batch stats) + activation
# ----------------------------------------------------------------------------
def _bn_single_kernel(x_ref, g_ref, b_ref, o_ref, *, act, eps, inv_r):
    # Whole activation resident in VMEM: mean-centered variance, one pass.
    x = x_ref[...].astype(jnp.float32)
    mean = jnp.sum(x, axis=0, keepdims=True) * inv_r
    xc = x - mean
    var = jnp.sum(xc * xc, axis=0, keepdims=True) * inv_r
    y = xc * (lax.rsqrt(var + eps) * g_ref[...]) + b_ref[...]
    o_ref[...] = _apply_act(y, act).astype(o_ref.dtype)


def _bn_stats_kernel(x_ref, sum_ref, ssq_ref):
    r = pl.program_id(0)

    @pl.when(r == 0)
    def _():
        sum_ref[...] = jnp.zeros_like(sum_ref)
        ssq_ref[...] = jnp.zeros_like(ssq_ref)

    x = x_ref[...].astype(jnp.float32)
    sum_ref[...] += jnp.sum(x, axis=0, keepdims=True)
    ssq_ref[...] += jnp.sum(x * x, axis=0, keepdims=True)


def _affine_act_kernel(x_ref, s_ref, t_ref, o_ref, *, act):
    y = x_ref[...].astype(jnp.float32) * s_ref[...] + t_ref[...]
    o_ref[...] = _apply_act(y, act).astype(o_ref.dtype)


def _bn_vmem_limit(rows, cp, in_itemsize, out_itemsize):
    b = 2 * rows * cp * (in_itemsize + out_itemsize) + 16 * 4 * cp
    return int(min(_vmem_budget(), b + (8 << 20)))


_BN_SINGLE_MAX_ELEMS = 1 << 20    # max x elements held in VMEM for single-pass


def batchnorm_act(x2d, gamma, beta, act, eps=1e-5, out_dtype=jnp.bfloat16):
    """Training-mode BatchNorm over rows (per-channel stats) + activation."""
    R, C = x2d.shape
    Cp = _round_up(C, 128)
    x_p = x2d if Cp == C else jnp.pad(x2d, ((0, 0), (0, Cp - C)))
    g_p = jnp.pad(gamma.astype(jnp.float32).reshape(1, C), ((0, 0), (0, Cp - C)))
    b_p = jnp.pad(beta.astype(jnp.float32).reshape(1, C), ((0, 0), (0, Cp - C)))
    in_itemsize = jnp.dtype(x_p.dtype).itemsize
    out_itemsize = jnp.dtype(out_dtype).itemsize

    if R * Cp <= _BN_SINGLE_MAX_ELEMS:
        out = pl.pallas_call(
            functools.partial(_bn_single_kernel, act=act, eps=eps, inv_r=1.0 / R),
            out_shape=jax.ShapeDtypeStruct((R, Cp), out_dtype),
            grid_spec=pltpu.PrefetchScalarGridSpec(
                num_scalar_prefetch=0,
                grid=(1,),
                in_specs=[pl.BlockSpec((R, Cp), lambda i: (0, 0)),
                          pl.BlockSpec((1, Cp), lambda i: (0, 0)),
                          pl.BlockSpec((1, Cp), lambda i: (0, 0))],
                out_specs=pl.BlockSpec((R, Cp), lambda i: (0, 0)),
            ),
            compiler_params=pltpu.CompilerParams(
                dimension_semantics=("arbitrary",),
                vmem_limit_bytes=_bn_vmem_limit(R, Cp, in_itemsize, out_itemsize),
            ),
        )(x_p, g_p, b_p)
        return out if Cp == C else out[:, :C]

    # Large-activation fallback: row-tiled stats reduction + affine kernel.
    tr = 512
    Rp = _round_up(R, tr)
    if Rp != R:
        x_p = jnp.pad(x_p, ((0, Rp - R), (0, 0)))   # zero rows don't affect sums
    nr = Rp // tr
    s, ss = pl.pallas_call(
        _bn_stats_kernel,
        out_shape=(jax.ShapeDtypeStruct((1, Cp), jnp.float32),
                   jax.ShapeDtypeStruct((1, Cp), jnp.float32)),
        grid_spec=pltpu.PrefetchScalarGridSpec(
            num_scalar_prefetch=0,
            grid=(nr,),
            in_specs=[pl.BlockSpec((tr, Cp), lambda r: (r, 0))],
            out_specs=(pl.BlockSpec((1, Cp), lambda r: (0, 0)),
                       pl.BlockSpec((1, Cp), lambda r: (0, 0))),
        ),
        compiler_params=pltpu.CompilerParams(
            dimension_semantics=("arbitrary",),
            vmem_limit_bytes=_bn_vmem_limit(tr, Cp, in_itemsize, 4),
        ),
    )(x_p)
    mean = s * (1.0 / R)
    var = jnp.maximum(ss * (1.0 / R) - mean * mean, 0.0)
    scale = g_p * lax.rsqrt(var + eps)
    shift = b_p - mean * scale
    out = pl.pallas_call(
        functools.partial(_affine_act_kernel, act=act),
        out_shape=jax.ShapeDtypeStruct((Rp, Cp), out_dtype),
        grid_spec=pltpu.PrefetchScalarGridSpec(
            num_scalar_prefetch=0,
            grid=(nr,),
            in_specs=[pl.BlockSpec((tr, Cp), lambda r: (r, 0)),
                      pl.BlockSpec((1, Cp), lambda r: (0, 0)),
                      pl.BlockSpec((1, Cp), lambda r: (0, 0))],
            out_specs=pl.BlockSpec((tr, Cp), lambda r: (r, 0)),
        ),
        compiler_params=pltpu.CompilerParams(
            dimension_semantics=("parallel",),
            vmem_limit_bytes=_bn_vmem_limit(tr, Cp, in_itemsize, out_itemsize),
        ),
    )(x_p, scale, shift)
    return out[:R, :C]


# ----------------------------------------------------------------------------
# conv lowerings (glue = im2col / parity interleave, hot path = Pallas matmul)
# ----------------------------------------------------------------------------
def _im2col(x_nhwc, k, stride, pad):
    x = jnp.pad(x_nhwc, ((0, 0), (pad, pad), (pad, pad), (0, 0)))
    N, H, W, C = x.shape
    OH = (H - k) // stride + 1
    OW = (W - k) // stride + 1
    patches = []
    for i in range(k):
        for j in range(k):
            patches.append(x[:, i:i + stride * OH:stride, j:j + stride * OW:stride, :])
    col = jnp.stack(patches, axis=3)                       # (N,OH,OW,k*k,C)
    return col.reshape(N * OH * OW, k * k * C), (N, OH, OW)


def conv2d(x_nhwc, w_pad, cout, bias_pad=None, *, k, stride, pad,
           act="linear", out_dtype=jnp.bfloat16):
    """w_pad is the pre-packed (k*k*Cin, Cout) bf16 matmul weight."""
    # TODO(synk): fuse the patch gather into the matmul A-side (pl.Element /
    #             scalar-prefetch index maps) to avoid materializing the
    #             im2col matrix in HBM.
    col, (n, oh, ow) = _im2col(x_nhwc.astype(jnp.bfloat16), k, stride, pad)
    out = matmul_act(col, w_pad, cout, bias_pad, act=act, out_dtype=out_dtype)
    return out.reshape(n, oh, ow, cout)


def _shift(t, axis, d):
    """result[m] = t[m + d] along `axis`, zero-filled outside [0, n)."""
    if d == 0:
        return t
    n = t.shape[axis]
    zshape = list(t.shape)
    zshape[axis] = 1
    z = jnp.zeros(zshape, t.dtype)
    if d == 1:
        return jnp.concatenate([lax.slice_in_dim(t, 1, n, axis=axis), z], axis=axis)
    return jnp.concatenate([z, lax.slice_in_dim(t, 0, n - 1, axis=axis)], axis=axis)


# Output-parity taps for ConvTranspose2d(k=4, s=2, p=1): o + 1 = 2*i + kh.
#   even output rows (2m):   (kh=1, i=m), (kh=3, i=m-1)
#   odd  output rows (2m+1): (kh=2, i=m), (kh=0, i=m+1)
_TCONV_TAPS = {0: ((1, 0), (3, -1)), 1: ((2, 0), (0, +1))}


def conv_transpose_s2k4p1(x_nhwc, w_pad, cout):
    """ConvTranspose2d(kernel=4, stride=2, pad=1), no bias.

    One matmul (N*H*W, Cin) @ (Cin, 16*Cout), then a parity-grouped
    interleave: 4 shifted adds per output parity + depth-to-space reshape.
    No zero-stuffing and no repeated read-modify-write of the output in HBM.
    """
    N, H, W, Cin = x_nhwc.shape
    y = matmul_act(x_nhwc.reshape(N * H * W, Cin), w_pad, 16 * cout,
                   out_dtype=jnp.float32)
    y = y.reshape(N, H, W, 4, 4, cout)

    rows = []
    for a in (0, 1):
        cols = []
        for b in (0, 1):
            acc = None
            for kh, dh in _TCONV_TAPS[a]:
                for kw, dw in _TCONV_TAPS[b]:
                    t = y[:, :, :, kh, kw, :]
                    t = _shift(_shift(t, 2, dw), 1, dh)
                    acc = t if acc is None else acc + t
            cols.append(acc)                               # (N,H,W,C)
        rows.append(jnp.stack(cols, axis=3))               # (N,H,W,2,C)
    out = jnp.stack(rows, axis=2)                          # (N,H,2,W,2,C)
    return out.reshape(N, 2 * H, 2 * W, cout)


# ----------------------------------------------------------------------------
# parameters: PyTorch-layout init (DCGAN-style N(0,0.02)) + one-time prep
# ----------------------------------------------------------------------------
def init_params(key):
    def nrm(k, shape):
        return 0.02 * jax.random.normal(k, shape, jnp.float32)

    ks = jax.random.split(key, 16)
    p = {}
    # Generator (ConvTranspose2d weights are IOHW)
    p["g_w1"] = nrm(ks[0], (74, 1024))                 # tconv1 1x1 == linear
    p["g_bn1_g"] = jnp.ones((1024,)); p["g_bn1_b"] = jnp.zeros((1024,))
    p["g_w2"] = nrm(ks[1], (1024, 128, 7, 7))          # tconv2
    p["g_bn2_g"] = jnp.ones((128,)); p["g_bn2_b"] = jnp.zeros((128,))
    p["g_w3"] = nrm(ks[2], (128, 64, 4, 4))            # tconv3 s2 p1
    p["g_bn3_g"] = jnp.ones((64,)); p["g_bn3_b"] = jnp.zeros((64,))
    p["g_w4"] = nrm(ks[3], (64, 1, 4, 4))              # tconv4 s2 p1
    # Discriminator (Conv2d weights are OIHW)
    p["d_w1"] = nrm(ks[4], (64, 1, 4, 4)); p["d_b1"] = jnp.zeros((64,))
    p["d_w2"] = nrm(ks[5], (128, 64, 4, 4))
    p["d_bn2_g"] = jnp.ones((128,)); p["d_bn2_b"] = jnp.zeros((128,))
    p["d_w3"] = nrm(ks[6], (1024, 128, 7, 7))
    p["d_bn3_g"] = jnp.ones((1024,)); p["d_bn3_b"] = jnp.zeros((1024,))
    # DHead
    p["dh_w"] = nrm(ks[7], (1024, 1)); p["dh_b"] = jnp.zeros((1,))
    # QHead
    p["q_w1"] = nrm(ks[8], (1024, 128))
    p["q_bn1_g"] = jnp.ones((128,)); p["q_bn1_b"] = jnp.zeros((128,))
    p["q_wd"] = nrm(ks[9], (128, 10)); p["q_bd"] = jnp.zeros((10,))
    p["q_wm"] = nrm(ks[10], (128, 2)); p["q_bm"] = jnp.zeros((2,))
    p["q_wv"] = nrm(ks[11], (128, 2)); p["q_bv"] = jnp.zeros((2,))
    return p


def _pack_weight(w2d):
    """Pad a (K, N) weight to its matmul layout (Kp, Np) and cast to bf16."""
    K, N = w2d.shape
    Kp = _geom_k(K)[1]
    Np = _geom_n(N)[1]
    return jnp.pad(w2d.astype(jnp.bfloat16), ((0, Kp - K), (0, Np - N)))


def _pack_bias(b):
    N = b.shape[0]
    Np = _geom_n(N)[1]
    return jnp.pad(b.astype(jnp.float32).reshape(1, N), ((0, 0), (0, Np - N)))


def prepare_params(p):
    """One-time layout prep: matmul layouts, NHWC weight ordering, head fusion,
    bf16 cast AND matmul padding.  Runs once, outside the jitted forward."""
    q = {}
    # Generator
    q["g_w1"] = _pack_weight(p["g_w1"])                                       # (74,1024)
    # tconv2 on 1x1 spatial: output directly in NHWC (kh,kw,cout) order
    q["g_w2_mat"] = _pack_weight(
        p["g_w2"].transpose(0, 2, 3, 1).reshape(1024, 7 * 7 * 128))
    # tconv3/4: (Cin, 4,4,Cout) -> (Cin, 16*Cout) for the parity-interleave lowering
    q["g_w3_mat"] = _pack_weight(p["g_w3"].transpose(0, 2, 3, 1).reshape(128, 16 * 64))
    q["g_w4_mat"] = _pack_weight(p["g_w4"].transpose(0, 2, 3, 1).reshape(64, 16 * 1))
    # Discriminator: OIHW -> (kh,kw,cin,cout) -> (k*k*cin, cout)
    q["d_w1_mat"] = _pack_weight(p["d_w1"].transpose(2, 3, 1, 0).reshape(16 * 1, 64))
    q["d_w2_mat"] = _pack_weight(p["d_w2"].transpose(2, 3, 1, 0).reshape(16 * 64, 128))
    q["d_w3_mat"] = _pack_weight(p["d_w3"].transpose(2, 3, 1, 0).reshape(49 * 128, 1024))
    q["d_b1"] = _pack_bias(p["d_b1"])
    # Fused heads: feat @ [q_w1 | dh_w], then q @ [q_wd | q_wm | q_wv]
    q["head1_w"] = _pack_weight(jnp.concatenate([p["q_w1"], p["dh_w"]], axis=1))  # (1024,129)
    q["head1_b"] = _pack_bias(jnp.concatenate([jnp.zeros((128,), jnp.float32),
                                               p["dh_b"]]))
    q["head2_w"] = _pack_weight(jnp.concatenate([p["q_wd"], p["q_wm"], p["q_wv"]],
                                                axis=1))                          # (128,14)
    q["head2_b"] = _pack_bias(jnp.concatenate([p["q_bd"], p["q_bm"], p["q_bv"]]))
    # BatchNorm params (f32)
    for name in ["g_bn1_g", "g_bn1_b", "g_bn2_g", "g_bn2_b", "g_bn3_g", "g_bn3_b",
                 "d_bn2_g", "d_bn2_b", "d_bn3_g", "d_bn3_b", "q_bn1_g", "q_bn1_b"]:
        q[name] = p[name]
    return q


# ----------------------------------------------------------------------------
# InfoGAN forward
# ----------------------------------------------------------------------------
def infogan_forward(p, noise, labels, rest_code):
    N = noise.shape[0]
    z = jnp.concatenate([noise, labels, rest_code], axis=1)             # (N, 74)

    # ---- Generator -------------------------------------------------------
    h = matmul_act(z, p["g_w1"], 1024)                                  # (N,1024) bf16
    h = batchnorm_act(h, p["g_bn1_g"], p["g_bn1_b"], "relu")
    h = matmul_act(h, p["g_w2_mat"], 7 * 7 * 128)                       # (N,6272) bf16
    h = batchnorm_act(h.reshape(N * 49, 128),
                      p["g_bn2_g"], p["g_bn2_b"], "relu").reshape(N, 7, 7, 128)
    h = conv_transpose_s2k4p1(h, p["g_w3_mat"], 64)                     # (N,14,14,64) f32
    h = batchnorm_act(h.reshape(N * 196, 64),
                      p["g_bn3_g"], p["g_bn3_b"], "relu").reshape(N, 14, 14, 64)
    images = jax.nn.sigmoid(conv_transpose_s2k4p1(h, p["g_w4_mat"], 1)) # (N,28,28,1)
    # TODO(synk): the final sigmoid could be fused into a Pallas interleave
    #             kernel; it is a tiny elementwise op here, left in XLA glue.

    # ---- Discriminator ---------------------------------------------------
    d = conv2d(images, p["d_w1_mat"], 64, p["d_b1"],
               k=4, stride=2, pad=1, act="lrelu")                       # (N,14,14,64)
    d = conv2d(d, p["d_w2_mat"], 128, None, k=4, stride=2, pad=1)       # (N,7,7,128)
    d = batchnorm_act(d.reshape(N * 49, 128),
                      p["d_bn2_g"], p["d_bn2_b"], "lrelu")
    # 7x7 "valid" conv on a 7x7 map is exactly a matmul over (kh,kw,cin)
    d = matmul_act(d.reshape(N, 49 * 128), p["d_w3_mat"], 1024)         # (N,1024)
    feat = batchnorm_act(d, p["d_bn3_g"], p["d_bn3_b"], "lrelu")

    # ---- Fused D head + Q head -------------------------------------------
    hq = matmul_act(feat, p["head1_w"], 129, p["head1_b"],
                    out_dtype=jnp.float32)                              # [q_pre|valid]
    valid_logits = hq[:, 128:129]
    q = batchnorm_act(hq[:, :128], p["q_bn1_g"], p["q_bn1_b"], "lrelu")
    qo = matmul_act(q, p["head2_w"], 14, p["head2_b"],
                    out_dtype=jnp.float32)                              # [logits|mu|log-var-ish]
    label_logits = qo[:, :10]
    rest_means = qo[:, 10:12]
    rest_vars = jnp.exp(qo[:, 12:14])

    return valid_logits, label_logits, rest_means, rest_vars


# ----------------------------------------------------------------------------
if __name__ == "__main__":
    key = jax.random.PRNGKey(0)
    k_params, k_noise, k_lab, k_rest = jax.random.split(key, 4)

    params = prepare_params(init_params(k_params))   # layout + padding hoisted here

    batch = 2
    noise = jax.random.normal(k_noise, (batch, 62), jnp.float32)
    labels = jax.nn.one_hot(jax.random.randint(k_lab, (batch,), 0, 10), 10,
                            dtype=jnp.float32)
    rest_code = jax.random.uniform(k_rest, (batch, 2), jnp.float32,
                                   minval=-1.0, maxval=1.0)

    fwd = jax.jit(infogan_forward)
    valid_logits, label_logits, rest_means, rest_vars = fwd(
        params, noise, labels, rest_code)
    jax.block_until_ready((valid_logits, label_logits, rest_means, rest_vars))

    assert valid_logits.shape == (batch, 1)
    assert label_logits.shape == (batch, 10)
    assert rest_means.shape == (batch, 2)
    assert rest_vars.shape == (batch, 2)
    assert bool(jnp.all(jnp.isfinite(valid_logits)))
    assert bool(jnp.all(jnp.isfinite(label_logits)))
    assert bool(jnp.all(rest_vars > 0))

    print("KERNEL_OK")
</pallas_src>

<mosaic_0001>
module attributes {stable_mosaic.version = 11 : i64} {
  func.func @_mm_kernel_nk1(%arg0: i32, %arg1: i32, %arg2: memref<8x74xbf16, #tpu.memory_space<vmem>>, %arg3: memref<74x512xbf16, #tpu.memory_space<vmem>>, %arg4: memref<8x512xbf16, #tpu.memory_space<vmem>>) attributes {dimension_semantics = [#tpu.dimension_semantics<parallel>, #tpu.dimension_semantics<parallel>], iteration_bounds = array<i64: 1, 2>, scalar_prefetch = 0 : i64, scratch_operands = 0 : i64, tpu.core_type = #tpu.core_type<tc>, window_params = [{transform_indices = @transform_0, window_bounds = array<i64: 8, 74>}, {transform_indices = @transform_1, window_bounds = array<i64: 74, 512>}, {transform_indices = @transform_2, window_bounds = array<i64: 8, 512>}]} {
    %c0 = arith.constant 0 : index
    %c0_0 = arith.constant 0 : index
    %0 = vector.load %arg2[%c0, %c0_0] : memref<8x74xbf16, #tpu.memory_space<vmem>>, vector<8x74xbf16>
    %c0_1 = arith.constant 0 : index
    %c0_2 = arith.constant 0 : index
    %1 = vector.load %arg3[%c0_1, %c0_2] : memref<74x512xbf16, #tpu.memory_space<vmem>>, vector<74x512xbf16>
    %cst = arith.constant dense<0.000000e+00> : vector<8x512xf32>
    %2 = tpu.matmul %0, %1, %cst {dimension_numbers = #tpu.dot_dimension_numbers<[1], [0], [0], [1], [0, 0, 1, 1], [], []>} : vector<8x74xbf16>, vector<74x512xbf16>, vector<8x512xf32> -> vector<8x512xf32>
    %3 = arith.truncf %2 : vector<8x512xf32> to vector<8x512xbf16>
    %c0_3 = arith.constant 0 : index
    %c0_4 = arith.constant 0 : index
    %4 = vector.load %arg4[%c0_3, %c0_4] : memref<8x512xbf16, #tpu.memory_space<vmem>>, vector<8x512xbf16>
    tpu.vector_store %arg4[%c0_3, %c0_4], %3 {strides = array<i32>} : memref<8x512xbf16, #tpu.memory_space<vmem>>, vector<8x512xbf16>,
    return
  }
  func.func @transform_0(%arg0: i32, %arg1: i32) -> (i32, i32) {
    %c0_i32 = arith.constant 0 : i32
    %c0_i32_0 = arith.constant 0 : i32
    return %arg0, %c0_i32 : i32, i32
  }
  func.func @transform_1(%arg0: i32, %arg1: i32) -> (i32, i32) {
    %c0_i32 = arith.constant 0 : i32
    %c0_i32_0 = arith.constant 0 : i32
    return %c0_i32, %arg1 : i32, i32
  }
  func.func @transform_2(%arg0: i32, %arg1: i32) -> (i32, i32) {
    %c0_i32 = arith.constant 0 : i32
    return %arg0, %arg1 : i32, i32
  }
}

module attributes {stable_mosaic.version = 11 : i64} {
  func.func @_bn_single_kernel(%arg0: i32, %arg1: memref<2x1024xbf16, #tpu.memory_space<vmem>>, %arg2: memref<1x1024xf32, #tpu.memory_space<vmem>>, %arg3: memref<1x1024xf32, #tpu.memory_space<vmem>>, %arg4: memref<2x1024xbf16, #tpu.memory_space<vmem>>) attributes {dimension_semantics = [#tpu.dimension_semantics<arbitrary>], iteration_bounds = array<i64: 1>, scalar_prefetch = 0 : i64, scratch_operands = 0 : i64, tpu.core_type = #tpu.core_type<tc>, window_params = [{pipeline_mode = #tpu.pipeline_mode<synchronous>, transform_indices = @transform_0, window_bounds = array<i64: 2, 1024>}, {pipeline_mode = #tpu.pipeline_mode<synchronous>, transform_indices = @transform_1, window_bounds = array<i64: 1, 1024>}, {pipeline_mode = #tpu.pipeline_mode<synchronous>, transform_indices = @transform_2, window_bounds = array<i64: 1, 1024>}, {pipeline_mode = #tpu.pipeline_mode<synchronous>, transform_indices = @transform_3, window_bounds = array<i64: 2, 1024>}]} {
    %c0 = arith.constant 0 : index
    %c0_0 = arith.constant 0 : index
    %0 = vector.load %arg1[%c0, %c0_0] : memref<2x1024xbf16, #tpu.memory_space<vmem>>, vector<2x1024xbf16>
    %1 = arith.extf %0 : vector<2x1024xbf16> to vector<2x1024xf32>
    %cst = arith.constant dense<0.000000e+00> : vector<1024xf32>
    %2 = vector.multi_reduction <add>, %1, %cst [0] : vector<2x1024xf32> to vector<1024xf32>
    %3 = vector.shape_cast %2 : vector<1024xf32> to vector<1x1024xf32>
    %cst_1 = arith.constant 5.000000e-01 : f32
    %4 = vector.broadcast %cst_1 : f32 to vector<1x1024xf32>
    %5 = arith.mulf %3, %4 : vector<1x1024xf32>
    %6 = vector.broadcast %5 : vector<1x1024xf32> to vector<2x1024xf32>
    %7 = arith.subf %1, %6 : vector<2x1024xf32>
    %8 = arith.mulf %7, %7 : vector<2x1024xf32>
    %cst_2 = arith.constant dense<0.000000e+00> : vector<1024xf32>
    %9 = vector.multi_reduction <add>, %8, %cst_2 [0] : vector<2x1024xf32> to vector<1024xf32>
    %10 = vector.shape_cast %9 : vector<1024xf32> to vector<1x1024xf32>
    %cst_3 = arith.constant 5.000000e-01 : f32
    %11 = vector.broadcast %cst_3 : f32 to vector<1x1024xf32>
    %12 = arith.mulf %10, %11 : vector<1x1024xf32>
    %cst_4 = arith.constant 9.99999974E-6 : f32
    %13 = vector.broadcast %cst_4 : f32 to vector<1x1024xf32>
    %14 = arith.addf %12, %13 : vector<1x1024xf32>
    %15 = math.rsqrt %14 : vector<1x1024xf32>
    %c0_5 = arith.constant 0 : index
    %c0_6 = arith.constant 0 : index
    %16 = vector.load %arg2[%c0_5, %c0_6] : memref<1x1024xf32, #tpu.memory_space<vmem>>, vector<1x1024xf32>
    %17 = arith.mulf %15, %16 : vector<1x1024xf32>
    %18 = vector.broadcast %17 : vector<1x1024xf32> to vector<2x1024xf32>
    %19 = arith.mulf %7, %18 : vector<2x1024xf32>
    %c0_7 = arith.constant 0 : index
    %c0_8 = arith.constant 0 : index
    %20 = vector.load %arg3[%c0_7, %c0_8] : memref<1x1024xf32, #tpu.memory_space<vmem>>, vector<1x1024xf32>
    %21 = vector.broadcast %20 : vector<1x1024xf32> to vector<2x1024xf32>
    %22 = arith.addf %19, %21 : vector<2x1024xf32>
    %cst_9 = arith.constant 0.000000e+00 : f32
    %23 = vector.broadcast %cst_9 : f32 to vector<2x1024xf32>
    %24 = arith.maximumf %22, %23 : vector<2x1024xf32>
    %25 = arith.truncf %24 : vector<2x1024xf32> to vector<2x1024xbf16>
    %c0_10 = arith.constant 0 : index
    %c0_11 = arith.constant 0 : index
    %26 = vector.load %arg4[%c0_10, %c0_11] : memref<2x1024xbf16, #tpu.memory_space<vmem>>, vector<2x1024xbf16>
    tpu.vector_store %arg4[%c0_10, %c0_11], %25 {strides = array<i32>} : memref<2x1024xbf16, #tpu.memory_space<vmem>>, vector<2x1024xbf16>,
    return
  }
  func.func @transform_0(%arg0: i32) -> (i32, i32) {
    %c0_i32 = arith.constant 0 : i32
    %c0_i32_0 = arith.constant 0 : i32
    %c0_i32_1 = arith.constant 0 : i32
    return %c0_i32, %c0_i32_0 : i32, i32
  }
  func.func @transform_1(%arg0: i32) -> (i32, i32) {
    %c0_i32 = arith.constant 0 : i32
    %c0_i32_0 = arith.constant 0 : i32
    %c0_i32_1 = arith.constant 0 : i32
    return %c0_i32, %c0_i32_0 : i32, i32
  }
  func.func @transform_2(%arg0: i32) -> (i32, i32) {
    %c0_i32 = arith.constant 0 : i32
    %c0_i32_0 = arith.constant 0 : i32
    %c0_i32_1 = arith.constant 0 : i32
    return %c0_i32, %c0_i32_0 : i32, i32
  }
  func.func @transform_3(%arg0: i32) -> (i32, i32) {
    %c0_i32 = arith.constant 0 : i32
    %c0_i32_0 = arith.constant 0 : i32
    %c0_i32_1 = arith.constant 0 : i32
    return %c0_i32, %c0_i32_0 : i32, i32
  }
}

module attributes {stable_mosaic.version = 11 : i64} {
  func.func @_mm_kernel_nk1(%arg0: i32, %arg1: i32, %arg2: memref<8x1024xbf16, #tpu.memory_space<vmem>>, %arg3: memref<1024x896xbf16, #tpu.memory_space<vmem>>, %arg4: memref<8x896xbf16, #tpu.memory_space<vmem>>) attributes {dimension_semantics = [#tpu.dimension_semantics<parallel>, #tpu.dimension_semantics<parallel>], iteration_bounds = array<i64: 1, 7>, scalar_prefetch = 0 : i64, scratch_operands = 0 : i64, tpu.core_type = #tpu.core_type<tc>, window_params = [{transform_indices = @transform_0, window_bounds = array<i64: 8, 1024>}, {transform_indices = @transform_1, window_bounds = array<i64: 1024, 896>}, {transform_indices = @transform_2, window_bounds = array<i64: 8, 896>}]} {
    %c0 = arith.constant 0 : index
    %c0_0 = arith.constant 0 : index
    %0 = vector.load %arg2[%c0, %c0_0] : memref<8x1024xbf16, #tpu.memory_space<vmem>>, vector<8x1024xbf16>
    %c0_1 = arith.constant 0 : index
    %c0_2 = arith.constant 0 : index
    %1 = vector.load %arg3[%c0_1, %c0_2] : memref<1024x896xbf16, #tpu.memory_space<vmem>>, vector<1024x896xbf16>
    %cst = arith.constant dense<0.000000e+00> : vector<8x896xf32>
    %2 = tpu.matmul %0, %1, %cst {dimension_numbers = #tpu.dot_dimension_numbers<[1], [0], [0], [1], [0, 0, 1, 1], [], []>} : vector<8x1024xbf16>, vector<1024x896xbf16>, vector<8x896xf32> -> vector<8x896xf32>
    %3 = arith.truncf %2 : vector<8x896xf32> to vector<8x896xbf16>
    %c0_3 = arith.constant 0 : index
    %c0_4 = arith.constant 0 : index
    %4 = vector.load %arg4[%c0_3, %c0_4] : memref<8x896xbf16, #tpu.memory_space<vmem>>, vector<8x896xbf16>
    tpu.vector_store %arg4[%c0_3, %c0_4], %3 {strides = array<i32>} : memref<8x896xbf16, #tpu.memory_space<vmem>>, vector<8x896xbf16>,
    return
  }
  func.func @transform_0(%arg0: i32, %arg1: i32) -> (i32, i32) {
    %c0_i32 = arith.constant 0 : i32
    %c0_i32_0 = arith.constant 0 : i32
    return %arg0, %c0_i32 : i32, i32
  }
  func.func @transform_1(%arg0: i32, %arg1: i32) -> (i32, i32) {
    %c0_i32 = arith.constant 0 : i32
    %c0_i32_0 = arith.constant 0 : i32
    return %c0_i32, %arg1 : i32, i32
  }
  func.func @transform_2(%arg0: i32, %arg1: i32) -> (i32, i32) {
    %c0_i32 = arith.constant 0 : i32
    return %arg0, %arg1 : i32, i32
  }
}

module attributes {stable_mosaic.version = 11 : i64} {
  func.func @_bn_single_kernel(%arg0: i32, %arg1: memref<98x128xbf16, #tpu.memory_space<vmem>>, %arg2: memref<1x128xf32, #tpu.memory_space<vmem>>, %arg3: memref<1x128xf32, #tpu.memory_space<vmem>>, %arg4: memref<98x128xbf16, #tpu.memory_space<vmem>>) attributes {dimension_semantics = [#tpu.dimension_semantics<arbitrary>], iteration_bounds = array<i64: 1>, scalar_prefetch = 0 : i64, scratch_operands = 0 : i64, tpu.core_type = #tpu.core_type<tc>, window_params = [{pipeline_mode = #tpu.pipeline_mode<synchronous>, transform_indices = @transform_0, window_bounds = array<i64: 98, 128>}, {pipeline_mode = #tpu.pipeline_mode<synchronous>, transform_indices = @transform_1, window_bounds = array<i64: 1, 128>}, {pipeline_mode = #tpu.pipeline_mode<synchronous>, transform_indices = @transform_2, window_bounds = array<i64: 1, 128>}, {pipeline_mode = #tpu.pipeline_mode<synchronous>, transform_indices = @transform_3, window_bounds = array<i64: 98, 128>}]} {
    %c0 = arith.constant 0 : index
    %c0_0 = arith.constant 0 : index
    %0 = vector.load %arg1[%c0, %c0_0] : memref<98x128xbf16, #tpu.memory_space<vmem>>, vector<98x128xbf16>
    %1 = arith.extf %0 : vector<98x128xbf16> to vector<98x128xf32>
    %cst = arith.constant dense<0.000000e+00> : vector<128xf32>
    %2 = vector.multi_reduction <add>, %1, %cst [0] : vector<98x128xf32> to vector<128xf32>
    %3 = vector.shape_cast %2 : vector<128xf32> to vector<1x128xf32>
    %cst_1 = arith.constant 0.0102040814 : f32
    %4 = vector.broadcast %cst_1 : f32 to vector<1x128xf32>
    %5 = arith.mulf %3, %4 : vector<1x128xf32>
    %6 = vector.broadcast %5 : vector<1x128xf32> to vector<98x128xf32>
    %7 = arith.subf %1, %6 : vector<98x128xf32>
    %8 = arith.mulf %7, %7 : vector<98x128xf32>
    %cst_2 = arith.constant dense<0.000000e+00> : vector<128xf32>
    %9 = vector.multi_reduction <add>, %8, %cst_2 [0] : vector<98x128xf32> to vector<128xf32>
    %10 = vector.shape_cast %9 : vector<128xf32> to vector<1x128xf32>
    %cst_3 = arith.constant 0.0102040814 : f32
    %11 = vector.broadcast %cst_3 : f32 to vector<1x128xf32>
    %12 = arith.mulf %10, %11 : vector<1x128xf32>
    %cst_4 = arith.constant 9.99999974E-6 : f32
    %13 = vector.broadcast %cst_4 : f32 to vector<1x128xf32>
    %14 = arith.addf %12, %13 : vector<1x128xf32>
    %15 = math.rsqrt %14 : vector<1x128xf32>
    %c0_5 = arith.constant 0 : index
    %c0_6 = arith.constant 0 : index
    %16 = vector.load %arg2[%c0_5, %c0_6] : memref<1x128xf32, #tpu.memory_space<vmem>>, vector<1x128xf32>
    %17 = arith.mulf %15, %16 : vector<1x128xf32>
    %18 = vector.broadcast %17 : vector<1x128xf32> to vector<98x128xf32>
    %19 = arith.mulf %7, %18 : vector<98x128xf32>
    %c0_7 = arith.constant 0 : index
    %c0_8 = arith.constant 0 : index
    %20 = vector.load %arg3[%c0_7, %c0_8] : memref<1x128xf32, #tpu.memory_space<vmem>>, vector<1x128xf32>
    %21 = vector.broadcast %20 : vector<1x128xf32> to vector<98x128xf32>
    %22 = arith.addf %19, %21 : vector<98x128xf32>
    %cst_9 = arith.constant 0.000000e+00 : f32
    %23 = vector.broadcast %cst_9 : f32 to vector<98x128xf32>
    %24 = arith.maximumf %22, %23 : vector<98x128xf32>
    %25 = arith.truncf %24 : vector<98x128xf32> to vector<98x128xbf16>
    %c0_10 = arith.constant 0 : index
    %c0_11 = arith.constant 0 : index
    %26 = vector.load %arg4[%c0_10, %c0_11] : memref<98x128xbf16, #tpu.memory_space<vmem>>, vector<98x128xbf16>
    tpu.vector_store %arg4[%c0_10, %c0_11], %25 {strides = array<i32>} : memref<98x128xbf16, #tpu.memory_space<vmem>>, vector<98x128xbf16>,
    return
  }
  func.func @transform_0(%arg0: i32) -> (i32, i32) {
    %c0_i32 = arith.constant 0 : i32
    %c0_i32_0 = arith.constant 0 : i32
    %c0_i32_1 = arith.constant 0 : i32
    return %c0_i32, %c0_i32_0 : i32, i32
  }
  func.func @transform_1(%arg0: i32) -> (i32, i32) {
    %c0_i32 = arith.constant 0 : i32
    %c0_i32_0 = arith.constant 0 : i32
    %c0_i32_1 = arith.constant 0 : i32
    return %c0_i32, %c0_i32_0 : i32, i32
  }
  func.func @transform_2(%arg0: i32) -> (i32, i32) {
    %c0_i32 = arith.constant 0 : i32
    %c0_i32_0 = arith.constant 0 : i32
    %c0_i32_1 = arith.constant 0 : i32
    return %c0_i32, %c0_i32_0 : i32, i32
  }
  func.func @transform_3(%arg0: i32) -> (i32, i32) {
    %c0_i32 = arith.constant 0 : i32
    %c0_i32_0 = arith.constant 0 : i32
    %c0_i32_1 = arith.constant 0 : i32
    return %c0_i32, %c0_i32_0 : i32, i32
  }
}

module attributes {stable_mosaic.version = 11 : i64} {
  func.func @_mm_kernel_nk1(%arg0: i32, %arg1: i32, %arg2: memref<104x128xbf16, #tpu.memory_space<vmem>>, %arg3: memref<128x512xbf16, #tpu.memory_space<vmem>>, %arg4: memref<104x512xf32, #tpu.memory_space<vmem>>) attributes {dimension_semantics = [#tpu.dimension_semantics<parallel>, #tpu.dimension_semantics<parallel>], iteration_bounds = array<i64: 1, 2>, scalar_prefetch = 0 : i64, scratch_operands = 0 : i64, tpu.core_type = #tpu.core_type<tc>, window_params = [{transform_indices = @transform_0, window_bounds = array<i64: 104, 128>}, {transform_indices = @transform_1, window_bounds = array<i64: 128, 512>}, {transform_indices = @transform_2, window_bounds = array<i64: 104, 512>}]} {
    %c0 = arith.constant 0 : index
    %c0_0 = arith.constant 0 : index
    %0 = vector.load %arg2[%c0, %c0_0] : memref<104x128xbf16, #tpu.memory_space<vmem>>, vector<104x128xbf16>
    %c0_1 = arith.constant 0 : index
    %c0_2 = arith.constant 0 : index
    %1 = vector.load %arg3[%c0_1, %c0_2] : memref<128x512xbf16, #tpu.memory_space<vmem>>, vector<128x512xbf16>
    %cst = arith.constant dense<0.000000e+00> : vector<104x512xf32>
    %2 = tpu.matmul %0, %1, %cst {dimension_numbers = #tpu.dot_dimension_numbers<[1], [0], [0], [1], [0, 0, 1, 1], [], []>} : vector<104x128xbf16>, vector<128x512xbf16>, vector<104x512xf32> -> vector<104x512xf32>
    %c0_3 = arith.constant 0 : index
    %c0_4 = arith.constant 0 : index
    %3 = vector.load %arg4[%c0_3, %c0_4] : memref<104x512xf32, #tpu.memory_space<vmem>>, vector<104x512xf32>
    tpu.vector_store %arg4[%c0_3, %c0_4], %2 {strides = array<i32>} : memref<104x512xf32, #tpu.memory_space<vmem>>, vector<104x512xf32>,
    return
  }
  func.func @transform_0(%arg0: i32, %arg1: i32) -> (i32, i32) {
    %c0_i32 = arith.constant 0 : i32
    %c0_i32_0 = arith.constant 0 : i32
    return %arg0, %c0_i32 : i32, i32
  }
  func.func @transform_1(%arg0: i32, %arg1: i32) -> (i32, i32) {
    %c0_i32 = arith.constant 0 : i32
    %c0_i32_0 = arith.constant 0 : i32
    return %c0_i32, %arg1 : i32, i32
  }
  func.func @transform_2(%arg0: i32, %arg1: i32) -> (i32, i32) {
    %c0_i32 = arith.constant 0 : i32
    return %arg0, %arg1 : i32, i32
  }
}

module attributes {stable_mosaic.version = 11 : i64} {
  func.func @_bn_single_kernel(%arg0: i32, %arg1: memref<392x128xf32, #tpu.memory_space<vmem>>, %arg2: memref<1x128xf32, #tpu.memory_space<vmem>>, %arg3: memref<1x128xf32, #tpu.memory_space<vmem>>, %arg4: memref<392x128xbf16, #tpu.memory_space<vmem>>) attributes {dimension_semantics = [#tpu.dimension_semantics<arbitrary>], iteration_bounds = array<i64: 1>, scalar_prefetch = 0 : i64, scratch_operands = 0 : i64, tpu.core_type = #tpu.core_type<tc>, window_params = [{pipeline_mode = #tpu.pipeline_mode<synchronous>, transform_indices = @transform_0, window_bounds = array<i64: 392, 128>}, {pipeline_mode = #tpu.pipeline_mode<synchronous>, transform_indices = @transform_1, window_bounds = array<i64: 1, 128>}, {pipeline_mode = #tpu.pipeline_mode<synchronous>, transform_indices = @transform_2, window_bounds = array<i64: 1, 128>}, {pipeline_mode = #tpu.pipeline_mode<synchronous>, transform_indices = @transform_3, window_bounds = array<i64: 392, 128>}]} {
    %c0 = arith.constant 0 : index
    %c0_0 = arith.constant 0 : index
    %0 = vector.load %arg1[%c0, %c0_0] : memref<392x128xf32, #tpu.memory_space<vmem>>, vector<392x128xf32>
    %cst = arith.constant dense<0.000000e+00> : vector<128xf32>
    %1 = vector.multi_reduction <add>, %0, %cst [0] : vector<392x128xf32> to vector<128xf32>
    %2 = vector.shape_cast %1 : vector<128xf32> to vector<1x128xf32>
    %cst_1 = arith.constant 0.00255102036 : f32
    %3 = vector.broadcast %cst_1 : f32 to vector<1x128xf32>
    %4 = arith.mulf %2, %3 : vector<1x128xf32>
    %5 = vector.broadcast %4 : vector<1x128xf32> to vector<392x128xf32>
    %6 = arith.subf %0, %5 : vector<392x128xf32>
    %7 = arith.mulf %6, %6 : vector<392x128xf32>
    %cst_2 = arith.constant dense<0.000000e+00> : vector<128xf32>
    %8 = vector.multi_reduction <add>, %7, %cst_2 [0] : vector<392x128xf32> to vector<128xf32>
    %9 = vector.shape_cast %8 : vector<128xf32> to vector<1x128xf32>
    %cst_3 = arith.constant 0.00255102036 : f32
    %10 = vector.broadcast %cst_3 : f32 to vector<1x128xf32>
    %11 = arith.mulf %9, %10 : vector<1x128xf32>
    %cst_4 = arith.constant 9.99999974E-6 : f32
    %12 = vector.broadcast %cst_4 : f32 to vector<1x128xf32>
    %13 = arith.addf %11, %12 : vector<1x128xf32>
    %14 = math.rsqrt %13 : vector<1x128xf32>
    %c0_5 = arith.constant 0 : index
    %c0_6 = arith.constant 0 : index
    %15 = vector.load %arg2[%c0_5, %c0_6] : memref<1x128xf32, #tpu.memory_space<vmem>>, vector<1x128xf32>
    %16 = arith.mulf %14, %15 : vector<1x128xf32>
    %17 = vector.broadcast %16 : vector<1x128xf32> to vector<392x128xf32>
    %18 = arith.mulf %6, %17 : vector<392x128xf32>
    %c0_7 = arith.constant 0 : index
    %c0_8 = arith.constant 0 : index
    %19 = vector.load %arg3[%c0_7, %c0_8] : memref<1x128xf32, #tpu.memory_space<vmem>>, vector<1x128xf32>
    %20 = vector.broadcast %19 : vector<1x128xf32> to vector<392x128xf32>
    %21 = arith.addf %18, %20 : vector<392x128xf32>
    %cst_9 = arith.constant 0.000000e+00 : f32
    %22 = vector.broadcast %cst_9 : f32 to vector<392x128xf32>
    %23 = arith.maximumf %21, %22 : vector<392x128xf32>
    %24 = arith.truncf %23 : vector<392x128xf32> to vector<392x128xbf16>
    %c0_10 = arith.constant 0 : index
    %c0_11 = arith.constant 0 : index
    %25 = vector.load %arg4[%c0_10, %c0_11] : memref<392x128xbf16, #tpu.memory_space<vmem>>, vector<392x128xbf16>
    tpu.vector_store %arg4[%c0_10, %c0_11], %24 {strides = array<i32>} : memref<392x128xbf16, #tpu.memory_space<vmem>>, vector<392x128xbf16>,
    return
  }
  func.func @transform_0(%arg0: i32) -> (i32, i32) {
    %c0_i32 = arith.constant 0 : i32
    %c0_i32_0 = arith.constant 0 : i32
    %c0_i32_1 = arith.constant 0 : i32
    return %c0_i32, %c0_i32_0 : i32, i32
  }
  func.func @transform_1(%arg0: i32) -> (i32, i32) {
    %c0_i32 = arith.constant 0 : i32
    %c0_i32_0 = arith.constant 0 : i32
    %c0_i32_1 = arith.constant 0 : i32
    return %c0_i32, %c0_i32_0 : i32, i32
  }
  func.func @transform_2(%arg0: i32) -> (i32, i32) {
    %c0_i32 = arith.constant 0 : i32
    %c0_i32_0 = arith.constant 0 : i32
    %c0_i32_1 = arith.constant 0 : i32
    return %c0_i32, %c0_i32_0 : i32, i32
  }
  func.func @transform_3(%arg0: i32) -> (i32, i32) {
    %c0_i32 = arith.constant 0 : i32
    %c0_i32_0 = arith.constant 0 : i32
    %c0_i32_1 = arith.constant 0 : i32
    return %c0_i32, %c0_i32_0 : i32, i32
  }
}

module attributes {stable_mosaic.version = 11 : i64} {
  func.func @_mm_kernel_nk1(%arg0: i32, %arg1: i32, %arg2: memref<80x64xbf16, #tpu.memory_space<vmem>>, %arg3: memref<64x128xbf16, #tpu.memory_space<vmem>>, %arg4: memref<80x128xf32, #tpu.memory_space<vmem>>) attributes {dimension_semantics = [#tpu.dimension_semantics<parallel>, #tpu.dimension_semantics<parallel>], iteration_bounds = array<i64: 5, 1>, scalar_prefetch = 0 : i64, scratch_operands = 0 : i64, tpu.core_type = #tpu.core_type<tc>, window_params = [{transform_indices = @transform_0, window_bounds = array<i64: 80, 64>}, {transform_indices = @transform_1, window_bounds = array<i64: 64, 128>}, {transform_indices = @transform_2, window_bounds = array<i64: 80, 128>}]} {
    %c0 = arith.constant 0 : index
    %c0_0 = arith.constant 0 : index
    %0 = vector.load %arg2[%c0, %c0_0] : memref<80x64xbf16, #tpu.memory_space<vmem>>, vector<80x64xbf16>
    %c0_1 = arith.constant 0 : index
    %c0_2 = arith.constant 0 : index
    %1 = vector.load %arg3[%c0_1, %c0_2] : memref<64x128xbf16, #tpu.memory_space<vmem>>, vector<64x128xbf16>
    %cst = arith.constant dense<0.000000e+00> : vector<80x128xf32>
    %2 = tpu.matmul %0, %1, %cst {dimension_numbers = #tpu.dot_dimension_numbers<[1], [0], [0], [1], [0, 0, 1, 1], [], []>} : vector<80x64xbf16>, vector<64x128xbf16>, vector<80x128xf32> -> vector<80x128xf32>
    %c0_3 = arith.constant 0 : index
    %c0_4 = arith.constant 0 : index
    %3 = vector.load %arg4[%c0_3, %c0_4] : memref<80x128xf32, #tpu.memory_space<vmem>>, vector<80x128xf32>
    tpu.vector_store %arg4[%c0_3, %c0_4], %2 {strides = array<i32>} : memref<80x128xf32, #tpu.memory_space<vmem>>, vector<80x128xf32>,
    return
  }
  func.func @transform_0(%arg0: i32, %arg1: i32) -> (i32, i32) {
    %c0_i32 = arith.constant 0 : i32
    %c0_i32_0 = arith.constant 0 : i32
    return %arg0, %c0_i32 : i32, i32
  }
  func.func @transform_1(%arg0: i32, %arg1: i32) -> (i32, i32) {
    %c0_i32 = arith.constant 0 : i32
    %c0_i32_0 = arith.constant 0 : i32
    return %c0_i32, %arg1 : i32, i32
  }
  func.func @transform_2(%arg0: i32, %arg1: i32) -> (i32, i32) {
    %c0_i32 = arith.constant 0 : i32
    return %arg0, %arg1 : i32, i32
  }
}

module attributes {stable_mosaic.version = 11 : i64} {
  func.func @_mm_kernel_nk1(%arg0: i32, %arg1: i32, %arg2: memref<80x16xbf16, #tpu.memory_space<vmem>>, %arg3: memref<16x128xbf16, #tpu.memory_space<vmem>>, %arg4: memref<1x128xf32, #tpu.memory_space<vmem>>, %arg5: memref<80x128xbf16, #tpu.memory_space<vmem>>) attributes {dimension_semantics = [#tpu.dimension_semantics<parallel>, #tpu.dimension_semantics<parallel>], iteration_bounds = array<i64: 5, 1>, scalar_prefetch = 0 : i64, scratch_operands = 0 : i64, tpu.core_type = #tpu.core_type<tc>, window_params = [{transform_indices = @transform_0, window_bounds = array<i64: 80, 16>}, {transform_indices = @transform_1, window_bounds = array<i64: 16, 128>}, {transform_indices = @transform_2, window_bounds = array<i64: 1, 128>}, {transform_indices = @transform_3, window_bounds = array<i64: 80, 128>}]} {
    %c0 = arith.constant 0 : index
    %c0_0 = arith.constant 0 : index
    %0 = vector.load %arg2[%c0, %c0_0] : memref<80x16xbf16, #tpu.memory_space<vmem>>, vector<80x16xbf16>
    %c0_1 = arith.constant 0 : index
    %c0_2 = arith.constant 0 : index
    %1 = vector.load %arg3[%c0_1, %c0_2] : memref<16x128xbf16, #tpu.memory_space<vmem>>, vector<16x128xbf16>
    %cst = arith.constant dense<0.000000e+00> : vector<80x128xf32>
    %2 = tpu.matmul %0, %1, %cst {dimension_numbers = #tpu.dot_dimension_numbers<[1], [0], [0], [1], [0, 0, 1, 1], [], []>} : vector<80x16xbf16>, vector<16x128xbf16>, vector<80x128xf32> -> vector<80x128xf32>
    %c0_3 = arith.constant 0 : index
    %c0_4 = arith.constant 0 : index
    %3 = vector.load %arg4[%c0_3, %c0_4] : memref<1x128xf32, #tpu.memory_space<vmem>>, vector<1x128xf32>
    %4 = vector.broadcast %3 : vector<1x128xf32> to vector<80x128xf32>
    %5 = arith.addf %2, %4 : vector<80x128xf32>
    %cst_5 = arith.constant 0.000000e+00 : f32
    %6 = vector.broadcast %cst_5 : f32 to vector<80x128xf32>
    %7 = arith.cmpf ogt, %5, %6 : vector<80x128xf32>
    %cst_6 = arith.constant 1.000000e-01 : f32
    %8 = vector.broadcast %cst_6 : f32 to vector<80x128xf32>
    %9 = arith.mulf %8, %5 : vector<80x128xf32>
    %10 = arith.select %7, %5, %9 : vector<80x128xi1>, vector<80x128xf32>
    %11 = arith.truncf %10 : vector<80x128xf32> to vector<80x128xbf16>
    %c0_7 = arith.constant 0 : index
    %c0_8 = arith.constant 0 : index
    %12 = vector.load %arg5[%c0_7, %c0_8] : memref<80x128xbf16, #tpu.memory_space<vmem>>, vector<80x128xbf16>
    tpu.vector_store %arg5[%c0_7, %c0_8], %11 {strides = array<i32>} : memref<80x128xbf16, #tpu.memory_space<vmem>>, vector<80x128xbf16>,
    return
  }
  func.func @transform_0(%arg0: i32, %arg1: i32) -> (i32, i32) {
    %c0_i32 = arith.constant 0 : i32
    %c0_i32_0 = arith.constant 0 : i32
    return %arg0, %c0_i32 : i32, i32
  }
  func.func @transform_1(%arg0: i32, %arg1: i32) -> (i32, i32) {
    %c0_i32 = arith.constant 0 : i32
    %c0_i32_0 = arith.constant 0 : i32
    return %c0_i32, %arg1 : i32, i32
  }
  func.func @transform_2(%arg0: i32, %arg1: i32) -> (i32, i32) {
    %c0_i32 = arith.constant 0 : i32
    %c0_i32_0 = arith.constant 0 : i32
    return %c0_i32, %arg1 : i32, i32
  }
  func.func @transform_3(%arg0: i32, %arg1: i32) -> (i32, i32) {
    %c0_i32 = arith.constant 0 : i32
    return %arg0, %arg1 : i32, i32
  }
}

module attributes {stable_mosaic.version = 11 : i64} {
  func.func @_bn_single_kernel(%arg0: i32, %arg1: memref<98x128xbf16, #tpu.memory_space<vmem>>, %arg2: memref<1x128xf32, #tpu.memory_space<vmem>>, %arg3: memref<1x128xf32, #tpu.memory_space<vmem>>, %arg4: memref<98x128xbf16, #tpu.memory_space<vmem>>) attributes {dimension_semantics = [#tpu.dimension_semantics<arbitrary>], iteration_bounds = array<i64: 1>, scalar_prefetch = 0 : i64, scratch_operands = 0 : i64, tpu.core_type = #tpu.core_type<tc>, window_params = [{pipeline_mode = #tpu.pipeline_mode<synchronous>, transform_indices = @transform_0, window_bounds = array<i64: 98, 128>}, {pipeline_mode = #tpu.pipeline_mode<synchronous>, transform_indices = @transform_1, window_bounds = array<i64: 1, 128>}, {pipeline_mode = #tpu.pipeline_mode<synchronous>, transform_indices = @transform_2, window_bounds = array<i64: 1, 128>}, {pipeline_mode = #tpu.pipeline_mode<synchronous>, transform_indices = @transform_3, window_bounds = array<i64: 98, 128>}]} {
    %c0 = arith.constant 0 : index
    %c0_0 = arith.constant 0 : index
    %0 = vector.load %arg1[%c0, %c0_0] : memref<98x128xbf16, #tpu.memory_space<vmem>>, vector<98x128xbf16>
    %1 = arith.extf %0 : vector<98x128xbf16> to vector<98x128xf32>
    %cst = arith.constant dense<0.000000e+00> : vector<128xf32>
    %2 = vector.multi_reduction <add>, %1, %cst [0] : vector<98x128xf32> to vector<128xf32>
    %3 = vector.shape_cast %2 : vector<128xf32> to vector<1x128xf32>
    %cst_1 = arith.constant 0.0102040814 : f32
    %4 = vector.broadcast %cst_1 : f32 to vector<1x128xf32>
    %5 = arith.mulf %3, %4 : vector<1x128xf32>
    %6 = vector.broadcast %5 : vector<1x128xf32> to vector<98x128xf32>
    %7 = arith.subf %1, %6 : vector<98x128xf32>
    %8 = arith.mulf %7, %7 : vector<98x128xf32>
    %cst_2 = arith.constant dense<0.000000e+00> : vector<128xf32>
    %9 = vector.multi_reduction <add>, %8, %cst_2 [0] : vector<98x128xf32> to vector<128xf32>
    %10 = vector.shape_cast %9 : vector<128xf32> to vector<1x128xf32>
    %cst_3 = arith.constant 0.0102040814 : f32
    %11 = vector.broadcast %cst_3 : f32 to vector<1x128xf32>
    %12 = arith.mulf %10, %11 : vector<1x128xf32>
    %cst_4 = arith.constant 9.99999974E-6 : f32
    %13 = vector.broadcast %cst_4 : f32 to vector<1x128xf32>
    %14 = arith.addf %12, %13 : vector<1x128xf32>
    %15 = math.rsqrt %14 : vector<1x128xf32>
    %c0_5 = arith.constant 0 : index
    %c0_6 = arith.constant 0 : index
    %16 = vector.load %arg2[%c0_5, %c0_6] : memref<1x128xf32, #tpu.memory_space<vmem>>, vector<1x128xf32>
    %17 = arith.mulf %15, %16 : vector<1x128xf32>
    %18 = vector.broadcast %17 : vector<1x128xf32> to vector<98x128xf32>
    %19 = arith.mulf %7, %18 : vector<98x128xf32>
    %c0_7 = arith.constant 0 : index
    %c0_8 = arith.constant 0 : index
    %20 = vector.load %arg3[%c0_7, %c0_8] : memref<1x128xf32, #tpu.memory_space<vmem>>, vector<1x128xf32>
    %21 = vector.broadcast %20 : vector<1x128xf32> to vector<98x128xf32>
    %22 = arith.addf %19, %21 : vector<98x128xf32>
    %cst_9 = arith.constant 0.000000e+00 : f32
    %23 = vector.broadcast %cst_9 : f32 to vector<98x128xf32>
    %24 = arith.cmpf ogt, %22, %23 : vector<98x128xf32>
    %cst_10 = arith.constant 1.000000e-01 : f32
    %25 = vector.broadcast %cst_10 : f32 to vector<98x128xf32>
    %26 = arith.mulf %25, %22 : vector<98x128xf32>
    %27 = arith.select %24, %22, %26 : vector<98x128xi1>, vector<98x128xf32>
    %28 = arith.truncf %27 : vector<98x128xf32> to vector<98x128xbf16>
    %c0_11 = arith.constant 0 : index
    %c0_12 = arith.constant 0 : index
    %29 = vector.load %arg4[%c0_11, %c0_12] : memref<98x128xbf16, #tpu.memory_space<vmem>>, vector<98x128xbf16>
    tpu.vector_store %arg4[%c0_11, %c0_12], %28 {strides = array<i32>} : memref<98x128xbf16, #tpu.memory_space<vmem>>, vector<98x128xbf16>,
    return
  }
  func.func @transform_0(%arg0: i32) -> (i32, i32) {
    %c0_i32 = arith.constant 0 : i32
    %c0_i32_0 = arith.constant 0 : i32
    %c0_i32_1 = arith.constant 0 : i32
    return %c0_i32, %c0_i32_0 : i32, i32
  }
  func.func @transform_1(%arg0: i32) -> (i32, i32) {
    %c0_i32 = arith.constant 0 : i32
    %c0_i32_0 = arith.constant 0 : i32
    %c0_i32_1 = arith.constant 0 : i32
    return %c0_i32, %c0_i32_0 : i32, i32
  }
  func.func @transform_2(%arg0: i32) -> (i32, i32) {
    %c0_i32 = arith.constant 0 : i32
    %c0_i32_0 = arith.constant 0 : i32
    %c0_i32_1 = arith.constant 0 : i32
    return %c0_i32, %c0_i32_0 : i32, i32
  }
  func.func @transform_3(%arg0: i32) -> (i32, i32) {
    %c0_i32 = arith.constant 0 : i32
    %c0_i32_0 = arith.constant 0 : i32
    %c0_i32_1 = arith.constant 0 : i32
    return %c0_i32, %c0_i32_0 : i32, i32
  }
}

module attributes {stable_mosaic.version = 11 : i64} {
  func.func @_mm_kernel_nk1(%arg0: i32, %arg1: i32, %arg2: memref<104x1024xbf16, #tpu.memory_space<vmem>>, %arg3: memref<1024x128xbf16, #tpu.memory_space<vmem>>, %arg4: memref<104x128xbf16, #tpu.memory_space<vmem>>) attributes {dimension_semantics = [#tpu.dimension_semantics<parallel>, #tpu.dimension_semantics<parallel>], iteration_bounds = array<i64: 1, 1>, scalar_prefetch = 0 : i64, scratch_operands = 0 : i64, tpu.core_type = #tpu.core_type<tc>, window_params = [{transform_indices = @transform_0, window_bounds = array<i64: 104, 1024>}, {transform_indices = @transform_1, window_bounds = array<i64: 1024, 128>}, {transform_indices = @transform_2, window_bounds = array<i64: 104, 128>}]} {
    %c0 = arith.constant 0 : index
    %c0_0 = arith.constant 0 : index
    %0 = vector.load %arg2[%c0, %c0_0] : memref<104x1024xbf16, #tpu.memory_space<vmem>>, vector<104x1024xbf16>
    %c0_1 = arith.constant 0 : index
    %c0_2 = arith.constant 0 : index
    %1 = vector.load %arg3[%c0_1, %c0_2] : memref<1024x128xbf16, #tpu.memory_space<vmem>>, vector<1024x128xbf16>
    %cst = arith.constant dense<0.000000e+00> : vector<104x128xf32>
    %2 = tpu.matmul %0, %1, %cst {dimension_numbers = #tpu.dot_dimension_numbers<[1], [0], [0], [1], [0, 0, 1, 1], [], []>} : vector<104x1024xbf16>, vector<1024x128xbf16>, vector<104x128xf32> -> vector<104x128xf32>
    %3 = arith.truncf %2 : vector<104x128xf32> to vector<104x128xbf16>
    %c0_3 = arith.constant 0 : index
    %c0_4 = arith.constant 0 : index
    %4 = vector.load %arg4[%c0_3, %c0_4] : memref<104x128xbf16, #tpu.memory_space<vmem>>, vector<104x128xbf16>
    tpu.vector_store %arg4[%c0_3, %c0_4], %3 {strides = array<i32>} : memref<104x128xbf16, #tpu.memory_space<vmem>>, vector<104x128xbf16>,
    return
  }
  func.func @transform_0(%arg0: i32, %arg1: i32) -> (i32, i32) {
    %c0_i32 = arith.constant 0 : i32
    %c0_i32_0 = arith.constant 0 : i32
    return %arg0, %c0_i32 : i32, i32
  }
  func.func @transform_1(%arg0: i32, %arg1: i32) -> (i32, i32) {
    %c0_i32 = arith.constant 0 : i32
    %c0_i32_0 = arith.constant 0 : i32
    return %c0_i32, %arg1 : i32, i32
  }
  func.func @transform_2(%arg0: i32, %arg1: i32) -> (i32, i32) {
    %c0_i32 = arith.constant 0 : i32
    return %arg0, %arg1 : i32, i32
  }
}

module attributes {stable_mosaic.version = 11 : i64} {
  func.func @_mm_kernel_nkN(%arg0: i32, %arg1: i32, %arg2: i32, %arg3: memref<8x896xbf16, #tpu.memory_space<vmem>>, %arg4: memref<896x512xbf16, #tpu.memory_space<vmem>>, %arg5: memref<8x512xbf16, #tpu.memory_space<vmem>>, %arg6: memref<8x512xf32, #tpu.memory_space<vmem>>) attributes {dimension_semantics = [#tpu.dimension_semantics<parallel>, #tpu.dimension_semantics<parallel>, #tpu.dimension_semantics<arbitrary>], iteration_bounds = array<i64: 1, 2, 7>, scalar_prefetch = 0 : i64, scratch_operands = 1 : i64, tpu.core_type = #tpu.core_type<tc>, window_params = [{transform_indices = @transform_0, window_bounds = array<i64: 8, 896>}, {transform_indices = @transform_1, window_bounds = array<i64: 896, 512>}, {transform_indices = @transform_2, window_bounds = array<i64: 8, 512>}]} {
    %c0_i32 = arith.constant 0 : i32
    %0 = arith.cmpi eq, %arg2, %c0_i32 : i32
    %1 = arith.extui %0 : i1 to i32
    %c0_i32_0 = arith.constant 0 : i32
    %2 = arith.cmpi ne, %1, %c0_i32_0 : i32
    scf.if %2 {
      %cst_9 = arith.constant 0.000000e+00 : f32
      %12 = vector.broadcast %cst_9 : f32 to vector<8x512xf32>
      %c0_10 = arith.constant 0 : index
      %c0_11 = arith.constant 0 : index
      %13 = vector.load %arg6[%c0_10, %c0_11] : memref<8x512xf32, #tpu.memory_space<vmem>>, vector<8x512xf32>
      tpu.vector_store %arg6[%c0_10, %c0_11], %12 {strides = array<i32>} : memref<8x512xf32, #tpu.memory_space<vmem>>, vector<8x512xf32>,
    } else {
    }
    %c0 = arith.constant 0 : index
    %c0_1 = arith.constant 0 : index
    %3 = vector.load %arg6[%c0, %c0_1] : memref<8x512xf32, #tpu.memory_space<vmem>>, vector<8x512xf32>
    %c0_2 = arith.constant 0 : index
    %c0_3 = arith.constant 0 : index
    %4 = vector.load %arg3[%c0_2, %c0_3] : memref<8x896xbf16, #tpu.memory_space<vmem>>, vector<8x896xbf16>
    %c0_4 = arith.constant 0 : index
    %c0_5 = arith.constant 0 : index
    %5 = vector.load %arg4[%c0_4, %c0_5] : memref<896x512xbf16, #tpu.memory_space<vmem>>, vector<896x512xbf16>
    %cst = arith.constant dense<0.000000e+00> : vector<8x512xf32>
    %6 = tpu.matmul %4, %5, %cst {dimension_numbers = #tpu.dot_dimension_numbers<[1], [0], [0], [1], [0, 0, 1, 1], [], []>} : vector<8x896xbf16>, vector<896x512xbf16>, vector<8x512xf32> -> vector<8x512xf32>
    %7 = arith.addf %3, %6 : vector<8x512xf32>
    %c0_6 = arith.constant 0 : index
    %c0_7 = arith.constant 0 : index
    %8 = vector.load %arg6[%c0_6, %c0_7] : memref<8x512xf32, #tpu.memory_space<vmem>>, vector<8x512xf32>
    tpu.vector_store %arg6[%c0_6, %c0_7], %7 {strides = array<i32>} : memref<8x512xf32, #tpu.memory_space<vmem>>, vector<8x512xf32>,
    %c6_i32 = arith.constant 6 : i32
    %9 = arith.cmpi eq, %arg2, %c6_i32 : i32
    %10 = arith.extui %9 : i1 to i32
    %c0_i32_8 = arith.constant 0 : i32
    %11 = arith.cmpi ne, %10, %c0_i32_8 : i32
    scf.if %11 {
      %c0_9 = arith.constant 0 : index
      %c0_10 = arith.constant 0 : index
      %12 = vector.load %arg6[%c0_9, %c0_10] : memref<8x512xf32, #tpu.memory_space<vmem>>, vector<8x512xf32>
      %13 = arith.truncf %12 : vector<8x512xf32> to vector<8x512xbf16>
      %c0_11 = arith.constant 0 : index
      %c0_12 = arith.constant 0 : index
      %14 = vector.load %arg5[%c0_11, %c0_12] : memref<8x512xbf16, #tpu.memory_space<vmem>>, vector<8x512xbf16>
      tpu.vector_store %arg5[%c0_11, %c0_12], %13 {strides = array<i32>} : memref<8x512xbf16, #tpu.memory_space<vmem>>, vector<8x512xbf16>,
    } else {
    }
    return
  }
  func.func @transform_0(%arg0: i32, %arg1: i32, %arg2: i32) -> (i32, i32) {
    %c0_i32 = arith.constant 0 : i32
    return %arg0, %arg2 : i32, i32
  }
  func.func @transform_1(%arg0: i32, %arg1: i32, %arg2: i32) -> (i32, i32) {
    %c0_i32 = arith.constant 0 : i32
    return %arg2, %arg1 : i32, i32
  }
  func.func @transform_2(%arg0: i32, %arg1: i32, %arg2: i32) -> (i32, i32) {
    %c0_i32 = arith.constant 0 : i32
    return %arg0, %arg1 : i32, i32
  }
}

module attributes {stable_mosaic.version = 11 : i64} {
  func.func @_bn_single_kernel(%arg0: i32, %arg1: memref<2x1024xbf16, #tpu.memory_space<vmem>>, %arg2: memref<1x1024xf32, #tpu.memory_space<vmem>>, %arg3: memref<1x1024xf32, #tpu.memory_space<vmem>>, %arg4: memref<2x1024xbf16, #tpu.memory_space<vmem>>) attributes {dimension_semantics = [#tpu.dimension_semantics<arbitrary>], iteration_bounds = array<i64: 1>, scalar_prefetch = 0 : i64, scratch_operands = 0 : i64, tpu.core_type = #tpu.core_type<tc>, window_params = [{pipeline_mode = #tpu.pipeline_mode<synchronous>, transform_indices = @transform_0, window_bounds = array<i64: 2, 1024>}, {pipeline_mode = #tpu.pipeline_mode<synchronous>, transform_indices = @transform_1, window_bounds = array<i64: 1, 1024>}, {pipeline_mode = #tpu.pipeline_mode<synchronous>, transform_indices = @transform_2, window_bounds = array<i64: 1, 1024>}, {pipeline_mode = #tpu.pipeline_mode<synchronous>, transform_indices = @transform_3, window_bounds = array<i64: 2, 1024>}]} {
    %c0 = arith.constant 0 : index
    %c0_0 = arith.constant 0 : index
    %0 = vector.load %arg1[%c0, %c0_0] : memref<2x1024xbf16, #tpu.memory_space<vmem>>, vector<2x1024xbf16>
    %1 = arith.extf %0 : vector<2x1024xbf16> to vector<2x1024xf32>
    %cst = arith.constant dense<0.000000e+00> : vector<1024xf32>
    %2 = vector.multi_reduction <add>, %1, %cst [0] : vector<2x1024xf32> to vector<1024xf32>
    %3 = vector.shape_cast %2 : vector<1024xf32> to vector<1x1024xf32>
    %cst_1 = arith.constant 5.000000e-01 : f32
    %4 = vector.broadcast %cst_1 : f32 to vector<1x1024xf32>
    %5 = arith.mulf %3, %4 : vector<1x1024xf32>
    %6 = vector.broadcast %5 : vector<1x1024xf32> to vector<2x1024xf32>
    %7 = arith.subf %1, %6 : vector<2x1024xf32>
    %8 = arith.mulf %7, %7 : vector<2x1024xf32>
    %cst_2 = arith.constant dense<0.000000e+00> : vector<1024xf32>
    %9 = vector.multi_reduction <add>, %8, %cst_2 [0] : vector<2x1024xf32> to vector<1024xf32>
    %10 = vector.shape_cast %9 : vector<1024xf32> to vector<1x1024xf32>
    %cst_3 = arith.constant 5.000000e-01 : f32
    %11 = vector.broadcast %cst_3 : f32 to vector<1x1024xf32>
    %12 = arith.mulf %10, %11 : vector<1x1024xf32>
    %cst_4 = arith.constant 9.99999974E-6 : f32
    %13 = vector.broadcast %cst_4 : f32 to vector<1x1024xf32>
    %14 = arith.addf %12, %13 : vector<1x1024xf32>
    %15 = math.rsqrt %14 : vector<1x1024xf32>
    %c0_5 = arith.constant 0 : index
    %c0_6 = arith.constant 0 : index
    %16 = vector.load %arg2[%c0_5, %c0_6] : memref<1x1024xf32, #tpu.memory_space<vmem>>, vector<1x1024xf32>
    %17 = arith.mulf %15, %16 : vector<1x1024xf32>
    %18 = vector.broadcast %17 : vector<1x1024xf32> to vector<2x1024xf32>
    %19 = arith.mulf %7, %18 : vector<2x1024xf32>
    %c0_7 = arith.constant 0 : index
    %c0_8 = arith.constant 0 : index
    %20 = vector.load %arg3[%c0_7, %c0_8] : memref<1x1024xf32, #tpu.memory_space<vmem>>, vector<1x1024xf32>
    %21 = vector.broadcast %20 : vector<1x1024xf32> to vector<2x1024xf32>
    %22 = arith.addf %19, %21 : vector<2x1024xf32>
    %cst_9 = arith.constant 0.000000e+00 : f32
    %23 = vector.broadcast %cst_9 : f32 to vector<2x1024xf32>
    %24 = arith.cmpf ogt, %22, %23 : vector<2x1024xf32>
    %cst_10 = arith.constant 1.000000e-01 : f32
    %25 = vector.broadcast %cst_10 : f32 to vector<2x1024xf32>
    %26 = arith.mulf %25, %22 : vector<2x1024xf32>
    %27 = arith.select %24, %22, %26 : vector<2x1024xi1>, vector<2x1024xf32>
    %28 = arith.truncf %27 : vector<2x1024xf32> to vector<2x1024xbf16>
    %c0_11 = arith.constant 0 : index
    %c0_12 = arith.constant 0 : index
    %29 = vector.load %arg4[%c0_11, %c0_12] : memref<2x1024xbf16, #tpu.memory_space<vmem>>, vector<2x1024xbf16>
    tpu.vector_store %arg4[%c0_11, %c0_12], %28 {strides = array<i32>} : memref<2x1024xbf16, #tpu.memory_space<vmem>>, vector<2x1024xbf16>,
    return
  }
  func.func @transform_0(%arg0: i32) -> (i32, i32) {
    %c0_i32 = arith.constant 0 : i32
    %c0_i32_0 = arith.constant 0 : i32
    %c0_i32_1 = arith.constant 0 : i32
    return %c0_i32, %c0_i32_0 : i32, i32
  }
  func.func @transform_1(%arg0: i32) -> (i32, i32) {
    %c0_i32 = arith.constant 0 : i32
    %c0_i32_0 = arith.constant 0 : i32
    %c0_i32_1 = arith.constant 0 : i32
    return %c0_i32, %c0_i32_0 : i32, i32
  }
  func.func @transform_2(%arg0: i32) -> (i32, i32) {
    %c0_i32 = arith.constant 0 : i32
    %c0_i32_0 = arith.constant 0 : i32
    %c0_i32_1 = arith.constant 0 : i32
    return %c0_i32, %c0_i32_0 : i32, i32
  }
  func.func @transform_3(%arg0: i32) -> (i32, i32) {
    %c0_i32 = arith.constant 0 : i32
    %c0_i32_0 = arith.constant 0 : i32
    %c0_i32_1 = arith.constant 0 : i32
    return %c0_i32, %c0_i32_0 : i32, i32
  }
}

module attributes {stable_mosaic.version = 11 : i64} {
  func.func @_mm_kernel_nk1(%arg0: i32, %arg1: i32, %arg2: memref<8x1024xbf16, #tpu.memory_space<vmem>>, %arg3: memref<1024x128xbf16, #tpu.memory_space<vmem>>, %arg4: memref<1x128xf32, #tpu.memory_space<vmem>>, %arg5: memref<8x128xf32, #tpu.memory_space<vmem>>) attributes {dimension_semantics = [#tpu.dimension_semantics<parallel>, #tpu.dimension_semantics<parallel>], iteration_bounds = array<i64: 1, 2>, scalar_prefetch = 0 : i64, scratch_operands = 0 : i64, tpu.core_type = #tpu.core_type<tc>, window_params = [{transform_indices = @transform_0, window_bounds = array<i64: 8, 1024>}, {transform_indices = @transform_1, window_bounds = array<i64: 1024, 128>}, {transform_indices = @transform_2, window_bounds = array<i64: 1, 128>}, {transform_indices = @transform_3, window_bounds = array<i64: 8, 128>}]} {
    %c0 = arith.constant 0 : index
    %c0_0 = arith.constant 0 : index
    %0 = vector.load %arg2[%c0, %c0_0] : memref<8x1024xbf16, #tpu.memory_space<vmem>>, vector<8x1024xbf16>
    %c0_1 = arith.constant 0 : index
    %c0_2 = arith.constant 0 : index
    %1 = vector.load %arg3[%c0_1, %c0_2] : memref<1024x128xbf16, #tpu.memory_space<vmem>>, vector<1024x128xbf16>
    %cst = arith.constant dense<0.000000e+00> : vector<8x128xf32>
    %2 = tpu.matmul %0, %1, %cst {dimension_numbers = #tpu.dot_dimension_numbers<[1], [0], [0], [1], [0, 0, 1, 1], [], []>} : vector<8x1024xbf16>, vector<1024x128xbf16>, vector<8x128xf32> -> vector<8x128xf32>
    %c0_3 = arith.constant 0 : index
    %c0_4 = arith.constant 0 : index
    %3 = vector.load %arg4[%c0_3, %c0_4] : memref<1x128xf32, #tpu.memory_space<vmem>>, vector<1x128xf32>
    %4 = vector.broadcast %3 : vector<1x128xf32> to vector<8x128xf32>
    %5 = arith.addf %2, %4 : vector<8x128xf32>
    %c0_5 = arith.constant 0 : index
    %c0_6 = arith.constant 0 : index
    %6 = vector.load %arg5[%c0_5, %c0_6] : memref<8x128xf32, #tpu.memory_space<vmem>>, vector<8x128xf32>
    tpu.vector_store %arg5[%c0_5, %c0_6], %5 {strides = array<i32>} : memref<8x128xf32, #tpu.memory_space<vmem>>, vector<8x128xf32>,
    return
  }
  func.func @transform_0(%arg0: i32, %arg1: i32) -> (i32, i32) {
    %c0_i32 = arith.constant 0 : i32
    %c0_i32_0 = arith.constant 0 : i32
    return %arg0, %c0_i32 : i32, i32
  }
  func.func @transform_1(%arg0: i32, %arg1: i32) -> (i32, i32) {
    %c0_i32 = arith.constant 0 : i32
    %c0_i32_0 = arith.constant 0 : i32
    return %c0_i32, %arg1 : i32, i32
  }
  func.func @transform_2(%arg0: i32, %arg1: i32) -> (i32, i32) {
    %c0_i32 = arith.constant 0 : i32
    %c0_i32_0 = arith.constant 0 : i32
    return %c0_i32, %arg1 : i32, i32
  }
  func.func @transform_3(%arg0: i32, %arg1: i32) -> (i32, i32) {
    %c0_i32 = arith.constant 0 : i32
    return %arg0, %arg1 : i32, i32
  }
}

module attributes {stable_mosaic.version = 11 : i64} {
  func.func @_bn_single_kernel(%arg0: i32, %arg1: memref<2x128xf32, #tpu.memory_space<vmem>>, %arg2: memref<1x128xf32, #tpu.memory_space<vmem>>, %arg3: memref<1x128xf32, #tpu.memory_space<vmem>>, %arg4: memref<2x128xbf16, #tpu.memory_space<vmem>>) attributes {dimension_semantics = [#tpu.dimension_semantics<arbitrary>], iteration_bounds = array<i64: 1>, scalar_prefetch = 0 : i64, scratch_operands = 0 : i64, tpu.core_type = #tpu.core_type<tc>, window_params = [{pipeline_mode = #tpu.pipeline_mode<synchronous>, transform_indices = @transform_0, window_bounds = array<i64: 2, 128>}, {pipeline_mode = #tpu.pipeline_mode<synchronous>, transform_indices = @transform_1, window_bounds = array<i64: 1, 128>}, {pipeline_mode = #tpu.pipeline_mode<synchronous>, transform_indices = @transform_2, window_bounds = array<i64: 1, 128>}, {pipeline_mode = #tpu.pipeline_mode<synchronous>, transform_indices = @transform_3, window_bounds = array<i64: 2, 128>}]} {
    %c0 = arith.constant 0 : index
    %c0_0 = arith.constant 0 : index
    %0 = vector.load %arg1[%c0, %c0_0] : memref<2x128xf32, #tpu.memory_space<vmem>>, vector<2x128xf32>
    %cst = arith.constant dense<0.000000e+00> : vector<128xf32>
    %1 = vector.multi_reduction <add>, %0, %cst [0] : vector<2x128xf32> to vector<128xf32>
    %2 = vector.shape_cast %1 : vector<128xf32> to vector<1x128xf32>
    %cst_1 = arith.constant 5.000000e-01 : f32
    %3 = vector.broadcast %cst_1 : f32 to vector<1x128xf32>
    %4 = arith.mulf %2, %3 : vector<1x128xf32>
    %5 = vector.broadcast %4 : vector<1x128xf32> to vector<2x128xf32>
    %6 = arith.subf %0, %5 : vector<2x128xf32>
    %7 = arith.mulf %6, %6 : vector<2x128xf32>
    %cst_2 = arith.constant dense<0.000000e+00> : vector<128xf32>
    %8 = vector.multi_reduction <add>, %7, %cst_2 [0] : vector<2x128xf32> to vector<128xf32>
    %9 = vector.shape_cast %8 : vector<128xf32> to vector<1x128xf32>
    %cst_3 = arith.constant 5.000000e-01 : f32
    %10 = vector.broadcast %cst_3 : f32 to vector<1x128xf32>
    %11 = arith.mulf %9, %10 : vector<1x128xf32>
    %cst_4 = arith.constant 9.99999974E-6 : f32
    %12 = vector.broadcast %cst_4 : f32 to vector<1x128xf32>
    %13 = arith.addf %11, %12 : vector<1x128xf32>
    %14 = math.rsqrt %13 : vector<1x128xf32>
    %c0_5 = arith.constant 0 : index
    %c0_6 = arith.constant 0 : index
    %15 = vector.load %arg2[%c0_5, %c0_6] : memref<1x128xf32, #tpu.memory_space<vmem>>, vector<1x128xf32>
    %16 = arith.mulf %14, %15 : vector<1x128xf32>
    %17 = vector.broadcast %16 : vector<1x128xf32> to vector<2x128xf32>
    %18 = arith.mulf %6, %17 : vector<2x128xf32>
    %c0_7 = arith.constant 0 : index
    %c0_8 = arith.constant 0 : index
    %19 = vector.load %arg3[%c0_7, %c0_8] : memref<1x128xf32, #tpu.memory_space<vmem>>, vector<1x128xf32>
    %20 = vector.broadcast %19 : vector<1x128xf32> to vector<2x128xf32>
    %21 = arith.addf %18, %20 : vector<2x128xf32>
    %cst_9 = arith.constant 0.000000e+00 : f32
    %22 = vector.broadcast %cst_9 : f32 to vector<2x128xf32>
    %23 = arith.cmpf ogt, %21, %22 : vector<2x128xf32>
    %cst_10 = arith.constant 1.000000e-01 : f32
    %24 = vector.broadcast %cst_10 : f32 to vector<2x128xf32>
    %25 = arith.mulf %24, %21 : vector<2x128xf32>
    %26 = arith.select %23, %21, %25 : vector<2x128xi1>, vector<2x128xf32>
    %27 = arith.truncf %26 : vector<2x128xf32> to vector<2x128xbf16>
    %c0_11 = arith.constant 0 : index
    %c0_12 = arith.constant 0 : index
    %28 = vector.load %arg4[%c0_11, %c0_12] : memref<2x128xbf16, #tpu.memory_space<vmem>>, vector<2x128xbf16>
    tpu.vector_store %arg4[%c0_11, %c0_12], %27 {strides = array<i32>} : memref<2x128xbf16, #tpu.memory_space<vmem>>, vector<2x128xbf16>,
    return
  }
  func.func @transform_0(%arg0: i32) -> (i32, i32) {
    %c0_i32 = arith.constant 0 : i32
    %c0_i32_0 = arith.constant 0 : i32
    %c0_i32_1 = arith.constant 0 : i32
    return %c0_i32, %c0_i32_0 : i32, i32
  }
  func.func @transform_1(%arg0: i32) -> (i32, i32) {
    %c0_i32 = arith.constant 0 : i32
    %c0_i32_0 = arith.constant 0 : i32
    %c0_i32_1 = arith.constant 0 : i32
    return %c0_i32, %c0_i32_0 : i32, i32
  }
  func.func @transform_2(%arg0: i32) -> (i32, i32) {
    %c0_i32 = arith.constant 0 : i32
    %c0_i32_0 = arith.constant 0 : i32
    %c0_i32_1 = arith.constant 0 : i32
    return %c0_i32, %c0_i32_0 : i32, i32
  }
  func.func @transform_3(%arg0: i32) -> (i32, i32) {
    %c0_i32 = arith.constant 0 : i32
    %c0_i32_0 = arith.constant 0 : i32
    %c0_i32_1 = arith.constant 0 : i32
    return %c0_i32, %c0_i32_0 : i32, i32
  }
}

module attributes {stable_mosaic.version = 11 : i64} {
  func.func @_mm_kernel_nk1(%arg0: i32, %arg1: i32, %arg2: memref<8x128xbf16, #tpu.memory_space<vmem>>, %arg3: memref<128x128xbf16, #tpu.memory_space<vmem>>, %arg4: memref<1x128xf32, #tpu.memory_space<vmem>>, %arg5: memref<8x128xf32, #tpu.memory_space<vmem>>) attributes {dimension_semantics = [#tpu.dimension_semantics<parallel>, #tpu.dimension_semantics<parallel>], iteration_bounds = array<i64: 1, 1>, scalar_prefetch = 0 : i64, scratch_operands = 0 : i64, tpu.core_type = #tpu.core_type<tc>, window_params = [{transform_indices = @transform_0, window_bounds = array<i64: 8, 128>}, {transform_indices = @transform_1, window_bounds = array<i64: 128, 128>}, {transform_indices = @transform_2, window_bounds = array<i64: 1, 128>}, {transform_indices = @transform_3, window_bounds = array<i64: 8, 128>}]} {
    %c0 = arith.constant 0 : index
    %c0_0 = arith.constant 0 : index
    %0 = vector.load %arg2[%c0, %c0_0] : memref<8x128xbf16, #tpu.memory_space<vmem>>, vector<8x128xbf16>
    %c0_1 = arith.constant 0 : index
    %c0_2 = arith.constant 0 : index
    %1 = vector.load %arg3[%c0_1, %c0_2] : memref<128x128xbf16, #tpu.memory_space<vmem>>, vector<128x128xbf16>
    %cst = arith.constant dense<0.000000e+00> : vector<8x128xf32>
    %2 = tpu.matmul %0, %1, %cst {dimension_numbers = #tpu.dot_dimension_numbers<[1], [0], [0], [1], [0, 0, 1, 1], [], []>} : vector<8x128xbf16>, vector<128x128xbf16>, vector<8x128xf32> -> vector<8x128xf32>
    %c0_3 = arith.constant 0 : index
    %c0_4 = arith.constant 0 : index
    %3 = vector.load %arg4[%c0_3, %c0_4] : memref<1x128xf32, #tpu.memory_space<vmem>>, vector<1x128xf32>
    %4 = vector.broadcast %3 : vector<1x128xf32> to vector<8x128xf32>
    %5 = arith.addf %2, %4 : vector<8x128xf32>
    %c0_5 = arith.constant 0 : index
    %c0_6 = arith.constant 0 : index
    %6 = vector.load %arg5[%c0_5, %c0_6] : memref<8x128xf32, #tpu.memory_space<vmem>>, vector<8x128xf32>
    tpu.vector_store %arg5[%c0_5, %c0_6], %5 {strides = array<i32>} : memref<8x128xf32, #tpu.memory_space<vmem>>, vector<8x128xf32>,
    return
  }
  func.func @transform_0(%arg0: i32, %arg1: i32) -> (i32, i32) {
    %c0_i32 = arith.constant 0 : i32
    %c0_i32_0 = arith.constant 0 : i32
    return %arg0, %c0_i32 : i32, i32
  }
  func.func @transform_1(%arg0: i32, %arg1: i32) -> (i32, i32) {
    %c0_i32 = arith.constant 0 : i32
    %c0_i32_0 = arith.constant 0 : i32
    return %c0_i32, %arg1 : i32, i32
  }
  func.func @transform_2(%arg0: i32, %arg1: i32) -> (i32, i32) {
    %c0_i32 = arith.constant 0 : i32
    %c0_i32_0 = arith.constant 0 : i32
    return %c0_i32, %arg1 : i32, i32
  }
  func.func @transform_3(%arg0: i32, %arg1: i32) -> (i32, i32) {
    %c0_i32 = arith.constant 0 : i32
    return %arg0, %arg1 : i32, i32
  }
}

</mosaic_0001>

<bundles_post_ra>
// kernel: infogan_forward.16
= control target key start
LH: loop header
LB: loop body
LE: loop exit
PB: predicated region body
PF: predicated region fallthrough
CT: control target
= control target key end

     0   :  { %8 = vsyncpa [#allocation3], 0  ;;  %s855_s0 = inlined_call_operand.vmem [shape: bf16[2,1024], index: 0, kind: input, shape index: {}]   ;;  %s856_s1 = inlined_call_operand.hbm [shape: f32[1,1024], index: 1, kind: input, shape index: {}]   ;;  %s857_s2 = inlined_call_operand.hbm [shape: f32[1,1024], index: 2, kind: input, shape index: {}]   ;;  %s858_s3 = inlined_call_operand.vmem [shape: bf16[2,1024], index: 3, kind: output, shape index: {}]  }
   0x1   :  { %9 = vsyncpa [#allocation5], 0  ;;  %s713_s12 = smov [#allocation2]   ;;  %s714_s14 = smov [#allocation4]  }
   0x2   :  { %s18_s13 = sshll.u32 %s713_s12, 4  ;;  %s28_s15 = sshll.u32 %s714_s14, 4  ;;  %s19_s13 = int_to_ptr.vmem [resolvable:$true] %s18_s13  ;;  %s29_s15 = int_to_ptr.vmem [resolvable:$true] %s28_s15 }
   0x3   :  { %s665_s18 = scalar_lea.hbm %s856_s1, 128 }
   0x4   :  { %p666_p0 = scmp.ne.s32.totalorder %s856_s1, %s665_s18  ;;  %p669_p1 = scmp.lt.u32.totalorder %s665_s18, %s856_s1 }
   0x6   :  { %p671_p2 = pnand %p669_p1, %p666_p0 }
   0x8   :  { %674 = shalt.err (!%p671_p2)
}
   0x9   :  { %s675_s23 = scalar_lea.vmem %s19_s13, 128  ;;  %p680_p4 = scmp.lt.s32.totalorder %s19_s13, %s19_s13 }
   0xa   :  { %p676_p3 = scmp.ne.s32.totalorder %s19_s13, %s675_s23  ;;  %p681_p5 = scmp.lt.s32.totalorder %s675_s23, %s675_s23 }
   0xc   :  { %p682_p6 = por %p681_p5, %p680_p4 }
   0xe   :  { %p683_p7 = pnand %p682_p6, %p676_p3 }
  0x10   :  { %686 = shalt.err (!%p683_p7)
}
  0x11   :  { %21 = dma.hbm_to_vmem [thread:$0]  %s856_s1, 128, %s19_s13, [#allocation3]  }
  0x12   :  { %s687_s28 = scalar_lea.hbm %s857_s2, 128 }
  0x13   :  { %p688_p8 = scmp.ne.s32.totalorder %s857_s2, %s687_s28  ;;  %p691_p9 = scmp.lt.u32.totalorder %s687_s28, %s857_s2 }
  0x15   :  { %p693_p10 = pnand %p691_p9, %p688_p8 }
  0x17   :  { %696 = shalt.err (!%p693_p10)
}
  0x18   :  { %s697_s6 = scalar_lea.vmem %s29_s15, 128  ;;  %p702_p12 = scmp.lt.s32.totalorder %s29_s15, %s29_s15 }
  0x19   :  { %p698_p11 = scmp.ne.s32.totalorder %s29_s15, %s697_s6  ;;  %p703_p13 = scmp.lt.s32.totalorder %s697_s6, %s697_s6 }
  0x1b   :  { %p704_p0 = por %p703_p13, %p702_p12 }
  0x1d   :  { %p705_p1 = pnand %p704_p0, %p698_p11 }
  0x1f   :  { %708 = shalt.err (!%p705_p1)
}
  0x20   :  { %31 = dma.hbm_to_vmem [thread:$0]  %s857_s2, 128, %s29_s15, [#allocation5]  }
  0x21   :  { %709 = dma.done.wait [#allocation3], 128  }
  0x22   :  { %710 = vsyncadd [#allocation3], 4294967168 }
  0x23   :  { %711 = dma.done.wait [#allocation5], 128  }
  0x24   :  { %712 = vsyncadd [#allocation5], 4294967168  ;;  %v47_v0 = vlaneseq  ;;  %v715_v1 = vmov 1983009808   ;;  %v38_v6 = vld [vmem:[%s855_s0] sm:$0xff]  ;;  %vm85_vm0 = vcmask 1041408  }
  0x25   :  { %v45_v2 = vunpack.c.l.s4 %v715_v1  ;;  %v769_v7 = vunpack.c.l.bf16 %v38_v6  ;;  %v771_v8 = vunpack.c.h.bf16 %v38_v6 }
  0x26   :  { %v761_v3 = vshrl.u32 %v47_v0, 7 }
  0x27   :  { %v46_v4 = vunpack.c.0.s8 %v45_v2  ;;  %v43_v9 = vcombine.high %v769_v7, %v769_v7  ;;  %v60_v11 = vcombine.high %v771_v8, %v771_v8 }
  0x29   :  { %v764_v5 = vsub.s32 %v46_v4, %v761_v3 }
  0x2b   :  { %v50_v10 = vrot.slane %v769_v7, %v764_v5  ;;  %v67_v12 = vrot.slane %v771_v8, %v764_v5  ;;  %v57_v13 = vrot.slane %v43_v9, %v764_v5  ;;  %v74_v15 = vrot.slane %v60_v11, %v764_v5 }
  0x2d   :  { %v58_v14 = vcombine.high %v50_v10, %v50_v10  ;;  %v75_v16 = vcombine.high %v67_v12, %v67_v12  ;;  %v86_v17 = vsel %vm85_vm0, %v50_v10, 0.0  ;;  %v114_v18 = vsel %vm85_vm0, %v67_v12, 0.0 }
  0x2e   :  { %v59_v19 = vcombine.high %v57_v13, %v57_v13  ;;  %v76_v20 = vcombine.high %v74_v15, %v74_v15  ;;  %v87_v21 = vrot.slane %v86_v17, 4  ;;  %v100_v24 = vsel %vm85_vm0, %v57_v13, 0.0 }
  0x2f   :  { %v93_v22 = vsel %vm85_vm0, %v58_v14, 0.0  ;;  %v115_v25 = vrot.slane %v114_v18, 4  ;;  %v121_v26 = vsel %vm85_vm0, %v75_v16, 0.0  ;;  %v101_v28 = vrot.slane %v100_v24, 4 }
  0x30   :  { %v94_v23 = vrot.slane %v93_v22, 4  ;;  %v88_v27 = vadd.f32 %v87_v21, %v86_v17  ;;  %v107_v29 = vsel %vm85_vm0, %v59_v19, 0.0  ;;  %v122_v30 = vrot.slane %v121_v26, 4 }
  0x31   :  { %v108_v32 = vrot.slane %v107_v29, 4  ;;  %v116_v33 = vadd.f32 %v115_v25, %v114_v18  ;;  %v128_v34 = vsel %vm85_vm0, %v74_v15, 0.0  ;;  %v102_v36 = vadd.f32 %v101_v28, %v100_v24 }
  0x32   :  { %v95_v31 = vadd.f32 %v94_v23, %v93_v22  ;;  %v89_v35 = vrot.slane %v88_v27, 2  ;;  %v123_v37 = vadd.f32 %v122_v30, %v121_v26  ;;  %v129_v38 = vrot.slane %v128_v34, 4 }
  0x33   :  { %v109_v40 = vadd.f32 %v108_v32, %v107_v29  ;;  %v117_v41 = vrot.slane %v116_v33, 2  ;;  %v135_v42 = vsel %vm85_vm0, %v76_v20, 0.0  ;;  %v103_v44 = vrot.slane %v102_v36, 2 }
  0x34   :  { %v96_v39 = vrot.slane %v95_v31, 2  ;;  %v90_v43 = vadd.f32 %v89_v35, %v88_v27  ;;  %v124_v45 = vrot.slane %v123_v37, 2  ;;  %v130_v46 = vadd.f32 %v129_v38, %v128_v34 }
  0x35   :  { %v110_v48 = vrot.slane %v109_v40, 2  ;;  %v118_v49 = vadd.f32 %v117_v41, %v116_v33  ;;  %v136_v50 = vrot.slane %v135_v42, 4  ;;  %v104_v52 = vadd.f32 %v103_v44, %v102_v36 }
  0x36   :  { %v97_v47 = vadd.f32 %v96_v39, %v95_v31  ;;  %v91_v51 = vrot.slane %v90_v43, 1  ;;  %v125_v53 = vadd.f32 %v124_v45, %v123_v37  ;;  %v131_v54 = vrot.slane %v130_v46, 2 }
  0x37   :  { %v111_v56 = vadd.f32 %v110_v48, %v109_v40  ;;  %v119_v57 = vrot.slane %v118_v49, 1  ;;  %v137_v58 = vadd.f32 %v136_v50, %v135_v42  ;;  %v105_v60 = vrot.slane %v104_v52, 1 }
  0x38   :  { %v98_v55 = vrot.slane %v97_v47, 1  ;;  %v92_v59 = vadd.f32 %v91_v51, %v90_v43  ;;  %v126_v61 = vrot.slane %v125_v53, 1  ;;  %v132_v62 = vadd.f32 %v131_v54, %v130_v46 }
  0x39   :  { %v112_v0 = vrot.slane %v111_v56, 1  ;;  %v120_v1 = vadd.f32 %v119_v57, %v118_v49  ;;  %v138_v2 = vrot.slane %v137_v58, 2  ;;  %v106_v4 = vadd.f32 %v105_v60, %v104_v52 }
  0x3a   :  { %v99_v63 = vadd.f32 %v98_v55, %v97_v47  ;;  %v127_v6 = vadd.f32 %v126_v61, %v125_v53  ;;  %v133_v9 = vrot.slane %v132_v62, 1  ;;  %v142_v10 = vmul.f32 0.5, %v92_v59 }
  0x3b   :  { %v113_v11 = vadd.f32 %v112_v0, %v111_v56  ;;  %v139_v12 = vadd.f32 %v138_v2, %v137_v58  ;;  %v146_v14 = vmul.f32 0.5, %v120_v1  ;;  %v144_v16 = vmul.f32 0.5, %v106_v4 }
  0x3c   :  { %v143_v13 = vmul.f32 0.5, %v99_v63  ;;  %v134_v15 = vadd.f32 %v133_v9, %v132_v62  ;;  %v147_v17 = vmul.f32 0.5, %v127_v6 }
  0x3d   :  { %v140_v18 = vrot.slane %v139_v12, 1  ;;  %v145_v19 = vmul.f32 0.5, %v113_v11 }
  0x3e   :  { %v158_v20 = vcombine.low %v142_v10, %v143_v13  ;;  %v148_v21 = vmul.f32 0.5, %v134_v15  ;;  %v175_v25 = vcombine.low %v146_v14, %v147_v17 }
  0x3f   :  { %v141_v22 = vadd.f32 %v140_v18, %v139_v12  ;;  %v159_v23 = vcombine.low %v144_v16, %v145_v19 }
  0x40   :  { %v166_v24 = vrot.slane %v158_v20, %v764_v5  ;;  %v183_v30 = vrot.slane %v175_v25, %v764_v5 }
  0x41   :  { %v149_v26 = vmul.f32 0.5, %v141_v22  ;;  %v173_v27 = vrot.slane %v159_v23, %v764_v5 }
  0x43   :  { %v174_v28 = vcombine.low %v166_v24, %v173_v27  ;;  %v176_v29 = vcombine.low %v148_v21, %v149_v26 }
  0x45   :  { %v190_v31 = vrot.slane %v176_v29, %v764_v5  ;;  %v796_v32 = vsub.f32 %v769_v7, %v174_v28 }
  0x47   :  { %v191_v33 = vcombine.low %v183_v30, %v190_v31  ;;  %v196_v34 = vmul.f32 %v796_v32, %v796_v32 }
  0x49   :  { %v801_v35 = vsub.f32 %v771_v8, %v191_v33  ;;  %v200_v36 = vcombine.high %v196_v34, %v196_v34  ;;  %v207_v37 = vrot.slane %v196_v34, %v764_v5 }
  0x4b   :  { %v197_v38 = vmul.f32 %v801_v35, %v801_v35  ;;  %v214_v39 = vrot.slane %v200_v36, %v764_v5  ;;  %v215_v40 = vcombine.high %v207_v37, %v207_v37  ;;  %v242_v41 = vsel %vm85_vm0, %v207_v37, 0.0 }
  0x4c   :  { %v243_v7 = vrot.slane %v242_v41, 4 }
  0x4d   :  { %v216_v42 = vcombine.high %v214_v39, %v214_v39  ;;  %v217_v43 = vcombine.high %v197_v38, %v197_v38  ;;  %v224_v44 = vrot.slane %v197_v38, %v764_v5  ;;  %v249_v45 = vsel %vm85_vm0, %v215_v40, 0.0 }
  0x4e   :  { %v244_v8 = vadd.f32 %v243_v7, %v242_v41  ;;  %v250_v46 = vrot.slane %v249_v45, 4  ;;  %v256_v47 = vsel %vm85_vm0, %v214_v39, 0.0 }
  0x4f   :  { %v231_v48 = vrot.slane %v217_v43, %v764_v5  ;;  %v232_v49 = vcombine.high %v224_v44, %v224_v44  ;;  %v257_v50 = vrot.slane %v256_v47, 4  ;;  %v263_v51 = vsel %vm85_vm0, %v216_v42, 0.0 }
  0x50   :  { %v245_v52 = vrot.slane %v244_v8, 2  ;;  %v251_v53 = vadd.f32 %v250_v46, %v249_v45  ;;  %v264_v54 = vrot.slane %v263_v51, 4  ;;  %v270_v55 = vsel %vm85_vm0, %v224_v44, 0.0 }
  0x51   :  { %v233_v56 = vcombine.high %v231_v48, %v231_v48  ;;  %v258_v57 = vadd.f32 %v257_v50, %v256_v47  ;;  %v271_v58 = vrot.slane %v270_v55, 4  ;;  %v277_v59 = vsel %vm85_vm0, %v232_v49, 0.0 }
  0x52   :  { %v246_v60 = vadd.f32 %v245_v52, %v244_v8  ;;  %v252_v61 = vrot.slane %v251_v53, 2  ;;  %v265_v62 = vadd.f32 %v264_v54, %v263_v51  ;;  %v278_v63 = vrot.slane %v277_v59, 4  ;;  %v322_v54 = vld [vmem:[#allocation2] sm:$0xff] }
  0x53   :  { %v259_v0 = vrot.slane %v258_v57, 2  ;;  %v272_v1 = vadd.f32 %v271_v58, %v270_v55  ;;  %v284_v2 = vsel %vm85_vm0, %v231_v48, 0.0  ;;  %v291_v4 = vsel %vm85_vm0, %v233_v56, 0.0 }
  0x54   :  { %v247_v6 = vrot.slane %v246_v60, 1  ;;  %v253_v9 = vadd.f32 %v252_v61, %v251_v53  ;;  %v266_v10 = vrot.slane %v265_v62, 2  ;;  %v279_v11 = vadd.f32 %v278_v63, %v277_v59  ;;  %v450_v63 = vld [vmem:[#allocation4] sm:$0xff] }
  0x55   :  { %v260_v12 = vadd.f32 %v259_v0, %v258_v57  ;;  %v273_v13 = vrot.slane %v272_v1, 2  ;;  %v285_v14 = vrot.slane %v284_v2, 4  ;;  %v292_v15 = vrot.slane %v291_v4, 4 }
  0x56   :  { %v248_v16 = vadd.f32 %v247_v6, %v246_v60  ;;  %v254_v17 = vrot.slane %v253_v9, 1  ;;  %v267_v18 = vadd.f32 %v266_v10, %v265_v62  ;;  %v280_v19 = vrot.slane %v279_v11, 2 }
  0x57   :  { %v261_v20 = vrot.slane %v260_v12, 1  ;;  %v274_v21 = vadd.f32 %v273_v13, %v272_v1  ;;  %v286_v22 = vadd.f32 %v285_v14, %v284_v2  ;;  %v293_v23 = vadd.f32 %v292_v15, %v291_v4 }
  0x58   :  { %v255_v24 = vadd.f32 %v254_v17, %v253_v9  ;;  %v268_v25 = vrot.slane %v267_v18, 1  ;;  %v281_v26 = vadd.f32 %v280_v19, %v279_v11  ;;  %v298_v27 = vmul.f32 0.5, %v248_v16 }
  0x59   :  { %v262_v28 = vadd.f32 %v261_v20, %v260_v12  ;;  %v275_v29 = vrot.slane %v274_v21, 1  ;;  %v287_v30 = vrot.slane %v286_v22, 2  ;;  %v294_v31 = vrot.slane %v293_v23, 2 }
  0x5a   :  { %v269_v33 = vadd.f32 %v268_v25, %v267_v18  ;;  %v282_v34 = vrot.slane %v281_v26, 1  ;;  %v299_v36 = vmul.f32 0.5, %v255_v24  ;;  %v306_v37 = vadd.f32 1e-05, %v298_v27 }
  0x5b   :  { %v276_v38 = vadd.f32 %v275_v29, %v274_v21  ;;  %v288_v39 = vadd.f32 %v287_v30, %v286_v22  ;;  %v295_v40 = vadd.f32 %v294_v31, %v293_v23  ;;  %v300_v41 = vmul.f32 0.5, %v262_v28 }
  0x5c   :  { %v283_v7 = vadd.f32 %v282_v34, %v281_v26  ;;  %v301_v42 = vmul.f32 0.5, %v269_v33  ;;  %v307_v43 = vadd.f32 1e-05, %v299_v36  ;;  %649 = vrsqrt.f32 %v306_v37 }
  0x5d   :  { %v289_v44 = vrot.slane %v288_v39, 1  ;;  %v296_v45 = vrot.slane %v295_v40, 1  ;;  %v302_v8 = vmul.f32 0.5, %v276_v38  ;;  %v308_v46 = vadd.f32 1e-05, %v300_v41 }
  0x5e   :  { %v303_v47 = vmul.f32 0.5, %v283_v7  ;;  %v309_v48 = vadd.f32 1e-05, %v301_v42  ;;  %651 = vrsqrt.f32 %v307_v43  ;;  %v818_v49 = vsub.s32 0, %v761_v3 }
  0x5f   :  { %v290_v50 = vadd.f32 %v289_v44, %v288_v39  ;;  %v297_v51 = vadd.f32 %v296_v45, %v295_v40  ;;  %v310_v52 = vadd.f32 1e-05, %v302_v8  ;;  %653 = vrsqrt.f32 %v308_v46 }
  0x60   :  { %v311_v53 = vadd.f32 1e-05, %v303_v47  ;;  %655 = vrsqrt.f32 %v309_v48  ;;  %v330_v57 = vsub.s32 1, %v761_v3  ;;  %v334_v58 = vsub.s32 2, %v761_v3 }
  0x61   :  { %v304_v55 = vmul.f32 0.5, %v290_v50  ;;  %v305_v56 = vmul.f32 0.5, %v297_v51  ;;  %657 = vrsqrt.f32 %v310_v52  ;;  %v327_v61 = vrot.slane %v322_v54, %v818_v49 }
  0x62   :  { %659 = vrsqrt.f32 %v311_v53  ;;  %v338_v62 = vsub.s32 3, %v761_v3  ;;  %v342_v0 = vsub.s32 4, %v761_v3  ;;  %v346_v1 = vsub.s32 5, %v761_v3 }
  0x63   :  { %v312_v59 = vadd.f32 1e-05, %v304_v55  ;;  %v313_v60 = vadd.f32 1e-05, %v305_v56  ;;  %v331_v2 = vrot.slane %v322_v54, %v330_v57  ;;  %v350_v4 = vsub.s32 6, %v761_v3 }
  0x64   :  { %v354_v6 = vsub.s32 7, %v761_v3  ;;  %v335_v10 = vrot.slane %v322_v54, %v334_v58  ;;  %v455_v11 = vrot.slane %v450_v63, %v818_v49  ;;  %v459_v12 = vrot.slane %v450_v63, %v330_v57 }
  0x65   :  { %661 = vrsqrt.f32 %v312_v59  ;;  %v339_v13 = vrot.slane %v322_v54, %v338_v62  ;;  %v463_v15 = vrot.slane %v450_v63, %v334_v58  ;;  %v467_v16 = vrot.slane %v450_v63, %v338_v62 }
  0x66   :  { %v650_v9 = vpop.eup %649  ;;  %663 = vrsqrt.f32 %v313_v60  ;;  %v343_v18 = vrot.slane %v322_v54, %v342_v0  ;;  %v347_v20 = vrot.slane %v322_v54, %v346_v1  ;;  %v351_v24 = vrot.slane %v322_v54, %v350_v4 }
  0x67   :  { %v364_v14 = vmul.f32 %v650_v9, %v327_v61  ;;  %v355_v25 = vrot.slane %v322_v54, %v354_v6  ;;  %v484_v27 = vcombine.low %v455_v11, %v459_v12  ;;  %v471_v31 = vrot.slane %v450_v63, %v342_v0 }
  0x68   :  { %v652_v17 = vpop.eup %651  ;;  %v485_v33 = vcombine.low %v463_v15, %v467_v16  ;;  %v475_v38 = vrot.slane %v450_v63, %v346_v1  ;;  %v479_v39 = vrot.slane %v450_v63, %v350_v4  ;;  %v483_v42 = vrot.slane %v450_v63, %v354_v6 }
  0x69   :  { %v654_v19 = vpop.eup %653  ;;  %v365_v21 = vmul.f32 %v652_v17, %v331_v2  ;;  %v375_v22 = vrot.slane %v364_v14, %v818_v49  ;;  %v492_v44 = vrot.slane %v484_v27, %v764_v5  ;;  %v716_v6 = vmov 1966171168  }
  0x6a   :  { %v656_v23 = vpop.eup %655  ;;  %v366_v26 = vmul.f32 %v654_v19, %v335_v10  ;;  %v499_v48 = vrot.slane %v485_v33, %v764_v5  ;;  %v501_v52 = vcombine.low %v471_v31, %v475_v38  ;;  %v502_v56 = vcombine.low %v479_v39, %v483_v42 }
  0x6b   :  { %v658_v28 = vpop.eup %657  ;;  %v367_v29 = vmul.f32 %v656_v23, %v339_v13  ;;  %v379_v30 = vrot.slane %v365_v21, %v818_v49  ;;  %v589_v9 = vunpack.c.l.s4 %v716_v6 }
  0x6c   :  { %v660_v34 = vpop.eup %659  ;;  %v368_v36 = vmul.f32 %v658_v28, %v343_v18  ;;  %v383_v37 = vrot.slane %v366_v26, %v818_v49  ;;  %v500_v60 = vcombine.low %v492_v44, %v499_v48  ;;  %v509_v61 = vrot.slane %v501_v52, %v764_v5 }
  0x6d   :  { %v369_v40 = vmul.f32 %v660_v34, %v347_v20  ;;  %v387_v41 = vrot.slane %v367_v29, %v818_v49  ;;  %v412_v7 = vcombine.low %v375_v22, %v379_v30  ;;  %v516_v1 = vrot.slane %v502_v56, %v764_v5 }
  0x6e   :  { %v391_v43 = vrot.slane %v368_v36, %v818_v49  ;;  %v590_v15 = vunpack.c.0.s8 %v589_v9 }
  0x6f   :  { %v662_v45 = vpop.eup %661  ;;  %v395_v8 = vrot.slane %v369_v40, %v818_v49  ;;  %v413_v46 = vcombine.low %v383_v37, %v387_v41  ;;  %v420_v47 = vrot.slane %v412_v7, %v764_v5  ;;  %v517_v11 = vcombine.low %v509_v61, %v516_v1 }
  0x70   :  { %v664_v50 = vpop.eup %663  ;;  %v370_v51 = vmul.f32 %v662_v45, %v351_v24  ;;  %v593_v21 = vsub.s32 %v590_v15, %v761_v3 }
  0x71   :  { %v371_v53 = vmul.f32 %v664_v50, %v355_v25  ;;  %v427_v54 = vrot.slane %v413_v46, %v764_v5  ;;  %v429_v55 = vcombine.low %v391_v43, %v395_v8 }
  0x72   :  { %v399_v57 = vrot.slane %v370_v51, %v818_v49 }
  0x73   :  { %v403_v58 = vrot.slane %v371_v53, %v818_v49  ;;  %v428_v59 = vcombine.low %v420_v47, %v427_v54  ;;  %v437_v63 = vrot.slane %v429_v55, %v764_v5 }
  0x75   :  { %v430_v62 = vcombine.low %v399_v57, %v403_v58  ;;  %v448_v0 = vmul.f32 %v428_v59, %v796_v32 }
  0x77   :  { %v444_v2 = vrot.slane %v430_v62, %v764_v5  ;;  %v520_v4 = vadd.f32 %v500_v60, %v448_v0 }
  0x79   :  { %v445_v10 = vcombine.low %v437_v63, %v444_v2  ;;  %v522_v12 = vmax.f32 %v520_v4, 0.0 }
  0x7b   :  { %v449_v49 = vmul.f32 %v445_v10, %v801_v35  ;;  %v526_v13 = vcombine.high %v522_v12, %v522_v12  ;;  %v533_v14 = vrot.slane %v522_v12, %v764_v5 }
  0x7d   :  { %v521_v16 = vadd.f32 %v517_v11, %v449_v49  ;;  %v540_v17 = vrot.slane %v526_v13, %v764_v5  ;;  %v541_v32 = vcombine.high %v533_v14, %v533_v14 }
  0x7f   :  { %v523_v18 = vmax.f32 %v521_v16, 0.0  ;;  %v542_v19 = vcombine.high %v540_v17, %v540_v17  ;;  %v641_v20 = vpack.c.bf16 %v541_v32, %v533_v14 }
  0x81   :  { %v543_v22 = vcombine.high %v523_v18, %v523_v18  ;;  %v550_v23 = vrot.slane %v523_v18, %v764_v5  ;;  %v642_v24 = vpack.c.bf16 %v542_v19, %v540_v17  ;;  %v594_v26 = vrot.slane %v641_v20, %v593_v21 }
  0x83   :  { %v557_v25 = vrot.slane %v543_v22, %v764_v5  ;;  %v558_v35 = vcombine.high %v550_v23, %v550_v23  ;;  %v601_v27 = vrot.slane %v642_v24, %v593_v21 }
  0x85   :  { %v559_v28 = vcombine.high %v557_v25, %v557_v25  ;;  %v643_v29 = vpack.c.bf16 %v558_v35, %v550_v23  ;;  %v616_v33 = vcombine.low %v594_v26, %v601_v27 }
  0x87   :  { %v644_v30 = vpack.c.bf16 %v559_v28, %v557_v25  ;;  %v608_v31 = vrot.slane %v643_v29, %v593_v21  ;;  %v624_v37 = vrot.slane %v616_v33, %v593_v21 }
  0x89   :  { %v615_v34 = vrot.slane %v644_v30, %v593_v21 }
  0x8b   :  { %v617_v36 = vcombine.low %v608_v31, %v615_v34 }
  0x8d   :  { %v631_v38 = vrot.slane %v617_v36, %v593_v21 }
  0x8f   :  { %v632_v39 = vcombine.low %v624_v37, %v631_v38 }
  0x91   :  { %634 = vst [vmem:[%s858_s3] sm:$0xff] %v632_v39 }
  0x92   :  { %639 = vsyncpa [#allocation3], 1 }
  0x93   :  { %640 = vsyncpa [#allocation5], 1 }

// kernel: infogan_forward.15
= control target key start
LH: loop header
LB: loop body
LE: loop exit
PB: predicated region body
PF: predicated region fallthrough
CT: control target
= control target key end

     0   :  { %7 = vsyncpa [#allocation3], 0  ;;  %s925_s0 = inlined_call_operand.vmem [shape: bf16[8,74], index: 0, kind: input, shape index: {}]   ;;  %s926_s1 = inlined_call_operand.hbm [shape: bf16[74,1024], index: 1, kind: input, shape index: {}]   ;;  %s927_s2 = inlined_call_operand.vmem [shape: bf16[8,1024], index: 2, kind: output, shape index: {}]  }
   0x1   :  { %9 = vsyncpa [#allocation3 + $0x1], 0  ;;  %s781_s9 = smov 0   ;;  %s783_s10 = smov 0  }
   0x2   :  { %s785_s11 = smov 0   ;;  %s787_s12 = smov 0  }
   0x3   :  { %s789_s13 = smov 0   ;;  %s791_s14 = smov 0  }
   0x4 LB: > { %s547_s15 = sadd.s32 4294967295, %s759_s14   ;;  %s24_s16 = sadd.s32 1, %s755_s13  ;;  %s759_s14 = sphi %s791_s14, %s15_s14   ;;  %s755_s13 = sphi %s789_s13, %s935_s13   ;;  %s751_s12 = sphi %s787_s12, %s934_s12   ;;  %s747_s11 = sphi %s785_s11, %s933_s11   ;;  %s743_s10 = sphi %s783_s10, %s932_s10   ;;  %s739_s9 = sphi %s781_s9, %s931_s9  }
   0x5   : > { %p25_p0 = scmp.ge.s32.totalorder %s24_s16, 2  ;;  %s60_s17 = sadd.s32 1, %s747_s11 }
   0x6   : > { %p67_p1 = scmp.ne.s32.totalorder %s747_s11, %s743_s10  ;;  %p68_p2 = scmp.eq.s32.totalorder %s759_s14, 0 }
   0x7   : > { %s937_s16 = smov (%p25_p0, %s24_s16), 0  ;;  %p73_p4 = scmp.ne.s32.totalorder %s743_s10, %s739_s9 }
   0x8   : > { %p69_p3 = por %p68_p2, %p67_p1  ;;  %s57_s18 = ssub.s32 %s755_s13, %s937_s16 }
   0x9   : > { %p74_p5 = scmp.eq.s32.totalorder %s547_s15, 0  ;;  %p58_p6 = scmp.eq.s32.totalorder %s57_s18, 0 }
   0xa   : > { %p596_p8 = scmp.lt.s32.totalorder %s759_s14, 2  ;;  %s132_s21 = sand.u32 1, %s747_s11  }
   0xb   : > { %p820_p7 = por %p74_p5, %p73_p4  ;;  %s585_s22 = sshll.u32 %s755_s13, 8 }
   0xc   : > { %s826_s20 = scalar_select %p58_p6, %s747_s11, %s60_s17  }
   0xd   : > { %s588_s23 = smul.u32 160, %s132_s21  ;;  %s833_s26 = scalar_lea.hbm %s926_s1, %s585_s22 }
   0xe   : > { %p835_p9 = pnand %p596_p8, %p69_p3  ;;  %s842_s30 = scalar_lea.sflag [#allocation3], %s132_s21 }
   0xf   : > { %s136_s28 = scalar_lea.vmem [#allocation2], %s588_s23  ;;  %s679_s3 = scalar_lea.hbm %s833_s26, 2560 }
  0x10   : > { %s143_s29 = sshll.u32 %s136_s28, 4  ;;  %p680_p11 = scmp.ne.s32.totalorder %s833_s26, %s679_s3  ;;  %s839_s29 = int_to_ptr.vmem [resolvable:$true] %s143_s29 }
  0x11   : > { %p681_p12 = pneg %p835_p9  ;;  %s684_s6 = scalar_lea.hbm %s926_s1, 5120 }
  0x12   : > { %p685_p1 = scmp.lt.u32.totalorder %s833_s26, %s926_s1  ;;  %p686_p2 = scmp.lt.u32.totalorder %s684_s6, %s679_s3 }
  0x13   : > { %p682_p13 = pnand %p681_p12, %p680_p11  ;;  %p688_p4 = scmp.lt.u32.totalorder %s679_s3, %s833_s26 }
  0x14   : > { %p687_p3 = por %p686_p2, %p685_p1 }
  0x15   : > { %p683_p0 = pneg %p682_p13 }
  0x16   : > { %p689_p5 = por %p688_p4, %p687_p3 }
  0x18   : > { %p690_p6 = pnand %p689_p5, %p683_p0 }
  0x1a   : > { %693 = shalt.err (!%p690_p6)
}
  0x1b   : > { %s694_s9 = scalar_lea.vmem %s839_s29, 2560  ;;  %s761_s15 = smov [#allocation2]  }
  0x1c   : > { %p695_p8 = scmp.ne.s32.totalorder %s839_s29, %s694_s9  ;;  %s699_s17 = sshll.u32 %s761_s15, 4  ;;  %s700_s17 = int_to_ptr.vmem [resolvable:$false] %s699_s17 }
  0x1d   : > { %s701_s18 = scalar_lea.vmem %s700_s17, 5120  ;;  %p702_p10 = scmp.lt.s32.totalorder %s839_s29, %s700_s17 }
  0x1e   : > { %p697_p11 = pnand %p695_p8, %p681_p12  ;;  %p703_p1 = scmp.lt.s32.totalorder %s701_s18, %s694_s9 }
  0x20   : > { %p698_p13 = pneg %p697_p11  ;;  %p704_p2 = por %p703_p1, %p702_p10 }
  0x22   : > { %p705_p3 = pnand %p704_p2, %p698_p13 }
  0x24   : > { %708 = shalt.err (!%p705_p3)
}
  0x25   : > { %s762_s21 = smov 512   ;;  %s763_s22 = smov 256  }
  0x26   : > { %s764_s23 = smov 16   ;;  %p151_p12 = scmp.lt.s32.totalorder %s759_s14, 3 }
  0x27   : > { %595 = dma.hbm_to_vmem [thread:$0]  (!%p835_p9), %s833_s26, 2560, %s839_s29, %s842_s30, %s762_s21, %s763_s22, %s764_s23  }
  0x28   : > { %p930_p0 = scmp.ge.s32.totalorder %s759_s14, 1 }
  0x2a   : > { %p152_p4 = pnand %p930_p0, %p151_p12 }
  0x2b   : > { %s157_s24 = sand.u32 (!%p152_p4), 1, %s743_s10  }
  0x2c   : > { %155 = sbr.rel (%p152_p4) target bundleno = 290 (0x122), region = 28  ;;  %s158_s28 = scalar_lea.sflag (!%p152_p4), [#allocation3], %s157_s24 }
  0x2d   : > { %s589_s25 = smul.u32 (!%p152_p4), 160, %s157_s24 }
  0x2f   : > { %s874_s3 = scalar_lea.vmem (!%p152_p4), [#allocation2], %s589_s25 }
  0x33   : > { %734 = dma.done.wait (%p820_p7), %s158_s28, 2560  }
  0x34   : > { %736 = vsyncadd (%p820_p7), %s158_s28, 4294964736  ;;  %v765_v0 = vmov 0   ;;  %v649_v1 = vld [vmem:[%s874_s3 + $0x4] ss:$16 sps:$4 sm:$0xff]   ;;  %v651_v2 = vld [vmem:[%s874_s3 + $0xc] ss:$16 sps:$4 sm:$0xff]  }
  0x35   : > { %372 = vmatprep.mubr.bf16.mxu0 %v765_v0  ;;  %413 = vmatprep.mubr.bf16.mxu1 %v765_v0  ;;  %v653_v3 = vld [vmem:[%s874_s3] ss:$16 sps:$4 sm:$0xff]   ;;  %v654_v4 = vld [vmem:[%s874_s3 + $0x8] ss:$16 sps:$4 sm:$0xff]   ;;  %v655_v5 = vld [vmem:[%s874_s3 + $0x24] ss:$16 sps:$4 sm:$0xff]  }
  0x36   : > { %340 = vmatprep.subr.bf16.mxu0 %v649_v1  ;;  %381 = vmatprep.subr.bf16.mxu1 %v651_v2  ;;  %v657_v6 = vld [vmem:[%s874_s3 + $0x2c] ss:$16 sps:$4 sm:$0xff]   ;;  %v659_v7 = vld [vmem:[%s874_s3 + $0x20] ss:$16 sps:$4 sm:$0xff]   ;;  %v660_v8 = vld [vmem:[%s874_s3 + $0x28] ss:$16 sps:$4 sm:$0xff]  }
  0x37   : > { %341 = vmatpush1.bf16.msra.mxu0 %v653_v3  ;;  %382 = vmatpush1.bf16.msra.mxu1 %v654_v4  ;;  %v661_v9 = vld [vmem:[%s874_s3 + $0x44] ss:$16 sps:$4 sm:$0xff]   ;;  %v663_v10 = vld [vmem:[%s874_s3 + $0x4c] ss:$16 sps:$4 sm:$0xff]   ;;  %v665_v11 = vld [vmem:[%s874_s3 + $0x40] ss:$16 sps:$4 sm:$0xff]  }
  0x38   : > { %342 = vmatprep.subr.bf16.mxu0 %v655_v5  ;;  %383 = vmatprep.subr.bf16.mxu1 %v657_v6  ;;  %v666_v12 = vld [vmem:[%s874_s3 + $0x48] ss:$16 sps:$4 sm:$0xff]   ;;  %v667_v13 = vld [vmem:[%s874_s3 + $0x64] ss:$16 sps:$4 sm:$0xff]   ;;  %v669_v14 = vld [vmem:[%s874_s3 + $0x6c] ss:$16 sps:$4 sm:$0xff]  }
  0x39   : > { %v671_v15 = vld [vmem:[%s874_s3 + $0x60] ss:$16 sps:$4 sm:$0xff]   ;;  %v672_v16 = vld [vmem:[%s874_s3 + $0x68] ss:$16 sps:$4 sm:$0xff]   ;;  %vm327_vm0 = vcmask 1044480   ;;  %vm323_vm1 = vcmask 605184  }
  0x3a   : > { %v673_v17 = vld [vmem:[%s874_s3 + $0x84] ss:$16 sps:$4 sm:$0x1f]   ;;  %v675_v18 = vld [vmem:[%s874_s3 + $0x8c] ss:$16 sps:$4 sm:$0x1f]  }
  0x3b   : > { %343 = vmatpush1.bf16.msra.mxu0 %v659_v7  ;;  %384 = vmatpush1.bf16.msra.mxu1 %v660_v8  ;;  %v677_v19 = vld [vmem:[%s874_s3 + $0x80] ss:$16 sps:$4 sm:$0x1f]   ;;  %v678_v20 = vld [vmem:[%s874_s3 + $0x88] ss:$16 sps:$4 sm:$0x1f]  }
  0x3c   : > { %344 = vmatprep.subr.bf16.mxu0 %v661_v9  ;;  %385 = vmatprep.subr.bf16.mxu1 %v663_v10  ;;  %v329_v21 = vsel %vm327_vm0, %v677_v19, 0  ;;  %v335_v22 = vsel %vm327_vm0, %v678_v20, 0  ;;  %v206_v23 = vld [vmem:[%s925_s0] sm:$0xf]  ;;  %s555_s27 = sshll.u32 %s751_s12, 2 }
  0x3d   : > { %p198_p7 = scmp.lt.s32.totalorder %s555_s27, 7 }
  0x3f   : > { %345 = vmatpush1.bf16.msra.mxu0 %v665_v11  ;;  %386 = vmatpush1.bf16.msra.mxu1 %v666_v12  ;;  %s939_s27 = smov (!%p198_p7, %s555_s27), 7 }
  0x40   : > { %346 = vmatprep.subr.bf16.mxu0 %v667_v13  ;;  %387 = vmatprep.subr.bf16.mxu1 %v669_v14  ;;  %s556_s29 = sshll.u32 %s939_s27, 2 }
  0x41   : > { %s203_s5 = scalar_lea.vmem %s927_s2, %s556_s29 }
  0x43   : > { %347 = vmatpush1.bf16.msra.mxu0 %v671_v15  ;;  %388 = vmatpush1.bf16.msra.mxu1 %v672_v16 }
  0x44   : > { %577 = vmatprep.subr.msk.bf16.mxu0 %vm327_vm0, %v673_v17  ;;  %579 = vmatprep.subr.msk.bf16.mxu1 %vm327_vm0, %v675_v18 }
  0x47   : > { %349 = vmatpush1.bf16.msra.mxu0 %v329_v21  ;;  %390 = vmatpush1.bf16.msra.mxu1 %v335_v22 }
  0x4a   : > { %578 = vmatmul.mubr.msk.bf16.vlgmr.msra.gmra.mrb[0].mxu0 %vm323_vm1, %v206_v23  ;;  %580 = vmatmul.mubr.msk.bf16.vlgmr.msra.gmra.mrb[0].mxu1 %vm323_vm1, %v206_v23 }
 0x11d   : > { %v374_v24 = vpop.f32.mrb[0].mxu0  ;;  %v415_v25 = vpop.f32.mrb[0].mxu1 }
 0x11e   : > { %v376_v26 = vpop.f32.mrb[1].mxu0  ;;  %v417_v27 = vpop.f32.mrb[1].mxu1 }
 0x11f   : > { %v586_v28 = vpack.c.bf16 %v376_v26, %v374_v24  ;;  %v587_v29 = vpack.c.bf16 %v417_v27, %v415_v25  ;;  %v378_v30 = vpop.f32.mrb[2].mxu0  ;;  %v419_v31 = vpop.f32.mrb[2].mxu1 }
 0x120   : > { %v379_v32 = vpop.f32.mrb[3].mxu0  ;;  %v420_v33 = vpop.f32.mrb[3].mxu1 }
 0x121   : > { %438 = vst [vmem:[%s203_s5] sm:$0xff] %v586_v28  ;;  %439 = vst [vmem:[%s203_s5 + $0x8] sm:$0xff] %v587_v29 }
 0x122 PF: > { %s15_s14 = sadd.s32 1, %s759_s14   ;;  %s931_s9 = smov %s743_s10 }
 0x123   : > { %p12_p9 = scmp.ge.s32.totalorder %s15_s14, 4   ;;  %s932_s10 = smov %s747_s11 }
 0x124   : > { %s933_s11 = smov %s826_s20  ;;  %s934_s12 = smov %s755_s13 }
 0x125   : > { %s935_s13 = smov %s937_s16  ;;  %14 = sbr.rel (!%p12_p9) target bundleno = 4 (0x4), region = 71 }
 0x12c   :  { %470 = vsyncpa [#allocation3], 1 }
 0x12d   :  { %472 = vsyncpa [#allocation3 + $0x1], 1 }

// kernel: infogan_forward.18
= control target key start
LH: loop header
LB: loop body
LE: loop exit
PB: predicated region body
PF: predicated region fallthrough
CT: control target
= control target key end

     0   :  { %vm51_vm0 = vcmask 1041408   ;;  %s419_s0 = inlined_call_operand.vmem [shape: bf16[98,128], index: 0, kind: input, shape index: {}]   ;;  %s420_s1 = inlined_call_operand.vmem [shape: f32[1,128], index: 1, kind: input, shape index: {}]   ;;  %s421_s2 = inlined_call_operand.vmem [shape: f32[1,128], index: 2, kind: input, shape index: {}]   ;;  %s422_s3 = inlined_call_operand.vmem [shape: bf16[98,128], index: 3, kind: output, shape index: {}]  }
   0x1   :  { %v259_v0 = vld [vmem:[%s419_s0] sm:$0xff]   ;;  %v312_v1 = vld [vmem:[%s419_s0 + $0x8] sm:$0xff]   ;;  %v313_v5 = vld [vmem:[%s419_s0 + $0x10] sm:$0xff]  }
   0x2   :  { %v260_v2 = vunpack.c.l.bf16 %v259_v0  ;;  %v261_v3 = vunpack.c.h.bf16 %v259_v0  ;;  %v264_v4 = vunpack.c.l.bf16 %v312_v1  ;;  %v265_v6 = vunpack.c.h.bf16 %v312_v1  ;;  %v314_v10 = vld [vmem:[%s419_s0 + $0x18] sm:$0xff]   ;;  %v315_v15 = vld [vmem:[%s419_s0 + $0x20] sm:$0xff]   ;;  %v316_v20 = vld [vmem:[%s419_s0 + $0x28] sm:$0xff]  }
   0x3   :  { %v268_v8 = vunpack.c.l.bf16 %v313_v5  ;;  %v269_v11 = vunpack.c.h.bf16 %v313_v5  ;;  %v272_v13 = vunpack.c.l.bf16 %v314_v10  ;;  %v273_v16 = vunpack.c.h.bf16 %v314_v10  ;;  %v26_v22 = vld [vmem:[%s419_s0 + $0x30] sm:$0x1] }
   0x4   :  { %v40_v7 = vadd.f32 %v261_v3, %v260_v2  ;;  %v276_v18 = vunpack.c.l.bf16 %v315_v15  ;;  %v277_v21 = vunpack.c.h.bf16 %v315_v15  ;;  %v280_v24 = vunpack.c.l.bf16 %v316_v20 }
   0x5   :  { %v39_v26 = vunpack.c.l.bf16 %v26_v22  ;;  %v281_v27 = vunpack.c.h.bf16 %v316_v20 }
   0x6   :  { %v41_v9 = vadd.f32 %v264_v4, %v40_v7 }
   0x7   :  { %v52_v30 = vsel %vm51_vm0, %v39_v26, 0.0 }
   0x8   :  { %v42_v12 = vadd.f32 %v265_v6, %v41_v9 }
   0xa   :  { %v43_v14 = vadd.f32 %v268_v8, %v42_v12 }
   0xc   :  { %v44_v17 = vadd.f32 %v269_v11, %v43_v14 }
   0xe   :  { %v45_v19 = vadd.f32 %v272_v13, %v44_v17 }
  0x10   :  { %v46_v23 = vadd.f32 %v273_v16, %v45_v19 }
  0x12   :  { %v47_v25 = vadd.f32 %v276_v18, %v46_v23  ;;  %v111_v23 = vlaneseq }
  0x14   :  { %v48_v28 = vadd.f32 %v277_v21, %v47_v25  ;;  %v109_v25 = vld [vmem:[%s420_s1] sm:$0x1] }
  0x16   :  { %v49_v29 = vadd.f32 %v280_v24, %v48_v28 }
  0x18   :  { %v50_v31 = vadd.f32 %v281_v27, %v49_v29 }
  0x1a   :  { %v53_v32 = vadd.f32 %v52_v30, %v50_v31  ;;  %v231_v30 = vld [vmem:[%s421_s2] ss:$0 sm:$0xff] }
  0x1c   :  { %v54_v33 = vrot.slane %v53_v32, 4 }
  0x1e   :  { %v55_v34 = vadd.f32 %v54_v33, %v53_v32 }
  0x20   :  { %v56_v35 = vrot.slane %v55_v34, 2 }
  0x22   :  { %v57_v36 = vadd.f32 %v56_v35, %v55_v34 }
  0x24   :  { %v58_v37 = vrot.slane %v57_v36, 1 }
  0x26   :  { %v59_v38 = vadd.f32 %v58_v37, %v57_v36 }
  0x28   :  { %v60_v39 = vmul.f32 0.010204081, %v59_v38 }
  0x2a   :  { %v61_v40 = vsub.f32 %v260_v2, %v60_v39  ;;  %v62_v41 = vsub.f32 %v261_v3, %v60_v39  ;;  %v63_v42 = vsub.f32 %v264_v4, %v60_v39  ;;  %v64_v43 = vsub.f32 %v265_v6, %v60_v39 }
  0x2b   :  { %v65_v46 = vsub.f32 %v268_v8, %v60_v39  ;;  %v66_v48 = vsub.f32 %v269_v11, %v60_v39  ;;  %v67_v51 = vsub.f32 %v272_v13, %v60_v39  ;;  %v68_v54 = vsub.f32 %v273_v16, %v60_v39 }
  0x2c   :  { %v74_v44 = vmul.f32 %v61_v40, %v61_v40  ;;  %v75_v45 = vmul.f32 %v62_v41, %v62_v41  ;;  %v76_v47 = vmul.f32 %v63_v42, %v63_v42  ;;  %v77_v49 = vmul.f32 %v64_v43, %v64_v43 }
  0x2d   :  { %v78_v52 = vmul.f32 %v65_v46, %v65_v46  ;;  %v79_v55 = vmul.f32 %v66_v48, %v66_v48  ;;  %v366_v57 = vsub.f32 %v276_v18, %v60_v39  ;;  %v80_v58 = vmul.f32 %v67_v51, %v67_v51 }
  0x2e   :  { %v87_v50 = vadd.f32 %v75_v45, %v74_v44  ;;  %v368_v60 = vsub.f32 %v277_v21, %v60_v39  ;;  %v81_v61 = vmul.f32 %v68_v54, %v68_v54  ;;  %v370_v63 = vsub.f32 %v280_v24, %v60_v39 }
  0x2f   :  { %v82_v0 = vmul.f32 %v366_v57, %v366_v57  ;;  %v374_v2 = vsub.f32 %v39_v26, %v60_v39  ;;  %v376_v3 = vsub.f32 %v281_v27, %v60_v39  ;;  %v112_v24 = vshrl.u32 %v111_v23, 7 }
  0x30   :  { %v88_v53 = vadd.f32 %v87_v50, %v76_v47  ;;  %v83_v4 = vmul.f32 %v368_v60, %v368_v60  ;;  %v84_v6 = vmul.f32 %v370_v63, %v370_v63 }
  0x31   :  { %v86_v8 = vmul.f32 %v374_v2, %v374_v2  ;;  %v85_v9 = vmul.f32 %v376_v3, %v376_v3  ;;  %v113_v26 = vsub.s32 0, %v112_v24 }
  0x32   :  { %v89_v56 = vadd.f32 %v88_v53, %v77_v49 }
  0x33   :  { %v98_v12 = vsel %vm51_vm0, %v86_v8, 0.0 }
  0x34   :  { %v90_v59 = vadd.f32 %v89_v56, %v78_v52 }
  0x36   :  { %v91_v62 = vadd.f32 %v90_v59, %v79_v55 }
  0x38   :  { %v92_v1 = vadd.f32 %v91_v62, %v80_v58 }
  0x3a   :  { %v93_v5 = vadd.f32 %v92_v1, %v81_v61 }
  0x3c   :  { %v94_v7 = vadd.f32 %v93_v5, %v82_v0 }
  0x3e   :  { %v95_v10 = vadd.f32 %v94_v7, %v83_v4 }
  0x40   :  { %v96_v11 = vadd.f32 %v95_v10, %v84_v6 }
  0x42   :  { %v97_v13 = vadd.f32 %v96_v11, %v85_v9 }
  0x44   :  { %v99_v14 = vadd.f32 %v98_v12, %v97_v13 }
  0x46   :  { %v100_v15 = vrot.slane %v99_v14, 4 }
  0x48   :  { %v101_v16 = vadd.f32 %v100_v15, %v99_v14 }
  0x4a   :  { %v102_v17 = vrot.slane %v101_v16, 2 }
  0x4c   :  { %v103_v18 = vadd.f32 %v102_v17, %v101_v16 }
  0x4e   :  { %v104_v19 = vrot.slane %v103_v18, 1 }
  0x50   :  { %v105_v20 = vadd.f32 %v104_v19, %v103_v18 }
  0x52   :  { %v106_v21 = vmul.f32 0.010204081, %v105_v20 }
  0x54   :  { %v107_v22 = vadd.f32 1e-05, %v106_v21 }
  0x56   :  { %322 = vrsqrt.f32 %v107_v22 }
  0x60   :  { %v323_v27 = vpop.eup %322 }
  0x61   :  { %v110_v28 = vmul.f32 %v323_v27, %v109_v25 }
  0x63   :  { %v114_v29 = vrot.slane %v110_v28, %v113_v26 }
  0x65   :  { %v115_v31 = vmul.f32 %v114_v29, %v61_v40  ;;  %v116_v32 = vmul.f32 %v114_v29, %v62_v41  ;;  %v117_v33 = vmul.f32 %v114_v29, %v63_v42  ;;  %v118_v34 = vmul.f32 %v114_v29, %v64_v43 }
  0x66   :  { %v119_v35 = vmul.f32 %v114_v29, %v65_v46  ;;  %v120_v36 = vmul.f32 %v114_v29, %v66_v48  ;;  %v121_v37 = vmul.f32 %v114_v29, %v67_v51  ;;  %v122_v38 = vmul.f32 %v114_v29, %v68_v54 }
  0x67   :  { %v135_v39 = vadd.f32 %v231_v30, %v115_v31  ;;  %v136_v44 = vadd.f32 %v231_v30, %v116_v32  ;;  %v137_v45 = vadd.f32 %v231_v30, %v117_v33  ;;  %v138_v47 = vadd.f32 %v231_v30, %v118_v34 }
  0x68   :  { %v139_v49 = vadd.f32 %v231_v30, %v119_v35  ;;  %v140_v50 = vadd.f32 %v231_v30, %v120_v36  ;;  %v141_v52 = vadd.f32 %v231_v30, %v121_v37  ;;  %v142_v53 = vadd.f32 %v231_v30, %v122_v38 }
  0x69   :  { %v148_v55 = vmax.f32 %v135_v39, 0.0  ;;  %v149_v56 = vmax.f32 %v136_v44, 0.0  ;;  %v150_v58 = vmax.f32 %v137_v45, 0.0  ;;  %v151_v59 = vmax.f32 %v138_v47, 0.0 }
  0x6a   :  { %v152_v40 = vmax.f32 %v139_v49, 0.0  ;;  %v153_v41 = vmax.f32 %v140_v50, 0.0  ;;  %v154_v42 = vmax.f32 %v141_v52, 0.0  ;;  %v155_v43 = vmax.f32 %v142_v53, 0.0 }
  0x6b   :  { %v285_v46 = vpack.c.bf16 %v149_v56, %v148_v55  ;;  %v290_v48 = vpack.c.bf16 %v151_v59, %v150_v58  ;;  %v123_v51 = vmul.f32 %v114_v29, %v366_v57  ;;  %v124_v54 = vmul.f32 %v114_v29, %v368_v60 }
  0x6c   :  { %v295_v61 = vpack.c.bf16 %v153_v41, %v152_v40  ;;  %v300_v62 = vpack.c.bf16 %v155_v43, %v154_v42  ;;  %v125_v0 = vmul.f32 %v114_v29, %v370_v63  ;;  %v126_v1 = vmul.f32 %v114_v29, %v376_v3 }
  0x6d   :  { %286 = vst [vmem:[%s422_s3] sm:$0xff] %v285_v46   ;;  %317 = vst [vmem:[%s422_s3 + $0x8] sm:$0xff] %v290_v48   ;;  %v143_v4 = vadd.f32 %v231_v30, %v123_v51  ;;  %v144_v5 = vadd.f32 %v231_v30, %v124_v54  ;;  %v127_v57 = vmul.f32 %v114_v29, %v374_v2 }
  0x6e   :  { %318 = vst [vmem:[%s422_s3 + $0x10] sm:$0xff] %v295_v61   ;;  %319 = vst [vmem:[%s422_s3 + $0x18] sm:$0xff] %v300_v62   ;;  %v145_v60 = vadd.f32 %v231_v30, %v125_v0  ;;  %v146_v63 = vadd.f32 %v231_v30, %v126_v1 }
  0x6f   :  { %v156_v3 = vmax.f32 %v143_v4, 0.0  ;;  %v157_v6 = vmax.f32 %v144_v5, 0.0  ;;  %v147_v7 = vadd.f32 %v231_v30, %v127_v57 }
  0x70   :  { %v158_v8 = vmax.f32 %v145_v60, 0.0  ;;  %v159_v9 = vmax.f32 %v146_v63, 0.0 }
  0x71   :  { %v305_v10 = vpack.c.bf16 %v157_v6, %v156_v3  ;;  %v160_v11 = vmax.f32 %v147_v7, 0.0 }
  0x72   :  { %v310_v12 = vpack.c.bf16 %v159_v9, %v158_v8 }
  0x73   :  { %320 = vst [vmem:[%s422_s3 + $0x20] sm:$0xff] %v305_v10   ;;  %v257_v2 = vpack.c.bf16 %v160_v11, %v160_v11 }
  0x74   :  { %321 = vst [vmem:[%s422_s3 + $0x28] sm:$0xff] %v310_v12  }
  0x75   :  { %226 = vst [vmem:[%s422_s3 + $0x30] sm:$0x1] %v257_v2 }

// kernel: infogan_forward.19
= control target key start
LH: loop header
LB: loop body
LE: loop exit
PB: predicated region body
PF: predicated region fallthrough
CT: control target
= control target key end

     0   :  { %s1182_s9 = smov 0   ;;  %s1184_s10 = smov 0   ;;  %s1555_s0 = inlined_call_operand.vmem [shape: bf16[104,128], index: 0, kind: input, shape index: {}]   ;;  %s1556_s1 = inlined_call_operand.vmem [shape: bf16[128,1024], index: 1, kind: input, shape index: {}]   ;;  %s1557_s2 = inlined_call_operand.vmem [shape: f32[104,1024], index: 2, kind: output, shape index: {}]  }
   0x1   :  { %s1186_s11 = smov 0   ;;  %s1188_s12 = smov 0  }
   0x2   :  { %s1190_s13 = smov 0  }
   0x3 LB: > { %s21_s14 = sadd.s32 1, %s1160_s12  ;;  %s974_s15 = sadd.s32 4294967295, %s1164_s13   ;;  %s1164_s13 = sphi %s1190_s13, %s12_s13   ;;  %s1160_s12 = sphi %s1188_s12, %s1562_s12   ;;  %s1156_s11 = sphi %s1186_s11, %s1561_s11   ;;  %s1152_s10 = sphi %s1184_s10, %s1560_s10   ;;  %s1148_s9 = sphi %s1182_s9, %s1559_s9  }
   0x4   : > { %p22_p0 = scmp.ge.s32.totalorder %s21_s14, 2  ;;  %p64_p1 = scmp.ne.s32.totalorder %s1152_s10, %s1148_s9 }
   0x5   : > { %p65_p2 = scmp.eq.s32.totalorder %s1164_s13, 0  ;;  %p96_p4 = scmp.eq.s32.totalorder %s974_s15, 1 }
   0x6   : > { %s1564_s14 = smov (%p22_p0, %s21_s14), 0  ;;  %s57_s17 = sadd.s32 1, %s1152_s10 }
   0x7   : > { %p66_p3 = por %p65_p2, %p64_p1  ;;  %s54_s16 = ssub.s32 %s1160_s12, %s1564_s14 }
   0x8   : > { %p55_p5 = scmp.eq.s32.totalorder %s54_s16, 0  ;;  %p1217_p6 = por %p96_p4, %p64_p1 }
   0x9   : > { %p978_p7 = scmp.ge.s32.totalorder %s1164_s13, 2 }
   0xa   : > { %s1222_s19 = scalar_select %p55_p5, %s1152_s10, %s57_s17  }
   0xb   : > { %127 = sbr.rel (%p978_p7) target bundleno = 38 (0x26), region = 20 }
  0x12   : > { %130 = sbr.rel (!%p66_p3) target bundleno = 38 (0x26), region = 24  ;;  %s132_s20 = sand.u32 (%p66_p3), 1, %s1152_s10  }
  0x13   : > { %s1027_s21 = sshll.u32 (%p66_p3), %s1160_s12, 4  ;;  %s979_s22 = sshll.u32 (%p66_p3), %s132_s20, 8 }
  0x14   : > { %s1230_s25 = scalar_lea.vmem (%p66_p3), %s1556_s1, %s1027_s21  ;;  %s1235_s26 = scalar_lea.vmem (%p66_p3), [#allocation2], %s979_s22 }
  0x15   : > { %v150_v0 = vld [vmem:[%s1230_s25] sm:$0xff] (%p66_p3)  ;;  %v152_v1 = vld [vmem:[%s1230_s25 + $0x8] sm:$0xff] (%p66_p3) }
  0x16   : > { %v154_v2 = vld [vmem:[%s1230_s25 + $0x20] sm:$0xff] (%p66_p3)  ;;  %151 = vst [vmem:[%s1235_s26] sm:$0xff] (%p66_p3), %v150_v0  ;;  %153 = vst [vmem:[%s1235_s26 + $0x8] sm:$0xff] (%p66_p3), %v152_v1  ;;  %v156_v3 = vld [vmem:[%s1230_s25 + $0x28] sm:$0xff] (%p66_p3) }
  0x17   : > { %155 = vst [vmem:[%s1235_s26 + $0x10] sm:$0xff] (%p66_p3), %v154_v2  ;;  %v158_v4 = vld [vmem:[%s1230_s25 + $0x40] sm:$0xff] (%p66_p3)  ;;  %v160_v5 = vld [vmem:[%s1230_s25 + $0x48] sm:$0xff] (%p66_p3)  ;;  %157 = vst [vmem:[%s1235_s26 + $0x18] sm:$0xff] (%p66_p3), %v156_v3 }
  0x18   : > { %159 = vst [vmem:[%s1235_s26 + $0x20] sm:$0xff] (%p66_p3), %v158_v4  ;;  %161 = vst [vmem:[%s1235_s26 + $0x28] sm:$0xff] (%p66_p3), %v160_v5  ;;  %v162_v6 = vld [vmem:[%s1230_s25 + $0x60] sm:$0xff] (%p66_p3)  ;;  %v164_v7 = vld [vmem:[%s1230_s25 + $0x68] sm:$0xff] (%p66_p3) }
  0x19   : > { %v166_v8 = vld [vmem:[%s1230_s25 + $0x80] sm:$0xff]  ;;  %163 = vst [vmem:[%s1235_s26 + $0x30] sm:$0xff] %v162_v6  ;;  %165 = vst [vmem:[%s1235_s26 + $0x38] sm:$0xff] %v164_v7  ;;  %v168_v9 = vld [vmem:[%s1230_s25 + $0x88] sm:$0xff] }
  0x1a   : > { %167 = vst [vmem:[%s1235_s26 + $0x40] sm:$0xff] %v166_v8  ;;  %v170_v10 = vld [vmem:[%s1230_s25 + $0xa0] sm:$0xff]  ;;  %v172_v11 = vld [vmem:[%s1230_s25 + $0xa8] sm:$0xff]  ;;  %169 = vst [vmem:[%s1235_s26 + $0x48] sm:$0xff] %v168_v9 }
  0x1b   : > { %171 = vst [vmem:[%s1235_s26 + $0x50] sm:$0xff] %v170_v10  ;;  %173 = vst [vmem:[%s1235_s26 + $0x58] sm:$0xff] %v172_v11  ;;  %v174_v12 = vld [vmem:[%s1230_s25 + $0xc0] sm:$0xff]  ;;  %v176_v13 = vld [vmem:[%s1230_s25 + $0xc8] sm:$0xff] }
  0x1c   : > { %v178_v14 = vld [vmem:[%s1230_s25 + $0xe0] sm:$0xff]  ;;  %175 = vst [vmem:[%s1235_s26 + $0x60] sm:$0xff] %v174_v12  ;;  %177 = vst [vmem:[%s1235_s26 + $0x68] sm:$0xff] %v176_v13  ;;  %v180_v15 = vld [vmem:[%s1230_s25 + $0xe8] sm:$0xff] }
  0x1d   : > { %179 = vst [vmem:[%s1235_s26 + $0x70] sm:$0xff] %v178_v14  ;;  %v182_v16 = vld [vmem:[%s1230_s25 + $0x100] sm:$0xff]  ;;  %v184_v17 = vld [vmem:[%s1230_s25 + $0x108] sm:$0xff]  ;;  %181 = vst [vmem:[%s1235_s26 + $0x78] sm:$0xff] %v180_v15 }
  0x1e   : > { %183 = vst [vmem:[%s1235_s26 + $0x80] sm:$0xff] %v182_v16  ;;  %185 = vst [vmem:[%s1235_s26 + $0x88] sm:$0xff] %v184_v17  ;;  %v186_v18 = vld [vmem:[%s1230_s25 + $0x120] sm:$0xff]  ;;  %v188_v19 = vld [vmem:[%s1230_s25 + $0x128] sm:$0xff] }
  0x1f   : > { %v190_v20 = vld [vmem:[%s1230_s25 + $0x140] sm:$0xff]  ;;  %187 = vst [vmem:[%s1235_s26 + $0x90] sm:$0xff] %v186_v18  ;;  %189 = vst [vmem:[%s1235_s26 + $0x98] sm:$0xff] %v188_v19  ;;  %v192_v21 = vld [vmem:[%s1230_s25 + $0x148] sm:$0xff] }
  0x20   : > { %191 = vst [vmem:[%s1235_s26 + $0xa0] sm:$0xff] %v190_v20  ;;  %v194_v22 = vld [vmem:[%s1230_s25 + $0x160] sm:$0xff]  ;;  %v196_v23 = vld [vmem:[%s1230_s25 + $0x168] sm:$0xff]  ;;  %193 = vst [vmem:[%s1235_s26 + $0xa8] sm:$0xff] %v192_v21 }
  0x21   : > { %195 = vst [vmem:[%s1235_s26 + $0xb0] sm:$0xff] %v194_v22  ;;  %197 = vst [vmem:[%s1235_s26 + $0xb8] sm:$0xff] %v196_v23  ;;  %v198_v24 = vld [vmem:[%s1230_s25 + $0x180] sm:$0xff]  ;;  %v200_v25 = vld [vmem:[%s1230_s25 + $0x188] sm:$0xff] }
  0x22   : > { %v202_v26 = vld [vmem:[%s1230_s25 + $0x1a0] sm:$0xff]  ;;  %199 = vst [vmem:[%s1235_s26 + $0xc0] sm:$0xff] %v198_v24  ;;  %201 = vst [vmem:[%s1235_s26 + $0xc8] sm:$0xff] %v200_v25  ;;  %v204_v27 = vld [vmem:[%s1230_s25 + $0x1a8] sm:$0xff] }
  0x23   : > { %203 = vst [vmem:[%s1235_s26 + $0xd0] sm:$0xff] %v202_v26  ;;  %v206_v28 = vld [vmem:[%s1230_s25 + $0x1c0] sm:$0xff]  ;;  %v208_v29 = vld [vmem:[%s1230_s25 + $0x1c8] sm:$0xff]  ;;  %205 = vst [vmem:[%s1235_s26 + $0xd8] sm:$0xff] %v204_v27 }
  0x24   : > { %207 = vst [vmem:[%s1235_s26 + $0xe0] sm:$0xff] %v206_v28  ;;  %209 = vst [vmem:[%s1235_s26 + $0xe8] sm:$0xff] %v208_v29  ;;  %v210_v30 = vld [vmem:[%s1230_s25 + $0x1e0] sm:$0xff]  ;;  %v212_v31 = vld [vmem:[%s1230_s25 + $0x1e8] sm:$0xff] }
  0x25   : > { %211 = vst [vmem:[%s1235_s26 + $0xf0] sm:$0xff] %v210_v30  ;;  %213 = vst [vmem:[%s1235_s26 + $0xf8] sm:$0xff] %v212_v31 }
  0x26 PF: > { %p982_p8 = scmp.ge.s32.totalorder %s1164_s13, 1  ;;  %p218_p9 = scmp.lt.s32.totalorder %s1164_s13, 3 }
  0x28   : > { %p219_p10 = pnand %p982_p8, %p218_p9 }
  0x29   : > { %s225_s27 = sand.u32 (!%p219_p10), 1, %s1148_s9   ;;  %v1166_v32 = vmov (!%p219_p10), 0   ;;  %v1119_v1 = vld [vmem:[%s1555_s0] sm:$0xff] (!%p219_p10)   ;;  %v1120_v2 = vld [vmem:[%s1555_s0 + $0x8] sm:$0xff] (!%p219_p10)   ;;  %v1121_v3 = vld [vmem:[%s1555_s0 + $0x10] sm:$0xff] (!%p219_p10)  }
  0x2a   : > { %222 = sbr.rel (%p219_p10) target bundleno = 347 (0x15b), region = 47  ;;  %s983_s28 = sshll.u32 (!%p219_p10), %s225_s27, 8  ;;  %537 = vmatprep.mubr.bf16.mxu0 (!%p219_p10), %v1166_v32  ;;  %638 = vmatprep.mubr.bf16.mxu1 (!%p219_p10), %v1166_v32  ;;  %v1122_v4 = vld [vmem:[%s1555_s0 + $0x18] sm:$0xff] (!%p219_p10)   ;;  %v1123_v5 = vld [vmem:[%s1555_s0 + $0x20] sm:$0xff] (!%p219_p10)   ;;  %v1124_v6 = vld [vmem:[%s1555_s0 + $0x28] sm:$0xff] (!%p219_p10)  }
  0x2b   : > { %s1305_s29 = scalar_lea.vmem (!%p219_p10), [#allocation2], %s983_s28  ;;  %v1125_v7 = vld [vmem:[%s1555_s0 + $0x30] ss:$0 sps:$4 sm:$0xff] (!%p219_p10)   ;;  %s1029_s24 = smul.u32 (!%p219_p10), 416, %s225_s27 }
  0x2c   : > { %v1071_v33 = vld [vmem:[%s1305_s29 + $0x4] ss:$16 sps:$4 sm:$0xff] (!%p219_p10)   ;;  %v1073_v34 = vld [vmem:[%s1305_s29 + $0xc] ss:$16 sps:$4 sm:$0xff] (!%p219_p10)   ;;  %v1075_v35 = vld [vmem:[%s1305_s29] ss:$16 sps:$4 sm:$0xff] (!%p219_p10)  }
  0x2d   : > { %505 = vmatprep.subr.bf16.mxu0 (!%p219_p10), %v1071_v33  ;;  %v1076_v36 = vld [vmem:[%s1305_s29 + $0x8] ss:$16 sps:$4 sm:$0xff] (!%p219_p10)   ;;  %606 = vmatprep.subr.bf16.mxu1 (!%p219_p10), %v1073_v34  ;;  %v1077_v37 = vld [vmem:[%s1305_s29 + $0x24] ss:$16 sps:$4 sm:$0xff] (!%p219_p10)   ;;  %v1079_v38 = vld [vmem:[%s1305_s29 + $0x2c] ss:$16 sps:$4 sm:$0xff] (!%p219_p10)  }
  0x2e   : > { %506 = vmatpush1.bf16.msra.mxu0 (!%p219_p10), %v1075_v35  ;;  %607 = vmatpush1.bf16.msra.mxu1 (!%p219_p10), %v1076_v36  ;;  %v1081_v39 = vld [vmem:[%s1305_s29 + $0x20] ss:$16 sps:$4 sm:$0xff] (!%p219_p10)   ;;  %v1082_v40 = vld [vmem:[%s1305_s29 + $0x28] ss:$16 sps:$4 sm:$0xff] (!%p219_p10)   ;;  %v1083_v41 = vld [vmem:[%s1305_s29 + $0x44] ss:$16 sps:$4 sm:$0xff] (!%p219_p10)  }
  0x2f   : > { %507 = vmatprep.subr.bf16.mxu0 (!%p219_p10), %v1077_v37  ;;  %608 = vmatprep.subr.bf16.mxu1 (!%p219_p10), %v1079_v38  ;;  %v1085_v42 = vld [vmem:[%s1305_s29 + $0x4c] ss:$16 sps:$4 sm:$0xff] (!%p219_p10)   ;;  %v1087_v43 = vld [vmem:[%s1305_s29 + $0x40] ss:$16 sps:$4 sm:$0xff] (!%p219_p10)   ;;  %v1088_v44 = vld [vmem:[%s1305_s29 + $0x48] ss:$16 sps:$4 sm:$0xff] (!%p219_p10)  }
  0x30   : > { %v1089_v45 = vld [vmem:[%s1305_s29 + $0x64] ss:$16 sps:$4 sm:$0xff] (!%p219_p10)   ;;  %v1091_v46 = vld [vmem:[%s1305_s29 + $0x6c] ss:$16 sps:$4 sm:$0xff] (!%p219_p10)   ;;  %v1093_v47 = vld [vmem:[%s1305_s29 + $0x60] ss:$16 sps:$4 sm:$0xff] (!%p219_p10)  }
  0x31   : > { %v1094_v48 = vld [vmem:[%s1305_s29 + $0x68] ss:$16 sps:$4 sm:$0xff]   ;;  %v1095_v49 = vld [vmem:[%s1305_s29 + $0x84] ss:$16 sps:$4 sm:$0xff]   ;;  %v1097_v50 = vld [vmem:[%s1305_s29 + $0x8c] ss:$16 sps:$4 sm:$0xff]  }
  0x32   : > { %508 = vmatpush1.bf16.msra.mxu0 %v1081_v39  ;;  %609 = vmatpush1.bf16.msra.mxu1 %v1082_v40  ;;  %v1099_v51 = vld [vmem:[%s1305_s29 + $0x80] ss:$16 sps:$4 sm:$0xff]   ;;  %v1100_v52 = vld [vmem:[%s1305_s29 + $0x88] ss:$16 sps:$4 sm:$0xff]   ;;  %v1101_v53 = vld [vmem:[%s1305_s29 + $0xa4] ss:$16 sps:$4 sm:$0xff]  }
  0x33   : > { %509 = vmatprep.subr.bf16.mxu0 %v1083_v41  ;;  %610 = vmatprep.subr.bf16.mxu1 %v1085_v42  ;;  %v1103_v54 = vld [vmem:[%s1305_s29 + $0xac] ss:$16 sps:$4 sm:$0xff]   ;;  %v1105_v55 = vld [vmem:[%s1305_s29 + $0xa0] ss:$16 sps:$4 sm:$0xff]   ;;  %v1106_v56 = vld [vmem:[%s1305_s29 + $0xa8] ss:$16 sps:$4 sm:$0xff]  }
  0x34   : > { %v1107_v57 = vld [vmem:[%s1305_s29 + $0xc4] ss:$16 sps:$4 sm:$0xff]   ;;  %v1109_v58 = vld [vmem:[%s1305_s29 + $0xcc] ss:$16 sps:$4 sm:$0xff]   ;;  %v1111_v59 = vld [vmem:[%s1305_s29 + $0xc0] ss:$16 sps:$4 sm:$0xff]  }
  0x35   : > { %v1112_v60 = vld [vmem:[%s1305_s29 + $0xc8] ss:$16 sps:$4 sm:$0xff]   ;;  %v1113_v61 = vld [vmem:[%s1305_s29 + $0xe4] ss:$16 sps:$4 sm:$0xff]   ;;  %v1115_v62 = vld [vmem:[%s1305_s29 + $0xec] ss:$16 sps:$4 sm:$0xff]  }
  0x36   : > { %510 = vmatpush1.bf16.msra.mxu0 %v1087_v43  ;;  %611 = vmatpush1.bf16.msra.mxu1 %v1088_v44  ;;  %v1117_v63 = vld [vmem:[%s1305_s29 + $0xe0] ss:$16 sps:$4 sm:$0xff]   ;;  %v1118_v0 = vld [vmem:[%s1305_s29 + $0xe8] ss:$16 sps:$4 sm:$0xff]   ;;  %s1374_s25 = scalar_lea.vmem [#allocation3], %s1029_s24  ;;  %s1028_s9 = sshll.u32 (%p1217_p6), %s1156_s11, 5 }
  0x37   : > { %511 = vmatprep.subr.bf16.mxu0 %v1089_v45  ;;  %612 = vmatprep.subr.bf16.mxu1 %v1091_v46  ;;  %s1437_s28 = scalar_lea.vmem (%p1217_p6), %s1557_s2, %s1028_s9 }
  0x3a   : > { %512 = vmatpush1.bf16.msra.mxu0 %v1093_v47  ;;  %613 = vmatpush1.bf16.msra.mxu1 %v1094_v48 }
  0x3b   : > { %513 = vmatprep.subr.bf16.mxu0 %v1095_v49  ;;  %614 = vmatprep.subr.bf16.mxu1 %v1097_v50 }
  0x3e   : > { %514 = vmatpush1.bf16.msra.mxu0 %v1099_v51  ;;  %615 = vmatpush1.bf16.msra.mxu1 %v1100_v52 }
  0x3f   : > { %515 = vmatprep.subr.bf16.mxu0 %v1101_v53  ;;  %616 = vmatprep.subr.bf16.mxu1 %v1103_v54 }
  0x42   : > { %516 = vmatpush1.bf16.msra.mxu0 %v1105_v55  ;;  %617 = vmatpush1.bf16.msra.mxu1 %v1106_v56 }
  0x43   : > { %517 = vmatprep.subr.bf16.mxu0 %v1107_v57  ;;  %618 = vmatprep.subr.bf16.mxu1 %v1109_v58 }
  0x46   : > { %518 = vmatpush1.bf16.msra.mxu0 %v1111_v59  ;;  %619 = vmatpush1.bf16.msra.mxu1 %v1112_v60 }
  0x47   : > { %519 = vmatprep.subr.bf16.mxu0 %v1113_v61  ;;  %620 = vmatprep.subr.bf16.mxu1 %v1115_v62 }
  0x4a   : > { %520 = vmatpush1.bf16.msra.mxu0 %v1117_v63  ;;  %621 = vmatpush1.bf16.msra.mxu1 %v1118_v0 }
  0x4d   : > { %538 = vmatmul.mubr.bf16.vlgmr.msra.gmra.mrb[0].mxu0 %v1119_v1  ;;  %639 = vmatmul.mubr.bf16.vlgmr.msra.gmra.mrb[0].mxu1 %v1119_v1 }
  0x4e   : > { %547 = vmatprep.mubr.bf16.mxu0 %v1166_v32  ;;  %648 = vmatprep.mubr.bf16.mxu1 %v1166_v32 }
  0x55   : > { %548 = vmatmul.mubr.bf16.gmra.mrb[4].mxu0 %v1120_v2  ;;  %649 = vmatmul.mubr.bf16.gmra.mrb[4].mxu1 %v1120_v2 }
  0x56   : > { %557 = vmatprep.mubr.bf16.mxu0 %v1166_v32  ;;  %658 = vmatprep.mubr.bf16.mxu1 %v1166_v32 }
  0x5d   : > { %558 = vmatmul.mubr.bf16.gmra.mrb[8].mxu0 %v1121_v3  ;;  %659 = vmatmul.mubr.bf16.gmra.mrb[8].mxu1 %v1121_v3 }
  0x5e   : > { %567 = vmatprep.mubr.bf16.mxu0 %v1166_v32  ;;  %668 = vmatprep.mubr.bf16.mxu1 %v1166_v32 }
  0x65   : > { %568 = vmatmul.mubr.bf16.gmra.mrb[12].mxu0 %v1122_v4  ;;  %669 = vmatmul.mubr.bf16.gmra.mrb[12].mxu1 %v1122_v4 }
  0x66   : > { %577 = vmatprep.mubr.bf16.mxu0 %v1166_v32  ;;  %678 = vmatprep.mubr.bf16.mxu1 %v1166_v32 }
  0x6d   : > { %578 = vmatmul.mubr.bf16.gmra.mrb[16].mxu0 %v1123_v5  ;;  %679 = vmatmul.mubr.bf16.gmra.mrb[16].mxu1 %v1123_v5 }
  0x6e   : > { %587 = vmatprep.mubr.bf16.mxu0 %v1166_v32  ;;  %688 = vmatprep.mubr.bf16.mxu1 %v1166_v32 }
  0x75   : > { %588 = vmatmul.mubr.bf16.gmra.mrb[20].mxu0 %v1124_v6  ;;  %689 = vmatmul.mubr.bf16.gmra.mrb[20].mxu1 %v1124_v6 }
  0x76   : > { %597 = vmatprep.mubr.bf16.mxu0 %v1166_v32  ;;  %698 = vmatprep.mubr.bf16.mxu1 %v1166_v32 }
  0x7d   : > { %598 = vmatmul.mubr.bf16.gmra.mrb[24].mxu0 %v1125_v7  ;;  %699 = vmatmul.mubr.bf16.gmra.mrb[24].mxu1 %v1125_v7 }
 0x120   : > { %v539_v8 = vpop.f32.mrb[0].mxu0  ;;  %v640_v9 = vpop.f32.mrb[0].mxu1 }
 0x121   : > { %707 = vst [vmem:[%s1374_s25] sm:$0xff] %v539_v8  ;;  %709 = vst [vmem:[%s1374_s25 + $0x10] sm:$0xff] %v640_v9  ;;  %v541_v10 = vpop.f32.mrb[1].mxu0  ;;  %v642_v11 = vpop.f32.mrb[1].mxu1 }
 0x122   : > { %708 = vst [vmem:[%s1374_s25 + $0x8] sm:$0xff] %v541_v10  ;;  %710 = vst [vmem:[%s1374_s25 + $0x18] sm:$0xff] %v642_v11  ;;  %v543_v12 = vpop.f32.mrb[2].mxu0  ;;  %v644_v13 = vpop.f32.mrb[2].mxu1 }
 0x123   : > { %711 = vst [vmem:[%s1374_s25 + $0x20] sm:$0xff] %v543_v12  ;;  %713 = vst [vmem:[%s1374_s25 + $0x30] sm:$0xff] %v644_v13  ;;  %v545_v14 = vpop.f32.mrb[3].mxu0  ;;  %v646_v15 = vpop.f32.mrb[3].mxu1 }
 0x124   : > { %712 = vst [vmem:[%s1374_s25 + $0x28] sm:$0xff] %v545_v14  ;;  %714 = vst [vmem:[%s1374_s25 + $0x38] sm:$0xff] %v646_v15 }
 0x128   : > { %v549_v16 = vpop.f32.mrb[4].mxu0  ;;  %v650_v17 = vpop.f32.mrb[4].mxu1  ;;  %v784_v0 = vld [vmem:[%s1374_s25] sm:$0xff] (%p1217_p6)  ;;  %v788_v2 = vld [vmem:[%s1374_s25 + $0x10] sm:$0xff] (%p1217_p6) }
 0x129   : > { %715 = vst [vmem:[%s1374_s25 + $0x40] sm:$0xff] %v549_v16  ;;  %717 = vst [vmem:[%s1374_s25 + $0x50] sm:$0xff] %v650_v17  ;;  %v551_v18 = vpop.f32.mrb[5].mxu0  ;;  %v652_v19 = vpop.f32.mrb[5].mxu1  ;;  %v786_v1 = vld [vmem:[%s1374_s25 + $0x8] sm:$0xff] (%p1217_p6)  ;;  %v790_v3 = vld [vmem:[%s1374_s25 + $0x18] sm:$0xff] (%p1217_p6) }
 0x12a   : > { %716 = vst [vmem:[%s1374_s25 + $0x48] sm:$0xff] %v551_v18  ;;  %718 = vst [vmem:[%s1374_s25 + $0x58] sm:$0xff] %v652_v19  ;;  %v553_v20 = vpop.f32.mrb[6].mxu0  ;;  %v654_v21 = vpop.f32.mrb[6].mxu1  ;;  %v792_v4 = vld [vmem:[%s1374_s25 + $0x20] sm:$0xff] (%p1217_p6)  ;;  %v796_v6 = vld [vmem:[%s1374_s25 + $0x30] sm:$0xff] (%p1217_p6) }
 0x12b   : > { %719 = vst [vmem:[%s1374_s25 + $0x60] sm:$0xff] %v553_v20  ;;  %721 = vst [vmem:[%s1374_s25 + $0x70] sm:$0xff] %v654_v21  ;;  %v555_v22 = vpop.f32.mrb[7].mxu0  ;;  %v656_v23 = vpop.f32.mrb[7].mxu1  ;;  %v794_v5 = vld [vmem:[%s1374_s25 + $0x28] sm:$0xff] (%p1217_p6)  ;;  %v798_v7 = vld [vmem:[%s1374_s25 + $0x38] sm:$0xff] (%p1217_p6) }
 0x12c   : > { %720 = vst [vmem:[%s1374_s25 + $0x68] sm:$0xff] %v555_v22  ;;  %722 = vst [vmem:[%s1374_s25 + $0x78] sm:$0xff] %v656_v23 }
 0x12d   : > { %785 = vst [vmem:[%s1437_s28] sm:$0xff] (%p1217_p6), %v784_v0  ;;  %787 = vst [vmem:[%s1437_s28 + $0x8] sm:$0xff] (%p1217_p6), %v786_v1 }
 0x12e   : > { %789 = vst [vmem:[%s1437_s28 + $0x10] sm:$0xff] (%p1217_p6), %v788_v2  ;;  %791 = vst [vmem:[%s1437_s28 + $0x18] sm:$0xff] (%p1217_p6), %v790_v3 }
 0x12f   : > { %793 = vst [vmem:[%s1437_s28 + $0x40] sm:$0xff] (%p1217_p6), %v792_v4  ;;  %795 = vst [vmem:[%s1437_s28 + $0x48] sm:$0xff] (%p1217_p6), %v794_v5 }
 0x130   : > { %v559_v24 = vpop.f32.mrb[8].mxu0  ;;  %v660_v25 = vpop.f32.mrb[8].mxu1  ;;  %v800_v8 = vld [vmem:[%s1374_s25 + $0x40] sm:$0xff] (%p1217_p6)  ;;  %797 = vst [vmem:[%s1437_s28 + $0x50] sm:$0xff] (%p1217_p6), %v796_v6  ;;  %799 = vst [vmem:[%s1437_s28 + $0x58] sm:$0xff] (%p1217_p6), %v798_v7  ;;  %v804_v10 = vld [vmem:[%s1374_s25 + $0x50] sm:$0xff] (%p1217_p6) }
 0x131   : > { %723 = vst [vmem:[%s1374_s25 + $0x80] sm:$0xff] %v559_v24  ;;  %725 = vst [vmem:[%s1374_s25 + $0x90] sm:$0xff] %v660_v25  ;;  %v561_v26 = vpop.f32.mrb[9].mxu0  ;;  %v662_v27 = vpop.f32.mrb[9].mxu1  ;;  %v802_v9 = vld [vmem:[%s1374_s25 + $0x48] sm:$0xff] (%p1217_p6)  ;;  %v806_v11 = vld [vmem:[%s1374_s25 + $0x58] sm:$0xff] (%p1217_p6) }
 0x132   : > { %724 = vst [vmem:[%s1374_s25 + $0x88] sm:$0xff] %v561_v26  ;;  %726 = vst [vmem:[%s1374_s25 + $0x98] sm:$0xff] %v662_v27  ;;  %v563_v28 = vpop.f32.mrb[10].mxu0  ;;  %v664_v29 = vpop.f32.mrb[10].mxu1  ;;  %v808_v12 = vld [vmem:[%s1374_s25 + $0x60] sm:$0xff] (%p1217_p6)  ;;  %v812_v14 = vld [vmem:[%s1374_s25 + $0x70] sm:$0xff] (%p1217_p6) }
 0x133   : > { %727 = vst [vmem:[%s1374_s25 + $0xa0] sm:$0xff] %v563_v28  ;;  %729 = vst [vmem:[%s1374_s25 + $0xb0] sm:$0xff] %v664_v29  ;;  %v565_v30 = vpop.f32.mrb[11].mxu0  ;;  %v666_v31 = vpop.f32.mrb[11].mxu1  ;;  %v810_v13 = vld [vmem:[%s1374_s25 + $0x68] sm:$0xff] (%p1217_p6)  ;;  %v814_v15 = vld [vmem:[%s1374_s25 + $0x78] sm:$0xff] (%p1217_p6) }
 0x134   : > { %728 = vst [vmem:[%s1374_s25 + $0xa8] sm:$0xff] %v565_v30  ;;  %730 = vst [vmem:[%s1374_s25 + $0xb8] sm:$0xff] %v666_v31 }
 0x135   : > { %801 = vst [vmem:[%s1437_s28 + $0x80] sm:$0xff] (%p1217_p6), %v800_v8  ;;  %803 = vst [vmem:[%s1437_s28 + $0x88] sm:$0xff] (%p1217_p6), %v802_v9 }
 0x136   : > { %805 = vst [vmem:[%s1437_s28 + $0x90] sm:$0xff] (%p1217_p6), %v804_v10  ;;  %807 = vst [vmem:[%s1437_s28 + $0x98] sm:$0xff] (%p1217_p6), %v806_v11 }
 0x137   : > { %809 = vst [vmem:[%s1437_s28 + $0xc0] sm:$0xff] (%p1217_p6), %v808_v12  ;;  %811 = vst [vmem:[%s1437_s28 + $0xc8] sm:$0xff] (%p1217_p6), %v810_v13 }
 0x138   : > { %v569_v32 = vpop.f32.mrb[12].mxu0  ;;  %v670_v33 = vpop.f32.mrb[12].mxu1  ;;  %813 = vst [vmem:[%s1437_s28 + $0xd0] sm:$0xff] (%p1217_p6), %v812_v14  ;;  %v816_v16 = vld [vmem:[%s1374_s25 + $0x80] sm:$0xff] (%p1217_p6)  ;;  %815 = vst [vmem:[%s1437_s28 + $0xd8] sm:$0xff] (%p1217_p6), %v814_v15  ;;  %v820_v18 = vld [vmem:[%s1374_s25 + $0x90] sm:$0xff] (%p1217_p6) }
 0x139   : > { %731 = vst [vmem:[%s1374_s25 + $0xc0] sm:$0xff] %v569_v32  ;;  %733 = vst [vmem:[%s1374_s25 + $0xd0] sm:$0xff] %v670_v33  ;;  %v571_v34 = vpop.f32.mrb[13].mxu0  ;;  %v672_v35 = vpop.f32.mrb[13].mxu1  ;;  %v818_v17 = vld [vmem:[%s1374_s25 + $0x88] sm:$0xff] (%p1217_p6)  ;;  %v822_v19 = vld [vmem:[%s1374_s25 + $0x98] sm:$0xff] (%p1217_p6) }
 0x13a   : > { %732 = vst [vmem:[%s1374_s25 + $0xc8] sm:$0xff] %v571_v34  ;;  %734 = vst [vmem:[%s1374_s25 + $0xd8] sm:$0xff] %v672_v35  ;;  %v573_v36 = vpop.f32.mrb[14].mxu0  ;;  %v674_v37 = vpop.f32.mrb[14].mxu1  ;;  %v824_v20 = vld [vmem:[%s1374_s25 + $0xa0] sm:$0xff] (%p1217_p6)  ;;  %v828_v22 = vld [vmem:[%s1374_s25 + $0xb0] sm:$0xff] (%p1217_p6) }
 0x13b   : > { %735 = vst [vmem:[%s1374_s25 + $0xe0] sm:$0xff] %v573_v36  ;;  %737 = vst [vmem:[%s1374_s25 + $0xf0] sm:$0xff] %v674_v37  ;;  %v575_v38 = vpop.f32.mrb[15].mxu0  ;;  %v676_v39 = vpop.f32.mrb[15].mxu1  ;;  %v826_v21 = vld [vmem:[%s1374_s25 + $0xa8] sm:$0xff] (%p1217_p6)  ;;  %v830_v23 = vld [vmem:[%s1374_s25 + $0xb8] sm:$0xff] (%p1217_p6) }
 0x13c   : > { %736 = vst [vmem:[%s1374_s25 + $0xe8] sm:$0xff] %v575_v38  ;;  %738 = vst [vmem:[%s1374_s25 + $0xf8] sm:$0xff] %v676_v39 }
 0x13d   : > { %817 = vst [vmem:[%s1437_s28 + $0x100] sm:$0xff] (%p1217_p6), %v816_v16  ;;  %819 = vst [vmem:[%s1437_s28 + $0x108] sm:$0xff] (%p1217_p6), %v818_v17 }
 0x13e   : > { %821 = vst [vmem:[%s1437_s28 + $0x110] sm:$0xff] (%p1217_p6), %v820_v18  ;;  %823 = vst [vmem:[%s1437_s28 + $0x118] sm:$0xff] (%p1217_p6), %v822_v19 }
 0x13f   : > { %825 = vst [vmem:[%s1437_s28 + $0x140] sm:$0xff] (%p1217_p6), %v824_v20  ;;  %827 = vst [vmem:[%s1437_s28 + $0x148] sm:$0xff] (%p1217_p6), %v826_v21 }
 0x140   : > { %v579_v40 = vpop.f32.mrb[16].mxu0  ;;  %v680_v41 = vpop.f32.mrb[16].mxu1  ;;  %829 = vst [vmem:[%s1437_s28 + $0x150] sm:$0xff] (%p1217_p6), %v828_v22  ;;  %831 = vst [vmem:[%s1437_s28 + $0x158] sm:$0xff] (%p1217_p6), %v830_v23  ;;  %v832_v24 = vld [vmem:[%s1374_s25 + $0xc0] sm:$0xff] (%p1217_p6)  ;;  %v836_v26 = vld [vmem:[%s1374_s25 + $0xd0] sm:$0xff] (%p1217_p6) }
 0x141   : > { %739 = vst [vmem:[%s1374_s25 + $0x100] sm:$0xff] %v579_v40  ;;  %741 = vst [vmem:[%s1374_s25 + $0x110] sm:$0xff] %v680_v41  ;;  %v581_v42 = vpop.f32.mrb[17].mxu0  ;;  %v682_v43 = vpop.f32.mrb[17].mxu1  ;;  %v834_v25 = vld [vmem:[%s1374_s25 + $0xc8] sm:$0xff] (%p1217_p6)  ;;  %v838_v27 = vld [vmem:[%s1374_s25 + $0xd8] sm:$0xff] (%p1217_p6) }
 0x142   : > { %740 = vst [vmem:[%s1374_s25 + $0x108] sm:$0xff] %v581_v42  ;;  %742 = vst [vmem:[%s1374_s25 + $0x118] sm:$0xff] %v682_v43  ;;  %v583_v44 = vpop.f32.mrb[18].mxu0  ;;  %v684_v45 = vpop.f32.mrb[18].mxu1  ;;  %v840_v28 = vld [vmem:[%s1374_s25 + $0xe0] sm:$0xff] (%p1217_p6)  ;;  %v844_v30 = vld [vmem:[%s1374_s25 + $0xf0] sm:$0xff] (%p1217_p6) }
 0x143   : > { %743 = vst [vmem:[%s1374_s25 + $0x120] sm:$0xff] %v583_v44  ;;  %745 = vst [vmem:[%s1374_s25 + $0x130] sm:$0xff] %v684_v45  ;;  %v585_v46 = vpop.f32.mrb[19].mxu0  ;;  %v686_v47 = vpop.f32.mrb[19].mxu1  ;;  %v842_v29 = vld [vmem:[%s1374_s25 + $0xe8] sm:$0xff] (%p1217_p6)  ;;  %v846_v31 = vld [vmem:[%s1374_s25 + $0xf8] sm:$0xff] (%p1217_p6) }
 0x144   : > { %744 = vst [vmem:[%s1374_s25 + $0x128] sm:$0xff] %v585_v46  ;;  %746 = vst [vmem:[%s1374_s25 + $0x138] sm:$0xff] %v686_v47 }
 0x145   : > { %833 = vst [vmem:[%s1437_s28 + $0x180] sm:$0xff] (%p1217_p6), %v832_v24  ;;  %835 = vst [vmem:[%s1437_s28 + $0x188] sm:$0xff] (%p1217_p6), %v834_v25 }
 0x146   : > { %837 = vst [vmem:[%s1437_s28 + $0x190] sm:$0xff] (%p1217_p6), %v836_v26  ;;  %839 = vst [vmem:[%s1437_s28 + $0x198] sm:$0xff] (%p1217_p6), %v838_v27 }
 0x147   : > { %841 = vst [vmem:[%s1437_s28 + $0x1c0] sm:$0xff] (%p1217_p6), %v840_v28  ;;  %843 = vst [vmem:[%s1437_s28 + $0x1c8] sm:$0xff] (%p1217_p6), %v842_v29 }
 0x148   : > { %v589_v48 = vpop.f32.mrb[20].mxu0  ;;  %v690_v49 = vpop.f32.mrb[20].mxu1  ;;  %v848_v32 = vld [vmem:[%s1374_s25 + $0x100] sm:$0xff] (%p1217_p6)  ;;  %845 = vst [vmem:[%s1437_s28 + $0x1d0] sm:$0xff] (%p1217_p6), %v844_v30  ;;  %847 = vst [vmem:[%s1437_s28 + $0x1d8] sm:$0xff] (%p1217_p6), %v846_v31  ;;  %v852_v34 = vld [vmem:[%s1374_s25 + $0x110] sm:$0xff] (%p1217_p6) }
 0x149   : > { %747 = vst [vmem:[%s1374_s25 + $0x140] sm:$0xff] %v589_v48  ;;  %749 = vst [vmem:[%s1374_s25 + $0x150] sm:$0xff] %v690_v49  ;;  %v591_v50 = vpop.f32.mrb[21].mxu0  ;;  %v692_v51 = vpop.f32.mrb[21].mxu1  ;;  %v850_v33 = vld [vmem:[%s1374_s25 + $0x108] sm:$0xff] (%p1217_p6)  ;;  %v854_v35 = vld [vmem:[%s1374_s25 + $0x118] sm:$0xff] (%p1217_p6) }
 0x14a   : > { %748 = vst [vmem:[%s1374_s25 + $0x148] sm:$0xff] %v591_v50  ;;  %750 = vst [vmem:[%s1374_s25 + $0x158] sm:$0xff] %v692_v51  ;;  %v593_v52 = vpop.f32.mrb[22].mxu0  ;;  %v694_v53 = vpop.f32.mrb[22].mxu1  ;;  %v856_v36 = vld [vmem:[%s1374_s25 + $0x120] sm:$0xff] (%p1217_p6)  ;;  %v860_v38 = vld [vmem:[%s1374_s25 + $0x130] sm:$0xff] (%p1217_p6) }
 0x14b   : > { %751 = vst [vmem:[%s1374_s25 + $0x160] sm:$0xff] %v593_v52  ;;  %753 = vst [vmem:[%s1374_s25 + $0x170] sm:$0xff] %v694_v53  ;;  %v595_v54 = vpop.f32.mrb[23].mxu0  ;;  %v696_v55 = vpop.f32.mrb[23].mxu1  ;;  %v858_v37 = vld [vmem:[%s1374_s25 + $0x128] sm:$0xff] (%p1217_p6)  ;;  %v862_v39 = vld [vmem:[%s1374_s25 + $0x138] sm:$0xff] (%p1217_p6) }
 0x14c   : > { %752 = vst [vmem:[%s1374_s25 + $0x168] sm:$0xff] %v595_v54  ;;  %754 = vst [vmem:[%s1374_s25 + $0x178] sm:$0xff] %v696_v55 }
 0x14d   : > { %765 = sbr.rel (!%p1217_p6) target bundleno = 347 (0x15b), region = 55  ;;  %849 = vst [vmem:[%s1437_s28 + $0x200] sm:$0xff] (%p1217_p6), %v848_v32  ;;  %851 = vst [vmem:[%s1437_s28 + $0x208] sm:$0xff] (%p1217_p6), %v850_v33 }
 0x14e   : > { %853 = vst [vmem:[%s1437_s28 + $0x210] sm:$0xff] (%p1217_p6), %v852_v34  ;;  %855 = vst [vmem:[%s1437_s28 + $0x218] sm:$0xff] (%p1217_p6), %v854_v35 }
 0x14f   : > { %857 = vst [vmem:[%s1437_s28 + $0x240] sm:$0xff] (%p1217_p6), %v856_v36  ;;  %859 = vst [vmem:[%s1437_s28 + $0x248] sm:$0xff] (%p1217_p6), %v858_v37 }
 0x150   : > { %v599_v56 = vpop.f32.mrb[24].mxu0  ;;  %v700_v57 = vpop.f32.mrb[24].mxu1  ;;  %861 = vst [vmem:[%s1437_s28 + $0x250] sm:$0xff] (%p1217_p6), %v860_v38  ;;  %v864_v40 = vld [vmem:[%s1374_s25 + $0x140] sm:$0xff] (%p1217_p6)  ;;  %863 = vst [vmem:[%s1437_s28 + $0x258] sm:$0xff] (%p1217_p6), %v862_v39  ;;  %v868_v42 = vld [vmem:[%s1374_s25 + $0x150] sm:$0xff] (%p1217_p6) }
 0x151   : > { %755 = vst [vmem:[%s1374_s25 + $0x180] sm:$0xff] %v599_v56  ;;  %757 = vst [vmem:[%s1374_s25 + $0x190] sm:$0xff] %v700_v57  ;;  %v601_v58 = vpop.f32.mrb[25].mxu0  ;;  %v702_v59 = vpop.f32.mrb[25].mxu1  ;;  %v866_v41 = vld [vmem:[%s1374_s25 + $0x148] sm:$0xff] (%p1217_p6)  ;;  %v870_v43 = vld [vmem:[%s1374_s25 + $0x158] sm:$0xff] (%p1217_p6) }
 0x152   : > { %756 = vst [vmem:[%s1374_s25 + $0x188] sm:$0xff] %v601_v58  ;;  %758 = vst [vmem:[%s1374_s25 + $0x198] sm:$0xff] %v702_v59  ;;  %v603_v60 = vpop.f32.mrb[26].mxu0  ;;  %v704_v61 = vpop.f32.mrb[26].mxu1  ;;  %v872_v44 = vld [vmem:[%s1374_s25 + $0x160] sm:$0xff] (%p1217_p6)  ;;  %v876_v46 = vld [vmem:[%s1374_s25 + $0x170] sm:$0xff] (%p1217_p6) }
 0x153   : > { %v604_v62 = vpop.f32.mrb[27].mxu0  ;;  %v705_v63 = vpop.f32.mrb[27].mxu1  ;;  %865 = vst [vmem:[%s1437_s28 + $0x280] sm:$0xff] (%p1217_p6), %v864_v40  ;;  %867 = vst [vmem:[%s1437_s28 + $0x288] sm:$0xff] (%p1217_p6), %v866_v41  ;;  %v874_v45 = vld [vmem:[%s1374_s25 + $0x168] sm:$0xff] (%p1217_p6)  ;;  %v878_v47 = vld [vmem:[%s1374_s25 + $0x178] sm:$0xff] (%p1217_p6) }
 0x154   : > { %869 = vst [vmem:[%s1437_s28 + $0x290] sm:$0xff] %v868_v42  ;;  %871 = vst [vmem:[%s1437_s28 + $0x298] sm:$0xff] %v870_v43 }
 0x155   : > { %873 = vst [vmem:[%s1437_s28 + $0x2c0] sm:$0xff] %v872_v44  ;;  %875 = vst [vmem:[%s1437_s28 + $0x2c8] sm:$0xff] %v874_v45 }
 0x156   : > { %877 = vst [vmem:[%s1437_s28 + $0x2d0] sm:$0xff] %v876_v46  ;;  %879 = vst [vmem:[%s1437_s28 + $0x2d8] sm:$0xff] %v878_v47 }
 0x158   : > { %v880_v48 = vld [vmem:[%s1374_s25 + $0x180] sm:$0xff]  ;;  %v884_v50 = vld [vmem:[%s1374_s25 + $0x190] sm:$0xff] }
 0x159   : > { %v882_v49 = vld [vmem:[%s1374_s25 + $0x188] sm:$0xff]  ;;  %881 = vst [vmem:[%s1437_s28 + $0x300] sm:$0xff] %v880_v48  ;;  %885 = vst [vmem:[%s1437_s28 + $0x310] sm:$0xff] %v884_v50  ;;  %v886_v51 = vld [vmem:[%s1374_s25 + $0x198] sm:$0xff] }
 0x15a   : > { %883 = vst [vmem:[%s1437_s28 + $0x308] sm:$0xff] %v882_v49  ;;  %887 = vst [vmem:[%s1437_s28 + $0x318] sm:$0xff] %v886_v51 }
 0x15b PF: > { %s12_s13 = sadd.s32 1, %s1164_s13   ;;  %s1559_s9 = smov %s1152_s10 }
 0x15c   : > { %p9_p11 = scmp.ge.s32.totalorder %s12_s13, 4   ;;  %s1560_s10 = smov %s1222_s19 }
 0x15d   : > { %s1561_s11 = smov %s1160_s12  ;;  %s1562_s12 = smov %s1564_s14 }
 0x15e   :  { %11 = sbr.rel (!%p9_p11) target bundleno = 3 (0x3), region = 112 }

// kernel: infogan_forward.17
= control target key start
LH: loop header
LB: loop body
LE: loop exit
PB: predicated region body
PF: predicated region fallthrough
CT: control target
= control target key end

     0   :  { %7 = vsyncpa [#allocation3], 0  ;;  %s5908_s0 = inlined_call_operand.vmem [shape: bf16[8,1024], index: 0, kind: input, shape index: {}]   ;;  %s5909_s1 = inlined_call_operand.hbm [shape: bf16[1024,6272], index: 1, kind: input, shape index: {}]   ;;  %s5910_s2 = inlined_call_operand.vmem [shape: bf16[8,6272], index: 2, kind: output, shape index: {}]  }
   0x1   :  { %9 = vsyncpa [#allocation3 + $0x1], 0  ;;  %s5255_s9 = smov 0   ;;  %s5257_s10 = smov 0  }
   0x2   :  { %s5259_s11 = smov 0   ;;  %s5261_s12 = smov 0  }
   0x3   :  { %s5263_s13 = smov 0   ;;  %s5265_s14 = smov 0  }
   0x4 LB: > { %s3849_s15 = sadd.s32 4294967295, %s5234_s14   ;;  %s24_s16 = sadd.s32 1, %s5230_s13  ;;  %s5234_s14 = sphi %s5265_s14, %s15_s14   ;;  %s5230_s13 = sphi %s5263_s13, %s5918_s13   ;;  %s5226_s12 = sphi %s5261_s12, %s5917_s12   ;;  %s5222_s11 = sphi %s5259_s11, %s5916_s11   ;;  %s5218_s10 = sphi %s5257_s10, %s5915_s10   ;;  %s5214_s9 = sphi %s5255_s9, %s5914_s9  }
   0x5   : > { %p25_p0 = scmp.ge.s32.totalorder %s24_s16, 7  ;;  %s60_s17 = sadd.s32 1, %s5222_s11 }
   0x6   : > { %p67_p1 = scmp.ne.s32.totalorder %s5222_s11, %s5218_s10  ;;  %p68_p2 = scmp.eq.s32.totalorder %s5234_s14, 0 }
   0x7   : > { %s5920_s16 = smov (%p25_p0, %s24_s16), 0  ;;  %p73_p4 = scmp.ne.s32.totalorder %s5218_s10, %s5214_s9 }
   0x8   : > { %p69_p3 = por %p68_p2, %p67_p1  ;;  %s57_s18 = ssub.s32 %s5230_s13, %s5920_s16 }
   0x9   : > { %p74_p5 = scmp.eq.s32.totalorder %s3849_s15, 0  ;;  %p58_p6 = scmp.eq.s32.totalorder %s57_s18, 0 }
   0xa   : > { %p4454_p8 = scmp.lt.s32.totalorder %s5234_s14, 7  ;;  %s133_s21 = sand.u32 1, %s5222_s11  }
   0xb   : > { %p5294_p7 = por %p74_p5, %p73_p4  ;;  %s4319_s22 = smul.u32 448, %s5230_s13 }
   0xc   : > { %s5300_s20 = scalar_select %p58_p6, %s5222_s11, %s60_s17  }
   0xd   : > { %s4446_s23 = smul.u32 3584, %s133_s21  ;;  %s5307_s26 = scalar_lea.hbm %s5909_s1, %s4319_s22 }
   0xe   : > { %p5309_p9 = pnand %p4454_p8, %p69_p3  ;;  %s5316_s30 = scalar_lea.sflag [#allocation3], %s133_s21 }
   0xf   : > { %s137_s28 = scalar_lea.vmem [#allocation2], %s4446_s23  ;;  %s5154_s3 = scalar_lea.hbm %s5307_s26, 57344 }
  0x10   : > { %s144_s29 = sshll.u32 %s137_s28, 4  ;;  %p5155_p11 = scmp.ne.s32.totalorder %s5307_s26, %s5154_s3  ;;  %s5313_s29 = int_to_ptr.vmem [resolvable:$true] %s144_s29 }
  0x11   : > { %p5156_p12 = pneg %p5309_p9  ;;  %s5159_s6 = scalar_lea.hbm %s5909_s1, 401408 }
  0x12   : > { %p5160_p1 = scmp.lt.u32.totalorder %s5307_s26, %s5909_s1  ;;  %p5161_p2 = scmp.lt.u32.totalorder %s5159_s6, %s5154_s3 }
  0x13   : > { %p5157_p13 = pnand %p5156_p12, %p5155_p11  ;;  %p5163_p4 = scmp.lt.u32.totalorder %s5154_s3, %s5307_s26 }
  0x14   : > { %p5162_p3 = por %p5161_p2, %p5160_p1 }
  0x15   : > { %p5158_p0 = pneg %p5157_p13 }
  0x16   : > { %p5164_p5 = por %p5163_p4, %p5162_p3 }
  0x18   : > { %p5165_p6 = pnand %p5164_p5, %p5158_p0 }
  0x1a   : > { %5168 = shalt.err (!%p5165_p6)
}
  0x1b   : > { %s5169_s9 = scalar_lea.vmem %s5313_s29, 57344  ;;  %s5236_s15 = smov [#allocation2]  }
  0x1c   : > { %p5170_p8 = scmp.ne.s32.totalorder %s5313_s29, %s5169_s9  ;;  %s5174_s17 = sshll.u32 %s5236_s15, 4  ;;  %s5175_s17 = int_to_ptr.vmem [resolvable:$false] %s5174_s17 }
  0x1d   : > { %s5176_s18 = scalar_lea.vmem %s5175_s17, 114688  ;;  %p5177_p10 = scmp.lt.s32.totalorder %s5313_s29, %s5175_s17 }
  0x1e   : > { %p5172_p11 = pnand %p5170_p8, %p5156_p12  ;;  %p5178_p1 = scmp.lt.s32.totalorder %s5176_s18, %s5169_s9 }
  0x20   : > { %p5173_p13 = pneg %p5172_p11  ;;  %p5179_p2 = por %p5178_p1, %p5177_p10 }
  0x22   : > { %p5180_p3 = pnand %p5179_p2, %p5173_p13 }
  0x24   : > { %5183 = shalt.err (!%p5180_p3)
}
  0x25   : > { %s5237_s21 = smov 3136   ;;  %s5238_s22 = smov 448  }
  0x26   : > { %s5239_s23 = smov 28   ;;  %p152_p12 = scmp.lt.s32.totalorder %s5234_s14, 8 }
  0x27   : > { %4453 = dma.hbm_to_vmem [thread:$0]  (!%p5309_p9), %s5307_s26, 57344, %s5313_s29, %s5316_s30, %s5237_s21, %s5238_s22, %s5239_s23  }
  0x28   : > { %p5913_p0 = scmp.ge.s32.totalorder %s5234_s14, 1 }
  0x2a   : > { %p153_p4 = pnand %p5913_p0, %p152_p12 }
  0x2b   : > { %s158_s24 = sand.u32 (!%p153_p4), 1, %s5218_s10  }
  0x2c   : > { %156 = sbr.rel (%p153_p4) target bundleno = 722 (0x2d2), region = 28  ;;  %s159_s28 = scalar_lea.sflag (!%p153_p4), [#allocation3], %s158_s24 }
  0x2d   : > { %s4447_s25 = smul.u32 (!%p153_p4), 3584, %s158_s24 }
  0x2f   : > { %s5348_s3 = scalar_lea.vmem (!%p153_p4), [#allocation2], %s4447_s25 }
  0x33   : > { %5209 = dma.done.wait (%p5294_p7), %s159_s28, 57344  }
  0x34   : > { %5211 = vsyncadd (%p5294_p7), %s159_s28, 4294909952  ;;  %v4506_v0 = vld [vmem:[%s5348_s3 + $0x4] ss:$28 sps:$4 sm:$0xff]   ;;  %v4512_v4 = vld [vmem:[%s5348_s3 + $0x3c] ss:$28 sps:$4 sm:$0xff]   ;;  %s198_s7 = smul.u32 7, %s5226_s12 }
  0x35   : > { %v4508_v1 = vld [vmem:[%s5348_s3 + $0x384] ss:$28 sps:$4 sm:$0xff]   ;;  %3057 = vmatprep.subr.bf16.mxu1 %v4506_v0  ;;  %v4514_v5 = vld [vmem:[%s5348_s3 + $0x3bc] ss:$28 sps:$4 sm:$0xff]   ;;  %v4518_v8 = vld [vmem:[%s5348_s3 + $0x74] ss:$28 sps:$4 sm:$0xff]  }
  0x36   : > { %v4510_v2 = vld [vmem:[%s5348_s3] ss:$28 sps:$4 sm:$0xff]   ;;  %3098 = vmatprep.subr.bf16.mxu0 %v4508_v1  ;;  %v4516_v6 = vld [vmem:[%s5348_s3 + $0x38] ss:$28 sps:$4 sm:$0xff]   ;;  %v4522_v10 = vld [vmem:[%s5348_s3 + $0x70] ss:$28 sps:$4 sm:$0xff]  }
  0x37   : > { %v4511_v3 = vld [vmem:[%s5348_s3 + $0x380] ss:$28 sps:$4 sm:$0xff]   ;;  %3058 = vmatpush1.bf16.msra.mxu1 %v4510_v2  ;;  %v4517_v7 = vld [vmem:[%s5348_s3 + $0x3b8] ss:$28 sps:$4 sm:$0xff]   ;;  %v4523_v11 = vld [vmem:[%s5348_s3 + $0x3f0] ss:$28 sps:$4 sm:$0xff]  }
  0x38   : > { %3099 = vmatpush1.bf16.msra.mxu0 %v4511_v3  ;;  %3059 = vmatprep.subr.bf16.mxu1 %v4512_v4  ;;  %v4520_v9 = vld [vmem:[%s5348_s3 + $0x3f4] ss:$28 sps:$4 sm:$0xff]   ;;  %v4524_v12 = vld [vmem:[%s5348_s3 + $0xac] ss:$28 sps:$4 sm:$0xff]   ;;  %v4530_v16 = vld [vmem:[%s5348_s3 + $0xe4] ss:$28 sps:$4 sm:$0xff]  }
  0x39   : > { %3100 = vmatprep.subr.bf16.mxu0 %v4514_v5  ;;  %v4526_v13 = vld [vmem:[%s5348_s3 + $0x42c] ss:$28 sps:$4 sm:$0xff]   ;;  %v4532_v17 = vld [vmem:[%s5348_s3 + $0x464] ss:$28 sps:$4 sm:$0xff]   ;;  %v4536_v20 = vld [vmem:[%s5348_s3 + $0x11c] ss:$28 sps:$4 sm:$0xff]  }
  0x3a   : > { %v4528_v14 = vld [vmem:[%s5348_s3 + $0xa8] ss:$28 sps:$4 sm:$0xff]   ;;  %v4534_v18 = vld [vmem:[%s5348_s3 + $0xe0] ss:$28 sps:$4 sm:$0xff]   ;;  %v4540_v22 = vld [vmem:[%s5348_s3 + $0x118] ss:$28 sps:$4 sm:$0xff]  }
  0x3b   : > { %3060 = vmatpush1.bf16.msra.mxu1 %v4516_v6  ;;  %v4529_v15 = vld [vmem:[%s5348_s3 + $0x428] ss:$28 sps:$4 sm:$0xff]   ;;  %v4535_v19 = vld [vmem:[%s5348_s3 + $0x460] ss:$28 sps:$4 sm:$0xff]   ;;  %v4541_v23 = vld [vmem:[%s5348_s3 + $0x498] ss:$28 sps:$4 sm:$0xff]  }
  0x3c   : > { %3101 = vmatpush1.bf16.msra.mxu0 %v4517_v7  ;;  %3061 = vmatprep.subr.bf16.mxu1 %v4518_v8  ;;  %v4538_v21 = vld [vmem:[%s5348_s3 + $0x49c] ss:$28 sps:$4 sm:$0xff]   ;;  %v4542_v24 = vld [vmem:[%s5348_s3 + $0x154] ss:$28 sps:$4 sm:$0xff]   ;;  %v4548_v28 = vld [vmem:[%s5348_s3 + $0x18c] ss:$28 sps:$4 sm:$0xff]  }
  0x3d   : > { %3102 = vmatprep.subr.bf16.mxu0 %v4520_v9  ;;  %v4544_v25 = vld [vmem:[%s5348_s3 + $0x4d4] ss:$28 sps:$4 sm:$0xff]   ;;  %v4550_v29 = vld [vmem:[%s5348_s3 + $0x50c] ss:$28 sps:$4 sm:$0xff]   ;;  %v4554_v32 = vld [vmem:[%s5348_s3 + $0x1c4] ss:$28 sps:$4 sm:$0xff]  }
  0x3e   : > { %v4546_v26 = vld [vmem:[%s5348_s3 + $0x150] ss:$28 sps:$4 sm:$0xff]   ;;  %v4552_v30 = vld [vmem:[%s5348_s3 + $0x188] ss:$28 sps:$4 sm:$0xff]   ;;  %v4558_v34 = vld [vmem:[%s5348_s3 + $0x1c0] ss:$28 sps:$4 sm:$0xff]  }
  0x3f   : > { %3062 = vmatpush1.bf16.msra.mxu1 %v4522_v10  ;;  %v4547_v27 = vld [vmem:[%s5348_s3 + $0x4d0] ss:$28 sps:$4 sm:$0xff]   ;;  %v4553_v31 = vld [vmem:[%s5348_s3 + $0x508] ss:$28 sps:$4 sm:$0xff]   ;;  %v4559_v35 = vld [vmem:[%s5348_s3 + $0x540] ss:$28 sps:$4 sm:$0xff]  }
  0x40   : > { %3103 = vmatpush1.bf16.msra.mxu0 %v4523_v11  ;;  %3063 = vmatprep.subr.bf16.mxu1 %v4524_v12  ;;  %v4556_v33 = vld [vmem:[%s5348_s3 + $0x544] ss:$28 sps:$4 sm:$0xff]   ;;  %v4560_v36 = vld [vmem:[%s5348_s3 + $0x1fc] ss:$28 sps:$4 sm:$0xff]   ;;  %v4566_v40 = vld [vmem:[%s5348_s3 + $0x234] ss:$28 sps:$4 sm:$0xff]  }
  0x41   : > { %3104 = vmatprep.subr.bf16.mxu0 %v4526_v13  ;;  %v4562_v37 = vld [vmem:[%s5348_s3 + $0x57c] ss:$28 sps:$4 sm:$0xff]   ;;  %v4568_v41 = vld [vmem:[%s5348_s3 + $0x5b4] ss:$28 sps:$4 sm:$0xff]   ;;  %v4572_v44 = vld [vmem:[%s5348_s3 + $0x26c] ss:$28 sps:$4 sm:$0xff]  }
  0x42   : > { %v4564_v38 = vld [vmem:[%s5348_s3 + $0x1f8] ss:$28 sps:$4 sm:$0xff]   ;;  %v4570_v42 = vld [vmem:[%s5348_s3 + $0x230] ss:$28 sps:$4 sm:$0xff]   ;;  %v209_v46 = vld [vmem:[%s5908_s0] sm:$0xff]  ;;  %p201_p7 = scmp.lt.s32.totalorder %s198_s7, 48 }
  0x43   : > { %3064 = vmatpush1.bf16.msra.mxu1 %v4528_v14  ;;  %v4565_v39 = vld [vmem:[%s5348_s3 + $0x578] ss:$28 sps:$4 sm:$0xff]   ;;  %v4571_v43 = vld [vmem:[%s5348_s3 + $0x5b0] ss:$28 sps:$4 sm:$0xff]   ;;  %v5403_v47 = vcombine.high %v209_v46, %v209_v46  ;;  %v4576_v49 = vld [vmem:[%s5348_s3 + $0x268] ss:$28 sps:$4 sm:$0xff]   ;;  %v5432_v6 = vcombine.low %v209_v46, %v209_v46 }
  0x44   : > { %3105 = vmatpush1.bf16.msra.mxu0 %v4529_v15  ;;  %3065 = vmatprep.subr.bf16.mxu1 %v4530_v16  ;;  %v4574_v45 = vld [vmem:[%s5348_s3 + $0x5ec] ss:$28 sps:$4 sm:$0xff]   ;;  %v4578_v52 = vld [vmem:[%s5348_s3 + $0x2a4] ss:$28 sps:$4 sm:$0xff]   ;;  %v4584_v56 = vld [vmem:[%s5348_s3 + $0x2dc] ss:$28 sps:$4 sm:$0xff]  }
  0x45   : > { %3106 = vmatprep.subr.bf16.mxu0 %v4532_v17  ;;  %v210_v48 = vld [vmem:[%s5908_s0 + $0x8] sm:$0xff]  ;;  %v4580_v53 = vld [vmem:[%s5348_s3 + $0x624] ss:$28 sps:$4 sm:$0xff]   ;;  %3089 = vmatprep.mubr.bf16.mxu1 %v5403_v47  ;;  %v4586_v57 = vld [vmem:[%s5348_s3 + $0x65c] ss:$28 sps:$4 sm:$0xff]   ;;  %s5922_s7 = smov (!%p201_p7, %s198_s7), 48 }
  0x46   : > { %v4577_v50 = vld [vmem:[%s5348_s3 + $0x5e8] ss:$28 sps:$4 sm:$0xff]   ;;  %v5410_v51 = vcombine.high %v210_v48, %v210_v48  ;;  %v4582_v54 = vld [vmem:[%s5348_s3 + $0x2a0] ss:$28 sps:$4 sm:$0xff]   ;;  %v4588_v58 = vld [vmem:[%s5348_s3 + $0x2d8] ss:$28 sps:$4 sm:$0xff]   ;;  %v5434_v7 = vcombine.low %v210_v48, %v210_v48 }
  0x47   : > { %3066 = vmatpush1.bf16.msra.mxu1 %v4534_v18  ;;  %v4583_v55 = vld [vmem:[%s5348_s3 + $0x620] ss:$28 sps:$4 sm:$0xff]   ;;  %v4589_v59 = vld [vmem:[%s5348_s3 + $0x658] ss:$28 sps:$4 sm:$0xff]   ;;  %v4594_v62 = vld [vmem:[%s5348_s3 + $0x310] ss:$28 sps:$4 sm:$0xff]  }
  0x48   : > { %3107 = vmatpush1.bf16.msra.mxu0 %v4535_v19  ;;  %3067 = vmatprep.subr.bf16.mxu1 %v4536_v20  ;;  %v4590_v60 = vld [vmem:[%s5348_s3 + $0x314] ss:$28 sps:$4 sm:$0xff]   ;;  %v4596_v0 = vld [vmem:[%s5348_s3 + $0x34c] ss:$28 sps:$4 sm:$0xff]   ;;  %v4607_v4 = vld [vmem:[%s5348_s3 + $0x704] ss:$28 sps:$4 sm:$0xff]  }
  0x49   : > { %3108 = vmatprep.subr.bf16.mxu0 %v4538_v21  ;;  %3130 = vmatprep.mubr.bf16.mxu0 %v5410_v51  ;;  %v4592_v61 = vld [vmem:[%s5348_s3 + $0x694] ss:$28 sps:$4 sm:$0xff]   ;;  %v4598_v1 = vld [vmem:[%s5348_s3 + $0x6cc] ss:$28 sps:$4 sm:$0xff]   ;;  %v4605_v8 = vld [vmem:[%s5348_s3 + $0x700] ss:$28 sps:$4 sm:$0xff]  }
  0x4a   : > { %v4595_v63 = vld [vmem:[%s5348_s3 + $0x690] ss:$28 sps:$4 sm:$0xff]   ;;  %v4600_v2 = vld [vmem:[%s5348_s3 + $0x348] ss:$28 sps:$4 sm:$0xff]   ;;  %v4614_v10 = vld [vmem:[%s5348_s3 + $0x73c] ss:$28 sps:$4 sm:$0xff]  }
  0x4b   : > { %3068 = vmatpush1.bf16.msra.mxu1 %v4540_v22  ;;  %v4601_v3 = vld [vmem:[%s5348_s3 + $0x6c8] ss:$28 sps:$4 sm:$0xff]   ;;  %v4612_v12 = vld [vmem:[%s5348_s3 + $0x738] ss:$28 sps:$4 sm:$0xff]   ;;  %v4615_v13 = vld [vmem:[%s5348_s3 + $0x40] ss:$28 sps:$4 sm:$0xff]  }
  0x4c   : > { %3109 = vmatpush1.bf16.msra.mxu0 %v4541_v23  ;;  %3069 = vmatprep.subr.bf16.mxu1 %v4542_v24  ;;  %v4610_v5 = vld [vmem:[%s5348_s3 + $0xc] ss:$28 sps:$4 sm:$0xff]   ;;  %v4617_v11 = vld [vmem:[%s5348_s3 + $0x44] ss:$28 sps:$4 sm:$0xff]   ;;  %v4620_v14 = vld [vmem:[%s5348_s3 + $0x774] ss:$28 sps:$4 sm:$0xff]  }
  0x4d   : > { %3110 = vmatprep.subr.bf16.mxu0 %v4544_v25  ;;  %v4608_v9 = vld [vmem:[%s5348_s3 + $0x8] ss:$28 sps:$4 sm:$0xff]   ;;  %v4623_v15 = vld [vmem:[%s5348_s3 + $0x7c] ss:$28 sps:$4 sm:$0xff]   ;;  %v4618_v16 = vld [vmem:[%s5348_s3 + $0x770] ss:$28 sps:$4 sm:$0xff]  }
  0x4e   : > { %v4621_v17 = vld [vmem:[%s5348_s3 + $0x78] ss:$28 sps:$4 sm:$0xff]   ;;  %v4626_v18 = vld [vmem:[%s5348_s3 + $0x7ac] ss:$28 sps:$4 sm:$0xff]   ;;  %v4632_v22 = vld [vmem:[%s5348_s3 + $0x7e4] ss:$28 sps:$4 sm:$0xff]  }
  0x4f   : > { %3070 = vmatpush1.bf16.msra.mxu1 %v4546_v26  ;;  %v4629_v19 = vld [vmem:[%s5348_s3 + $0xb4] ss:$28 sps:$4 sm:$0xff]   ;;  %v4624_v20 = vld [vmem:[%s5348_s3 + $0x7a8] ss:$28 sps:$4 sm:$0xff]   ;;  %v4630_v24 = vld [vmem:[%s5348_s3 + $0x7e0] ss:$28 sps:$4 sm:$0xff]  }
  0x50   : > { %3111 = vmatpush1.bf16.msra.mxu0 %v4547_v27  ;;  %3071 = vmatprep.subr.bf16.mxu1 %v4548_v28  ;;  %v4627_v21 = vld [vmem:[%s5348_s3 + $0xb0] ss:$28 sps:$4 sm:$0xff]   ;;  %v4633_v25 = vld [vmem:[%s5348_s3 + $0xe8] ss:$28 sps:$4 sm:$0xff]   ;;  %v4638_v26 = vld [vmem:[%s5348_s3 + $0x81c] ss:$28 sps:$4 sm:$0xff]  }
  0x51   : > { %3112 = vmatprep.subr.bf16.mxu0 %v4550_v29  ;;  %v4635_v23 = vld [vmem:[%s5348_s3 + $0xec] ss:$28 sps:$4 sm:$0xff]   ;;  %v4641_v27 = vld [vmem:[%s5348_s3 + $0x124] ss:$28 sps:$4 sm:$0xff]   ;;  %v4636_v28 = vld [vmem:[%s5348_s3 + $0x818] ss:$28 sps:$4 sm:$0xff]  }
  0x52   : > { %v4639_v29 = vld [vmem:[%s5348_s3 + $0x120] ss:$28 sps:$4 sm:$0xff]   ;;  %v4660_v46 = vld [vmem:[%s5348_s3 + $0x8f8] ss:$28 sps:$4 sm:$0xff]   ;;  %s3856_s12 = sshll.u32 %s5922_s7, 2 }
  0x53   : > { %3072 = vmatpush1.bf16.msra.mxu1 %v4552_v30  ;;  %v4644_v30 = vld [vmem:[%s5348_s3 + $0x854] ss:$28 sps:$4 sm:$0xff]   ;;  %v4663_v48 = vld [vmem:[%s5348_s3 + $0x200] ss:$28 sps:$4 sm:$0xff]   ;;  %s5844_s15 = scalar_lea.vmem %s5910_s2, %s3856_s12 }
  0x54   : > { %3113 = vmatpush1.bf16.msra.mxu0 %v4553_v31  ;;  %3073 = vmatprep.subr.bf16.mxu1 %v4554_v32  ;;  %v4647_v31 = vld [vmem:[%s5348_s3 + $0x15c] ss:$28 sps:$4 sm:$0xff]   ;;  %v5466_v32 = vld [vmem:[%s5908_s0 + $0x10] sm:$0xff] }
  0x55   : > { %3114 = vmatprep.subr.bf16.mxu0 %v4556_v33  ;;  %v4642_v33 = vld [vmem:[%s5348_s3 + $0x850] ss:$28 sps:$4 sm:$0xff]  }
  0x57   : > { %3074 = vmatpush1.bf16.msra.mxu1 %v4558_v34  ;;  %v5471_v34 = vcombine.high %v5466_v32, %v5466_v32 }
  0x58   : > { %3115 = vmatpush1.bf16.msra.mxu0 %v4559_v35  ;;  %3075 = vmatprep.subr.bf16.mxu1 %v4560_v36  ;;  %v4645_v35 = vld [vmem:[%s5348_s3 + $0x158] ss:$28 sps:$4 sm:$0xff]   ;;  %v4650_v36 = vld [vmem:[%s5348_s3 + $0x88c] ss:$28 sps:$4 sm:$0xff]  }
  0x59   : > { %3116 = vmatprep.subr.bf16.mxu0 %v4562_v37  ;;  %v4653_v37 = vld [vmem:[%s5348_s3 + $0x194] ss:$28 sps:$4 sm:$0xff]  }
  0x5b   : > { %3076 = vmatpush1.bf16.msra.mxu1 %v4564_v38  ;;  %v4648_v38 = vld [vmem:[%s5348_s3 + $0x888] ss:$28 sps:$4 sm:$0xff]  }
  0x5c   : > { %3117 = vmatpush1.bf16.msra.mxu0 %v4565_v39  ;;  %3077 = vmatprep.subr.bf16.mxu1 %v4566_v40  ;;  %v4651_v39 = vld [vmem:[%s5348_s3 + $0x190] ss:$28 sps:$4 sm:$0xff]   ;;  %v4656_v40 = vld [vmem:[%s5348_s3 + $0x8c4] ss:$28 sps:$4 sm:$0xff]  }
  0x5d   : > { %3118 = vmatprep.subr.bf16.mxu0 %v4568_v41  ;;  %v4659_v41 = vld [vmem:[%s5348_s3 + $0x1cc] ss:$28 sps:$4 sm:$0xff]  }
  0x5f   : > { %3078 = vmatpush1.bf16.msra.mxu1 %v4570_v42  ;;  %v4654_v42 = vld [vmem:[%s5348_s3 + $0x8c0] ss:$28 sps:$4 sm:$0xff]  }
  0x60   : > { %3119 = vmatpush1.bf16.msra.mxu0 %v4571_v43  ;;  %3079 = vmatprep.subr.bf16.mxu1 %v4572_v44  ;;  %v4657_v43 = vld [vmem:[%s5348_s3 + $0x1c8] ss:$28 sps:$4 sm:$0xff]   ;;  %v4662_v44 = vld [vmem:[%s5348_s3 + $0x8fc] ss:$28 sps:$4 sm:$0xff]  }
  0x61   : > { %3120 = vmatprep.subr.bf16.mxu0 %v4574_v45  ;;  %v4665_v45 = vld [vmem:[%s5348_s3 + $0x204] ss:$28 sps:$4 sm:$0xff]  }
  0x63   : > { %3080 = vmatpush1.bf16.msra.mxu1 %v4576_v49  ;;  %v4668_v49 = vld [vmem:[%s5348_s3 + $0x934] ss:$28 sps:$4 sm:$0xff]  }
  0x64   : > { %3121 = vmatpush1.bf16.msra.mxu0 %v4577_v50  ;;  %3081 = vmatprep.subr.bf16.mxu1 %v4578_v52  ;;  %v4671_v50 = vld [vmem:[%s5348_s3 + $0x23c] ss:$28 sps:$4 sm:$0xff]   ;;  %v4666_v52 = vld [vmem:[%s5348_s3 + $0x930] ss:$28 sps:$4 sm:$0xff]  }
  0x65   : > { %3122 = vmatprep.subr.bf16.mxu0 %v4580_v53  ;;  %v4669_v53 = vld [vmem:[%s5348_s3 + $0x238] ss:$28 sps:$4 sm:$0xff]  }
  0x67   : > { %3082 = vmatpush1.bf16.msra.mxu1 %v4582_v54  ;;  %v4674_v54 = vld [vmem:[%s5348_s3 + $0x96c] ss:$28 sps:$4 sm:$0xff]  }
  0x68   : > { %3123 = vmatpush1.bf16.msra.mxu0 %v4583_v55  ;;  %3083 = vmatprep.subr.bf16.mxu1 %v4584_v56  ;;  %v4677_v55 = vld [vmem:[%s5348_s3 + $0x274] ss:$28 sps:$4 sm:$0xff]   ;;  %v4672_v56 = vld [vmem:[%s5348_s3 + $0x968] ss:$28 sps:$4 sm:$0xff]  }
  0x69   : > { %3124 = vmatprep.subr.bf16.mxu0 %v4586_v57  ;;  %v4675_v57 = vld [vmem:[%s5348_s3 + $0x270] ss:$28 sps:$4 sm:$0xff]  }
  0x6b   : > { %3084 = vmatpush1.bf16.msra.mxu1 %v4588_v58  ;;  %v4680_v58 = vld [vmem:[%s5348_s3 + $0x9a4] ss:$28 sps:$4 sm:$0xff]  }
  0x6c   : > { %3125 = vmatpush1.bf16.msra.mxu0 %v4589_v59  ;;  %3085 = vmatprep.subr.bf16.mxu1 %v4590_v60  ;;  %v4683_v59 = vld [vmem:[%s5348_s3 + $0x2ac] ss:$28 sps:$4 sm:$0xff]   ;;  %v4678_v60 = vld [vmem:[%s5348_s3 + $0x9a0] ss:$28 sps:$4 sm:$0xff]  }
  0x6d   : > { %3126 = vmatprep.subr.bf16.mxu0 %v4592_v61  ;;  %v4681_v61 = vld [vmem:[%s5348_s3 + $0x2a8] ss:$28 sps:$4 sm:$0xff]  }
  0x6f   : > { %3086 = vmatpush1.bf16.msra.mxu1 %v4594_v62  ;;  %v4686_v62 = vld [vmem:[%s5348_s3 + $0x9dc] ss:$28 sps:$4 sm:$0xff]  }
  0x70   : > { %3127 = vmatpush1.bf16.msra.mxu0 %v4595_v63  ;;  %3087 = vmatprep.subr.bf16.mxu1 %v4596_v0  ;;  %v4689_v63 = vld [vmem:[%s5348_s3 + $0x2e4] ss:$28 sps:$4 sm:$0xff]   ;;  %v4684_v0 = vld [vmem:[%s5348_s3 + $0x9d8] ss:$28 sps:$4 sm:$0xff]  }
  0x71   : > { %3128 = vmatprep.subr.bf16.mxu0 %v4598_v1  ;;  %v4687_v1 = vld [vmem:[%s5348_s3 + $0x2e0] ss:$28 sps:$4 sm:$0xff]  }
  0x73   : > { %3088 = vmatpush1.bf16.msra.mxu1 %v4600_v2  ;;  %v4692_v2 = vld [vmem:[%s5348_s3 + $0xa14] ss:$28 sps:$4 sm:$0xff]  }
  0x74   : > { %3129 = vmatpush1.bf16.msra.mxu0 %v4601_v3  ;;  %3221 = vmatprep.subr.bf16.mxu1 %v4610_v5  ;;  %v4695_v3 = vld [vmem:[%s5348_s3 + $0x31c] ss:$28 sps:$4 sm:$0xff]  }
  0x75   : > { %3139 = vmatprep.subr.bf16.mxu0 %v4607_v4  ;;  %v4690_v4 = vld [vmem:[%s5348_s3 + $0xa10] ss:$28 sps:$4 sm:$0xff]   ;;  %v4693_v5 = vld [vmem:[%s5348_s3 + $0x318] ss:$28 sps:$4 sm:$0xff]  }
  0x76   : > { %3090 = vmatmul.mubr.bf16.vlgmr.msra.gmra.mrb[0].mxu1 %v5432_v6 }
  0x77   : > { %3131 = vmatmul.mubr.bf16.vlgmr.msra.gmra.mrb[0].mxu0 %v5434_v7  ;;  %3222 = vmatpush1.bf16.msra.mxu1 %v4608_v9  ;;  %v4701_v9 = vld [vmem:[%s5348_s3 + $0x354] ss:$28 sps:$4 sm:$0xff]  }
  0x78   : > { %3140 = vmatpush1.bf16.msra.mxu0 %v4605_v8  ;;  %3223 = vmatprep.subr.bf16.mxu1 %v4617_v11  ;;  %v4698_v8 = vld [vmem:[%s5348_s3 + $0xa4c] ss:$28 sps:$4 sm:$0xff]  }
  0x79   : > { %3141 = vmatprep.subr.bf16.mxu0 %v4614_v10  ;;  %3253 = vmatprep.mubr.bf16.mxu1 %v5403_v47  ;;  %v4696_v10 = vld [vmem:[%s5348_s3 + $0xa48] ss:$28 sps:$4 sm:$0xff]   ;;  %v4699_v11 = vld [vmem:[%s5348_s3 + $0x350] ss:$28 sps:$4 sm:$0xff]  }
  0x7a   : > { %3171 = vmatprep.mubr.bf16.mxu0 %v5471_v34 }
  0x7b   : > { %3224 = vmatpush1.bf16.msra.mxu1 %v4615_v13  ;;  %v4708_v13 = vld [vmem:[%s5348_s3 + $0x38c] ss:$28 sps:$4 sm:$0xff]  }
  0x7c   : > { %3142 = vmatpush1.bf16.msra.mxu0 %v4612_v12  ;;  %3225 = vmatprep.subr.bf16.mxu1 %v4623_v15  ;;  %v4705_v12 = vld [vmem:[%s5348_s3 + $0xa84] ss:$28 sps:$4 sm:$0xff]  }
  0x7d   : > { %3143 = vmatprep.subr.bf16.mxu0 %v4620_v14  ;;  %v4703_v14 = vld [vmem:[%s5348_s3 + $0xa80] ss:$28 sps:$4 sm:$0xff]   ;;  %v4706_v15 = vld [vmem:[%s5348_s3 + $0x388] ss:$28 sps:$4 sm:$0xff]  }
  0x7f   : > { %3226 = vmatpush1.bf16.msra.mxu1 %v4621_v17  ;;  %v4712_v17 = vld [vmem:[%s5348_s3 + $0xabc] ss:$28 sps:$4 sm:$0xff]  }
  0x80   : > { %3144 = vmatpush1.bf16.msra.mxu0 %v4618_v16  ;;  %3227 = vmatprep.subr.bf16.mxu1 %v4629_v19  ;;  %v5517_v16 = vcombine.low %v5466_v32, %v5466_v32  ;;  %v5524_v19 = vld [vmem:[%s5908_s0 + $0x18] sm:$0xff]  ;;  %v4733_v32 = vld [vmem:[%s5348_s3 + $0x46c] ss:$28 sps:$4 sm:$0xff]  }
  0x81   : > { %3145 = vmatprep.subr.bf16.mxu0 %v4626_v18  ;;  %v4715_v18 = vld [vmem:[%s5348_s3 + $0x3c4] ss:$28 sps:$4 sm:$0xff]  }
  0x83   : > { %3228 = vmatpush1.bf16.msra.mxu1 %v4627_v21  ;;  %v4710_v21 = vld [vmem:[%s5348_s3 + $0xab8] ss:$28 sps:$4 sm:$0xff]  }
  0x84   : > { %3146 = vmatpush1.bf16.msra.mxu0 %v4624_v20  ;;  %3229 = vmatprep.subr.bf16.mxu1 %v4635_v23  ;;  %v5528_v20 = vcombine.high %v5524_v19, %v5524_v19  ;;  %v4718_v23 = vld [vmem:[%s5348_s3 + $0xaf4] ss:$28 sps:$4 sm:$0xff]  }
  0x85   : > { %3147 = vmatprep.subr.bf16.mxu0 %v4632_v22  ;;  %v4713_v22 = vld [vmem:[%s5348_s3 + $0x3c0] ss:$28 sps:$4 sm:$0xff]  }
  0x87   : > { %3230 = vmatpush1.bf16.msra.mxu1 %v4633_v25  ;;  %v4716_v25 = vld [vmem:[%s5348_s3 + $0xaf0] ss:$28 sps:$4 sm:$0xff]  }
  0x88   : > { %3148 = vmatpush1.bf16.msra.mxu0 %v4630_v24  ;;  %3231 = vmatprep.subr.bf16.mxu1 %v4641_v27  ;;  %v4721_v24 = vld [vmem:[%s5348_s3 + $0x3fc] ss:$28 sps:$4 sm:$0xff]   ;;  %v4724_v27 = vld [vmem:[%s5348_s3 + $0xb2c] ss:$28 sps:$4 sm:$0xff]  }
  0x89   : > { %3149 = vmatprep.subr.bf16.mxu0 %v4638_v26  ;;  %v4719_v26 = vld [vmem:[%s5348_s3 + $0x3f8] ss:$28 sps:$4 sm:$0xff]  }
  0x8b   : > { %3232 = vmatpush1.bf16.msra.mxu1 %v4639_v29  ;;  %v4722_v29 = vld [vmem:[%s5348_s3 + $0xb28] ss:$28 sps:$4 sm:$0xff]  }
  0x8c   : > { %3150 = vmatpush1.bf16.msra.mxu0 %v4636_v28  ;;  %3233 = vmatprep.subr.bf16.mxu1 %v4647_v31  ;;  %v4727_v28 = vld [vmem:[%s5348_s3 + $0x434] ss:$28 sps:$4 sm:$0xff]   ;;  %v4730_v31 = vld [vmem:[%s5348_s3 + $0xb64] ss:$28 sps:$4 sm:$0xff]  }
  0x8d   : > { %3151 = vmatprep.subr.bf16.mxu0 %v4644_v30  ;;  %v4725_v30 = vld [vmem:[%s5348_s3 + $0x430] ss:$28 sps:$4 sm:$0xff]  }
  0x8f   : > { %3234 = vmatpush1.bf16.msra.mxu1 %v4645_v35  ;;  %v4731_v35 = vld [vmem:[%s5348_s3 + $0x468] ss:$28 sps:$4 sm:$0xff]  }
  0x90   : > { %3152 = vmatpush1.bf16.msra.mxu0 %v4642_v33  ;;  %3235 = vmatprep.subr.bf16.mxu1 %v4653_v37  ;;  %v4728_v33 = vld [vmem:[%s5348_s3 + $0xb60] ss:$28 sps:$4 sm:$0xff]  }
  0x91   : > { %3153 = vmatprep.subr.bf16.mxu0 %v4650_v36  ;;  %v4736_v36 = vld [vmem:[%s5348_s3 + $0xb9c] ss:$28 sps:$4 sm:$0xff]   ;;  %v4739_v37 = vld [vmem:[%s5348_s3 + $0x4a4] ss:$28 sps:$4 sm:$0xff]  }
  0x93   : > { %3236 = vmatpush1.bf16.msra.mxu1 %v4651_v39  ;;  %v4737_v39 = vld [vmem:[%s5348_s3 + $0x4a0] ss:$28 sps:$4 sm:$0xff]  }
  0x94   : > { %3154 = vmatpush1.bf16.msra.mxu0 %v4648_v38  ;;  %3237 = vmatprep.subr.bf16.mxu1 %v4659_v41  ;;  %v4734_v38 = vld [vmem:[%s5348_s3 + $0xb98] ss:$28 sps:$4 sm:$0xff]  }
  0x95   : > { %3155 = vmatprep.subr.bf16.mxu0 %v4656_v40  ;;  %v4742_v40 = vld [vmem:[%s5348_s3 + $0xbd4] ss:$28 sps:$4 sm:$0xff]   ;;  %v4745_v41 = vld [vmem:[%s5348_s3 + $0x4dc] ss:$28 sps:$4 sm:$0xff]  }
  0x97   : > { %3238 = vmatpush1.bf16.msra.mxu1 %v4657_v43  ;;  %v4743_v43 = vld [vmem:[%s5348_s3 + $0x4d8] ss:$28 sps:$4 sm:$0xff]  }
  0x98   : > { %3156 = vmatpush1.bf16.msra.mxu0 %v4654_v42  ;;  %3239 = vmatprep.subr.bf16.mxu1 %v4665_v45  ;;  %v4740_v42 = vld [vmem:[%s5348_s3 + $0xbd0] ss:$28 sps:$4 sm:$0xff]  }
  0x99   : > { %3157 = vmatprep.subr.bf16.mxu0 %v4662_v44  ;;  %v4748_v44 = vld [vmem:[%s5348_s3 + $0xc0c] ss:$28 sps:$4 sm:$0xff]   ;;  %v4751_v45 = vld [vmem:[%s5348_s3 + $0x514] ss:$28 sps:$4 sm:$0xff]  }
  0x9b   : > { %3240 = vmatpush1.bf16.msra.mxu1 %v4663_v48  ;;  %v4749_v48 = vld [vmem:[%s5348_s3 + $0x510] ss:$28 sps:$4 sm:$0xff]  }
  0x9c   : > { %3158 = vmatpush1.bf16.msra.mxu0 %v4660_v46  ;;  %3241 = vmatprep.subr.bf16.mxu1 %v4671_v50  ;;  %v4746_v46 = vld [vmem:[%s5348_s3 + $0xc08] ss:$28 sps:$4 sm:$0xff]  }
  0x9d   : > { %3159 = vmatprep.subr.bf16.mxu0 %v4668_v49  ;;  %v4754_v49 = vld [vmem:[%s5348_s3 + $0xc44] ss:$28 sps:$4 sm:$0xff]   ;;  %v4757_v50 = vld [vmem:[%s5348_s3 + $0x54c] ss:$28 sps:$4 sm:$0xff]  }
  0x9f   : > { %3242 = vmatpush1.bf16.msra.mxu1 %v4669_v53  ;;  %v4755_v53 = vld [vmem:[%s5348_s3 + $0x548] ss:$28 sps:$4 sm:$0xff]  }
  0xa0   : > { %3160 = vmatpush1.bf16.msra.mxu0 %v4666_v52  ;;  %3243 = vmatprep.subr.bf16.mxu1 %v4677_v55  ;;  %v4752_v52 = vld [vmem:[%s5348_s3 + $0xc40] ss:$28 sps:$4 sm:$0xff]  }
  0xa1   : > { %3161 = vmatprep.subr.bf16.mxu0 %v4674_v54  ;;  %v4760_v54 = vld [vmem:[%s5348_s3 + $0xc7c] ss:$28 sps:$4 sm:$0xff]   ;;  %v4763_v55 = vld [vmem:[%s5348_s3 + $0x584] ss:$28 sps:$4 sm:$0xff]  }
  0xa3   : > { %3244 = vmatpush1.bf16.msra.mxu1 %v4675_v57  ;;  %v4761_v57 = vld [vmem:[%s5348_s3 + $0x580] ss:$28 sps:$4 sm:$0xff]  }
  0xa4   : > { %3162 = vmatpush1.bf16.msra.mxu0 %v4672_v56  ;;  %3245 = vmatprep.subr.bf16.mxu1 %v4683_v59  ;;  %v4758_v56 = vld [vmem:[%s5348_s3 + $0xc78] ss:$28 sps:$4 sm:$0xff]  }
  0xa5   : > { %3163 = vmatprep.subr.bf16.mxu0 %v4680_v58  ;;  %v4766_v58 = vld [vmem:[%s5348_s3 + $0xcb4] ss:$28 sps:$4 sm:$0xff]   ;;  %v4769_v59 = vld [vmem:[%s5348_s3 + $0x5bc] ss:$28 sps:$4 sm:$0xff]  }
  0xa7   : > { %3246 = vmatpush1.bf16.msra.mxu1 %v4681_v61  ;;  %v4767_v61 = vld [vmem:[%s5348_s3 + $0x5b8] ss:$28 sps:$4 sm:$0xff]  }
  0xa8   : > { %3164 = vmatpush1.bf16.msra.mxu0 %v4678_v60  ;;  %3247 = vmatprep.subr.bf16.mxu1 %v4689_v63  ;;  %v4764_v60 = vld [vmem:[%s5348_s3 + $0xcb0] ss:$28 sps:$4 sm:$0xff]  }
  0xa9   : > { %3165 = vmatprep.subr.bf16.mxu0 %v4686_v62  ;;  %v4772_v62 = vld [vmem:[%s5348_s3 + $0xcec] ss:$28 sps:$4 sm:$0xff]   ;;  %v4775_v63 = vld [vmem:[%s5348_s3 + $0x5f4] ss:$28 sps:$4 sm:$0xff]  }
  0xab   : > { %3248 = vmatpush1.bf16.msra.mxu1 %v4687_v1  ;;  %v4773_v1 = vld [vmem:[%s5348_s3 + $0x5f0] ss:$28 sps:$4 sm:$0xff]  }
  0xac   : > { %3166 = vmatpush1.bf16.msra.mxu0 %v4684_v0  ;;  %3249 = vmatprep.subr.bf16.mxu1 %v4695_v3  ;;  %v4770_v0 = vld [vmem:[%s5348_s3 + $0xce8] ss:$28 sps:$4 sm:$0xff]  }
  0xad   : > { %3167 = vmatprep.subr.bf16.mxu0 %v4692_v2  ;;  %v4778_v2 = vld [vmem:[%s5348_s3 + $0xd24] ss:$28 sps:$4 sm:$0xff]   ;;  %v4781_v3 = vld [vmem:[%s5348_s3 + $0x62c] ss:$28 sps:$4 sm:$0xff]  }
  0xaf   : > { %3250 = vmatpush1.bf16.msra.mxu1 %v4693_v5  ;;  %v4779_v5 = vld [vmem:[%s5348_s3 + $0x628] ss:$28 sps:$4 sm:$0xff]  }
  0xb0   : > { %3168 = vmatpush1.bf16.msra.mxu0 %v4690_v4  ;;  %3251 = vmatprep.subr.bf16.mxu1 %v4701_v9  ;;  %v4776_v4 = vld [vmem:[%s5348_s3 + $0xd20] ss:$28 sps:$4 sm:$0xff]  }
  0xb1   : > { %3169 = vmatprep.subr.bf16.mxu0 %v4698_v8  ;;  %v4784_v8 = vld [vmem:[%s5348_s3 + $0xd5c] ss:$28 sps:$4 sm:$0xff]   ;;  %v4787_v9 = vld [vmem:[%s5348_s3 + $0x664] ss:$28 sps:$4 sm:$0xff]  }
  0xb3   : > { %3252 = vmatpush1.bf16.msra.mxu1 %v4699_v11  ;;  %v4785_v11 = vld [vmem:[%s5348_s3 + $0x660] ss:$28 sps:$4 sm:$0xff]  }
  0xb4   : > { %3170 = vmatpush1.bf16.msra.mxu0 %v4696_v10  ;;  %3262 = vmatprep.subr.bf16.mxu1 %v4708_v13  ;;  %v4782_v10 = vld [vmem:[%s5348_s3 + $0xd58] ss:$28 sps:$4 sm:$0xff]  }
  0xb5   : > { %3180 = vmatprep.subr.bf16.mxu0 %v4705_v12  ;;  %v4790_v12 = vld [vmem:[%s5348_s3 + $0xd94] ss:$28 sps:$4 sm:$0xff]   ;;  %v4793_v13 = vld [vmem:[%s5348_s3 + $0x69c] ss:$28 sps:$4 sm:$0xff]  }
  0xb6   : > { %3254 = vmatmul.mubr.bf16.vlgmr.msra.gmra.mrb[4].mxu1 %v5432_v6 }
  0xb7   : > { %3172 = vmatmul.mubr.bf16.vlgmr.msra.gmra.mrb[0].mxu0 %v5517_v16  ;;  %3263 = vmatpush1.bf16.msra.mxu1 %v4706_v15  ;;  %v4791_v15 = vld [vmem:[%s5348_s3 + $0x698] ss:$28 sps:$4 sm:$0xff]  }
  0xb8   : > { %3181 = vmatpush1.bf16.msra.mxu0 %v4703_v14  ;;  %3264 = vmatprep.subr.bf16.mxu1 %v4715_v18  ;;  %v4788_v14 = vld [vmem:[%s5348_s3 + $0xd90] ss:$28 sps:$4 sm:$0xff]  }
  0xb9   : > { %3182 = vmatprep.subr.bf16.mxu0 %v4712_v17  ;;  %3212 = vmatprep.mubr.bf16.mxu0 %v5528_v20  ;;  %v4796_v17 = vld [vmem:[%s5348_s3 + $0xdcc] ss:$28 sps:$4 sm:$0xff]   ;;  %v4799_v18 = vld [vmem:[%s5348_s3 + $0x6d4] ss:$28 sps:$4 sm:$0xff]  }
  0xba   : > { %3294 = vmatprep.mubr.bf16.mxu1 %v5410_v51 }
  0xbb   : > { %3265 = vmatpush1.bf16.msra.mxu1 %v4713_v22  ;;  %v4797_v22 = vld [vmem:[%s5348_s3 + $0x6d0] ss:$28 sps:$4 sm:$0xff]  }
  0xbc   : > { %3183 = vmatpush1.bf16.msra.mxu0 %v4710_v21  ;;  %3266 = vmatprep.subr.bf16.mxu1 %v4721_v24  ;;  %v4794_v21 = vld [vmem:[%s5348_s3 + $0xdc8] ss:$28 sps:$4 sm:$0xff]   ;;  %v4807_v24 = vld [vmem:[%s5348_s3 + $0x14] ss:$28 sps:$4 sm:$0xff]  }
  0xbd   : > { %3184 = vmatprep.subr.bf16.mxu0 %v4718_v23  ;;  %v4804_v23 = vld [vmem:[%s5348_s3 + $0x70c] ss:$28 sps:$4 sm:$0xff]  }
  0xbf   : > { %3267 = vmatpush1.bf16.msra.mxu1 %v4719_v26  ;;  %v4802_v26 = vld [vmem:[%s5348_s3 + $0x708] ss:$28 sps:$4 sm:$0xff]  }
  0xc0   : > { %3185 = vmatpush1.bf16.msra.mxu0 %v4716_v25  ;;  %3268 = vmatprep.subr.bf16.mxu1 %v4727_v28  ;;  %v5596_v25 = vcombine.low %v5524_v19, %v5524_v19  ;;  %v4810_v28 = vld [vmem:[%s5348_s3 + $0x744] ss:$28 sps:$4 sm:$0xff]   ;;  %v4816_v19 = vld [vmem:[%s5348_s3 + $0x77c] ss:$28 sps:$4 sm:$0xff]  }
  0xc1   : > { %3186 = vmatprep.subr.bf16.mxu0 %v4724_v27  ;;  %v4805_v27 = vld [vmem:[%s5348_s3 + $0x10] ss:$28 sps:$4 sm:$0xff]  }
  0xc3   : > { %3269 = vmatpush1.bf16.msra.mxu1 %v4725_v30  ;;  %v4808_v30 = vld [vmem:[%s5348_s3 + $0x740] ss:$28 sps:$4 sm:$0xff]  }
  0xc4   : > { %3187 = vmatpush1.bf16.msra.mxu0 %v4722_v29  ;;  %3270 = vmatprep.subr.bf16.mxu1 %v4733_v32  ;;  %v4813_v29 = vld [vmem:[%s5348_s3 + $0x4c] ss:$28 sps:$4 sm:$0xff]   ;;  %v4819_v32 = vld [vmem:[%s5348_s3 + $0x84] ss:$28 sps:$4 sm:$0xff]  }
  0xc5   : > { %3188 = vmatprep.subr.bf16.mxu0 %v4730_v31  ;;  %v4811_v31 = vld [vmem:[%s5348_s3 + $0x48] ss:$28 sps:$4 sm:$0xff]  }
  0xc7   : > { %3271 = vmatpush1.bf16.msra.mxu1 %v4731_v35  ;;  %v4817_v35 = vld [vmem:[%s5348_s3 + $0x80] ss:$28 sps:$4 sm:$0xff]  }
  0xc8   : > { %3189 = vmatpush1.bf16.msra.mxu0 %v4728_v33  ;;  %3272 = vmatprep.subr.bf16.mxu1 %v4739_v37  ;;  %v4814_v33 = vld [vmem:[%s5348_s3 + $0x778] ss:$28 sps:$4 sm:$0xff]  }
  0xc9   : > { %3190 = vmatprep.subr.bf16.mxu0 %v4736_v36  ;;  %v4822_v36 = vld [vmem:[%s5348_s3 + $0x7b4] ss:$28 sps:$4 sm:$0xff]   ;;  %v4825_v37 = vld [vmem:[%s5348_s3 + $0xbc] ss:$28 sps:$4 sm:$0xff]  }
  0xcb   : > { %3273 = vmatpush1.bf16.msra.mxu1 %v4737_v39  ;;  %v4823_v39 = vld [vmem:[%s5348_s3 + $0xb8] ss:$28 sps:$4 sm:$0xff]  }
  0xcc   : > { %3191 = vmatpush1.bf16.msra.mxu0 %v4734_v38  ;;  %3274 = vmatprep.subr.bf16.mxu1 %v4745_v41  ;;  %v4820_v38 = vld [vmem:[%s5348_s3 + $0x7b0] ss:$28 sps:$4 sm:$0xff]  }
  0xcd   : > { %3192 = vmatprep.subr.bf16.mxu0 %v4742_v40  ;;  %v4828_v40 = vld [vmem:[%s5348_s3 + $0x7ec] ss:$28 sps:$4 sm:$0xff]   ;;  %v4831_v41 = vld [vmem:[%s5348_s3 + $0xf4] ss:$28 sps:$4 sm:$0xff]  }
  0xcf   : > { %3275 = vmatpush1.bf16.msra.mxu1 %v4743_v43  ;;  %v4829_v43 = vld [vmem:[%s5348_s3 + $0xf0] ss:$28 sps:$4 sm:$0xff]  }
  0xd0   : > { %3193 = vmatpush1.bf16.msra.mxu0 %v4740_v42  ;;  %3276 = vmatprep.subr.bf16.mxu1 %v4751_v45  ;;  %v4826_v42 = vld [vmem:[%s5348_s3 + $0x7e8] ss:$28 sps:$4 sm:$0xff]  }
  0xd1   : > { %3194 = vmatprep.subr.bf16.mxu0 %v4748_v44  ;;  %v4834_v44 = vld [vmem:[%s5348_s3 + $0x824] ss:$28 sps:$4 sm:$0xff]   ;;  %v4837_v45 = vld [vmem:[%s5348_s3 + $0x12c] ss:$28 sps:$4 sm:$0xff]  }
  0xd3   : > { %3277 = vmatpush1.bf16.msra.mxu1 %v4749_v48  ;;  %v4835_v48 = vld [vmem:[%s5348_s3 + $0x128] ss:$28 sps:$4 sm:$0xff]  }
  0xd4   : > { %3195 = vmatpush1.bf16.msra.mxu0 %v4746_v46  ;;  %3278 = vmatprep.subr.bf16.mxu1 %v4757_v50  ;;  %v4832_v46 = vld [vmem:[%s5348_s3 + $0x820] ss:$28 sps:$4 sm:$0xff]  }
  0xd5   : > { %3196 = vmatprep.subr.bf16.mxu0 %v4754_v49  ;;  %v4840_v49 = vld [vmem:[%s5348_s3 + $0x85c] ss:$28 sps:$4 sm:$0xff]   ;;  %v4843_v50 = vld [vmem:[%s5348_s3 + $0x164] ss:$28 sps:$4 sm:$0xff]  }
  0xd7   : > { %3279 = vmatpush1.bf16.msra.mxu1 %v4755_v53  ;;  %v4841_v53 = vld [vmem:[%s5348_s3 + $0x160] ss:$28 sps:$4 sm:$0xff]  }
  0xd8   : > { %3197 = vmatpush1.bf16.msra.mxu0 %v4752_v52  ;;  %3280 = vmatprep.subr.bf16.mxu1 %v4763_v55  ;;  %v4838_v52 = vld [vmem:[%s5348_s3 + $0x858] ss:$28 sps:$4 sm:$0xff]  }
  0xd9   : > { %3198 = vmatprep.subr.bf16.mxu0 %v4760_v54  ;;  %v4846_v54 = vld [vmem:[%s5348_s3 + $0x894] ss:$28 sps:$4 sm:$0xff]   ;;  %v4849_v55 = vld [vmem:[%s5348_s3 + $0x19c] ss:$28 sps:$4 sm:$0xff]  }
  0xdb   : > { %3281 = vmatpush1.bf16.msra.mxu1 %v4761_v57  ;;  %v4847_v57 = vld [vmem:[%s5348_s3 + $0x198] ss:$28 sps:$4 sm:$0xff]  }
  0xdc   : > { %3199 = vmatpush1.bf16.msra.mxu0 %v4758_v56  ;;  %3282 = vmatprep.subr.bf16.mxu1 %v4769_v59  ;;  %v4844_v56 = vld [vmem:[%s5348_s3 + $0x890] ss:$28 sps:$4 sm:$0xff]  }
  0xdd   : > { %3200 = vmatprep.subr.bf16.mxu0 %v4766_v58  ;;  %v4852_v58 = vld [vmem:[%s5348_s3 + $0x8cc] ss:$28 sps:$4 sm:$0xff]   ;;  %v4855_v59 = vld [vmem:[%s5348_s3 + $0x1d4] ss:$28 sps:$4 sm:$0xff]  }
  0xdf   : > { %3283 = vmatpush1.bf16.msra.mxu1 %v4767_v61  ;;  %v4853_v61 = vld [vmem:[%s5348_s3 + $0x1d0] ss:$28 sps:$4 sm:$0xff]  }
  0xe0   : > { %3201 = vmatpush1.bf16.msra.mxu0 %v4764_v60  ;;  %3284 = vmatprep.subr.bf16.mxu1 %v4775_v63  ;;  %v4850_v60 = vld [vmem:[%s5348_s3 + $0x8c8] ss:$28 sps:$4 sm:$0xff]  }
  0xe1   : > { %3202 = vmatprep.subr.bf16.mxu0 %v4772_v62  ;;  %v4858_v62 = vld [vmem:[%s5348_s3 + $0x904] ss:$28 sps:$4 sm:$0xff]   ;;  %v4861_v63 = vld [vmem:[%s5348_s3 + $0x20c] ss:$28 sps:$4 sm:$0xff]  }
  0xe3   : > { %3285 = vmatpush1.bf16.msra.mxu1 %v4773_v1  ;;  %v4859_v1 = vld [vmem:[%s5348_s3 + $0x208] ss:$28 sps:$4 sm:$0xff]  }
  0xe4   : > { %3203 = vmatpush1.bf16.msra.mxu0 %v4770_v0  ;;  %3286 = vmatprep.subr.bf16.mxu1 %v4781_v3  ;;  %v4856_v0 = vld [vmem:[%s5348_s3 + $0x900] ss:$28 sps:$4 sm:$0xff]  }
  0xe5   : > { %3204 = vmatprep.subr.bf16.mxu0 %v4778_v2  ;;  %v4864_v2 = vld [vmem:[%s5348_s3 + $0x93c] ss:$28 sps:$4 sm:$0xff]   ;;  %v4867_v3 = vld [vmem:[%s5348_s3 + $0x244] ss:$28 sps:$4 sm:$0xff]  }
  0xe7   : > { %3287 = vmatpush1.bf16.msra.mxu1 %v4779_v5  ;;  %v4865_v5 = vld [vmem:[%s5348_s3 + $0x240] ss:$28 sps:$4 sm:$0xff]  }
  0xe8   : > { %3205 = vmatpush1.bf16.msra.mxu0 %v4776_v4  ;;  %3288 = vmatprep.subr.bf16.mxu1 %v4787_v9  ;;  %v4862_v4 = vld [vmem:[%s5348_s3 + $0x938] ss:$28 sps:$4 sm:$0xff]  }
  0xe9   : > { %3206 = vmatprep.subr.bf16.mxu0 %v4784_v8  ;;  %v4870_v8 = vld [vmem:[%s5348_s3 + $0x974] ss:$28 sps:$4 sm:$0xff]   ;;  %v4873_v9 = vld [vmem:[%s5348_s3 + $0x27c] ss:$28 sps:$4 sm:$0xff]  }
  0xeb   : > { %3289 = vmatpush1.bf16.msra.mxu1 %v4785_v11  ;;  %v4871_v11 = vld [vmem:[%s5348_s3 + $0x278] ss:$28 sps:$4 sm:$0xff]  }
  0xec   : > { %3207 = vmatpush1.bf16.msra.mxu0 %v4782_v10  ;;  %3290 = vmatprep.subr.bf16.mxu1 %v4793_v13  ;;  %v4868_v10 = vld [vmem:[%s5348_s3 + $0x970] ss:$28 sps:$4 sm:$0xff]  }
  0xed   : > { %3208 = vmatprep.subr.bf16.mxu0 %v4790_v12  ;;  %v4876_v12 = vld [vmem:[%s5348_s3 + $0x9ac] ss:$28 sps:$4 sm:$0xff]   ;;  %v4879_v13 = vld [vmem:[%s5348_s3 + $0x2b4] ss:$28 sps:$4 sm:$0xff]  }
  0xef   : > { %3291 = vmatpush1.bf16.msra.mxu1 %v4791_v15  ;;  %v4877_v15 = vld [vmem:[%s5348_s3 + $0x2b0] ss:$28 sps:$4 sm:$0xff]  }
  0xf0   : > { %3209 = vmatpush1.bf16.msra.mxu0 %v4788_v14  ;;  %3292 = vmatprep.subr.bf16.mxu1 %v4799_v18  ;;  %v4874_v14 = vld [vmem:[%s5348_s3 + $0x9a8] ss:$28 sps:$4 sm:$0xff]  }
  0xf1   : > { %3210 = vmatprep.subr.bf16.mxu0 %v4796_v17  ;;  %v4882_v17 = vld [vmem:[%s5348_s3 + $0x9e4] ss:$28 sps:$4 sm:$0xff]   ;;  %v4885_v18 = vld [vmem:[%s5348_s3 + $0x2ec] ss:$28 sps:$4 sm:$0xff]  }
  0xf3   : > { %3293 = vmatpush1.bf16.msra.mxu1 %v4797_v22  ;;  %v4883_v22 = vld [vmem:[%s5348_s3 + $0x2e8] ss:$28 sps:$4 sm:$0xff]  }
  0xf4   : > { %3211 = vmatpush1.bf16.msra.mxu0 %v4794_v21  ;;  %3303 = vmatprep.subr.bf16.mxu1 %v4804_v23  ;;  %v4880_v21 = vld [vmem:[%s5348_s3 + $0x9e0] ss:$28 sps:$4 sm:$0xff]  }
  0xf5   : > { %3385 = vmatprep.subr.bf16.mxu0 %v4807_v24  ;;  %v4888_v23 = vld [vmem:[%s5348_s3 + $0xa1c] ss:$28 sps:$4 sm:$0xff]   ;;  %v4891_v24 = vld [vmem:[%s5348_s3 + $0x324] ss:$28 sps:$4 sm:$0xff]  }
  0xf6   : > { %3295 = vmatmul.mubr.bf16.vlgmr.msra.gmra.mrb[4].mxu1 %v5434_v7 }
  0xf7   : > { %3213 = vmatmul.mubr.bf16.vlgmr.msra.gmra.mrb[0].mxu0 %v5596_v25  ;;  %3304 = vmatpush1.bf16.msra.mxu1 %v4802_v26  ;;  %v4886_v26 = vld [vmem:[%s5348_s3 + $0xa18] ss:$28 sps:$4 sm:$0xff]  }
  0xf8   : > { %3386 = vmatpush1.bf16.msra.mxu0 %v4805_v27  ;;  %3305 = vmatprep.subr.bf16.mxu1 %v4810_v28  ;;  %v4889_v27 = vld [vmem:[%s5348_s3 + $0x320] ss:$28 sps:$4 sm:$0xff]   ;;  %v4894_v28 = vld [vmem:[%s5348_s3 + $0xa54] ss:$28 sps:$4 sm:$0xff]  }
  0xf9   : > { %3387 = vmatprep.subr.bf16.mxu0 %v4813_v29  ;;  %3335 = vmatprep.mubr.bf16.mxu1 %v5471_v34  ;;  %v4897_v29 = vld [vmem:[%s5348_s3 + $0x35c] ss:$28 sps:$4 sm:$0xff]  }
  0xfa   : > { %3417 = vmatprep.mubr.bf16.mxu0 %v5403_v47 }
  0xfb   : > { %3306 = vmatpush1.bf16.msra.mxu1 %v4808_v30  ;;  %v4892_v30 = vld [vmem:[%s5348_s3 + $0xa50] ss:$28 sps:$4 sm:$0xff]  }
  0xfc   : > { %3388 = vmatpush1.bf16.msra.mxu0 %v4811_v31  ;;  %3307 = vmatprep.subr.bf16.mxu1 %v4816_v19  ;;  %v4895_v31 = vld [vmem:[%s5348_s3 + $0x358] ss:$28 sps:$4 sm:$0xff]   ;;  %v4900_v19 = vld [vmem:[%s5348_s3 + $0xa8c] ss:$28 sps:$4 sm:$0xff]  }
  0xfd   : > { %3389 = vmatprep.subr.bf16.mxu0 %v4819_v32  ;;  %v4903_v32 = vld [vmem:[%s5348_s3 + $0x394] ss:$28 sps:$4 sm:$0xff]  }
  0xff   : > { %3308 = vmatpush1.bf16.msra.mxu1 %v4814_v33  ;;  %v4898_v33 = vld [vmem:[%s5348_s3 + $0xa88] ss:$28 sps:$4 sm:$0xff]  }
 0x100   : > { %3390 = vmatpush1.bf16.msra.mxu0 %v4817_v35  ;;  %3309 = vmatprep.subr.bf16.mxu1 %v4822_v36  ;;  %v4901_v35 = vld [vmem:[%s5348_s3 + $0x390] ss:$28 sps:$4 sm:$0xff]   ;;  %v4906_v36 = vld [vmem:[%s5348_s3 + $0xac4] ss:$28 sps:$4 sm:$0xff]  }
 0x101   : > { %3391 = vmatprep.subr.bf16.mxu0 %v4825_v37  ;;  %v4909_v37 = vld [vmem:[%s5348_s3 + $0x3cc] ss:$28 sps:$4 sm:$0xff]  }
 0x103   : > { %3310 = vmatpush1.bf16.msra.mxu1 %v4820_v38  ;;  %v4904_v38 = vld [vmem:[%s5348_s3 + $0xac0] ss:$28 sps:$4 sm:$0xff]  }
 0x104   : > { %3392 = vmatpush1.bf16.msra.mxu0 %v4823_v39  ;;  %3311 = vmatprep.subr.bf16.mxu1 %v4828_v40  ;;  %v4907_v39 = vld [vmem:[%s5348_s3 + $0x3c8] ss:$28 sps:$4 sm:$0xff]   ;;  %v4912_v40 = vld [vmem:[%s5348_s3 + $0xafc] ss:$28 sps:$4 sm:$0xff]  }
 0x105   : > { %3393 = vmatprep.subr.bf16.mxu0 %v4831_v41  ;;  %v4915_v41 = vld [vmem:[%s5348_s3 + $0x404] ss:$28 sps:$4 sm:$0xff]  }
 0x107   : > { %3312 = vmatpush1.bf16.msra.mxu1 %v4826_v42  ;;  %v4910_v42 = vld [vmem:[%s5348_s3 + $0xaf8] ss:$28 sps:$4 sm:$0xff]  }
 0x108   : > { %3394 = vmatpush1.bf16.msra.mxu0 %v4829_v43  ;;  %3313 = vmatprep.subr.bf16.mxu1 %v4834_v44  ;;  %v4913_v43 = vld [vmem:[%s5348_s3 + $0x400] ss:$28 sps:$4 sm:$0xff]   ;;  %v4918_v44 = vld [vmem:[%s5348_s3 + $0xb34] ss:$28 sps:$4 sm:$0xff]  }
 0x109   : > { %3395 = vmatprep.subr.bf16.mxu0 %v4837_v45  ;;  %v4921_v45 = vld [vmem:[%s5348_s3 + $0x43c] ss:$28 sps:$4 sm:$0xff]  }
 0x10b   : > { %3314 = vmatpush1.bf16.msra.mxu1 %v4832_v46  ;;  %v4916_v46 = vld [vmem:[%s5348_s3 + $0xb30] ss:$28 sps:$4 sm:$0xff]  }
 0x10c   : > { %3396 = vmatpush1.bf16.msra.mxu0 %v4835_v48  ;;  %3315 = vmatprep.subr.bf16.mxu1 %v4840_v49  ;;  %v4919_v48 = vld [vmem:[%s5348_s3 + $0x438] ss:$28 sps:$4 sm:$0xff]   ;;  %v4924_v49 = vld [vmem:[%s5348_s3 + $0xb6c] ss:$28 sps:$4 sm:$0xff]  }
 0x10d   : > { %3397 = vmatprep.subr.bf16.mxu0 %v4843_v50  ;;  %v4927_v50 = vld [vmem:[%s5348_s3 + $0x474] ss:$28 sps:$4 sm:$0xff]  }
 0x10f   : > { %3316 = vmatpush1.bf16.msra.mxu1 %v4838_v52  ;;  %v4922_v52 = vld [vmem:[%s5348_s3 + $0xb68] ss:$28 sps:$4 sm:$0xff]  }
 0x110   : > { %3398 = vmatpush1.bf16.msra.mxu0 %v4841_v53  ;;  %3317 = vmatprep.subr.bf16.mxu1 %v4846_v54  ;;  %v4925_v53 = vld [vmem:[%s5348_s3 + $0x470] ss:$28 sps:$4 sm:$0xff]   ;;  %v4930_v54 = vld [vmem:[%s5348_s3 + $0xba4] ss:$28 sps:$4 sm:$0xff]  }
 0x111   : > { %3399 = vmatprep.subr.bf16.mxu0 %v4849_v55  ;;  %v4933_v55 = vld [vmem:[%s5348_s3 + $0x4ac] ss:$28 sps:$4 sm:$0xff]  }
 0x113   : > { %3318 = vmatpush1.bf16.msra.mxu1 %v4844_v56  ;;  %v4928_v56 = vld [vmem:[%s5348_s3 + $0xba0] ss:$28 sps:$4 sm:$0xff]  }
 0x114   : > { %3400 = vmatpush1.bf16.msra.mxu0 %v4847_v57  ;;  %3319 = vmatprep.subr.bf16.mxu1 %v4852_v58  ;;  %v4931_v57 = vld [vmem:[%s5348_s3 + $0x4a8] ss:$28 sps:$4 sm:$0xff]   ;;  %v4936_v58 = vld [vmem:[%s5348_s3 + $0xbdc] ss:$28 sps:$4 sm:$0xff]  }
 0x115   : > { %3401 = vmatprep.subr.bf16.mxu0 %v4855_v59  ;;  %v4939_v59 = vld [vmem:[%s5348_s3 + $0x4e4] ss:$28 sps:$4 sm:$0xff]  }
 0x117   : > { %3320 = vmatpush1.bf16.msra.mxu1 %v4850_v60 }
 0x118   : > { %3402 = vmatpush1.bf16.msra.mxu0 %v4853_v61  ;;  %3321 = vmatprep.subr.bf16.mxu1 %v4858_v62  ;;  %v4934_v61 = vld [vmem:[%s5348_s3 + $0xbd8] ss:$28 sps:$4 sm:$0xff]   ;;  %v4937_v62 = vld [vmem:[%s5348_s3 + $0x4e0] ss:$28 sps:$4 sm:$0xff]  }
 0x119   : > { %3403 = vmatprep.subr.bf16.mxu0 %v4861_v63 }
 0x11b   : > { %3322 = vmatpush1.bf16.msra.mxu1 %v4856_v0  ;;  %v4942_v0 = vld [vmem:[%s5348_s3 + $0xc14] ss:$28 sps:$4 sm:$0xff]  }
 0x11c   : > { %3404 = vmatpush1.bf16.msra.mxu0 %v4859_v1  ;;  %3323 = vmatprep.subr.bf16.mxu1 %v4864_v2  ;;  %v4945_v2 = vld [vmem:[%s5348_s3 + $0x51c] ss:$28 sps:$4 sm:$0xff]  }
 0x11d   : > { %3405 = vmatprep.subr.bf16.mxu0 %v4867_v3 }
 0x11f   : > { %3324 = vmatpush1.bf16.msra.mxu1 %v4862_v4  ;;  %v4940_v4 = vld [vmem:[%s5348_s3 + $0xc10] ss:$28 sps:$4 sm:$0xff]  }
 0x120   : > { %3406 = vmatpush1.bf16.msra.mxu0 %v4865_v5  ;;  %3325 = vmatprep.subr.bf16.mxu1 %v4870_v8  ;;  %v4943_v5 = vld [vmem:[%s5348_s3 + $0x518] ss:$28 sps:$4 sm:$0xff]   ;;  %v4948_v8 = vld [vmem:[%s5348_s3 + $0xc4c] ss:$28 sps:$4 sm:$0xff]  }
 0x121   : > { %3407 = vmatprep.subr.bf16.mxu0 %v4873_v9  ;;  %v4951_v9 = vld [vmem:[%s5348_s3 + $0x554] ss:$28 sps:$4 sm:$0xff]  }
 0x123   : > { %3326 = vmatpush1.bf16.msra.mxu1 %v4868_v10  ;;  %v4946_v10 = vld [vmem:[%s5348_s3 + $0xc48] ss:$28 sps:$4 sm:$0xff]  }
 0x124   : > { %3408 = vmatpush1.bf16.msra.mxu0 %v4871_v11  ;;  %3327 = vmatprep.subr.bf16.mxu1 %v4876_v12  ;;  %v4949_v11 = vld [vmem:[%s5348_s3 + $0x550] ss:$28 sps:$4 sm:$0xff]   ;;  %v4954_v12 = vld [vmem:[%s5348_s3 + $0xc84] ss:$28 sps:$4 sm:$0xff]  }
 0x125   : > { %3409 = vmatprep.subr.bf16.mxu0 %v4879_v13  ;;  %v4957_v13 = vld [vmem:[%s5348_s3 + $0x58c] ss:$28 sps:$4 sm:$0xff]  }
 0x127   : > { %3328 = vmatpush1.bf16.msra.mxu1 %v4874_v14  ;;  %v4952_v14 = vld [vmem:[%s5348_s3 + $0xc80] ss:$28 sps:$4 sm:$0xff]  }
 0x128   : > { %3410 = vmatpush1.bf16.msra.mxu0 %v4877_v15  ;;  %3329 = vmatprep.subr.bf16.mxu1 %v4882_v17  ;;  %v4955_v15 = vld [vmem:[%s5348_s3 + $0x588] ss:$28 sps:$4 sm:$0xff]   ;;  %v4960_v17 = vld [vmem:[%s5348_s3 + $0xcbc] ss:$28 sps:$4 sm:$0xff]  }
 0x129   : > { %3411 = vmatprep.subr.bf16.mxu0 %v4885_v18  ;;  %v4963_v18 = vld [vmem:[%s5348_s3 + $0x5c4] ss:$28 sps:$4 sm:$0xff]  }
 0x12b   : > { %3330 = vmatpush1.bf16.msra.mxu1 %v4880_v21  ;;  %v4958_v21 = vld [vmem:[%s5348_s3 + $0xcb8] ss:$28 sps:$4 sm:$0xff]  }
 0x12c   : > { %3412 = vmatpush1.bf16.msra.mxu0 %v4883_v22  ;;  %3331 = vmatprep.subr.bf16.mxu1 %v4888_v23  ;;  %v4961_v22 = vld [vmem:[%s5348_s3 + $0x5c0] ss:$28 sps:$4 sm:$0xff]   ;;  %v4966_v23 = vld [vmem:[%s5348_s3 + $0xcf4] ss:$28 sps:$4 sm:$0xff]  }
 0x12d   : > { %3413 = vmatprep.subr.bf16.mxu0 %v4891_v24  ;;  %v4969_v24 = vld [vmem:[%s5348_s3 + $0x5fc] ss:$28 sps:$4 sm:$0xff]  }
 0x12f   : > { %3332 = vmatpush1.bf16.msra.mxu1 %v4886_v26  ;;  %v4964_v26 = vld [vmem:[%s5348_s3 + $0xcf0] ss:$28 sps:$4 sm:$0xff]  }
 0x130   : > { %3414 = vmatpush1.bf16.msra.mxu0 %v4889_v27  ;;  %3333 = vmatprep.subr.bf16.mxu1 %v4894_v28  ;;  %v4967_v27 = vld [vmem:[%s5348_s3 + $0x5f8] ss:$28 sps:$4 sm:$0xff]   ;;  %v4972_v28 = vld [vmem:[%s5348_s3 + $0xd2c] ss:$28 sps:$4 sm:$0xff]  }
 0x131   : > { %3415 = vmatprep.subr.bf16.mxu0 %v4897_v29  ;;  %v4975_v29 = vld [vmem:[%s5348_s3 + $0x634] ss:$28 sps:$4 sm:$0xff]  }
 0x133   : > { %3334 = vmatpush1.bf16.msra.mxu1 %v4892_v30  ;;  %v4970_v30 = vld [vmem:[%s5348_s3 + $0xd28] ss:$28 sps:$4 sm:$0xff]  }
 0x134   : > { %3416 = vmatpush1.bf16.msra.mxu0 %v4895_v31  ;;  %3344 = vmatprep.subr.bf16.mxu1 %v4900_v19  ;;  %v4973_v31 = vld [vmem:[%s5348_s3 + $0x630] ss:$28 sps:$4 sm:$0xff]   ;;  %v4978_v19 = vld [vmem:[%s5348_s3 + $0xd64] ss:$28 sps:$4 sm:$0xff]  }
 0x135   : > { %3426 = vmatprep.subr.bf16.mxu0 %v4903_v32  ;;  %v4981_v32 = vld [vmem:[%s5348_s3 + $0x66c] ss:$28 sps:$4 sm:$0xff]  }
 0x136   : > { %3336 = vmatmul.mubr.bf16.vlgmr.msra.gmra.mrb[4].mxu1 %v5517_v16 }
 0x137   : > { %3418 = vmatmul.mubr.bf16.vlgmr.msra.gmra.mrb[4].mxu0 %v5432_v6  ;;  %3345 = vmatpush1.bf16.msra.mxu1 %v4898_v33  ;;  %v4976_v33 = vld [vmem:[%s5348_s3 + $0xd60] ss:$28 sps:$4 sm:$0xff]  }
 0x138   : > { %3427 = vmatpush1.bf16.msra.mxu0 %v4901_v35  ;;  %3346 = vmatprep.subr.bf16.mxu1 %v4906_v36  ;;  %v4979_v35 = vld [vmem:[%s5348_s3 + $0x668] ss:$28 sps:$4 sm:$0xff]   ;;  %v4984_v36 = vld [vmem:[%s5348_s3 + $0xd9c] ss:$28 sps:$4 sm:$0xff]  }
 0x139   : > { %3428 = vmatprep.subr.bf16.mxu0 %v4909_v37  ;;  %3376 = vmatprep.mubr.bf16.mxu1 %v5528_v20  ;;  %v4987_v37 = vld [vmem:[%s5348_s3 + $0x6a4] ss:$28 sps:$4 sm:$0xff]  }
 0x13a   : > { %3458 = vmatprep.mubr.bf16.mxu0 %v5410_v51 }
 0x13b   : > { %3347 = vmatpush1.bf16.msra.mxu1 %v4904_v38  ;;  %v4982_v38 = vld [vmem:[%s5348_s3 + $0xd98] ss:$28 sps:$4 sm:$0xff]  }
 0x13c   : > { %3429 = vmatpush1.bf16.msra.mxu0 %v4907_v39  ;;  %3348 = vmatprep.subr.bf16.mxu1 %v4912_v40  ;;  %v4985_v39 = vld [vmem:[%s5348_s3 + $0x6a0] ss:$28 sps:$4 sm:$0xff]   ;;  %v4990_v40 = vld [vmem:[%s5348_s3 + $0xdd4] ss:$28 sps:$4 sm:$0xff]  }
 0x13d   : > { %3430 = vmatprep.subr.bf16.mxu0 %v4915_v41  ;;  %v4993_v41 = vld [vmem:[%s5348_s3 + $0x6dc] ss:$28 sps:$4 sm:$0xff]  }
 0x13f   : > { %3349 = vmatpush1.bf16.msra.mxu1 %v4910_v42  ;;  %v4988_v42 = vld [vmem:[%s5348_s3 + $0xdd0] ss:$28 sps:$4 sm:$0xff]  }
 0x140   : > { %3431 = vmatpush1.bf16.msra.mxu0 %v4913_v43  ;;  %3350 = vmatprep.subr.bf16.mxu1 %v4918_v44  ;;  %v4991_v43 = vld [vmem:[%s5348_s3 + $0x6d8] ss:$28 sps:$4 sm:$0xff]  }
 0x141   : > { %3432 = vmatprep.subr.bf16.mxu0 %v4921_v45  ;;  %v4996_v44 = vld [vmem:[%s5348_s3 + $0x714] ss:$28 sps:$4 sm:$0xff]  }
 0x142   : > { %v4997_v45 = vld [vmem:[%s5348_s3 + $0x1d8] ss:$28 sps:$4 sm:$0xff]  }
 0x143   : > { %3351 = vmatpush1.bf16.msra.mxu1 %v4916_v46  ;;  %v4994_v46 = vld [vmem:[%s5348_s3 + $0x710] ss:$28 sps:$4 sm:$0xff]  }
 0x144   : > { %3433 = vmatpush1.bf16.msra.mxu0 %v4919_v48  ;;  %3352 = vmatprep.subr.bf16.mxu1 %v4924_v49  ;;  %v4998_v48 = vld [vmem:[%s5348_s3 + $0x18] ss:$28 sps:$4 sm:$0xff]   ;;  %v5001_v49 = vld [vmem:[%s5348_s3 + $0x74c] ss:$28 sps:$4 sm:$0xff]  }
 0x145   : > { %3434 = vmatprep.subr.bf16.mxu0 %v4927_v50  ;;  %v5002_v50 = vld [vmem:[%s5348_s3 + $0x210] ss:$28 sps:$4 sm:$0xff]  }
 0x147   : > { %3353 = vmatpush1.bf16.msra.mxu1 %v4922_v52  ;;  %v4999_v52 = vld [vmem:[%s5348_s3 + $0x748] ss:$28 sps:$4 sm:$0xff]  }
 0x148   : > { %3435 = vmatpush1.bf16.msra.mxu0 %v4925_v53  ;;  %3354 = vmatprep.subr.bf16.mxu1 %v4930_v54  ;;  %v5003_v53 = vld [vmem:[%s5348_s3 + $0x50] ss:$28 sps:$4 sm:$0xff]   ;;  %v5006_v54 = vld [vmem:[%s5348_s3 + $0x784] ss:$28 sps:$4 sm:$0xff]  }
 0x149   : > { %3436 = vmatprep.subr.bf16.mxu0 %v4933_v55  ;;  %v5694_v60 = vpop.f32.mrb[0].mxu1  ;;  %v5007_v55 = vld [vmem:[%s5348_s3 + $0x248] ss:$28 sps:$4 sm:$0xff]  }
 0x14a   : > { %v5698_v63 = vpop.f32.mrb[1].mxu1 }
 0x14b   : > { %v3095_v1 = vpop.f32.mrb[2].mxu1  ;;  %3355 = vmatpush1.bf16.msra.mxu1 %v4928_v56  ;;  %v5004_v56 = vld [vmem:[%s5348_s3 + $0x780] ss:$28 sps:$4 sm:$0xff]  }
 0x14c   : > { %3437 = vmatpush1.bf16.msra.mxu0 %v4931_v57  ;;  %v3096_v3 = vpop.f32.mrb[3].mxu1  ;;  %3356 = vmatprep.subr.bf16.mxu1 %v4936_v58  ;;  %v5008_v57 = vld [vmem:[%s5348_s3 + $0x88] ss:$28 sps:$4 sm:$0xff]   ;;  %v5011_v58 = vld [vmem:[%s5348_s3 + $0x7bc] ss:$28 sps:$4 sm:$0xff]  }
 0x14d   : > { %3438 = vmatprep.subr.bf16.mxu0 %v4939_v59  ;;  %v5012_v59 = vld [vmem:[%s5348_s3 + $0x280] ss:$28 sps:$4 sm:$0xff]   ;;  %v5014_v1 = vld [vmem:[%s5348_s3 + $0x7f0] ss:$28 sps:$4 sm:$0xff]  }
 0x14e   : > { %v5021_v3 = vld [vmem:[%s5348_s3 + $0x82c] ss:$28 sps:$4 sm:$0xff]  }
 0x14f   : > { %3357 = vmatpush1.bf16.msra.mxu1 %v4934_v61  ;;  %v5009_v61 = vld [vmem:[%s5348_s3 + $0x7b8] ss:$28 sps:$4 sm:$0xff]  }
 0x150   : > { %3439 = vmatpush1.bf16.msra.mxu0 %v4937_v62  ;;  %3358 = vmatprep.subr.bf16.mxu1 %v4942_v0  ;;  %v5016_v62 = vld [vmem:[%s5348_s3 + $0x7f4] ss:$28 sps:$4 sm:$0xff]  }
 0x151   : > { %3440 = vmatprep.subr.bf16.mxu0 %v4945_v2  ;;  %v5017_v0 = vld [vmem:[%s5348_s3 + $0x2b8] ss:$28 sps:$4 sm:$0xff]  }
 0x152   : > { %v5018_v2 = vld [vmem:[%s5348_s3 + $0xf8] ss:$28 sps:$4 sm:$0xff]  }
 0x153   : > { %3359 = vmatpush1.bf16.msra.mxu1 %v4940_v4  ;;  %v5022_v4 = vld [vmem:[%s5348_s3 + $0x2f0] ss:$28 sps:$4 sm:$0xff]  }
 0x154   : > { %3441 = vmatpush1.bf16.msra.mxu0 %v4943_v5  ;;  %3360 = vmatprep.subr.bf16.mxu1 %v4948_v8  ;;  %v5019_v5 = vld [vmem:[%s5348_s3 + $0x828] ss:$28 sps:$4 sm:$0xff]   ;;  %v5023_v8 = vld [vmem:[%s5348_s3 + $0x130] ss:$28 sps:$4 sm:$0xff]  }
 0x155   : > { %3442 = vmatprep.subr.bf16.mxu0 %v4951_v9  ;;  %v5026_v9 = vld [vmem:[%s5348_s3 + $0x864] ss:$28 sps:$4 sm:$0xff]  }
 0x157   : > { %3361 = vmatpush1.bf16.msra.mxu1 %v4946_v10  ;;  %v5027_v10 = vld [vmem:[%s5348_s3 + $0x328] ss:$28 sps:$4 sm:$0xff]  }
 0x158   : > { %3443 = vmatpush1.bf16.msra.mxu0 %v4949_v11  ;;  %3362 = vmatprep.subr.bf16.mxu1 %v4954_v12  ;;  %v5024_v11 = vld [vmem:[%s5348_s3 + $0x860] ss:$28 sps:$4 sm:$0xff]   ;;  %v5028_v12 = vld [vmem:[%s5348_s3 + $0x168] ss:$28 sps:$4 sm:$0xff]  }
 0x159   : > { %3444 = vmatprep.subr.bf16.mxu0 %v4957_v13  ;;  %v5031_v13 = vld [vmem:[%s5348_s3 + $0x89c] ss:$28 sps:$4 sm:$0xff]  }
 0x15b   : > { %3363 = vmatpush1.bf16.msra.mxu1 %v4952_v14  ;;  %v5032_v14 = vld [vmem:[%s5348_s3 + $0x360] ss:$28 sps:$4 sm:$0xff]  }
 0x15c   : > { %3445 = vmatpush1.bf16.msra.mxu0 %v4955_v15  ;;  %3364 = vmatprep.subr.bf16.mxu1 %v4960_v17  ;;  %v5029_v15 = vld [vmem:[%s5348_s3 + $0x898] ss:$28 sps:$4 sm:$0xff]   ;;  %v5033_v17 = vld [vmem:[%s5348_s3 + $0x1a0] ss:$28 sps:$4 sm:$0xff]  }
 0x15d   : > { %3446 = vmatprep.subr.bf16.mxu0 %v4963_v18  ;;  %v5036_v18 = vld [vmem:[%s5348_s3 + $0x8d4] ss:$28 sps:$4 sm:$0xff]  }
 0x15f   : > { %3365 = vmatpush1.bf16.msra.mxu1 %v4958_v21  ;;  %v5037_v21 = vld [vmem:[%s5348_s3 + $0x558] ss:$28 sps:$4 sm:$0xff]  }
 0x160   : > { %3447 = vmatpush1.bf16.msra.mxu0 %v4961_v22  ;;  %3366 = vmatprep.subr.bf16.mxu1 %v4966_v23  ;;  %v5034_v22 = vld [vmem:[%s5348_s3 + $0x8d0] ss:$28 sps:$4 sm:$0xff]   ;;  %v5038_v23 = vld [vmem:[%s5348_s3 + $0x398] ss:$28 sps:$4 sm:$0xff]  }
 0x161   : > { %3448 = vmatprep.subr.bf16.mxu0 %v4969_v24  ;;  %v5041_v24 = vld [vmem:[%s5348_s3 + $0x90c] ss:$28 sps:$4 sm:$0xff]  }
 0x163   : > { %3367 = vmatpush1.bf16.msra.mxu1 %v4964_v26  ;;  %v5042_v26 = vld [vmem:[%s5348_s3 + $0x590] ss:$28 sps:$4 sm:$0xff]  }
 0x164   : > { %3449 = vmatpush1.bf16.msra.mxu0 %v4967_v27  ;;  %3368 = vmatprep.subr.bf16.mxu1 %v4972_v28  ;;  %v5039_v27 = vld [vmem:[%s5348_s3 + $0x908] ss:$28 sps:$4 sm:$0xff]   ;;  %v5043_v28 = vld [vmem:[%s5348_s3 + $0x3d0] ss:$28 sps:$4 sm:$0xff]  }
 0x165   : > { %3450 = vmatprep.subr.bf16.mxu0 %v4975_v29  ;;  %v5046_v29 = vld [vmem:[%s5348_s3 + $0x944] ss:$28 sps:$4 sm:$0xff]  }
 0x167   : > { %3369 = vmatpush1.bf16.msra.mxu1 %v4970_v30  ;;  %v5047_v30 = vld [vmem:[%s5348_s3 + $0x5c8] ss:$28 sps:$4 sm:$0xff]  }
 0x168   : > { %3451 = vmatpush1.bf16.msra.mxu0 %v4973_v31  ;;  %3370 = vmatprep.subr.bf16.mxu1 %v4978_v19  ;;  %v5044_v31 = vld [vmem:[%s5348_s3 + $0x940] ss:$28 sps:$4 sm:$0xff]  }
 0x169   : > { %3452 = vmatprep.subr.bf16.mxu0 %v4981_v32  ;;  %v5051_v19 = vld [vmem:[%s5348_s3 + $0x97c] ss:$28 sps:$4 sm:$0xff]  }
 0x16a   : > { %v5052_v32 = vld [vmem:[%s5348_s3 + $0x600] ss:$28 sps:$4 sm:$0xff]  }
 0x16b   : > { %3371 = vmatpush1.bf16.msra.mxu1 %v4976_v33  ;;  %v5049_v33 = vld [vmem:[%s5348_s3 + $0x978] ss:$28 sps:$4 sm:$0xff]  }
 0x16c   : > { %3453 = vmatpush1.bf16.msra.mxu0 %v4979_v35  ;;  %3372 = vmatprep.subr.bf16.mxu1 %v4984_v36  ;;  %v5053_v35 = vld [vmem:[%s5348_s3 + $0x440] ss:$28 sps:$4 sm:$0xff]   ;;  %v5057_v36 = vld [vmem:[%s5348_s3 + $0x638] ss:$28 sps:$4 sm:$0xff]  }
 0x16d   : > { %3454 = vmatprep.subr.bf16.mxu0 %v4987_v37  ;;  %v5054_v37 = vld [vmem:[%s5348_s3 + $0x9b0] ss:$28 sps:$4 sm:$0xff]  }
 0x16f   : > { %3373 = vmatpush1.bf16.msra.mxu1 %v4982_v38  ;;  %v5058_v38 = vld [vmem:[%s5348_s3 + $0x478] ss:$28 sps:$4 sm:$0xff]  }
 0x170   : > { %3455 = vmatpush1.bf16.msra.mxu0 %v4985_v39  ;;  %3374 = vmatprep.subr.bf16.mxu1 %v4990_v40  ;;  %v5061_v39 = vld [vmem:[%s5348_s3 + $0x9ec] ss:$28 sps:$4 sm:$0xff]  }
 0x171   : > { %3456 = vmatprep.subr.bf16.mxu0 %v4993_v41  ;;  %v5062_v40 = vld [vmem:[%s5348_s3 + $0x670] ss:$28 sps:$4 sm:$0xff]   ;;  %v5059_v41 = vld [vmem:[%s5348_s3 + $0x9e8] ss:$28 sps:$4 sm:$0xff]  }
 0x173   : > { %3375 = vmatpush1.bf16.msra.mxu1 %v4988_v42  ;;  %v5063_v42 = vld [vmem:[%s5348_s3 + $0x4b0] ss:$28 sps:$4 sm:$0xff]  }
 0x174   : > { %3457 = vmatpush1.bf16.msra.mxu0 %v4991_v43  ;;  %4324 = vmatprep.subr.bf16.mxu1 %v4997_v45  ;;  %v5066_v43 = vld [vmem:[%s5348_s3 + $0xa24] ss:$28 sps:$4 sm:$0xff]  }
 0x175   : > { %3467 = vmatprep.subr.bf16.mxu0 %v4996_v44  ;;  %v5067_v44 = vld [vmem:[%s5348_s3 + $0x6a8] ss:$28 sps:$4 sm:$0xff]   ;;  %v5064_v45 = vld [vmem:[%s5348_s3 + $0xa20] ss:$28 sps:$4 sm:$0xff]  }
 0x176   : > { %3377 = vmatmul.mubr.bf16.vlgmr.msra.gmra.mrb[4].mxu1 %v5596_v25 }
 0x177   : > { %3459 = vmatmul.mubr.bf16.vlgmr.msra.gmra.mrb[4].mxu0 %v5434_v7  ;;  %4325 = vmatpush3.bf16.msra.mxu1 %v4998_v48  ;;  %v5071_v48 = vld [vmem:[%s5348_s3 + $0xa5c] ss:$28 sps:$4 sm:$0xff]  }
 0x178   : > { %3468 = vmatpush1.bf16.msra.mxu0 %v4994_v46  ;;  %4326 = vmatprep.subr.bf16.mxu1 %v5002_v50  ;;  %v5068_v46 = vld [vmem:[%s5348_s3 + $0x4e8] ss:$28 sps:$4 sm:$0xff]   ;;  %v5069_v50 = vld [vmem:[%s5348_s3 + $0xa58] ss:$28 sps:$4 sm:$0xff]  }
 0x179   : > { %3469 = vmatprep.subr.bf16.mxu0 %v5001_v49  ;;  %3581 = vmatprep.mubr.bf16.mxu1 %v5403_v47  ;;  %v5013_v47 = vld [vmem:[%s5348_s3 + $0xc0] ss:$28 sps:$4 sm:$0xff]  }
 0x17a   : > { %3499 = vmatprep.mubr.bf16.mxu0 %v5471_v34  ;;  %v5072_v49 = vld [vmem:[%s5348_s3 + $0x6e0] ss:$28 sps:$4 sm:$0xff]  }
 0x17b   : > { %4327 = vmatpush3.bf16.msra.mxu1 %v5003_v53  ;;  %v5076_v53 = vld [vmem:[%s5348_s3 + $0xa94] ss:$28 sps:$4 sm:$0xff]  }
 0x17c   : > { %3470 = vmatpush1.bf16.msra.mxu0 %v4999_v52  ;;  %4328 = vmatprep.subr.bf16.mxu1 %v5007_v55  ;;  %v5073_v52 = vld [vmem:[%s5348_s3 + $0x520] ss:$28 sps:$4 sm:$0xff]   ;;  %v5074_v55 = vld [vmem:[%s5348_s3 + $0xa90] ss:$28 sps:$4 sm:$0xff]  }
 0x17d   : > { %3471 = vmatprep.subr.bf16.mxu0 %v5006_v54  ;;  %v5077_v54 = vld [vmem:[%s5348_s3 + $0x8d8] ss:$28 sps:$4 sm:$0xff]  }
 0x17f   : > { %4329 = vmatpush3.bf16.msra.mxu1 %v5008_v57  ;;  %v5081_v57 = vld [vmem:[%s5348_s3 + $0xacc] ss:$28 sps:$4 sm:$0xff]  }
 0x180   : > { %3472 = vmatpush1.bf16.msra.mxu0 %v5004_v56  ;;  %4330 = vmatprep.subr.bf16.mxu1 %v5012_v59  ;;  %v5078_v56 = vld [vmem:[%s5348_s3 + $0x718] ss:$28 sps:$4 sm:$0xff]   ;;  %v5079_v59 = vld [vmem:[%s5348_s3 + $0xac8] ss:$28 sps:$4 sm:$0xff]  }
 0x181   : > { %3473 = vmatprep.subr.bf16.mxu0 %v5011_v58  ;;  %v5082_v58 = vld [vmem:[%s5348_s3 + $0x910] ss:$28 sps:$4 sm:$0xff]  }
 0x183   : > { %4331 = vmatpush3.bf16.msra.mxu1 %v5013_v47  ;;  %v5086_v47 = vld [vmem:[%s5348_s3 + $0xb04] ss:$28 sps:$4 sm:$0xff]  }
 0x184   : > { %3474 = vmatpush1.bf16.msra.mxu0 %v5009_v61  ;;  %4332 = vmatprep.subr.bf16.mxu1 %v5017_v0  ;;  %v5083_v61 = vld [vmem:[%s5348_s3 + $0x750] ss:$28 sps:$4 sm:$0xff]   ;;  %v5088_v0 = vld [vmem:[%s5348_s3 + $0x788] ss:$28 sps:$4 sm:$0xff]  }
 0x185   : > { %3475 = vmatprep.subr.bf16.mxu0 %v5016_v62  ;;  %v5087_v62 = vld [vmem:[%s5348_s3 + $0x948] ss:$28 sps:$4 sm:$0xff]  }
 0x187   : > { %4333 = vmatpush3.bf16.msra.mxu1 %v5018_v2  ;;  %v5092_v2 = vld [vmem:[%s5348_s3 + $0x980] ss:$28 sps:$4 sm:$0xff]  }
 0x188   : > { %3476 = vmatpush1.bf16.msra.mxu0 %v5014_v1  ;;  %4334 = vmatprep.subr.bf16.mxu1 %v5022_v4  ;;  %v5091_v1 = vld [vmem:[%s5348_s3 + $0xb3c] ss:$28 sps:$4 sm:$0xff]   ;;  %v5096_v4 = vld [vmem:[%s5348_s3 + $0xb74] ss:$28 sps:$4 sm:$0xff]  }
 0x189   : > { %3477 = vmatprep.subr.bf16.mxu0 %v5021_v3  ;;  %v5093_v3 = vld [vmem:[%s5348_s3 + $0x7c0] ss:$28 sps:$4 sm:$0xff]  }
 0x18b   : > { %4335 = vmatpush3.bf16.msra.mxu1 %v5023_v8  ;;  %v5094_v8 = vld [vmem:[%s5348_s3 + $0xb70] ss:$28 sps:$4 sm:$0xff]  }
 0x18c   : > { %3478 = vmatpush1.bf16.msra.mxu0 %v5019_v5  ;;  %4336 = vmatprep.subr.bf16.mxu1 %v5027_v10  ;;  %v5097_v5 = vld [vmem:[%s5348_s3 + $0x9b8] ss:$28 sps:$4 sm:$0xff]   ;;  %v5101_v10 = vld [vmem:[%s5348_s3 + $0xbac] ss:$28 sps:$4 sm:$0xff]  }
 0x18d   : > { %3479 = vmatprep.subr.bf16.mxu0 %v5026_v9  ;;  %v5098_v9 = vld [vmem:[%s5348_s3 + $0x7f8] ss:$28 sps:$4 sm:$0xff]  }
 0x18f   : > { %4337 = vmatpush3.bf16.msra.mxu1 %v5028_v12  ;;  %v5099_v12 = vld [vmem:[%s5348_s3 + $0xba8] ss:$28 sps:$4 sm:$0xff]  }
 0x190   : > { %3480 = vmatpush1.bf16.msra.mxu0 %v5024_v11  ;;  %4338 = vmatprep.subr.bf16.mxu1 %v5032_v14  ;;  %v5102_v11 = vld [vmem:[%s5348_s3 + $0x9f0] ss:$28 sps:$4 sm:$0xff]   ;;  %v5106_v14 = vld [vmem:[%s5348_s3 + $0xbe4] ss:$28 sps:$4 sm:$0xff]  }
 0x191   : > { %3481 = vmatprep.subr.bf16.mxu0 %v5031_v13  ;;  %v5103_v13 = vld [vmem:[%s5348_s3 + $0x830] ss:$28 sps:$4 sm:$0xff]  }
 0x193   : > { %4339 = vmatpush3.bf16.msra.mxu1 %v5033_v17 }
 0x194   : > { %3482 = vmatpush1.bf16.msra.mxu0 %v5029_v15  ;;  %4346 = vmatprep.subr.bf16.mxu1 %v5037_v21  ;;  %v5107_v15 = vld [vmem:[%s5348_s3 + $0xa28] ss:$28 sps:$4 sm:$0xff]  }
 0x195   : > { %3483 = vmatprep.subr.bf16.mxu0 %v5036_v18 }
 0x196   : > { %3582 = vmatmul.mubr.bf16.vlgmr.msra.gmra.mrb[8].mxu1 %v5432_v6  ;;  %v5048_v6 = vld [vmem:[%s5348_s3 + $0x408] ss:$28 sps:$4 sm:$0xff]  }
 0x197   : > { %4347 = vmatpush3.bf16.msra.mxu1 %v5038_v23  ;;  %3621 = vmatprep.mubr.bf16.mxu1 %v5410_v51  ;;  %v5056_v51 = vld [vmem:[%s5348_s3 + $0x9b4] ss:$28 sps:$4 sm:$0xff]  }
 0x198   : > { %3484 = vmatpush1.bf16.msra.mxu0 %v5034_v22  ;;  %4348 = vmatprep.subr.bf16.mxu1 %v5042_v26  ;;  %v5108_v26 = vld [vmem:[%s5348_s3 + $0x868] ss:$28 sps:$4 sm:$0xff]  }
 0x199   : > { %3485 = vmatprep.subr.bf16.mxu0 %v5041_v24  ;;  %v5104_v24 = vld [vmem:[%s5348_s3 + $0xbe0] ss:$28 sps:$4 sm:$0xff]  }
 0x19b   : > { %4349 = vmatpush3.bf16.msra.mxu1 %v5043_v28 }
 0x19c   : > { %3486 = vmatpush1.bf16.msra.mxu0 %v5039_v27  ;;  %4350 = vmatprep.subr.bf16.mxu1 %v5047_v30  ;;  %v5113_v30 = vld [vmem:[%s5348_s3 + $0x8a0] ss:$28 sps:$4 sm:$0xff]  }
 0x19d   : > { %3487 = vmatprep.subr.bf16.mxu0 %v5046_v29  ;;  %v5109_v29 = vld [vmem:[%s5348_s3 + $0xc18] ss:$28 sps:$4 sm:$0xff]  }
 0x19f   : > { %4351 = vmatpush3.bf16.msra.mxu1 %v5048_v6  ;;  %v5117_v6 = vld [vmem:[%s5348_s3 + $0xc58] ss:$28 sps:$4 sm:$0xff]  }
 0x1a0   : > { %3488 = vmatpush1.bf16.msra.mxu0 %v5044_v31  ;;  %4352 = vmatprep.subr.bf16.mxu1 %v5052_v32  ;;  %v5116_v31 = vld [vmem:[%s5348_s3 + $0xc54] ss:$28 sps:$4 sm:$0xff]  }
 0x1a1   : > { %3489 = vmatprep.subr.bf16.mxu0 %v5051_v19  ;;  %v5114_v19 = vld [vmem:[%s5348_s3 + $0xc50] ss:$28 sps:$4 sm:$0xff]   ;;  %v5118_v32 = vld [vmem:[%s5348_s3 + $0xa98] ss:$28 sps:$4 sm:$0xff]  }
 0x1a3   : > { %4353 = vmatpush3.bf16.msra.mxu1 %v5053_v35  ;;  %v5122_v35 = vld [vmem:[%s5348_s3 + $0xc90] ss:$28 sps:$4 sm:$0xff]  }
 0x1a4   : > { %3490 = vmatpush1.bf16.msra.mxu0 %v5049_v33  ;;  %4354 = vmatprep.subr.bf16.mxu1 %v5057_v36  ;;  %v5121_v33 = vld [vmem:[%s5348_s3 + $0xc8c] ss:$28 sps:$4 sm:$0xff]  }
 0x1a5   : > { %3491 = vmatprep.subr.bf16.mxu0 %v5056_v51  ;;  %v5119_v51 = vld [vmem:[%s5348_s3 + $0xc88] ss:$28 sps:$4 sm:$0xff]   ;;  %v5123_v36 = vld [vmem:[%s5348_s3 + $0xad0] ss:$28 sps:$4 sm:$0xff]  }
 0x1a7   : > { %4355 = vmatpush3.bf16.msra.mxu1 %v5058_v38  ;;  %v5127_v38 = vld [vmem:[%s5348_s3 + $0xcc8] ss:$28 sps:$4 sm:$0xff]  }
 0x1a8   : > { %3492 = vmatpush1.bf16.msra.mxu0 %v5054_v37  ;;  %4356 = vmatprep.subr.bf16.mxu1 %v5062_v40  ;;  %v5126_v37 = vld [vmem:[%s5348_s3 + $0xcc4] ss:$28 sps:$4 sm:$0xff]   ;;  %v5131_v40 = vld [vmem:[%s5348_s3 + $0xcfc] ss:$28 sps:$4 sm:$0xff]  }
 0x1a9   : > { %3493 = vmatprep.subr.bf16.mxu0 %v5061_v39  ;;  %v5124_v39 = vld [vmem:[%s5348_s3 + $0xcc0] ss:$28 sps:$4 sm:$0xff]  }
 0x1ab   : > { %4357 = vmatpush3.bf16.msra.mxu1 %v5063_v42  ;;  %v5129_v42 = vld [vmem:[%s5348_s3 + $0xcf8] ss:$28 sps:$4 sm:$0xff]  }
 0x1ac   : > { %3494 = vmatpush1.bf16.msra.mxu0 %v5059_v41  ;;  %4358 = vmatprep.subr.bf16.mxu1 %v5067_v44  ;;  %v5132_v41 = vld [vmem:[%s5348_s3 + $0xd00] ss:$28 sps:$4 sm:$0xff]   ;;  %v5137_v44 = vld [vmem:[%s5348_s3 + $0xd38] ss:$28 sps:$4 sm:$0xff]  }
 0x1ad   : > { %3495 = vmatprep.subr.bf16.mxu0 %v5066_v43  ;;  %v5133_v43 = vld [vmem:[%s5348_s3 + $0xb40] ss:$28 sps:$4 sm:$0xff]  }
 0x1af   : > { %4359 = vmatpush3.bf16.msra.mxu1 %v5068_v46  ;;  %v5138_v46 = vld [vmem:[%s5348_s3 + $0xb78] ss:$28 sps:$4 sm:$0xff]  }
 0x1b0   : > { %3496 = vmatpush1.bf16.msra.mxu0 %v5064_v45  ;;  %4360 = vmatprep.subr.bf16.mxu1 %v5072_v49  ;;  %v5134_v45 = vld [vmem:[%s5348_s3 + $0xd30] ss:$28 sps:$4 sm:$0xff]  }
 0x1b1   : > { %3497 = vmatprep.subr.bf16.mxu0 %v5071_v48  ;;  %v5141_v48 = vld [vmem:[%s5348_s3 + $0xd6c] ss:$28 sps:$4 sm:$0xff]  }
 0x1b2   : > { %v5142_v49 = vld [vmem:[%s5348_s3 + $0xd70] ss:$28 sps:$4 sm:$0xff]  }
 0x1b3   : > { %4361 = vmatpush3.bf16.msra.mxu1 %v5073_v52  ;;  %v5143_v52 = vld [vmem:[%s5348_s3 + $0xbb0] ss:$28 sps:$4 sm:$0xff]  }
 0x1b4   : > { %3498 = vmatpush1.bf16.msra.mxu0 %v5069_v50  ;;  %4368 = vmatprep.subr.bf16.mxu1 %v5077_v54  ;;  %v5139_v50 = vld [vmem:[%s5348_s3 + $0xd68] ss:$28 sps:$4 sm:$0xff]  }
 0x1b5   : > { %3508 = vmatprep.subr.bf16.mxu0 %v5076_v53  ;;  %v5146_v53 = vld [vmem:[%s5348_s3 + $0xda4] ss:$28 sps:$4 sm:$0xff]  }
 0x1b6   : > { %3622 = vmatmul.mubr.bf16.vlgmr.msra.gmra.mrb[12].mxu1 %v5434_v7  ;;  %v5084_v7 = vld [vmem:[%s5348_s3 + $0xb00] ss:$28 sps:$4 sm:$0xff]   ;;  %v5147_v54 = vld [vmem:[%s5348_s3 + $0xda8] ss:$28 sps:$4 sm:$0xff]  }
 0x1b7   : > { %3500 = vmatmul.mubr.bf16.vlgmr.msra.gmra.mrb[4].mxu0 %v5517_v16  ;;  %4369 = vmatpush3.bf16.msra.mxu1 %v5078_v56  ;;  %v5148_v56 = vld [vmem:[%s5348_s3 + $0xbe8] ss:$28 sps:$4 sm:$0xff]  }
 0x1b8   : > { %3509 = vmatpush1.bf16.msra.mxu0 %v5074_v55  ;;  %4370 = vmatprep.subr.bf16.mxu1 %v5082_v58  ;;  %v5144_v55 = vld [vmem:[%s5348_s3 + $0xda0] ss:$28 sps:$4 sm:$0xff]  }
 0x1b9   : > { %3510 = vmatprep.subr.bf16.mxu0 %v5081_v57  ;;  %3661 = vmatprep.mubr.bf16.mxu1 %v5471_v34  ;;  %v5089_v34 = vld [vmem:[%s5348_s3 + $0xb38] ss:$28 sps:$4 sm:$0xff]   ;;  %v5152_v58 = vld [vmem:[%s5348_s3 + $0xde0] ss:$28 sps:$4 sm:$0xff]  }
 0x1ba   : > { %3540 = vmatprep.mubr.bf16.mxu0 %v5528_v20  ;;  %v5151_v57 = vld [vmem:[%s5348_s3 + $0xddc] ss:$28 sps:$4 sm:$0xff]  }
 0x1bb   : > { %4371 = vmatpush3.bf16.msra.mxu1 %v5083_v61  ;;  %v5153_v61 = vld [vmem:[%s5348_s3 + $0xc20] ss:$28 sps:$4 sm:$0xff]  }
 0x1bc   : > { %3511 = vmatpush1.bf16.msra.mxu0 %v5079_v59  ;;  %4372 = vmatprep.subr.bf16.mxu1 %v5087_v62  ;;  %v5149_v59 = vld [vmem:[%s5348_s3 + $0xdd8] ss:$28 sps:$4 sm:$0xff]  }
 0x1bd   : > { %3512 = vmatprep.subr.bf16.mxu0 %v5086_v47 }
 0x1bf   : > { %4373 = vmatpush3.bf16.msra.mxu1 %v5088_v0 }
 0x1c0   : > { %3513 = vmatpush1.bf16.msra.mxu0 %v5084_v7  ;;  %4374 = vmatprep.subr.bf16.mxu1 %v5092_v2 }
 0x1c1   : > { %3514 = vmatprep.subr.bf16.mxu0 %v5091_v1 }
 0x1c3   : > { %4375 = vmatpush3.bf16.msra.mxu1 %v5093_v3 }
 0x1c4   : > { %3515 = vmatpush1.bf16.msra.mxu0 %v5089_v34  ;;  %4376 = vmatprep.subr.bf16.mxu1 %v5097_v5 }
 0x1c5   : > { %3516 = vmatprep.subr.bf16.mxu0 %v5096_v4 }
 0x1c7   : > { %4377 = vmatpush3.bf16.msra.mxu1 %v5098_v9 }
 0x1c8   : > { %3517 = vmatpush1.bf16.msra.mxu0 %v5094_v8  ;;  %4378 = vmatprep.subr.bf16.mxu1 %v5102_v11 }
 0x1c9   : > { %3518 = vmatprep.subr.bf16.mxu0 %v5101_v10 }
 0x1ca   : > { %v3214_v17 = vpop.f32.mrb[0].mxu0 }
 0x1cb   : > { %v4412_v18 = vadd.f32 %v3214_v17, %v5694_v60  ;;  %v3216_v21 = vpop.f32.mrb[1].mxu0  ;;  %4379 = vmatpush3.bf16.msra.mxu1 %v5103_v13  ;;  %v5111_v60 = vld [vmem:[%s5348_s3 + $0xc1c] ss:$28 sps:$4 sm:$0xff]  }
 0x1cc   : > { %v4413_v22 = vadd.f32 %v3216_v21, %v5698_v63  ;;  %v3218_v23 = vpop.f32.mrb[2].mxu0  ;;  %3519 = vmatpush1.bf16.msra.mxu0 %v5099_v12  ;;  %4380 = vmatprep.subr.bf16.mxu1 %v5107_v15  ;;  %v5112_v63 = vld [vmem:[%s5348_s3 + $0xa60] ss:$28 sps:$4 sm:$0xff]  }
 0x1cd   : > { %v3219_v27 = vpop.f32.mrb[3].mxu0  ;;  %3520 = vmatprep.subr.bf16.mxu0 %v5106_v14 }
 0x1ce   : > { %v4320_v28 = vpack.c.bf16 %v4413_v22, %v4412_v18 }
 0x1cf   : > { %4381 = vmatpush3.bf16.msra.mxu1 %v5108_v26 }
 0x1d0   : > { %3738 = vst [vmem:[%s5844_s15] sm:$0xff] %v4320_v28  ;;  %3521 = vmatpush1.bf16.msra.mxu0 %v5104_v24  ;;  %4382 = vmatprep.subr.bf16.mxu1 %v5112_v63 }
 0x1d1   : > { %3522 = vmatprep.subr.bf16.mxu0 %v5111_v60 }
 0x1d3   : > { %4383 = vmatpush3.bf16.msra.mxu1 %v5113_v30 }
 0x1d4   : > { %3523 = vmatpush1.bf16.msra.mxu0 %v5109_v29  ;;  %4390 = vmatprep.subr.bf16.mxu1 %v5117_v6 }
 0x1d5   : > { %3524 = vmatprep.subr.bf16.mxu0 %v5116_v31 }
 0x1d6   : > { %3662 = vmatmul.mubr.bf16.vlgmr.msra.gmra.mrb[16].mxu1 %v5517_v16  ;;  %v5128_v16 = vld [vmem:[%s5348_s3 + $0xb08] ss:$28 sps:$4 sm:$0xff]  }
 0x1d7   : > { %4391 = vmatpush3.bf16.msra.mxu1 %v5118_v32  ;;  %3701 = vmatprep.mubr.bf16.mxu1 %v5528_v20  ;;  %v5136_v20 = vld [vmem:[%s5348_s3 + $0xd34] ss:$28 sps:$4 sm:$0xff]  }
 0x1d8   : > { %3525 = vmatpush1.bf16.msra.mxu0 %v5114_v19  ;;  %4392 = vmatprep.subr.bf16.mxu1 %v5122_v35 }
 0x1d9   : > { %3526 = vmatprep.subr.bf16.mxu0 %v5121_v33 }
 0x1db   : > { %4393 = vmatpush3.bf16.msra.mxu1 %v5123_v36 }
 0x1dc   : > { %3527 = vmatpush1.bf16.msra.mxu0 %v5119_v51  ;;  %4394 = vmatprep.subr.bf16.mxu1 %v5127_v38 }
 0x1dd   : > { %3528 = vmatprep.subr.bf16.mxu0 %v5126_v37 }
 0x1df   : > { %4395 = vmatpush3.bf16.msra.mxu1 %v5128_v16 }
 0x1e0   : > { %3529 = vmatpush1.bf16.msra.mxu0 %v5124_v39  ;;  %4396 = vmatprep.subr.bf16.mxu1 %v5132_v41 }
 0x1e1   : > { %3530 = vmatprep.subr.bf16.mxu0 %v5131_v40 }
 0x1e3   : > { %4397 = vmatpush3.bf16.msra.mxu1 %v5133_v43 }
 0x1e4   : > { %3531 = vmatpush1.bf16.msra.mxu0 %v5129_v42  ;;  %4398 = vmatprep.subr.bf16.mxu1 %v5137_v44 }
 0x1e5   : > { %3532 = vmatprep.subr.bf16.mxu0 %v5136_v20 }
 0x1e7   : > { %4399 = vmatpush3.bf16.msra.mxu1 %v5138_v46 }
 0x1e8   : > { %3533 = vmatpush1.bf16.msra.mxu0 %v5134_v45  ;;  %4400 = vmatprep.subr.bf16.mxu1 %v5142_v49 }
 0x1e9   : > { %3534 = vmatprep.subr.bf16.mxu0 %v5141_v48 }
 0x1eb   : > { %4401 = vmatpush3.bf16.msra.mxu1 %v5143_v52 }
 0x1ec   : > { %3535 = vmatpush1.bf16.msra.mxu0 %v5139_v50  ;;  %4402 = vmatprep.subr.bf16.mxu1 %v5147_v54 }
 0x1ed   : > { %3536 = vmatprep.subr.bf16.mxu0 %v5146_v53 }
 0x1ef   : > { %4403 = vmatpush3.bf16.msra.mxu1 %v5148_v56 }
 0x1f0   : > { %3537 = vmatpush1.bf16.msra.mxu0 %v5144_v55  ;;  %4404 = vmatprep.subr.bf16.mxu1 %v5152_v58 }
 0x1f1   : > { %3538 = vmatprep.subr.bf16.mxu0 %v5151_v57 }
 0x1f3   : > { %4405 = vmatpush3.bf16.msra.mxu1 %v5153_v61 }
 0x1f4   : > { %3539 = vmatpush1.bf16.msra.mxu0 %v5149_v59 }
 0x1f6   : > { %3702 = vmatmul.mubr.bf16.vlgmr.msra.gmra.mrb[20].mxu1 %v5596_v25 }
 0x1f7   : > { %3541 = vmatmul.mubr.bf16.vlgmr.msra.gmra.mrb[4].mxu0 %v5596_v25 }
 0x249   : > { %v3378_v47 = vpop.f32.mrb[4].mxu1 }
 0x24a   : > { %v3380_v62 = vpop.f32.mrb[5].mxu1 }
 0x24b   : > { %v4321_v7 = vpack.c.bf16 %v3380_v62, %v3378_v47  ;;  %v3382_v0 = vpop.f32.mrb[6].mxu1 }
 0x24c   : > { %v3383_v1 = vpop.f32.mrb[7].mxu1 }
 0x24d   : > { %3739 = vst [vmem:[%s5844_s15 + $0x8] sm:$0xff] %v4321_v7 }
 0x269   : > { %v4340_v2 = vpop.f32.mrb[8].mxu1 }
 0x26a   : > { %v4341_v34 = vpop.f32.mrb[9].mxu1 }
 0x26b   : > { %v4342_v3 = vadd.f32 %v4341_v34, %v4340_v2  ;;  %v4343_v4 = vpop.f32.mrb[10].mxu1 }
 0x26c   : > { %v4344_v5 = vpop.f32.mrb[11].mxu1 }
 0x289   : > { %v4362_v8 = vpop.f32.mrb[12].mxu1 }
 0x28a   : > { %v4363_v9 = vpop.f32.mrb[13].mxu1 }
 0x28b   : > { %v4364_v10 = vadd.f32 %v4363_v9, %v4362_v8  ;;  %v4365_v11 = vpop.f32.mrb[14].mxu1 }
 0x28c   : > { %v4366_v12 = vpop.f32.mrb[15].mxu1 }
 0x28d   : > { %v3624_v13 = vadd.f32 %v4364_v10, %v4342_v3 }
 0x2a9   : > { %v4384_v14 = vpop.f32.mrb[16].mxu1 }
 0x2aa   : > { %v4385_v25 = vpop.f32.mrb[17].mxu1 }
 0x2ab   : > { %v4386_v15 = vadd.f32 %v4385_v25, %v4384_v14  ;;  %v4387_v17 = vpop.f32.mrb[18].mxu1 }
 0x2ac   : > { %v4388_v18 = vpop.f32.mrb[19].mxu1 }
 0x2ad   : > { %v3664_v21 = vadd.f32 %v4386_v15, %v3624_v13 }
 0x2c9   : > { %v4406_v23 = vpop.f32.mrb[20].mxu1 }
 0x2ca   : > { %v3542_v22 = vpop.f32.mrb[4].mxu0  ;;  %v4407_v26 = vpop.f32.mrb[21].mxu1 }
 0x2cb   : > { %v3544_v24 = vpop.f32.mrb[5].mxu0  ;;  %v4408_v60 = vadd.f32 %v4407_v26, %v4406_v23  ;;  %v4409_v28 = vpop.f32.mrb[22].mxu1 }
 0x2cc   : > { %v4322_v27 = vpack.c.bf16 %v3544_v24, %v3542_v22  ;;  %v3546_v63 = vpop.f32.mrb[6].mxu0  ;;  %v4410_v30 = vpop.f32.mrb[23].mxu1 }
 0x2cd   : > { %v3547_v29 = vpop.f32.mrb[7].mxu0  ;;  %v3704_v31 = vadd.f32 %v4408_v60, %v3664_v21 }
 0x2ce   : > { %3740 = vst [vmem:[%s5844_s15 + $0x10] sm:$0xff] %v4322_v27 }
 0x2cf   : > { %v4323_v6 = vpack.c.bf16 %v3704_v31, %v3704_v31 }
 0x2d1   : > { %3741 = vst [vmem:[%s5844_s15 + $0x18] sm:$0xf] %v4323_v6 }
 0x2d2 PF: > { %s15_s14 = sadd.s32 1, %s5234_s14   ;;  %s5914_s9 = smov %s5218_s10 }
 0x2d3   : > { %p12_p9 = scmp.ge.s32.totalorder %s15_s14, 9   ;;  %s5915_s10 = smov %s5222_s11 }
 0x2d4   : > { %s5916_s11 = smov %s5300_s20  ;;  %s5917_s12 = smov %s5230_s13 }
 0x2d5   : > { %s5918_s13 = smov %s5920_s16  ;;  %14 = sbr.rel (!%p12_p9) target bundleno = 4 (0x4), region = 71 }
 0x2dc   :  { %3772 = vsyncpa [#allocation3], 1 }
 0x2dd   :  { %3774 = vsyncpa [#allocation3 + $0x1], 1 }

// kernel: infogan_forward.21
= control target key start
LH: loop header
LB: loop body
LE: loop exit
PB: predicated region body
PF: predicated region fallthrough
CT: control target
= control target key end

     0   :  { %s586_s9 = smov 0   ;;  %s588_s10 = smov 0   ;;  %s636_s0 = inlined_call_operand.vmem [shape: bf16[400,64], index: 0, kind: input, shape index: {}]   ;;  %s637_s1 = inlined_call_operand.vmem [shape: bf16[64,128], index: 1, kind: input, shape index: {}]   ;;  %s638_s2 = inlined_call_operand.vmem [shape: f32[400,128], index: 2, kind: output, shape index: {}]  }
   0x1   :  { %s590_s11 = smov 0  }
   0x2 LB: > { %s24_s12 = sadd.s32 1, %s563_s10  ;;  %p446_p0 = scmp.ge.s32.totalorder %s567_s11, 1  ;;  %s567_s11 = sphi %s590_s11, %s12_s11   ;;  %s563_s10 = sphi %s588_s10, %s640_s10   ;;  %s559_s9 = sphi %s586_s9, %s639_s9  }
   0x3   : > { %p26_p1 = scmp.ge.s32.totalorder %s24_s12, 5  ;;  %p136_p2 = scmp.lt.s32.totalorder %s567_s11, 6 }
   0x5   : > { %s642_s12 = smov (%p26_p1, %s24_s12), 0  ;;  %p137_p3 = pnand %p446_p0, %p136_p2 }
   0x6   : > { %v536_v0 = vld [vmem:[%s637_s1] sm:$0xff] (!%p137_p3)   ;;  %v569_v1 = vmov (!%p137_p3), 0.0   ;;  %v537_v2 = vld [vmem:[%s637_s1 + $0x8] sm:$0xff] (!%p137_p3)   ;;  %s165_s17 = smul.u32 (!%p137_p3), 10, %s559_s9  ;;  %vm570_vm0 = vmmov (!%p137_p3), 0   ;;  %v538_v3 = vld [vmem:[%s637_s1 + $0x10] sm:$0xff] (!%p137_p3)  }
   0x7   : > { %140 = sbr.rel (%p137_p3) target bundleno = 254 (0xfe), region = 28  ;;  %474 = vmatprep.subr.bf16.mxu0 (!%p137_p3), %v569_v1  ;;  %502 = vmatprep.subr.bf16.mxu1 (!%p137_p3), %v569_v1  ;;  %v539_v4 = vld [vmem:[%s637_s1 + $0x18] sm:$0xff] (!%p137_p3)   ;;  %vm252_vm1 = vcmask (!%p137_p3), 523264  }
   0x8   : > { %475 = vmatpush3.bf16.msra.mxu0 (!%p137_p3), %v536_v0  ;;  %506 = vmatpush3.bf16.msra.mxu1 (!%p137_p3), %v536_v0  ;;  %p166_p4 = scmp.lt.s32.totalorder (!%p137_p3), %s165_s17, 49 }
   0x9   : > { %476 = vmatprep.subr.bf16.mxu0 (!%p137_p3), %v569_v1  ;;  %503 = vmatprep.subr.bf16.mxu1 (!%p137_p3), %v569_v1 }
   0xa   : > { %482 = vmatprep.mubr.msk.bf16.mxu0 (!%p137_p3), %vm570_vm0, %v569_v1  ;;  %494 = vmatprep.mubr.msk.bf16.mxu1 (!%p137_p3), %vm570_vm0, %v569_v1 }
   0xc   : > { %477 = vmatpush3.bf16.msra.mxu0 (!%p137_p3), %v537_v2  ;;  %507 = vmatpush3.bf16.msra.mxu1 (!%p137_p3), %v537_v2 }
   0xd   : > { %478 = vmatprep.subr.bf16.mxu0 (!%p137_p3), %v569_v1  ;;  %504 = vmatprep.subr.bf16.mxu1 (!%p137_p3), %v569_v1 }
   0xe   : > { %s644_s17 = smov (!%p166_p4, %s165_s17), 49 }
   0xf   : > { %s447_s20 = sshll.u32 %s644_s17, 2  ;;  %s448_s26 = sshll.u32 %s644_s17, 3 }
  0x10   : > { %s169_s23 = scalar_lea.vmem %s636_s0, %s447_s20  ;;  %479 = vmatpush3.bf16.msra.mxu0 %v538_v3  ;;  %508 = vmatpush3.bf16.msra.mxu1 %v538_v3  ;;  %s182_s29 = scalar_lea.vmem %s638_s2, %s448_s26 }
  0x11   : > { %480 = vmatprep.subr.bf16.mxu0 %v569_v1  ;;  %505 = vmatprep.subr.bf16.mxu1 %v569_v1  ;;  %v540_v5 = vld [vmem:[%s169_s23] sm:$0xff]   ;;  %v541_v6 = vld [vmem:[%s169_s23 + $0x18] sm:$0xff]   ;;  %v542_v7 = vld [vmem:[%s169_s23 + $0x8] sm:$0xff]  }
  0x12   : > { %v543_v8 = vld [vmem:[%s169_s23 + $0x20] sm:$0xff]   ;;  %v544_v9 = vld [vmem:[%s169_s23 + $0x10] sm:$0xff]  }
  0x14   : > { %481 = vmatpush3.bf16.msra.mxu0 %v539_v4  ;;  %509 = vmatpush3.bf16.msra.mxu1 %v539_v4 }
  0x17   : > { %483 = vmatmul.mubr.msk.bf16.vlgmr.msra.gmra.mrb[0].mxu0 %vm252_vm1, %v540_v5  ;;  %495 = vmatmul.mubr.msk.bf16.vlgmr.msra.gmra.mrb[0].mxu1 %vm252_vm1, %v541_v6 }
  0x18   : > { %486 = vmatprep.mubr.msk.bf16.mxu0 %vm570_vm0, %v569_v1  ;;  %498 = vmatprep.mubr.msk.bf16.mxu1 %vm570_vm0, %v569_v1 }
  0x1f   : > { %487 = vmatmul.mubr.msk.bf16.gmra.mrb[4].mxu0 %vm252_vm1, %v542_v7  ;;  %499 = vmatmul.mubr.msk.bf16.gmra.mrb[4].mxu1 %vm252_vm1, %v543_v8 }
  0x20   : > { %490 = vmatprep.mubr.msk.bf16.mxu0 %vm570_vm0, %v569_v1 }
  0x27   : > { %491 = vmatmul.mubr.msk.bf16.gmra.mrb[8].mxu0 %vm252_vm1, %v544_v9 }
  0xea   : > { %v302_v10 = vpop.f32.mrb[0].mxu0  ;;  %v326_v11 = vpop.f32.mrb[0].mxu1 }
  0xeb   : > { %341 = vst [vmem:[%s182_s29] sm:$0xff] %v302_v10  ;;  %v484_v12 = vpop.f32.mrb[1].mxu0  ;;  %347 = vst [vmem:[%s182_s29 + $0x30] sm:$0xff] %v326_v11  ;;  %v496_v13 = vpop.f32.mrb[1].mxu1 }
  0xec   : > { %v305_v14 = vpop.f32.mrb[2].mxu0  ;;  %v329_v15 = vpop.f32.mrb[2].mxu1 }
  0xed   : > { %342 = vst [vmem:[%s182_s29 + $0x8] sm:$0xff] %v305_v14  ;;  %v485_v16 = vpop.f32.mrb[3].mxu0  ;;  %348 = vst [vmem:[%s182_s29 + $0x38] sm:$0xff] %v329_v15  ;;  %v497_v17 = vpop.f32.mrb[3].mxu1 }
  0xf2   : > { %v310_v18 = vpop.f32.mrb[4].mxu0  ;;  %v334_v19 = vpop.f32.mrb[4].mxu1 }
  0xf3   : > { %343 = vst [vmem:[%s182_s29 + $0x10] sm:$0xff] %v310_v18  ;;  %v488_v20 = vpop.f32.mrb[5].mxu0  ;;  %349 = vst [vmem:[%s182_s29 + $0x40] sm:$0xff] %v334_v19  ;;  %v500_v21 = vpop.f32.mrb[5].mxu1 }
  0xf4   : > { %v313_v22 = vpop.f32.mrb[6].mxu0  ;;  %v337_v23 = vpop.f32.mrb[6].mxu1 }
  0xf5   : > { %344 = vst [vmem:[%s182_s29 + $0x18] sm:$0xff] %v313_v22  ;;  %v489_v24 = vpop.f32.mrb[7].mxu0  ;;  %350 = vst [vmem:[%s182_s29 + $0x48] sm:$0xff] %v337_v23  ;;  %v501_v25 = vpop.f32.mrb[7].mxu1 }
  0xfa   : > { %v318_v26 = vpop.f32.mrb[8].mxu0 }
  0xfb   : > { %345 = vst [vmem:[%s182_s29 + $0x20] sm:$0xff] %v318_v26  ;;  %v492_v27 = vpop.f32.mrb[9].mxu0 }
  0xfc   : > { %v321_v28 = vpop.f32.mrb[10].mxu0 }
  0xfd   : > { %346 = vst [vmem:[%s182_s29 + $0x28] sm:$0xff] %v321_v28  ;;  %v493_v29 = vpop.f32.mrb[11].mxu0 }
  0xfe PF: > { %s12_s11 = sadd.s32 1, %s567_s11   ;;  %s639_s9 = smov %s563_s10 }
  0xff   : > { %p9_p5 = scmp.ge.s32.totalorder %s12_s11, 7   ;;  %s640_s10 = smov %s642_s12 }
 0x101   :  { %11 = sbr.rel (!%p9_p5) target bundleno = 2 (0x2), region = 61 }

// kernel: infogan_forward.20
= control target key start
LH: loop header
LB: loop body
LE: loop exit
PB: predicated region body
PF: predicated region fallthrough
CT: control target
= control target key end

     0   :  { %s1681_s0 = inlined_call_operand.vmem [shape: f32[392,128], index: 0, kind: input, shape index: {}]   ;;  %s1682_s1 = inlined_call_operand.vmem [shape: f32[1,128], index: 1, kind: input, shape index: {}]   ;;  %s1683_s2 = inlined_call_operand.vmem [shape: f32[1,128], index: 2, kind: input, shape index: {}]   ;;  %s1684_s3 = inlined_call_operand.vmem [shape: bf16[392,128], index: 3, kind: output, shape index: {}]  }
   0x1   :  { %v950_v0 = vld [vmem:[%s1681_s0] sm:$0xff]  ;;  %v955_v1 = vld [vmem:[%s1681_s0 + $0x8] sm:$0xff]  ;;  %v960_v2 = vld [vmem:[%s1681_s0 + $0x10] sm:$0xff] }
   0x2   :  { %v63_v3 = vadd.f32 %v955_v1, %v950_v0  ;;  %v967_v4 = vld [vmem:[%s1681_s0 + $0x18] sm:$0xff]  ;;  %v973_v6 = vld [vmem:[%s1681_s0 + $0x20] sm:$0xff]  ;;  %v979_v8 = vld [vmem:[%s1681_s0 + $0x28] sm:$0xff] }
   0x3   :  { %v985_v10 = vld [vmem:[%s1681_s0 + $0x30] sm:$0xff]  ;;  %v991_v12 = vld [vmem:[%s1681_s0 + $0x38] sm:$0xff]  ;;  %v997_v14 = vld [vmem:[%s1681_s0 + $0x40] sm:$0xff] }
   0x4   :  { %v64_v5 = vadd.f32 %v63_v3, %v960_v2  ;;  %v1003_v16 = vld [vmem:[%s1681_s0 + $0x48] sm:$0xff]  ;;  %v1009_v18 = vld [vmem:[%s1681_s0 + $0x50] sm:$0xff]  ;;  %v1015_v20 = vld [vmem:[%s1681_s0 + $0x58] sm:$0xff] }
   0x5   :  { %v1021_v22 = vld [vmem:[%s1681_s0 + $0x60] sm:$0xff]  ;;  %v1027_v24 = vld [vmem:[%s1681_s0 + $0x68] sm:$0xff]  ;;  %v1033_v26 = vld [vmem:[%s1681_s0 + $0x70] sm:$0xff] }
   0x6   :  { %v65_v7 = vadd.f32 %v64_v5, %v967_v4  ;;  %v1039_v28 = vld [vmem:[%s1681_s0 + $0x78] sm:$0xff]  ;;  %v1045_v30 = vld [vmem:[%s1681_s0 + $0x80] sm:$0xff]  ;;  %v1051_v32 = vld [vmem:[%s1681_s0 + $0x88] sm:$0xff] }
   0x7   :  { %v1057_v34 = vld [vmem:[%s1681_s0 + $0x90] sm:$0xff]  ;;  %v1063_v36 = vld [vmem:[%s1681_s0 + $0x98] sm:$0xff]  ;;  %v1069_v38 = vld [vmem:[%s1681_s0 + $0xa0] sm:$0xff] }
   0x8   :  { %v66_v9 = vadd.f32 %v65_v7, %v973_v6  ;;  %v1075_v40 = vld [vmem:[%s1681_s0 + $0xa8] sm:$0xff]  ;;  %v1081_v42 = vld [vmem:[%s1681_s0 + $0xb0] sm:$0xff]  ;;  %v1087_v44 = vld [vmem:[%s1681_s0 + $0xb8] sm:$0xff] }
   0x9   :  { %v1093_v46 = vld [vmem:[%s1681_s0 + $0xc0] sm:$0xff]  ;;  %v1099_v48 = vld [vmem:[%s1681_s0 + $0xc8] sm:$0xff]  ;;  %v1105_v50 = vld [vmem:[%s1681_s0 + $0xd0] sm:$0xff] }
   0xa   :  { %v67_v11 = vadd.f32 %v66_v9, %v979_v8  ;;  %v41_v52 = vld [vmem:[%s1681_s0 + $0xd8] sm:$0xff]  ;;  %v42_v54 = vld [vmem:[%s1681_s0 + $0xe0] sm:$0xff]  ;;  %v43_v56 = vld [vmem:[%s1681_s0 + $0xe8] sm:$0xff] }
   0xb   :  { %v44_v58 = vld [vmem:[%s1681_s0 + $0xf0] sm:$0xff]  ;;  %v45_v60 = vld [vmem:[%s1681_s0 + $0xf8] sm:$0xff]  ;;  %v46_v62 = vld [vmem:[%s1681_s0 + $0x100] sm:$0xff] }
   0xc   :  { %v68_v13 = vadd.f32 %v67_v11, %v985_v10  ;;  %v47_v3 = vld [vmem:[%s1681_s0 + $0x108] sm:$0xff]  ;;  %v48_v7 = vld [vmem:[%s1681_s0 + $0x110] sm:$0xff]  ;;  %v49_v11 = vld [vmem:[%s1681_s0 + $0x118] sm:$0xff] }
   0xe   :  { %v69_v15 = vadd.f32 %v68_v13, %v991_v12 }
  0x10   :  { %v70_v17 = vadd.f32 %v69_v15, %v997_v14  ;;  %v50_v15 = vld [vmem:[%s1681_s0 + $0x120] sm:$0xff] }
  0x12   :  { %v71_v19 = vadd.f32 %v70_v17, %v1003_v16 }
  0x14   :  { %v72_v21 = vadd.f32 %v71_v19, %v1009_v18  ;;  %v51_v19 = vld [vmem:[%s1681_s0 + $0x128] sm:$0xff] }
  0x16   :  { %v73_v23 = vadd.f32 %v72_v21, %v1015_v20 }
  0x18   :  { %v74_v25 = vadd.f32 %v73_v23, %v1021_v22  ;;  %v52_v23 = vld [vmem:[%s1681_s0 + $0x130] sm:$0xff] }
  0x1a   :  { %v75_v27 = vadd.f32 %v74_v25, %v1027_v24 }
  0x1c   :  { %v76_v29 = vadd.f32 %v75_v27, %v1033_v26  ;;  %v53_v27 = vld [vmem:[%s1681_s0 + $0x138] sm:$0xff] }
  0x1e   :  { %v77_v31 = vadd.f32 %v76_v29, %v1039_v28 }
  0x20   :  { %v78_v33 = vadd.f32 %v77_v31, %v1045_v30  ;;  %v54_v31 = vld [vmem:[%s1681_s0 + $0x140] sm:$0xff] }
  0x22   :  { %v79_v35 = vadd.f32 %v78_v33, %v1051_v32 }
  0x24   :  { %v80_v37 = vadd.f32 %v79_v35, %v1057_v34  ;;  %v55_v35 = vld [vmem:[%s1681_s0 + $0x148] sm:$0xff] }
  0x26   :  { %v81_v39 = vadd.f32 %v80_v37, %v1063_v36 }
  0x28   :  { %v82_v41 = vadd.f32 %v81_v39, %v1069_v38  ;;  %v56_v39 = vld [vmem:[%s1681_s0 + $0x150] sm:$0xff] }
  0x2a   :  { %v83_v43 = vadd.f32 %v82_v41, %v1075_v40 }
  0x2c   :  { %v84_v45 = vadd.f32 %v83_v43, %v1081_v42  ;;  %v57_v43 = vld [vmem:[%s1681_s0 + $0x158] sm:$0xff] }
  0x2e   :  { %v85_v47 = vadd.f32 %v84_v45, %v1087_v44 }
  0x30   :  { %v86_v49 = vadd.f32 %v85_v47, %v1093_v46  ;;  %v58_v47 = vld [vmem:[%s1681_s0 + $0x160] sm:$0xff] }
  0x32   :  { %v87_v51 = vadd.f32 %v86_v49, %v1099_v48 }
  0x34   :  { %v88_v53 = vadd.f32 %v87_v51, %v1105_v50  ;;  %v59_v51 = vld [vmem:[%s1681_s0 + $0x168] sm:$0xff] }
  0x36   :  { %v89_v55 = vadd.f32 %v88_v53, %v41_v52 }
  0x38   :  { %v90_v57 = vadd.f32 %v89_v55, %v42_v54  ;;  %v60_v55 = vld [vmem:[%s1681_s0 + $0x170] sm:$0xff] }
  0x3a   :  { %v91_v59 = vadd.f32 %v90_v57, %v43_v56 }
  0x3c   :  { %v92_v61 = vadd.f32 %v91_v59, %v44_v58  ;;  %v61_v59 = vld [vmem:[%s1681_s0 + $0x178] sm:$0xff] }
  0x3e   :  { %v93_v63 = vadd.f32 %v92_v61, %v45_v60 }
  0x40   :  { %v94_v5 = vadd.f32 %v93_v63, %v46_v62  ;;  %v62_v63 = vld [vmem:[%s1681_s0 + $0x180] sm:$0xff] }
  0x42   :  { %v95_v9 = vadd.f32 %v94_v5, %v47_v3 }
  0x44   :  { %v96_v13 = vadd.f32 %v95_v9, %v48_v7 }
  0x46   :  { %v97_v17 = vadd.f32 %v96_v13, %v49_v11 }
  0x48   :  { %v98_v21 = vadd.f32 %v97_v17, %v50_v15 }
  0x4a   :  { %v99_v25 = vadd.f32 %v98_v21, %v51_v19 }
  0x4c   :  { %v100_v29 = vadd.f32 %v99_v25, %v52_v23 }
  0x4e   :  { %v101_v33 = vadd.f32 %v100_v29, %v53_v27 }
  0x50   :  { %v102_v37 = vadd.f32 %v101_v33, %v54_v31 }
  0x52   :  { %v103_v41 = vadd.f32 %v102_v37, %v55_v35 }
  0x54   :  { %v104_v45 = vadd.f32 %v103_v41, %v56_v39 }
  0x56   :  { %v105_v49 = vadd.f32 %v104_v45, %v57_v43 }
  0x58   :  { %v106_v53 = vadd.f32 %v105_v49, %v58_v47 }
  0x5a   :  { %v107_v57 = vadd.f32 %v106_v53, %v59_v51 }
  0x5c   :  { %v108_v61 = vadd.f32 %v107_v57, %v60_v55 }
  0x5e   :  { %v109_v5 = vadd.f32 %v108_v61, %v61_v59 }
  0x60   :  { %v110_v9 = vadd.f32 %v109_v5, %v62_v63 }
  0x62   :  { %v111_v13 = vrot.slane %v110_v9, 4 }
  0x64   :  { %v112_v17 = vadd.f32 %v111_v13, %v110_v9 }
  0x66   :  { %v113_v21 = vrot.slane %v112_v17, 2 }
  0x68   :  { %v114_v25 = vadd.f32 %v113_v21, %v112_v17 }
  0x6a   :  { %v115_v29 = vrot.slane %v114_v25, 1 }
  0x6c   :  { %v116_v33 = vadd.f32 %v115_v29, %v114_v25 }
  0x6e   :  { %v1175_v37 = vmul.f32 0.0025510204, %v116_v33 }
  0x70   :  { %v1178_v41 = vsub.f32 %v41_v52, %v1175_v37  ;;  %v1181_v45 = vsub.f32 %v42_v54, %v1175_v37  ;;  %v1184_v49 = vsub.f32 %v43_v56, %v1175_v37  ;;  %v1187_v53 = vsub.f32 %v44_v58, %v1175_v37 }
  0x71   :  { %v1190_v57 = vsub.f32 %v45_v60, %v1175_v37  ;;  %v1193_v61 = vsub.f32 %v46_v62, %v1175_v37  ;;  %v1196_v5 = vsub.f32 %v47_v3, %v1175_v37  ;;  %v1199_v52 = vsub.f32 %v48_v7, %v1175_v37 }
  0x72   :  { %v1202_v54 = vsub.f32 %v49_v11, %v1175_v37  ;;  %v1205_v56 = vsub.f32 %v50_v15, %v1175_v37  ;;  %v1208_v58 = vsub.f32 %v51_v19, %v1175_v37  ;;  %v1211_v60 = vsub.f32 %v52_v23, %v1175_v37 }
  0x73   :  { %v1214_v62 = vsub.f32 %v53_v27, %v1175_v37  ;;  %v1217_v3 = vsub.f32 %v54_v31, %v1175_v37  ;;  %v1220_v7 = vsub.f32 %v55_v35, %v1175_v37  ;;  %v1223_v11 = vsub.f32 %v56_v39, %v1175_v37 }
  0x74   :  { %v1226_v15 = vsub.f32 %v57_v43, %v1175_v37  ;;  %v1229_v19 = vsub.f32 %v58_v47, %v1175_v37  ;;  %v1232_v23 = vsub.f32 %v59_v51, %v1175_v37  ;;  %v1235_v27 = vsub.f32 %v60_v55, %v1175_v37 }
  0x75   :  { %1690 = vst [vmem:[#allocation2_spill] sm:$0xff] %v1223_v11  ;;  %v1238_v31 = vsub.f32 %v61_v59, %v1175_v37  ;;  %v1241_v35 = vsub.f32 %v62_v63, %v1175_v37  ;;  %v1245_v39 = vsub.f32 %v950_v0, %v1175_v37  ;;  %v1249_v43 = vsub.f32 %v955_v1, %v1175_v37 }
  0x76   :  { %1691 = vst [vmem:[#allocation3_spill] sm:$0xff] %v1226_v15  ;;  %1692 = vst [vmem:[#allocation4_spill] sm:$0xff] %v1229_v19  ;;  %v1253_v47 = vsub.f32 %v960_v2, %v1175_v37  ;;  %v1257_v51 = vsub.f32 %v967_v4, %v1175_v37  ;;  %v1265_v0 = vsub.f32 %v973_v6, %v1175_v37 }
  0x77   :  { %1693 = vst [vmem:[#allocation5_spill] sm:$0xff] %v1232_v23  ;;  %1694 = vst [vmem:[#allocation6_spill] sm:$0xff] %v1241_v35  ;;  %v167_v55 = vmul.f32 %v1245_v39, %v1245_v39  ;;  %v168_v59 = vmul.f32 %v1249_v43, %v1249_v43  ;;  %v1271_v2 = vsub.f32 %v979_v8, %v1175_v37 }
  0x78   :  { %v169_v1 = vmul.f32 %v1253_v47, %v1253_v47  ;;  %v170_v4 = vmul.f32 %v1257_v51, %v1257_v51  ;;  %v1277_v9 = vsub.f32 %v985_v10, %v1175_v37  ;;  %v171_v13 = vmul.f32 %v1265_v0, %v1265_v0 }
  0x79   :  { %v216_v63 = vadd.f32 %v168_v59, %v167_v55  ;;  %v1283_v17 = vsub.f32 %v991_v12, %v1175_v37  ;;  %v172_v8 = vmul.f32 %v1271_v2, %v1271_v2  ;;  %v1289_v25 = vsub.f32 %v997_v14, %v1175_v37 }
  0x7a   :  { %v173_v10 = vmul.f32 %v1277_v9, %v1277_v9  ;;  %v1295_v33 = vsub.f32 %v1003_v16, %v1175_v37  ;;  %v1301_v59 = vsub.f32 %v1009_v18, %v1175_v37 }
  0x7b   :  { %v217_v6 = vadd.f32 %v216_v63, %v169_v1  ;;  %v174_v12 = vmul.f32 %v1283_v17, %v1283_v17  ;;  %v175_v14 = vmul.f32 %v1289_v25, %v1289_v25 }
  0x7c   :  { %v176_v16 = vmul.f32 %v1295_v33, %v1295_v33  ;;  %v177_v18 = vmul.f32 %v1301_v59, %v1301_v59 }
  0x7d   :  { %v218_v21 = vadd.f32 %v217_v6, %v170_v4  ;;  %v1307_v4 = vsub.f32 %v1015_v20, %v1175_v37 }
  0x7f   :  { %v219_v29 = vadd.f32 %v218_v21, %v171_v13  ;;  %v1313_v13 = vsub.f32 %v1021_v22, %v1175_v37  ;;  %v178_v20 = vmul.f32 %v1307_v4, %v1307_v4 }
  0x81   :  { %v220_v55 = vadd.f32 %v219_v29, %v172_v8  ;;  %v1319_v8 = vsub.f32 %v1027_v24, %v1175_v37  ;;  %v179_v22 = vmul.f32 %v1313_v13, %v1313_v13 }
  0x83   :  { %v221_v1 = vadd.f32 %v220_v55, %v173_v10  ;;  %v1325_v10 = vsub.f32 %v1033_v26, %v1175_v37  ;;  %v180_v24 = vmul.f32 %v1319_v8, %v1319_v8 }
  0x85   :  { %v222_v63 = vadd.f32 %v221_v1, %v174_v12  ;;  %v1331_v12 = vsub.f32 %v1039_v28, %v1175_v37  ;;  %v181_v26 = vmul.f32 %v1325_v10, %v1325_v10 }
  0x87   :  { %v223_v6 = vadd.f32 %v222_v63, %v175_v14  ;;  %v1337_v14 = vsub.f32 %v1045_v30, %v1175_v37  ;;  %v182_v28 = vmul.f32 %v1331_v12, %v1331_v12 }
  0x89   :  { %v224_v21 = vadd.f32 %v223_v6, %v176_v16  ;;  %v1343_v16 = vsub.f32 %v1051_v32, %v1175_v37  ;;  %v183_v30 = vmul.f32 %v1337_v14, %v1337_v14 }
  0x8b   :  { %v225_v29 = vadd.f32 %v224_v21, %v177_v18  ;;  %v1349_v18 = vsub.f32 %v1057_v34, %v1175_v37  ;;  %v184_v32 = vmul.f32 %v1343_v16, %v1343_v16 }
  0x8d   :  { %v226_v55 = vadd.f32 %v225_v29, %v178_v20  ;;  %v1355_v20 = vsub.f32 %v1063_v36, %v1175_v37  ;;  %v185_v34 = vmul.f32 %v1349_v18, %v1349_v18 }
  0x8f   :  { %v227_v1 = vadd.f32 %v226_v55, %v179_v22  ;;  %v1361_v22 = vsub.f32 %v1069_v38, %v1175_v37  ;;  %v186_v36 = vmul.f32 %v1355_v20, %v1355_v20 }
  0x91   :  { %v228_v63 = vadd.f32 %v227_v1, %v180_v24  ;;  %v1367_v24 = vsub.f32 %v1075_v40, %v1175_v37  ;;  %v187_v38 = vmul.f32 %v1361_v22, %v1361_v22 }
  0x93   :  { %v229_v6 = vadd.f32 %v228_v63, %v181_v26  ;;  %v1373_v26 = vsub.f32 %v1081_v42, %v1175_v37  ;;  %v188_v40 = vmul.f32 %v1367_v24, %v1367_v24 }
  0x95   :  { %v230_v21 = vadd.f32 %v229_v6, %v182_v28  ;;  %v1379_v28 = vsub.f32 %v1087_v44, %v1175_v37  ;;  %v189_v42 = vmul.f32 %v1373_v26, %v1373_v26 }
  0x97   :  { %v231_v29 = vadd.f32 %v230_v21, %v183_v30  ;;  %v1385_v30 = vsub.f32 %v1093_v46, %v1175_v37  ;;  %v190_v44 = vmul.f32 %v1379_v28, %v1379_v28 }
  0x99   :  { %v232_v55 = vadd.f32 %v231_v29, %v184_v32  ;;  %v1391_v32 = vsub.f32 %v1099_v48, %v1175_v37  ;;  %v191_v46 = vmul.f32 %v1385_v30, %v1385_v30 }
  0x9b   :  { %v233_v1 = vadd.f32 %v232_v55, %v185_v34  ;;  %v1397_v34 = vsub.f32 %v1105_v50, %v1175_v37  ;;  %v195_v50 = vmul.f32 %v1181_v45, %v1181_v45 }
  0x9d   :  { %v234_v63 = vadd.f32 %v233_v1, %v186_v36  ;;  %v192_v36 = vmul.f32 %v1391_v32, %v1391_v32  ;;  %v193_v48 = vmul.f32 %v1397_v34, %v1397_v34  ;;  %v194_v1 = vmul.f32 %v1178_v41, %v1178_v41 }
  0x9f   :  { %v235_v6 = vadd.f32 %v234_v63, %v187_v38  ;;  %v196_v63 = vmul.f32 %v1184_v49, %v1184_v49 }
  0xa1   :  { %v236_v21 = vadd.f32 %v235_v6, %v188_v40  ;;  %v197_v6 = vmul.f32 %v1187_v53, %v1187_v53 }
  0xa3   :  { %v237_v29 = vadd.f32 %v236_v21, %v189_v42  ;;  %v198_v21 = vmul.f32 %v1190_v57, %v1190_v57 }
  0xa5   :  { %v238_v55 = vadd.f32 %v237_v29, %v190_v44  ;;  %v199_v29 = vmul.f32 %v1193_v61, %v1193_v61 }
  0xa7   :  { %v239_v38 = vadd.f32 %v238_v55, %v191_v46  ;;  %v200_v55 = vmul.f32 %v1196_v5, %v1196_v5 }
  0xa9   :  { %v240_v40 = vadd.f32 %v239_v38, %v192_v36  ;;  %v201_v38 = vmul.f32 %v1199_v52, %v1199_v52 }
  0xab   :  { %v241_v37 = vadd.f32 %v240_v40, %v193_v48  ;;  %v202_v40 = vmul.f32 %v1202_v54, %v1202_v54 }
  0xad   :  { %v242_v42 = vadd.f32 %v241_v37, %v194_v1  ;;  %v203_v37 = vmul.f32 %v1205_v56, %v1205_v56 }
  0xaf   :  { %v243_v44 = vadd.f32 %v242_v42, %v195_v50  ;;  %v204_v42 = vmul.f32 %v1208_v58, %v1208_v58 }
  0xb1   :  { %v244_v46 = vadd.f32 %v243_v44, %v196_v63  ;;  %v205_v44 = vmul.f32 %v1211_v60, %v1211_v60 }
  0xb3   :  { %v245_v36 = vadd.f32 %v244_v46, %v197_v6  ;;  %v206_v46 = vmul.f32 %v1214_v62, %v1214_v62 }
  0xb5   :  { %v246_v48 = vadd.f32 %v245_v36, %v198_v21  ;;  %v207_v36 = vmul.f32 %v1217_v3, %v1217_v3 }
  0xb7   :  { %v247_v1 = vadd.f32 %v246_v48, %v199_v29  ;;  %v208_v48 = vmul.f32 %v1220_v7, %v1220_v7 }
  0xb9   :  { %v248_v50 = vadd.f32 %v247_v1, %v200_v55  ;;  %v209_v1 = vmul.f32 %v1223_v11, %v1223_v11 }
  0xbb   :  { %v249_v63 = vadd.f32 %v248_v50, %v201_v38  ;;  %v210_v50 = vmul.f32 %v1226_v15, %v1226_v15 }
  0xbd   :  { %v250_v6 = vadd.f32 %v249_v63, %v202_v40  ;;  %v211_v63 = vmul.f32 %v1229_v19, %v1229_v19 }
  0xbf   :  { %v251_v21 = vadd.f32 %v250_v6, %v203_v37  ;;  %v212_v6 = vmul.f32 %v1232_v23, %v1232_v23 }
  0xc1   :  { %v252_v29 = vadd.f32 %v251_v21, %v204_v42  ;;  %v213_v21 = vmul.f32 %v1235_v27, %v1235_v27 }
  0xc3   :  { %v253_v55 = vadd.f32 %v252_v29, %v205_v44  ;;  %v214_v29 = vmul.f32 %v1238_v31, %v1238_v31 }
  0xc5   :  { %v254_v38 = vadd.f32 %v253_v55, %v206_v46  ;;  %v215_v55 = vmul.f32 %v1241_v35, %v1241_v35 }
  0xc7   :  { %v255_v40 = vadd.f32 %v254_v38, %v207_v36 }
  0xc9   :  { %v256_v37 = vadd.f32 %v255_v40, %v208_v48 }
  0xcb   :  { %v257_v42 = vadd.f32 %v256_v37, %v209_v1 }
  0xcd   :  { %v258_v44 = vadd.f32 %v257_v42, %v210_v50 }
  0xcf   :  { %v259_v46 = vadd.f32 %v258_v44, %v211_v63  ;;  %v275_v63 = vlaneseq }
  0xd1   :  { %v260_v36 = vadd.f32 %v259_v46, %v212_v6  ;;  %v276_v44 = vshrl.u32 %v275_v63, 7  ;;  %v273_v6 = vld [vmem:[%s1682_s1] sm:$0x1] }
  0xd3   :  { %v261_v48 = vadd.f32 %v260_v36, %v213_v21  ;;  %v277_v46 = vsub.s32 0, %v276_v44 }
  0xd5   :  { %v262_v38 = vadd.f32 %v261_v48, %v214_v29 }
  0xd7   :  { %v263_v40 = vadd.f32 %v262_v38, %v215_v55 }
  0xd9   :  { %v264_v19 = vrot.slane %v263_v40, 4 }
  0xdb   :  { %v265_v1 = vadd.f32 %v264_v19, %v263_v40  ;;  %v1457_v19 = vld [vmem:[%s1683_s2] ss:$0 sm:$0xff] }
  0xdd   :  { %v266_v37 = vrot.slane %v265_v1, 2 }
  0xdf   :  { %v267_v15 = vadd.f32 %v266_v37, %v265_v1 }
  0xe1   :  { %v268_v23 = vrot.slane %v267_v15, 1 }
  0xe3   :  { %v269_v50 = vadd.f32 %v268_v23, %v267_v15 }
  0xe5   :  { %v270_v42 = vmul.f32 0.0025510204, %v269_v50 }
  0xe7   :  { %v271_v11 = vadd.f32 1e-05, %v270_v42 }
  0xe9   :  { %925 = vrsqrt.f32 %v271_v11 }
  0xf3   :  { %v926_v35 = vpop.eup %925 }
  0xf4   :  { %v274_v21 = vmul.f32 %v926_v35, %v273_v6 }
  0xf6   :  { %v1452_v29 = vrot.slane %v274_v21, %v277_v46 }
  0xf8   :  { %v279_v15 = vmul.f32 %v1452_v29, %v1245_v39  ;;  %v280_v11 = vmul.f32 %v1452_v29, %v1249_v43  ;;  %v281_v23 = vmul.f32 %v1452_v29, %v1253_v47  ;;  %v282_v36 = vmul.f32 %v1452_v29, %v1257_v51 }
  0xf9   :  { %v283_v35 = vmul.f32 %v1452_v29, %v1265_v0  ;;  %v284_v55 = vmul.f32 %v1452_v29, %v1271_v2  ;;  %v285_v48 = vmul.f32 %v1452_v29, %v1277_v9  ;;  %v286_v39 = vmul.f32 %v1452_v29, %v1283_v17 }
  0xfa   :  { %v335_v43 = vadd.f32 %v1457_v19, %v279_v15  ;;  %v336_v38 = vadd.f32 %v1457_v19, %v280_v11  ;;  %v337_v47 = vadd.f32 %v1457_v19, %v281_v23  ;;  %v338_v51 = vadd.f32 %v1457_v19, %v282_v36 }
  0xfb   :  { %v339_v40 = vadd.f32 %v1457_v19, %v283_v35  ;;  %v340_v0 = vadd.f32 %v1457_v19, %v284_v55  ;;  %v341_v2 = vadd.f32 %v1457_v19, %v285_v48  ;;  %v342_v1 = vadd.f32 %v1457_v19, %v286_v39 }
  0xfc   :  { %v384_v9 = vmax.f32 %v335_v43, 0.0  ;;  %v385_v37 = vmax.f32 %v336_v38, 0.0  ;;  %v386_v50 = vmax.f32 %v337_v47, 0.0  ;;  %v387_v17 = vmax.f32 %v338_v51, 0.0 }
  0xfd   :  { %v388_v42 = vmax.f32 %v339_v40, 0.0  ;;  %v389_v63 = vmax.f32 %v340_v0, 0.0  ;;  %v390_v44 = vmax.f32 %v341_v2, 0.0  ;;  %v391_v6 = vmax.f32 %v342_v1, 0.0 }
  0xfe   :  { %v785_v46 = vpack.c.bf16 %v385_v37, %v384_v9  ;;  %v790_v21 = vpack.c.bf16 %v387_v17, %v386_v50  ;;  %v287_v15 = vmul.f32 %v1452_v29, %v1289_v25  ;;  %v288_v11 = vmul.f32 %v1452_v29, %v1295_v33 }
  0xff   :  { %v795_v23 = vpack.c.bf16 %v389_v63, %v388_v42  ;;  %v800_v36 = vpack.c.bf16 %v391_v6, %v390_v44  ;;  %v289_v35 = vmul.f32 %v1452_v29, %v1301_v59  ;;  %v290_v55 = vmul.f32 %v1452_v29, %v1307_v4 }
 0x100   :  { %786 = vst [vmem:[%s1684_s3] sm:$0xff] %v785_v46   ;;  %902 = vst [vmem:[%s1684_s3 + $0x8] sm:$0xff] %v790_v21   ;;  %v343_v25 = vadd.f32 %v1457_v19, %v287_v15  ;;  %v344_v33 = vadd.f32 %v1457_v19, %v288_v11  ;;  %v291_v48 = vmul.f32 %v1452_v29, %v1313_v13 }
 0x101   :  { %v292_v59 = vmul.f32 %v1452_v29, %v1319_v8  ;;  %903 = vst [vmem:[%s1684_s3 + $0x10] sm:$0xff] %v795_v23   ;;  %904 = vst [vmem:[%s1684_s3 + $0x18] sm:$0xff] %v800_v36   ;;  %v345_v4 = vadd.f32 %v1457_v19, %v289_v35  ;;  %v346_v39 = vadd.f32 %v1457_v19, %v290_v55 }
 0x102   :  { %v293_v43 = vmul.f32 %v1452_v29, %v1325_v10  ;;  %v294_v13 = vmul.f32 %v1452_v29, %v1331_v12  ;;  %v392_v38 = vmax.f32 %v343_v25, 0.0  ;;  %v393_v8 = vmax.f32 %v344_v33, 0.0 }
 0x103   :  { %v347_v47 = vadd.f32 %v1457_v19, %v291_v48  ;;  %v348_v51 = vadd.f32 %v1457_v19, %v292_v59  ;;  %v394_v40 = vmax.f32 %v345_v4, 0.0  ;;  %v395_v0 = vmax.f32 %v346_v39, 0.0 }
 0x104   :  { %v349_v2 = vadd.f32 %v1457_v19, %v293_v43  ;;  %v350_v1 = vadd.f32 %v1457_v19, %v294_v13  ;;  %v805_v9 = vpack.c.bf16 %v393_v8, %v392_v38  ;;  %v295_v10 = vmul.f32 %v1452_v29, %v1337_v14 }
 0x105   :  { %v396_v37 = vmax.f32 %v347_v47, 0.0  ;;  %v397_v50 = vmax.f32 %v348_v51, 0.0  ;;  %v810_v17 = vpack.c.bf16 %v395_v0, %v394_v40  ;;  %v296_v63 = vmul.f32 %v1452_v29, %v1343_v16 }
 0x106   :  { %v398_v12 = vmax.f32 %v349_v2, 0.0  ;;  %v399_v42 = vmax.f32 %v350_v1, 0.0  ;;  %905 = vst [vmem:[%s1684_s3 + $0x20] sm:$0xff] %v805_v9   ;;  %v351_v6 = vadd.f32 %v1457_v19, %v295_v10  ;;  %v297_v46 = vmul.f32 %v1452_v29, %v1349_v18 }
 0x107   :  { %v815_v44 = vpack.c.bf16 %v397_v50, %v396_v37  ;;  %v298_v21 = vmul.f32 %v1452_v29, %v1355_v20  ;;  %906 = vst [vmem:[%s1684_s3 + $0x28] sm:$0xff] %v810_v17   ;;  %v352_v16 = vadd.f32 %v1457_v19, %v296_v63  ;;  %v299_v15 = vmul.f32 %v1452_v29, %v1361_v22 }
 0x108   :  { %v820_v14 = vpack.c.bf16 %v399_v42, %v398_v12  ;;  %v300_v11 = vmul.f32 %v1452_v29, %v1367_v24  ;;  %v400_v18 = vmax.f32 %v351_v6, 0.0  ;;  %v353_v20 = vadd.f32 %v1457_v19, %v297_v46 }
 0x109   :  { %907 = vst [vmem:[%s1684_s3 + $0x30] sm:$0xff] %v815_v44   ;;  %v354_v23 = vadd.f32 %v1457_v19, %v298_v21  ;;  %v301_v36 = vmul.f32 %v1452_v29, %v1373_v26  ;;  %v401_v22 = vmax.f32 %v352_v16, 0.0  ;;  %v355_v35 = vadd.f32 %v1457_v19, %v299_v15 }
 0x10a   :  { %908 = vst [vmem:[%s1684_s3 + $0x38] sm:$0xff] %v820_v14   ;;  %v356_v24 = vadd.f32 %v1457_v19, %v300_v11  ;;  %v302_v55 = vmul.f32 %v1452_v29, %v1379_v28  ;;  %v402_v25 = vmax.f32 %v353_v20, 0.0  ;;  %v303_v59 = vmul.f32 %v1452_v29, %v1385_v30 }
 0x10b   :  { %v403_v33 = vmax.f32 %v354_v23, 0.0  ;;  %v357_v48 = vadd.f32 %v1457_v19, %v301_v36  ;;  %v825_v26 = vpack.c.bf16 %v401_v22, %v400_v18  ;;  %v404_v4 = vmax.f32 %v355_v35, 0.0 }
 0x10c   :  { %v405_v39 = vmax.f32 %v356_v24, 0.0  ;;  %v358_v43 = vadd.f32 %v1457_v19, %v302_v55  ;;  %v304_v8 = vmul.f32 %v1452_v29, %v1391_v32  ;;  %v359_v47 = vadd.f32 %v1457_v19, %v303_v59 }
 0x10d   :  { %v830_v13 = vpack.c.bf16 %v403_v33, %v402_v25  ;;  %v406_v38 = vmax.f32 %v357_v48, 0.0  ;;  %909 = vst [vmem:[%s1684_s3 + $0x40] sm:$0xff] %v825_v26   ;;  %v305_v30 = vmul.f32 %v1452_v29, %v1397_v34  ;;  %v306_v40 = vmul.f32 %v1452_v29, %v1178_v41 }
 0x10e   :  { %v835_v28 = vpack.c.bf16 %v405_v39, %v404_v4  ;;  %v407_v51 = vmax.f32 %v358_v43, 0.0  ;;  %v360_v32 = vadd.f32 %v1457_v19, %v304_v8  ;;  %v408_v0 = vmax.f32 %v359_v47, 0.0 }
 0x10f   :  { %910 = vst [vmem:[%s1684_s3 + $0x48] sm:$0xff] %v830_v13   ;;  %v307_v2 = vmul.f32 %v1452_v29, %v1181_v45  ;;  %v308_v1 = vmul.f32 %v1452_v29, %v1184_v49  ;;  %v361_v41 = vadd.f32 %v1457_v19, %v305_v30  ;;  %v362_v9 = vadd.f32 %v1457_v19, %v306_v40 }
 0x110   :  { %911 = vst [vmem:[%s1684_s3 + $0x50] sm:$0xff] %v835_v28   ;;  %v840_v34 = vpack.c.bf16 %v407_v51, %v406_v38  ;;  %v309_v37 = vmul.f32 %v1452_v29, %v1187_v53  ;;  %v409_v50 = vmax.f32 %v360_v32, 0.0  ;;  %v310_v49 = vmul.f32 %v1452_v29, %v1190_v57  ;;  %v1695_v28 = vld [vmem:[#allocation2_spill] sm:$0xff]  ;;  %v1696_v51 = vld [vmem:[#allocation3_spill] sm:$0xff]  ;;  %v1697_v32 = vld [vmem:[#allocation4_spill] sm:$0xff] }
 0x111   :  { %v363_v10 = vadd.f32 %v1457_v19, %v307_v2  ;;  %v364_v45 = vadd.f32 %v1457_v19, %v308_v1  ;;  %v410_v17 = vmax.f32 %v361_v41, 0.0  ;;  %v411_v12 = vmax.f32 %v362_v9, 0.0  ;;  %v1698_v2 = vld [vmem:[#allocation5_spill] sm:$0xff] }
 0x112   :  { %912 = vst [vmem:[%s1684_s3 + $0x58] sm:$0xff] %v840_v34   ;;  %v365_v42 = vadd.f32 %v1457_v19, %v309_v37  ;;  %v311_v63 = vmul.f32 %v1452_v29, %v1193_v61  ;;  %v845_v53 = vpack.c.bf16 %v409_v50, %v408_v0  ;;  %v366_v46 = vadd.f32 %v1457_v19, %v310_v49 }
 0x113   :  { %v412_v44 = vmax.f32 %v363_v10, 0.0  ;;  %v413_v6 = vmax.f32 %v364_v45, 0.0  ;;  %v850_v21 = vpack.c.bf16 %v411_v12, %v410_v17  ;;  %v312_v57 = vmul.f32 %v1452_v29, %v1196_v5 }
 0x114   :  { %v414_v14 = vmax.f32 %v365_v42, 0.0  ;;  %v367_v16 = vadd.f32 %v1457_v19, %v311_v63  ;;  %913 = vst [vmem:[%s1684_s3 + $0x60] sm:$0xff] %v845_v53   ;;  %v415_v11 = vmax.f32 %v366_v46, 0.0  ;;  %v313_v61 = vmul.f32 %v1452_v29, %v1199_v52  ;;  %v1699_v63 = vld [vmem:[#allocation6_spill] sm:$0xff] }
 0x115   :  { %v855_v15 = vpack.c.bf16 %v413_v6, %v412_v44  ;;  %v314_v18 = vmul.f32 %v1452_v29, %v1202_v54  ;;  %914 = vst [vmem:[%s1684_s3 + $0x68] sm:$0xff] %v850_v21   ;;  %v368_v5 = vadd.f32 %v1457_v19, %v312_v57  ;;  %v315_v23 = vmul.f32 %v1452_v29, %v1205_v56 }
 0x116   :  { %v416_v20 = vmax.f32 %v367_v16, 0.0  ;;  %v316_v36 = vmul.f32 %v1452_v29, %v1208_v58  ;;  %v860_v52 = vpack.c.bf16 %v415_v11, %v414_v14  ;;  %v369_v54 = vadd.f32 %v1457_v19, %v313_v61 }
 0x117   :  { %915 = vst [vmem:[%s1684_s3 + $0x70] sm:$0xff] %v855_v15   ;;  %v370_v22 = vadd.f32 %v1457_v19, %v314_v18  ;;  %v317_v35 = vmul.f32 %v1452_v29, %v1211_v60  ;;  %v417_v24 = vmax.f32 %v368_v5, 0.0  ;;  %v371_v55 = vadd.f32 %v1457_v19, %v315_v23 }
 0x118   :  { %v372_v56 = vadd.f32 %v1457_v19, %v316_v36  ;;  %v318_v58 = vmul.f32 %v1452_v29, %v1214_v62  ;;  %916 = vst [vmem:[%s1684_s3 + $0x78] sm:$0xff] %v860_v52   ;;  %v418_v25 = vmax.f32 %v369_v54, 0.0  ;;  %v319_v59 = vmul.f32 %v1452_v29, %v1217_v3 }
 0x119   :  { %v419_v33 = vmax.f32 %v370_v22, 0.0  ;;  %v373_v48 = vadd.f32 %v1457_v19, %v317_v35  ;;  %v865_v60 = vpack.c.bf16 %v417_v24, %v416_v20  ;;  %v420_v26 = vmax.f32 %v371_v55, 0.0 }
 0x11a   :  { %v421_v4 = vmax.f32 %v372_v56, 0.0  ;;  %v374_v39 = vadd.f32 %v1457_v19, %v318_v58  ;;  %v320_v62 = vmul.f32 %v1452_v29, %v1220_v7  ;;  %v375_v38 = vadd.f32 %v1457_v19, %v319_v59 }
 0x11b   :  { %v870_v43 = vpack.c.bf16 %v419_v33, %v418_v25  ;;  %v422_v13 = vmax.f32 %v373_v48, 0.0  ;;  %917 = vst [vmem:[%s1684_s3 + $0x80] sm:$0xff] %v865_v60   ;;  %v321_v3 = vmul.f32 %v1452_v29, %v1695_v28  ;;  %v322_v30 = vmul.f32 %v1452_v29, %v1696_v51 }
 0x11c   :  { %v875_v8 = vpack.c.bf16 %v421_v4, %v420_v26  ;;  %v423_v47 = vmax.f32 %v374_v39, 0.0  ;;  %v376_v7 = vadd.f32 %v1457_v19, %v320_v62  ;;  %v424_v40 = vmax.f32 %v375_v38, 0.0 }
 0x11d   :  { %918 = vst [vmem:[%s1684_s3 + $0x88] sm:$0xff] %v870_v43   ;;  %v323_v0 = vmul.f32 %v1452_v29, %v1697_v32  ;;  %v324_v1 = vmul.f32 %v1452_v29, %v1698_v2  ;;  %v377_v41 = vadd.f32 %v1457_v19, %v321_v3  ;;  %v378_v9 = vadd.f32 %v1457_v19, %v322_v30 }
 0x11e   :  { %919 = vst [vmem:[%s1684_s3 + $0x90] sm:$0xff] %v875_v8   ;;  %v880_v34 = vpack.c.bf16 %v423_v47, %v422_v13  ;;  %v325_v37 = vmul.f32 %v1452_v29, %v1235_v27  ;;  %v425_v50 = vmax.f32 %v376_v7, 0.0  ;;  %v326_v49 = vmul.f32 %v1452_v29, %v1238_v31 }
 0x11f   :  { %v379_v10 = vadd.f32 %v1457_v19, %v323_v0  ;;  %v380_v45 = vadd.f32 %v1457_v19, %v324_v1  ;;  %v426_v17 = vmax.f32 %v377_v41, 0.0  ;;  %v427_v12 = vmax.f32 %v378_v9, 0.0 }
 0x120   :  { %920 = vst [vmem:[%s1684_s3 + $0x98] sm:$0xff] %v880_v34   ;;  %v381_v42 = vadd.f32 %v1457_v19, %v325_v37  ;;  %v327_v53 = vmul.f32 %v1452_v29, %v1699_v63  ;;  %v885_v27 = vpack.c.bf16 %v425_v50, %v424_v40  ;;  %v382_v46 = vadd.f32 %v1457_v19, %v326_v49 }
 0x121   :  { %v428_v44 = vmax.f32 %v379_v10, 0.0  ;;  %v429_v6 = vmax.f32 %v380_v45, 0.0  ;;  %v890_v21 = vpack.c.bf16 %v427_v12, %v426_v17 }
 0x122   :  { %v430_v14 = vmax.f32 %v381_v42, 0.0  ;;  %v383_v31 = vadd.f32 %v1457_v19, %v327_v53  ;;  %921 = vst [vmem:[%s1684_s3 + $0xa0] sm:$0xff] %v885_v27   ;;  %v431_v16 = vmax.f32 %v382_v46, 0.0 }
 0x123   :  { %v895_v57 = vpack.c.bf16 %v429_v6, %v428_v44  ;;  %922 = vst [vmem:[%s1684_s3 + $0xa8] sm:$0xff] %v890_v21  }
 0x124   :  { %v432_v29 = vmax.f32 %v383_v31, 0.0  ;;  %v900_v15 = vpack.c.bf16 %v431_v16, %v430_v14 }
 0x125   :  { %923 = vst [vmem:[%s1684_s3 + $0xb0] sm:$0xff] %v895_v57  }
 0x126   :  { %v781_v11 = vpack.c.bf16 %v432_v29, %v432_v29  ;;  %924 = vst [vmem:[%s1684_s3 + $0xb8] sm:$0xff] %v900_v15  }
 0x128   :  { %678 = vst [vmem:[%s1684_s3 + $0xc0] sm:$0xf] %v781_v11 }

// kernel: infogan_forward.22
= control target key start
LH: loop header
LB: loop body
LE: loop exit
PB: predicated region body
PF: predicated region fallthrough
CT: control target
= control target key end

     0   :  { %s727_s12 = smov 0   ;;  %s729_s13 = smov 0   ;;  %s797_s0 = inlined_call_operand.vmem [shape: bf16[400,16], index: 0, kind: input, shape index: {}]   ;;  %s798_s1 = inlined_call_operand.vmem [shape: bf16[16,128], index: 1, kind: input, shape index: {}]   ;;  %s799_s2 = inlined_call_operand.vmem [shape: f32[1,128], index: 2, kind: input, shape index: {}]   ;;  %s800_s3 = inlined_call_operand.vmem [shape: bf16[400,128], index: 3, kind: output, shape index: {}]  }
   0x1   :  { %s731_s14 = smov 0  }
   0x2 LB: > { %s25_s15 = sadd.s32 1, %s699_s13  ;;  %p553_p0 = scmp.ge.s32.totalorder %s703_s14, 1  ;;  %s703_s14 = sphi %s731_s14, %s13_s14   ;;  %s699_s13 = sphi %s729_s13, %s802_s13   ;;  %s695_s12 = sphi %s727_s12, %s801_s12  }
   0x3   : > { %p27_p1 = scmp.ge.s32.totalorder %s25_s15, 5  ;;  %p169_p2 = scmp.lt.s32.totalorder %s703_s14, 6 }
   0x5   : > { %s804_s15 = smov (%p27_p1, %s25_s15), 0  ;;  %p170_p3 = pnand %p553_p0, %p169_p2 }
   0x6   : > { %v675_v0 = vld [vmem:[%s798_s1] sm:$0xff] (!%p170_p3)   ;;  %v705_v1 = vmov (!%p170_p3), 0.0   ;;  %s203_s18 = smul.u32 (!%p170_p3), 10, %s695_s12  ;;  %vm706_vm0 = vmmov (!%p170_p3), 0   ;;  %vm276_vm1 = vcmask (!%p170_p3), 130048  }
   0x7   : > { %173 = sbr.rel (%p170_p3) target bundleno = 256 (0x100), region = 32  ;;  %625 = vmatprep.subr.bf16.mxu0 (!%p170_p3), %v705_v1  ;;  %647 = vmatprep.subr.bf16.mxu1 (!%p170_p3), %v705_v1  ;;  %v764_v7 = vld [vmem:[%s799_s2] ss:$0 sm:$0xff] (!%p170_p3) }
   0x8   : > { %626 = vmatpush3.bf16.msra.mxu0 (!%p170_p3), %v675_v0  ;;  %627 = vmatprep.mubr.msk.bf16.mxu0 (!%p170_p3), %vm706_vm0, %v705_v1  ;;  %p204_p4 = scmp.lt.s32.totalorder (!%p170_p3), %s203_s18, 49 }
   0x9   : > { %648 = vmatpush3.bf16.msra.mxu1 (!%p170_p3), %v675_v0  ;;  %639 = vmatprep.mubr.msk.bf16.mxu1 (!%p170_p3), %vm706_vm0, %v705_v1 }
   0xe   : > { %s806_s18 = smov (!%p204_p4, %s203_s18), 49 }
   0xf   : > { %s554_s19 = sshll.u32 %s806_s18, 2 }
  0x10   : > { %s207_s22 = scalar_lea.vmem %s797_s0, %s554_s19  ;;  %s775_s27 = scalar_lea.vmem %s800_s3, %s554_s19 }
  0x11   : > { %v676_v2 = vld [vmem:[%s207_s22] sm:$0xff]   ;;  %v677_v3 = vld [vmem:[%s207_s22 + $0x18] sm:$0xff]   ;;  %v678_v4 = vld [vmem:[%s207_s22 + $0x8] sm:$0xff]  }
  0x12   : > { %628 = vmatmul.mubr.msk.bf16.vlgmr.msra.gmra.mrb[0].mxu0 %vm276_vm1, %v676_v2  ;;  %640 = vmatmul.mubr.msk.bf16.vlgmr.msra.gmra.mrb[0].mxu1 %vm276_vm1, %v677_v3  ;;  %v679_v5 = vld [vmem:[%s207_s22 + $0x20] sm:$0xff]   ;;  %v680_v6 = vld [vmem:[%s207_s22 + $0x10] sm:$0xff]  }
  0x13   : > { %631 = vmatprep.mubr.msk.bf16.mxu0 %vm706_vm0, %v705_v1  ;;  %643 = vmatprep.mubr.msk.bf16.mxu1 %vm706_vm0, %v705_v1 }
  0x1a   : > { %632 = vmatmul.mubr.msk.bf16.gmra.mrb[4].mxu0 %vm276_vm1, %v678_v4  ;;  %644 = vmatmul.mubr.msk.bf16.gmra.mrb[4].mxu1 %vm276_vm1, %v679_v5 }
  0x1b   : > { %635 = vmatprep.mubr.msk.bf16.mxu0 %vm706_vm0, %v705_v1 }
  0x22   : > { %636 = vmatmul.mubr.msk.bf16.gmra.mrb[8].mxu0 %vm276_vm1, %v680_v6 }
  0xe5   : > { %v326_v8 = vpop.f32.mrb[0].mxu0  ;;  %v350_v11 = vpop.f32.mrb[0].mxu1 }
  0xe6   : > { %v327_v9 = vadd.f32 %v764_v7, %v326_v8  ;;  %v629_v10 = vpop.f32.mrb[1].mxu0  ;;  %v351_v13 = vadd.f32 %v764_v7, %v350_v11  ;;  %v641_v14 = vpop.f32.mrb[1].mxu1 }
  0xe7   : > { %v329_v12 = vpop.f32.mrb[2].mxu0  ;;  %v353_v18 = vpop.f32.mrb[2].mxu1 }
  0xe8   : > { %v375_v15 = vmul.f32 0.1, %v327_v9  ;;  %v330_v16 = vadd.f32 %v764_v7, %v329_v12  ;;  %v630_v17 = vpop.f32.mrb[3].mxu0  ;;  %vm365_vm2 = vcmp.gt.f32.partialorder %v327_v9, 0.0  ;;  %vm371_vm3 = vcmp.gt.f32.partialorder %v351_v13, 0.0  ;;  %v642_v21 = vpop.f32.mrb[3].mxu1 }
  0xe9   : > { %v381_v19 = vmul.f32 0.1, %v351_v13  ;;  %v354_v20 = vadd.f32 %v764_v7, %v353_v18 }
  0xea   : > { %vm366_vm4 = vcmp.gt.f32.partialorder %v330_v16, 0.0  ;;  %v376_v22 = vmul.f32 0.1, %v330_v16  ;;  %v385_v25 = vsel %vm365_vm2, %v327_v9, %v375_v15 }
  0xeb   : > { %v391_v23 = vsel %vm371_vm3, %v351_v13, %v381_v19  ;;  %vm372_vm5 = vcmp.gt.f32.partialorder %v354_v20, 0.0  ;;  %v382_v24 = vmul.f32 0.1, %v354_v20 }
  0xec   : > { %v386_v26 = vsel %vm366_vm4, %v330_v16, %v376_v22 }
  0xed   : > { %v593_v27 = vpack.c.bf16 %v386_v26, %v385_v25  ;;  %v392_v28 = vsel %vm372_vm5, %v354_v20, %v382_v24  ;;  %v334_v29 = vpop.f32.mrb[4].mxu0  ;;  %v358_v33 = vpop.f32.mrb[4].mxu1 }
  0xee   : > { %v608_v30 = vpack.c.bf16 %v392_v28, %v391_v23  ;;  %v335_v31 = vadd.f32 %v764_v7, %v334_v29  ;;  %v633_v32 = vpop.f32.mrb[5].mxu0  ;;  %v359_v35 = vadd.f32 %v764_v7, %v358_v33  ;;  %v645_v36 = vpop.f32.mrb[5].mxu1 }
  0xef   : > { %594 = vst [vmem:[%s775_s27] sm:$0xff] %v593_v27   ;;  %v337_v34 = vpop.f32.mrb[6].mxu0  ;;  %v361_v40 = vpop.f32.mrb[6].mxu1 }
  0xf0   : > { %617 = vst [vmem:[%s775_s27 + $0x18] sm:$0xff] %v608_v30   ;;  %v377_v37 = vmul.f32 0.1, %v335_v31  ;;  %v338_v38 = vadd.f32 %v764_v7, %v337_v34  ;;  %v634_v39 = vpop.f32.mrb[7].mxu0  ;;  %vm367_vm6 = vcmp.gt.f32.partialorder %v335_v31, 0.0  ;;  %vm373_vm7 = vcmp.gt.f32.partialorder %v359_v35, 0.0 }
  0xf1   : > { %v383_v41 = vmul.f32 0.1, %v359_v35  ;;  %v362_v42 = vadd.f32 %v764_v7, %v361_v40  ;;  %v646_v43 = vpop.f32.mrb[7].mxu1 }
  0xf2   : > { %vm368_vm8 = vcmp.gt.f32.partialorder %v338_v38, 0.0  ;;  %v378_v44 = vmul.f32 0.1, %v338_v38  ;;  %v387_v47 = vsel %vm367_vm6, %v335_v31, %v377_v37 }
  0xf3   : > { %v393_v45 = vsel %vm373_vm7, %v359_v35, %v383_v41  ;;  %vm374_vm9 = vcmp.gt.f32.partialorder %v362_v42, 0.0  ;;  %v384_v46 = vmul.f32 0.1, %v362_v42 }
  0xf4   : > { %v388_v48 = vsel %vm368_vm8, %v338_v38, %v378_v44 }
  0xf5   : > { %v598_v49 = vpack.c.bf16 %v388_v48, %v387_v47  ;;  %v394_v50 = vsel %vm374_vm9, %v362_v42, %v384_v46  ;;  %v342_v51 = vpop.f32.mrb[8].mxu0 }
  0xf6   : > { %v613_v52 = vpack.c.bf16 %v394_v50, %v393_v45  ;;  %v343_v53 = vadd.f32 %v764_v7, %v342_v51  ;;  %v637_v54 = vpop.f32.mrb[9].mxu0 }
  0xf7   : > { %615 = vst [vmem:[%s775_s27 + $0x8] sm:$0xff] %v598_v49   ;;  %v345_v55 = vpop.f32.mrb[10].mxu0 }
  0xf8   : > { %618 = vst [vmem:[%s775_s27 + $0x20] sm:$0xff] %v613_v52   ;;  %v379_v56 = vmul.f32 0.1, %v343_v53  ;;  %v346_v57 = vadd.f32 %v764_v7, %v345_v55  ;;  %v638_v58 = vpop.f32.mrb[11].mxu0  ;;  %vm369_vm10 = vcmp.gt.f32.partialorder %v343_v53, 0.0 }
  0xfa   : > { %vm370_vm11 = vcmp.gt.f32.partialorder %v346_v57, 0.0  ;;  %v380_v59 = vmul.f32 0.1, %v346_v57  ;;  %v389_v60 = vsel %vm369_vm10, %v343_v53, %v379_v56 }
  0xfc   : > { %v390_v61 = vsel %vm370_vm11, %v346_v57, %v380_v59 }
  0xfd   : > { %v603_v62 = vpack.c.bf16 %v390_v61, %v389_v60 }
  0xff   : > { %616 = vst [vmem:[%s775_s27 + $0x10] sm:$0xff] %v603_v62  }
 0x100 PF: > { %s13_s14 = sadd.s32 1, %s703_s14   ;;  %s801_s12 = smov %s699_s13 }
 0x101   : > { %p10_p5 = scmp.ge.s32.totalorder %s13_s14, 7   ;;  %s802_s13 = smov %s804_s15 }
 0x103   :  { %12 = sbr.rel (!%p10_p5) target bundleno = 2 (0x2), region = 68 }

// kernel: infogan_forward.24
= control target key start
LH: loop header
LB: loop body
LE: loop exit
PB: predicated region body
PF: predicated region fallthrough
CT: control target
= control target key end

     0   :  { %vm51_vm0 = vcmask 1041408   ;;  %s460_s0 = inlined_call_operand.vmem [shape: bf16[98,128], index: 0, kind: input, shape index: {}]   ;;  %s461_s1 = inlined_call_operand.vmem [shape: f32[1,128], index: 1, kind: input, shape index: {}]   ;;  %s462_s2 = inlined_call_operand.vmem [shape: f32[1,128], index: 2, kind: input, shape index: {}]   ;;  %s463_s3 = inlined_call_operand.vmem [shape: bf16[98,128], index: 3, kind: output, shape index: {}]  }
   0x1   :  { %v285_v0 = vld [vmem:[%s460_s0] sm:$0xff]   ;;  %v338_v1 = vld [vmem:[%s460_s0 + $0x8] sm:$0xff]   ;;  %v339_v5 = vld [vmem:[%s460_s0 + $0x10] sm:$0xff]  }
   0x2   :  { %v286_v2 = vunpack.c.l.bf16 %v285_v0  ;;  %v287_v3 = vunpack.c.h.bf16 %v285_v0  ;;  %v290_v4 = vunpack.c.l.bf16 %v338_v1  ;;  %v291_v6 = vunpack.c.h.bf16 %v338_v1  ;;  %v340_v10 = vld [vmem:[%s460_s0 + $0x18] sm:$0xff]   ;;  %v341_v15 = vld [vmem:[%s460_s0 + $0x20] sm:$0xff]   ;;  %v342_v20 = vld [vmem:[%s460_s0 + $0x28] sm:$0xff]  }
   0x3   :  { %v294_v8 = vunpack.c.l.bf16 %v339_v5  ;;  %v295_v11 = vunpack.c.h.bf16 %v339_v5  ;;  %v298_v13 = vunpack.c.l.bf16 %v340_v10  ;;  %v299_v16 = vunpack.c.h.bf16 %v340_v10  ;;  %v26_v22 = vld [vmem:[%s460_s0 + $0x30] sm:$0x1] }
   0x4   :  { %v40_v7 = vadd.f32 %v287_v3, %v286_v2  ;;  %v302_v18 = vunpack.c.l.bf16 %v341_v15  ;;  %v303_v21 = vunpack.c.h.bf16 %v341_v15  ;;  %v306_v24 = vunpack.c.l.bf16 %v342_v20 }
   0x5   :  { %v39_v26 = vunpack.c.l.bf16 %v26_v22  ;;  %v307_v27 = vunpack.c.h.bf16 %v342_v20 }
   0x6   :  { %v41_v9 = vadd.f32 %v290_v4, %v40_v7 }
   0x7   :  { %v52_v30 = vsel %vm51_vm0, %v39_v26, 0.0 }
   0x8   :  { %v42_v12 = vadd.f32 %v291_v6, %v41_v9 }
   0xa   :  { %v43_v14 = vadd.f32 %v294_v8, %v42_v12 }
   0xc   :  { %v44_v17 = vadd.f32 %v295_v11, %v43_v14 }
   0xe   :  { %v45_v19 = vadd.f32 %v298_v13, %v44_v17 }
  0x10   :  { %v46_v23 = vadd.f32 %v299_v16, %v45_v19 }
  0x12   :  { %v47_v25 = vadd.f32 %v302_v18, %v46_v23  ;;  %v111_v23 = vlaneseq }
  0x14   :  { %v48_v28 = vadd.f32 %v303_v21, %v47_v25  ;;  %v109_v25 = vld [vmem:[%s461_s1] sm:$0x1] }
  0x16   :  { %v49_v29 = vadd.f32 %v306_v24, %v48_v28 }
  0x18   :  { %v50_v31 = vadd.f32 %v307_v27, %v49_v29 }
  0x1a   :  { %v53_v32 = vadd.f32 %v52_v30, %v50_v31  ;;  %v419_v30 = vld [vmem:[%s462_s2] ss:$0 sm:$0xff] }
  0x1c   :  { %v54_v33 = vrot.slane %v53_v32, 4 }
  0x1e   :  { %v55_v34 = vadd.f32 %v54_v33, %v53_v32 }
  0x20   :  { %v56_v35 = vrot.slane %v55_v34, 2 }
  0x22   :  { %v57_v36 = vadd.f32 %v56_v35, %v55_v34 }
  0x24   :  { %v58_v37 = vrot.slane %v57_v36, 1 }
  0x26   :  { %v59_v38 = vadd.f32 %v58_v37, %v57_v36 }
  0x28   :  { %v60_v39 = vmul.f32 0.010204081, %v59_v38 }
  0x2a   :  { %v61_v40 = vsub.f32 %v286_v2, %v60_v39  ;;  %v62_v41 = vsub.f32 %v287_v3, %v60_v39  ;;  %v63_v42 = vsub.f32 %v290_v4, %v60_v39  ;;  %v64_v43 = vsub.f32 %v291_v6, %v60_v39 }
  0x2b   :  { %v65_v46 = vsub.f32 %v294_v8, %v60_v39  ;;  %v66_v48 = vsub.f32 %v295_v11, %v60_v39  ;;  %v67_v51 = vsub.f32 %v298_v13, %v60_v39  ;;  %v68_v54 = vsub.f32 %v299_v16, %v60_v39 }
  0x2c   :  { %v74_v44 = vmul.f32 %v61_v40, %v61_v40  ;;  %v75_v45 = vmul.f32 %v62_v41, %v62_v41  ;;  %v76_v47 = vmul.f32 %v63_v42, %v63_v42  ;;  %v77_v49 = vmul.f32 %v64_v43, %v64_v43 }
  0x2d   :  { %v78_v52 = vmul.f32 %v65_v46, %v65_v46  ;;  %v79_v55 = vmul.f32 %v66_v48, %v66_v48  ;;  %v392_v57 = vsub.f32 %v302_v18, %v60_v39  ;;  %v80_v58 = vmul.f32 %v67_v51, %v67_v51 }
  0x2e   :  { %v87_v50 = vadd.f32 %v75_v45, %v74_v44  ;;  %v394_v60 = vsub.f32 %v303_v21, %v60_v39  ;;  %v81_v61 = vmul.f32 %v68_v54, %v68_v54  ;;  %v396_v63 = vsub.f32 %v306_v24, %v60_v39 }
  0x2f   :  { %v82_v0 = vmul.f32 %v392_v57, %v392_v57  ;;  %v400_v2 = vsub.f32 %v39_v26, %v60_v39  ;;  %v402_v3 = vsub.f32 %v307_v27, %v60_v39  ;;  %v112_v24 = vshrl.u32 %v111_v23, 7 }
  0x30   :  { %v88_v53 = vadd.f32 %v87_v50, %v76_v47  ;;  %v83_v4 = vmul.f32 %v394_v60, %v394_v60  ;;  %v84_v6 = vmul.f32 %v396_v63, %v396_v63 }
  0x31   :  { %v86_v8 = vmul.f32 %v400_v2, %v400_v2  ;;  %v85_v9 = vmul.f32 %v402_v3, %v402_v3  ;;  %v113_v26 = vsub.s32 0, %v112_v24 }
  0x32   :  { %v89_v56 = vadd.f32 %v88_v53, %v77_v49 }
  0x33   :  { %v98_v12 = vsel %vm51_vm0, %v86_v8, 0.0 }
  0x34   :  { %v90_v59 = vadd.f32 %v89_v56, %v78_v52 }
  0x36   :  { %v91_v62 = vadd.f32 %v90_v59, %v79_v55 }
  0x38   :  { %v92_v1 = vadd.f32 %v91_v62, %v80_v58 }
  0x3a   :  { %v93_v5 = vadd.f32 %v92_v1, %v81_v61 }
  0x3c   :  { %v94_v7 = vadd.f32 %v93_v5, %v82_v0 }
  0x3e   :  { %v95_v10 = vadd.f32 %v94_v7, %v83_v4 }
  0x40   :  { %v96_v11 = vadd.f32 %v95_v10, %v84_v6 }
  0x42   :  { %v97_v13 = vadd.f32 %v96_v11, %v85_v9 }
  0x44   :  { %v99_v14 = vadd.f32 %v98_v12, %v97_v13 }
  0x46   :  { %v100_v15 = vrot.slane %v99_v14, 4 }
  0x48   :  { %v101_v16 = vadd.f32 %v100_v15, %v99_v14 }
  0x4a   :  { %v102_v17 = vrot.slane %v101_v16, 2 }
  0x4c   :  { %v103_v18 = vadd.f32 %v102_v17, %v101_v16 }
  0x4e   :  { %v104_v19 = vrot.slane %v103_v18, 1 }
  0x50   :  { %v105_v20 = vadd.f32 %v104_v19, %v103_v18 }
  0x52   :  { %v106_v21 = vmul.f32 0.010204081, %v105_v20 }
  0x54   :  { %v107_v22 = vadd.f32 1e-05, %v106_v21 }
  0x56   :  { %348 = vrsqrt.f32 %v107_v22 }
  0x60   :  { %v349_v27 = vpop.eup %348 }
  0x61   :  { %v110_v28 = vmul.f32 %v349_v27, %v109_v25 }
  0x63   :  { %v114_v29 = vrot.slane %v110_v28, %v113_v26 }
  0x65   :  { %v115_v31 = vmul.f32 %v114_v29, %v61_v40  ;;  %v116_v32 = vmul.f32 %v114_v29, %v62_v41  ;;  %v117_v33 = vmul.f32 %v114_v29, %v63_v42  ;;  %v118_v34 = vmul.f32 %v114_v29, %v64_v43 }
  0x66   :  { %v119_v35 = vmul.f32 %v114_v29, %v65_v46  ;;  %v120_v36 = vmul.f32 %v114_v29, %v66_v48  ;;  %v121_v37 = vmul.f32 %v114_v29, %v67_v51  ;;  %v122_v38 = vmul.f32 %v114_v29, %v68_v54 }
  0x67   :  { %v135_v39 = vadd.f32 %v419_v30, %v115_v31  ;;  %v136_v44 = vadd.f32 %v419_v30, %v116_v32  ;;  %v137_v45 = vadd.f32 %v419_v30, %v117_v33  ;;  %v138_v47 = vadd.f32 %v419_v30, %v118_v34 }
  0x68   :  { %v139_v49 = vadd.f32 %v419_v30, %v119_v35  ;;  %v140_v50 = vadd.f32 %v419_v30, %v120_v36  ;;  %v141_v40 = vadd.f32 %v419_v30, %v121_v37  ;;  %v142_v41 = vadd.f32 %v419_v30, %v122_v38 }
  0x69   :  { %vm148_vm1 = vcmp.gt.f32.partialorder %v135_v39, 0.0  ;;  %vm149_vm2 = vcmp.gt.f32.partialorder %v136_v44, 0.0  ;;  %v161_v42 = vmul.f32 0.1, %v135_v39  ;;  %v162_v43 = vmul.f32 0.1, %v136_v44 }
  0x6a   :  { %vm150_vm3 = vcmp.gt.f32.partialorder %v137_v45, 0.0  ;;  %vm151_vm4 = vcmp.gt.f32.partialorder %v138_v47, 0.0  ;;  %v163_v46 = vmul.f32 0.1, %v137_v45  ;;  %v164_v48 = vmul.f32 0.1, %v138_v47 }
  0x6b   :  { %v174_v51 = vsel %vm148_vm1, %v135_v39, %v161_v42  ;;  %v175_v52 = vsel %vm149_vm2, %v136_v44, %v162_v43  ;;  %vm152_vm5 = vcmp.gt.f32.partialorder %v139_v49, 0.0  ;;  %vm153_vm6 = vcmp.gt.f32.partialorder %v140_v50, 0.0 }
  0x6c   :  { %v311_v53 = vpack.c.bf16 %v175_v52, %v174_v51  ;;  %v176_v54 = vsel %vm150_vm3, %v137_v45, %v163_v46  ;;  %v177_v55 = vsel %vm151_vm4, %v138_v47, %v164_v48  ;;  %v165_v56 = vmul.f32 0.1, %v139_v49 }
  0x6d   :  { %v316_v58 = vpack.c.bf16 %v177_v55, %v176_v54  ;;  %v166_v59 = vmul.f32 0.1, %v140_v50  ;;  %vm154_vm7 = vcmp.gt.f32.partialorder %v141_v40, 0.0  ;;  %vm155_vm8 = vcmp.gt.f32.partialorder %v142_v41, 0.0 }
  0x6e   :  { %312 = vst [vmem:[%s463_s3] sm:$0xff] %v311_v53   ;;  %v178_v61 = vsel %vm152_vm5, %v139_v49, %v165_v56  ;;  %v167_v62 = vmul.f32 0.1, %v141_v40  ;;  %v168_v0 = vmul.f32 0.1, %v142_v41  ;;  %v123_v1 = vmul.f32 %v114_v29, %v392_v57 }
  0x6f   :  { %343 = vst [vmem:[%s463_s3 + $0x8] sm:$0xff] %v316_v58   ;;  %v179_v4 = vsel %vm153_vm6, %v140_v50, %v166_v59  ;;  %v124_v5 = vmul.f32 %v114_v29, %v394_v60  ;;  %v125_v6 = vmul.f32 %v114_v29, %v396_v63  ;;  %v126_v7 = vmul.f32 %v114_v29, %v402_v3 }
  0x70   :  { %v321_v8 = vpack.c.bf16 %v179_v4, %v178_v61  ;;  %v180_v9 = vsel %vm154_vm7, %v141_v40, %v167_v62  ;;  %v181_v10 = vsel %vm155_vm8, %v142_v41, %v168_v0  ;;  %v143_v11 = vadd.f32 %v419_v30, %v123_v1 }
  0x71   :  { %v326_v12 = vpack.c.bf16 %v181_v10, %v180_v9  ;;  %v144_v13 = vadd.f32 %v419_v30, %v124_v5  ;;  %v145_v57 = vadd.f32 %v419_v30, %v125_v6  ;;  %v146_v14 = vadd.f32 %v419_v30, %v126_v7 }
  0x72   :  { %344 = vst [vmem:[%s463_s3 + $0x10] sm:$0xff] %v321_v8   ;;  %vm156_vm9 = vcmp.gt.f32.partialorder %v143_v11, 0.0  ;;  %v169_v60 = vmul.f32 0.1, %v143_v11  ;;  %v127_v63 = vmul.f32 %v114_v29, %v400_v2 }
  0x73   :  { %345 = vst [vmem:[%s463_s3 + $0x18] sm:$0xff] %v326_v12   ;;  %vm157_vm10 = vcmp.gt.f32.partialorder %v144_v13, 0.0  ;;  %v170_v3 = vmul.f32 0.1, %v144_v13  ;;  %vm158_vm11 = vcmp.gt.f32.partialorder %v145_v57, 0.0  ;;  %vm159_vm12 = vcmp.gt.f32.partialorder %v146_v14, 0.0 }
  0x74   :  { %v182_v15 = vsel %vm156_vm9, %v143_v11, %v169_v60  ;;  %v171_v16 = vmul.f32 0.1, %v145_v57  ;;  %v172_v17 = vmul.f32 0.1, %v146_v14  ;;  %v147_v18 = vadd.f32 %v419_v30, %v127_v63 }
  0x75   :  { %v183_v19 = vsel %vm157_vm10, %v144_v13, %v170_v3 }
  0x76   :  { %v331_v20 = vpack.c.bf16 %v183_v19, %v182_v15  ;;  %v184_v21 = vsel %vm158_vm11, %v145_v57, %v171_v16  ;;  %v185_v22 = vsel %vm159_vm12, %v146_v14, %v172_v17  ;;  %vm160_vm13 = vcmp.gt.f32.partialorder %v147_v18, 0.0 }
  0x77   :  { %v336_v23 = vpack.c.bf16 %v185_v22, %v184_v21  ;;  %v173_v2 = vmul.f32 0.1, %v147_v18 }
  0x78   :  { %346 = vst [vmem:[%s463_s3 + $0x20] sm:$0xff] %v331_v20  }
  0x79   :  { %347 = vst [vmem:[%s463_s3 + $0x28] sm:$0xff] %v336_v23   ;;  %v186_v24 = vsel %vm160_vm13, %v147_v18, %v173_v2 }
  0x7a   :  { %v283_v25 = vpack.c.bf16 %v186_v24, %v186_v24 }
  0x7c   :  { %252 = vst [vmem:[%s463_s3 + $0x30] sm:$0x1] %v283_v25 }

// kernel: infogan_forward.23
= control target key start
LH: loop header
LB: loop body
LE: loop exit
PB: predicated region body
PF: predicated region fallthrough
CT: control target
= control target key end

     0   :  { %s2174_s1 = inlined_call_operand.vmem [shape: bf16[1024,128], index: 1, kind: input, shape index: {}]   ;;  %s2175_s0 = inlined_call_operand.vmem [shape: bf16[104,1024], index: 0, kind: input, shape index: {}]   ;;  %s2176_s2 = inlined_call_operand.vmem [shape: bf16[104,128], index: 2, kind: output, shape index: {}]  }
   0x1   :  { %v1679_v0 = vld [vmem:[%s2174_s1 + $0x40] sm:$0xff]   ;;  %v1683_v4 = vld [vmem:[%s2174_s1 + $0x48] sm:$0xff]   ;;  %v1687_v8 = vld [vmem:[%s2174_s1 + $0x50] sm:$0xff]  }
   0x2   :  { %v1680_v1 = vld [vmem:[%s2174_s1 + $0xc0] sm:$0xff]   ;;  %1447 = vmatprep.subr.bf16.mxu0 %v1679_v0  ;;  %v1684_v5 = vld [vmem:[%s2174_s1 + $0xc8] sm:$0xff]   ;;  %v1688_v9 = vld [vmem:[%s2174_s1 + $0xd0] sm:$0xff]  }
   0x3   :  { %v1681_v2 = vld [vmem:[%s2174_s1] sm:$0xff]   ;;  %1505 = vmatprep.subr.bf16.mxu1 %v1680_v1  ;;  %v1685_v6 = vld [vmem:[%s2174_s1 + $0x8] sm:$0xff]   ;;  %v1689_v10 = vld [vmem:[%s2174_s1 + $0x10] sm:$0xff]  }
   0x4   :  { %v1682_v3 = vld [vmem:[%s2174_s1 + $0x80] sm:$0xff]   ;;  %1448 = vmatpush3.bf16.msra.mxu0 %v1681_v2  ;;  %v1686_v7 = vld [vmem:[%s2174_s1 + $0x88] sm:$0xff]   ;;  %v1690_v11 = vld [vmem:[%s2174_s1 + $0x90] sm:$0xff]  }
   0x5   :  { %1506 = vmatpush3.bf16.msra.mxu1 %v1682_v3  ;;  %1449 = vmatprep.subr.bf16.mxu0 %v1683_v4  ;;  %v1691_v12 = vld [vmem:[%s2174_s1 + $0x58] sm:$0xff]   ;;  %v1695_v16 = vld [vmem:[%s2174_s1 + $0x60] sm:$0xff]   ;;  %v1699_v20 = vld [vmem:[%s2174_s1 + $0x68] sm:$0xff]  }
   0x6   :  { %1507 = vmatprep.subr.bf16.mxu1 %v1684_v5  ;;  %v1692_v13 = vld [vmem:[%s2174_s1 + $0xd8] sm:$0xff]   ;;  %v1696_v17 = vld [vmem:[%s2174_s1 + $0xe0] sm:$0xff]   ;;  %v1700_v21 = vld [vmem:[%s2174_s1 + $0xe8] sm:$0xff]  }
   0x7   :  { %v1693_v14 = vld [vmem:[%s2174_s1 + $0x18] sm:$0xff]   ;;  %v1697_v18 = vld [vmem:[%s2174_s1 + $0x20] sm:$0xff]   ;;  %v1701_v22 = vld [vmem:[%s2174_s1 + $0x28] sm:$0xff]  }
   0x8   :  { %1450 = vmatpush3.bf16.msra.mxu0 %v1685_v6  ;;  %v1694_v15 = vld [vmem:[%s2174_s1 + $0x98] sm:$0xff]   ;;  %v1698_v19 = vld [vmem:[%s2174_s1 + $0xa0] sm:$0xff]   ;;  %v1702_v23 = vld [vmem:[%s2174_s1 + $0xa8] sm:$0xff]  }
   0x9   :  { %1508 = vmatpush3.bf16.msra.mxu1 %v1686_v7  ;;  %1451 = vmatprep.subr.bf16.mxu0 %v1687_v8  ;;  %v1703_v24 = vld [vmem:[%s2174_s1 + $0x70] sm:$0xff]   ;;  %v1707_v28 = vld [vmem:[%s2174_s1 + $0x78] sm:$0xff]   ;;  %v12_v32 = vld [vmem:[%s2175_s0] sm:$0xff] }
   0xa   :  { %1509 = vmatprep.subr.bf16.mxu1 %v1688_v9  ;;  %v1704_v25 = vld [vmem:[%s2174_s1 + $0xf0] sm:$0xff]   ;;  %v1708_v29 = vld [vmem:[%s2174_s1 + $0xf8] sm:$0xff]   ;;  %v16_v33 = vld [vmem:[%s2175_s0 + $0x20] sm:$0xff] }
   0xb   :  { %v1705_v26 = vld [vmem:[%s2174_s1 + $0x30] sm:$0xff]   ;;  %v1709_v30 = vld [vmem:[%s2174_s1 + $0x38] sm:$0xff]   ;;  %v13_v34 = vld [vmem:[%s2175_s0 + $0x8] sm:$0xff]  ;;  %v1266_v35 = vcombine.low %v12_v32, %v16_v33  ;;  %v1267_v36 = vcombine.high %v12_v32, %v16_v33 }
   0xc   :  { %1452 = vmatpush3.bf16.msra.mxu0 %v1689_v10  ;;  %v1706_v27 = vld [vmem:[%s2174_s1 + $0xb0] sm:$0xff]   ;;  %v1710_v31 = vld [vmem:[%s2174_s1 + $0xb8] sm:$0xff]   ;;  %v17_v37 = vld [vmem:[%s2175_s0 + $0x28] sm:$0xff] }
   0xd   :  { %1510 = vmatpush3.bf16.msra.mxu1 %v1690_v11  ;;  %1453 = vmatprep.subr.bf16.mxu0 %v1691_v12  ;;  %v1268_v38 = vcombine.low %v13_v34, %v17_v37  ;;  %v1269_v39 = vcombine.high %v13_v34, %v17_v37  ;;  %v1711_v40 = vld [vmem:[%s2174_s1 + $0x140] sm:$0xff]   ;;  %v21_v47 = vld [vmem:[%s2175_s0 + $0x48] sm:$0xff]  ;;  %v1719_v56 = vld [vmem:[%s2174_s1 + $0x150] sm:$0xff]  }
   0xe   :  { %1511 = vmatprep.subr.bf16.mxu1 %v1692_v13  ;;  %876 = vmatprep.mubr.bf16.mxu0 %v1267_v36  ;;  %v1712_v41 = vld [vmem:[%s2174_s1 + $0x100] sm:$0xff]   ;;  %v25_v48 = vld [vmem:[%s2175_s0 + $0x68] sm:$0xff]  ;;  %v1720_v63 = vld [vmem:[%s2174_s1 + $0x110] sm:$0xff]  }
   0xf   :  { %964 = vmatprep.mubr.bf16.mxu1 %v1269_v39  ;;  %v1713_v42 = vld [vmem:[%s2174_s1 + $0x1c0] sm:$0xff]   ;;  %v1277_v49 = vcombine.high %v21_v47, %v25_v48  ;;  %v1715_v50 = vld [vmem:[%s2174_s1 + $0x148] sm:$0xff]   ;;  %v1276_v53 = vcombine.low %v21_v47, %v25_v48  ;;  %v1721_v0 = vld [vmem:[%s2174_s1 + $0x1d0] sm:$0xff]  }
  0x10   :  { %1454 = vmatpush3.bf16.msra.mxu0 %v1693_v14  ;;  %v1714_v43 = vld [vmem:[%s2174_s1 + $0x180] sm:$0xff]   ;;  %v1716_v52 = vld [vmem:[%s2174_s1 + $0x108] sm:$0xff]   ;;  %v1722_v1 = vld [vmem:[%s2174_s1 + $0x190] sm:$0xff]  }
  0x11   :  { %1512 = vmatpush3.bf16.msra.mxu1 %v1694_v15  ;;  %1455 = vmatprep.subr.bf16.mxu0 %v1695_v16  ;;  %v20_v44 = vld [vmem:[%s2175_s0 + $0x40] sm:$0xff]  ;;  %v1717_v54 = vld [vmem:[%s2174_s1 + $0x1c8] sm:$0xff]   ;;  %v1723_v3 = vld [vmem:[%s2174_s1 + $0x158] sm:$0xff]  }
  0x12   :  { %1513 = vmatprep.subr.bf16.mxu1 %v1696_v17  ;;  %v24_v45 = vld [vmem:[%s2175_s0 + $0x60] sm:$0xff]  ;;  %v1718_v55 = vld [vmem:[%s2174_s1 + $0x188] sm:$0xff]   ;;  %v1724_v5 = vld [vmem:[%s2174_s1 + $0x118] sm:$0xff]  }
  0x13   :  { %v1275_v46 = vcombine.high %v20_v44, %v24_v45  ;;  %v1274_v51 = vcombine.low %v20_v44, %v24_v45  ;;  %v28_v57 = vld [vmem:[%s2175_s0 + $0x80] sm:$0xff]  ;;  %v29_v59 = vld [vmem:[%s2175_s0 + $0x88] sm:$0xff]  ;;  %v1725_v12 = vld [vmem:[%s2174_s1 + $0x1d8] sm:$0xff]  }
  0x14   :  { %1456 = vmatpush3.bf16.msra.mxu0 %v1697_v18  ;;  %v32_v58 = vld [vmem:[%s2175_s0 + $0xa0] sm:$0xff]  ;;  %v33_v60 = vld [vmem:[%s2175_s0 + $0xa8] sm:$0xff]  ;;  %v1726_v13 = vld [vmem:[%s2174_s1 + $0x198] sm:$0xff]  }
  0x15   :  { %1514 = vmatpush3.bf16.msra.mxu1 %v1698_v19  ;;  %1457 = vmatprep.subr.bf16.mxu0 %v1699_v20  ;;  %v1283_v61 = vcombine.high %v28_v57, %v32_v58  ;;  %v1285_v62 = vcombine.high %v29_v59, %v33_v60  ;;  %v1282_v2 = vcombine.low %v28_v57, %v32_v58  ;;  %v36_v6 = vld [vmem:[%s2175_s0 + $0xc0] sm:$0xff]  ;;  %v37_v8 = vld [vmem:[%s2175_s0 + $0xc8] sm:$0xff]  ;;  %v1743_v44 = vld [vmem:[%s2174_s1 + $0x178] sm:$0xff]  }
  0x16   :  { %1515 = vmatprep.subr.bf16.mxu1 %v1700_v21  ;;  %v1284_v4 = vcombine.low %v29_v59, %v33_v60  ;;  %v40_v7 = vld [vmem:[%s2175_s0 + $0xe0] sm:$0xff]  ;;  %v41_v10 = vld [vmem:[%s2175_s0 + $0xe8] sm:$0xff]  ;;  %v1744_v45 = vld [vmem:[%s2174_s1 + $0x138] sm:$0xff]  }
  0x17   :  { %v1291_v9 = vcombine.high %v36_v6, %v40_v7  ;;  %v1293_v11 = vcombine.high %v37_v8, %v41_v10  ;;  %v1727_v14 = vld [vmem:[%s2174_s1 + $0x160] sm:$0xff]   ;;  %v1290_v16 = vcombine.low %v36_v6, %v40_v7  ;;  %v1292_v20 = vcombine.low %v37_v8, %v41_v10  ;;  %v53_v32 = vld [vmem:[%s2175_s0 + $0x148] sm:$0xff]  ;;  %v1746_v48 = vld [vmem:[%s2174_s1 + $0x1b8] sm:$0xff]  }
  0x18   :  { %1458 = vmatpush3.bf16.msra.mxu0 %v1701_v22  ;;  %v1728_v15 = vld [vmem:[%s2174_s1 + $0x120] sm:$0xff]   ;;  %v45_v22 = vld [vmem:[%s2175_s0 + $0x108] sm:$0xff]  ;;  %v22_v60 = vld [vmem:[%s2175_s0 + $0x50] sm:$0xff] }
  0x19   :  { %1516 = vmatpush3.bf16.msra.mxu1 %v1702_v23  ;;  %1459 = vmatprep.subr.bf16.mxu0 %v1703_v24  ;;  %v1729_v17 = vld [vmem:[%s2174_s1 + $0x1e0] sm:$0xff]   ;;  %v49_v23 = vld [vmem:[%s2175_s0 + $0x128] sm:$0xff]  ;;  %v31_v6 = vld [vmem:[%s2175_s0 + $0x98] sm:$0xff] }
  0x1a   :  { %1517 = vmatprep.subr.bf16.mxu1 %v1704_v25  ;;  %v44_v18 = vld [vmem:[%s2175_s0 + $0x100] sm:$0xff]  ;;  %v1301_v24 = vcombine.high %v45_v22, %v49_v23  ;;  %v57_v33 = vld [vmem:[%s2175_s0 + $0x168] sm:$0xff]  ;;  %v1300_v36 = vcombine.low %v45_v22, %v49_v23  ;;  %v35_v7 = vld [vmem:[%s2175_s0 + $0xb8] sm:$0xff] }
  0x1b   :  { %v48_v19 = vld [vmem:[%s2175_s0 + $0x120] sm:$0xff]  ;;  %v1309_v39 = vcombine.high %v53_v32, %v57_v33  ;;  %v47_v22 = vld [vmem:[%s2175_s0 + $0x118] sm:$0xff] }
  0x1c   :  { %1460 = vmatpush3.bf16.msra.mxu0 %v1705_v26  ;;  %v1299_v21 = vcombine.high %v44_v18, %v48_v19  ;;  %v1730_v25 = vld [vmem:[%s2174_s1 + $0x1a0] sm:$0xff]   ;;  %v1731_v26 = vld [vmem:[%s2174_s1 + $0x168] sm:$0xff]   ;;  %v1298_v34 = vcombine.low %v44_v18, %v48_v19  ;;  %v51_v23 = vld [vmem:[%s2175_s0 + $0x138] sm:$0xff] }
  0x1d   :  { %1518 = vmatpush3.bf16.msra.mxu1 %v1706_v27  ;;  %1461 = vmatprep.subr.bf16.mxu0 %v1707_v28  ;;  %v1732_v27 = vld [vmem:[%s2174_s1 + $0x128] sm:$0xff]  }
  0x1e   :  { %1519 = vmatprep.subr.bf16.mxu1 %v1708_v29  ;;  %v1733_v28 = vld [vmem:[%s2174_s1 + $0x1e8] sm:$0xff]  }
  0x1f   :  { %v1734_v29 = vld [vmem:[%s2174_s1 + $0x1a8] sm:$0xff]  }
  0x20   :  { %1462 = vmatpush3.bf16.msra.mxu0 %v1709_v30  ;;  %v52_v30 = vld [vmem:[%s2175_s0 + $0x140] sm:$0xff] }
  0x21   :  { %1520 = vmatpush3.bf16.msra.mxu1 %v1710_v31  ;;  %1563 = vmatprep.subr.bf16.mxu0 %v1711_v40  ;;  %v56_v31 = vld [vmem:[%s2175_s0 + $0x160] sm:$0xff]  ;;  %v1737_v40 = vld [vmem:[%s2174_s1 + $0x1f0] sm:$0xff]  }
  0x22   :  { %1621 = vmatprep.subr.bf16.mxu1 %v1713_v42  ;;  %v1307_v37 = vcombine.high %v52_v30, %v56_v31  ;;  %v60_v42 = vld [vmem:[%s2175_s0 + $0x180] sm:$0xff]  ;;  %v1306_v47 = vcombine.low %v52_v30, %v56_v31  ;;  %v55_v30 = vld [vmem:[%s2175_s0 + $0x158] sm:$0xff] }
  0x23   :  { %877 = vmatmul.mubr.bf16.vlgmr.msra.gmra.mrb[0].mxu0 %v1266_v35  ;;  %v1735_v35 = vld [vmem:[%s2174_s1 + $0x170] sm:$0xff]   ;;  %v59_v31 = vld [vmem:[%s2175_s0 + $0x178] sm:$0xff] }
  0x24   :  { %965 = vmatmul.mubr.bf16.vlgmr.msra.gmra.mrb[0].mxu1 %v1268_v38  ;;  %1564 = vmatpush3.bf16.msra.mxu0 %v1712_v41  ;;  %v1736_v38 = vld [vmem:[%s2174_s1 + $0x130] sm:$0xff]  }
  0x25   :  { %1622 = vmatpush3.bf16.msra.mxu1 %v1714_v43  ;;  %884 = vmatprep.mubr.bf16.mxu0 %v1275_v46  ;;  %v1738_v41 = vld [vmem:[%s2174_s1 + $0x1b0] sm:$0xff]   ;;  %v61_v43 = vld [vmem:[%s2175_s0 + $0x188] sm:$0xff]  ;;  %v1745_v46 = vld [vmem:[%s2174_s1 + $0x1f8] sm:$0xff]  }
  0x26   :  { %972 = vmatprep.mubr.bf16.mxu1 %v1277_v49  ;;  %1565 = vmatprep.subr.bf16.mxu0 %v1715_v50  ;;  %v1308_v49 = vcombine.low %v53_v32, %v57_v33  ;;  %v1315_v50 = vcombine.high %v60_v42, %v60_v42  ;;  %v1316_v57 = vcombine.low %v61_v43, %v61_v43 }
  0x27   :  { %1623 = vmatprep.subr.bf16.mxu1 %v1717_v54  ;;  %v15_v54 = vld [vmem:[%s2175_s0 + $0x18] sm:$0xff]  ;;  %v1304_v33 = vcombine.low %v47_v22, %v51_v23 }
  0x28   :  { %1566 = vmatpush3.bf16.msra.mxu0 %v1716_v52  ;;  %v14_v52 = vld [vmem:[%s2175_s0 + $0x10] sm:$0xff] }
  0x29   :  { %1624 = vmatpush3.bf16.msra.mxu1 %v1718_v55  ;;  %1567 = vmatprep.subr.bf16.mxu0 %v1719_v56  ;;  %v19_v55 = vld [vmem:[%s2175_s0 + $0x38] sm:$0xff]  ;;  %v1314_v56 = vcombine.low %v60_v42, %v60_v42 }
  0x2a   :  { %1625 = vmatprep.subr.bf16.mxu1 %v1721_v0  ;;  %v1273_v59 = vcombine.high %v15_v54, %v19_v55 }
  0x2b   :  { %885 = vmatmul.mubr.bf16.gmra.mrb[4].mxu0 %v1274_v51  ;;  %v1317_v51 = vcombine.high %v61_v43, %v61_v43 }
  0x2c   :  { %973 = vmatmul.mubr.bf16.gmra.mrb[4].mxu1 %v1276_v53  ;;  %892 = vmatprep.mubr.bf16.mxu0 %v1283_v61  ;;  %v18_v53 = vld [vmem:[%s2175_s0 + $0x30] sm:$0xff] }
  0x2d   :  { %980 = vmatprep.mubr.bf16.mxu1 %v1285_v62  ;;  %1568 = vmatpush3.bf16.msra.mxu0 %v1720_v63  ;;  %v1271_v58 = vcombine.high %v14_v52, %v18_v53  ;;  %v26_v61 = vld [vmem:[%s2175_s0 + $0x70] sm:$0xff]  ;;  %v23_v62 = vld [vmem:[%s2175_s0 + $0x58] sm:$0xff]  ;;  %v1270_v0 = vcombine.low %v14_v52, %v18_v53 }
  0x2e   :  { %1626 = vmatpush3.bf16.msra.mxu1 %v1722_v1  ;;  %1569 = vmatprep.subr.bf16.mxu0 %v1723_v3  ;;  %v27_v63 = vld [vmem:[%s2175_s0 + $0x78] sm:$0xff]  ;;  %v1272_v1 = vcombine.low %v15_v54, %v19_v55  ;;  %v1278_v8 = vcombine.low %v22_v60, %v26_v61 }
  0x2f   :  { %1627 = vmatprep.subr.bf16.mxu1 %v1725_v12  ;;  %v1281_v3 = vcombine.high %v23_v62, %v27_v63  ;;  %v38_v12 = vld [vmem:[%s2175_s0 + $0xd0] sm:$0xff] }
  0x31   :  { %1570 = vmatpush3.bf16.msra.mxu0 %v1724_v5  ;;  %v34_v5 = vld [vmem:[%s2175_s0 + $0xb0] sm:$0xff] }
  0x32   :  { %1628 = vmatpush3.bf16.msra.mxu1 %v1726_v13  ;;  %1571 = vmatprep.subr.bf16.mxu0 %v1727_v14  ;;  %v42_v13 = vld [vmem:[%s2175_s0 + $0xf0] sm:$0xff]  ;;  %v39_v14 = vld [vmem:[%s2175_s0 + $0xd8] sm:$0xff] }
  0x33   :  { %893 = vmatmul.mubr.bf16.gmra.mrb[8].mxu0 %v1282_v2  ;;  %1629 = vmatprep.subr.bf16.mxu1 %v1729_v17  ;;  %v1279_v2 = vcombine.high %v22_v60, %v26_v61  ;;  %v1288_v17 = vcombine.low %v31_v6, %v35_v7  ;;  %v1295_v18 = vcombine.high %v38_v12, %v42_v13 }
  0x34   :  { %981 = vmatmul.mubr.bf16.gmra.mrb[8].mxu1 %v1284_v4  ;;  %900 = vmatprep.mubr.bf16.mxu0 %v1291_v9  ;;  %v30_v4 = vld [vmem:[%s2175_s0 + $0x90] sm:$0xff]  ;;  %v1280_v9 = vcombine.low %v23_v62, %v27_v63 }
  0x35   :  { %988 = vmatprep.mubr.bf16.mxu1 %v1293_v11  ;;  %1572 = vmatpush3.bf16.msra.mxu0 %v1728_v15  ;;  %v1287_v10 = vcombine.high %v30_v4, %v34_v5  ;;  %v1289_v11 = vcombine.high %v31_v6, %v35_v7  ;;  %v43_v15 = vld [vmem:[%s2175_s0 + $0xf8] sm:$0xff] }
  0x36   :  { %1630 = vmatpush3.bf16.msra.mxu1 %v1730_v25  ;;  %1573 = vmatprep.subr.bf16.mxu0 %v1731_v26  ;;  %v1297_v19 = vcombine.high %v39_v14, %v43_v15  ;;  %v1296_v25 = vcombine.low %v39_v14, %v43_v15 }
  0x37   :  { %1631 = vmatprep.subr.bf16.mxu1 %v1733_v28  ;;  %v54_v28 = vld [vmem:[%s2175_s0 + $0x150] sm:$0xff] }
  0x39   :  { %1574 = vmatpush3.bf16.msra.mxu0 %v1732_v27  ;;  %v1305_v27 = vcombine.high %v47_v22, %v51_v23 }
  0x3a   :  { %1632 = vmatpush3.bf16.msra.mxu1 %v1734_v29  ;;  %1575 = vmatprep.subr.bf16.mxu0 %v1735_v35  ;;  %v58_v29 = vld [vmem:[%s2175_s0 + $0x170] sm:$0xff]  ;;  %v1313_v35 = vcombine.high %v55_v30, %v59_v31 }
  0x3b   :  { %901 = vmatmul.mubr.bf16.gmra.mrb[12].mxu0 %v1290_v16  ;;  %1633 = vmatprep.subr.bf16.mxu1 %v1737_v40  ;;  %v1286_v16 = vcombine.low %v30_v4, %v34_v5 }
  0x3c   :  { %989 = vmatmul.mubr.bf16.gmra.mrb[12].mxu1 %v1292_v20  ;;  %908 = vmatprep.mubr.bf16.mxu0 %v1299_v21  ;;  %v46_v20 = vld [vmem:[%s2175_s0 + $0x110] sm:$0xff] }
  0x3d   :  { %996 = vmatprep.mubr.bf16.mxu1 %v1301_v24  ;;  %1576 = vmatpush3.bf16.msra.mxu0 %v1736_v38  ;;  %v50_v21 = vld [vmem:[%s2175_s0 + $0x130] sm:$0xff]  ;;  %v1294_v24 = vcombine.low %v38_v12, %v42_v13  ;;  %v1310_v38 = vcombine.low %v54_v28, %v58_v29 }
  0x3e   :  { %1634 = vmatpush3.bf16.msra.mxu1 %v1738_v41  ;;  %1577 = vmatprep.subr.bf16.mxu0 %v1743_v44  ;;  %v1303_v26 = vcombine.high %v46_v20, %v50_v21  ;;  %v1302_v32 = vcombine.low %v46_v20, %v50_v21 }
  0x3f   :  { %1635 = vmatprep.subr.bf16.mxu1 %v1745_v46 }
  0x41   :  { %1578 = vmatpush3.bf16.msra.mxu0 %v1744_v45 }
  0x42   :  { %1636 = vmatpush3.bf16.msra.mxu1 %v1746_v48 }
  0x43   :  { %909 = vmatmul.mubr.bf16.gmra.mrb[16].mxu0 %v1298_v34  ;;  %v1311_v34 = vcombine.high %v54_v28, %v58_v29 }
  0x44   :  { %997 = vmatmul.mubr.bf16.gmra.mrb[16].mxu1 %v1300_v36  ;;  %916 = vmatprep.mubr.bf16.mxu0 %v1307_v37  ;;  %v62_v36 = vld [vmem:[%s2175_s0 + $0x190] sm:$0xff]  ;;  %v63_v37 = vld [vmem:[%s2175_s0 + $0x198] sm:$0xff] }
  0x45   :  { %1004 = vmatprep.mubr.bf16.mxu1 %v1309_v39  ;;  %v1312_v39 = vcombine.low %v55_v30, %v59_v31  ;;  %v1319_v40 = vcombine.high %v62_v36, %v62_v36  ;;  %v1321_v41 = vcombine.high %v63_v37, %v63_v37  ;;  %v1318_v42 = vcombine.low %v62_v36, %v62_v36 }
  0x46   :  { %v1320_v43 = vcombine.low %v63_v37, %v63_v37 }
  0x4b   :  { %917 = vmatmul.mubr.bf16.gmra.mrb[20].mxu0 %v1306_v47 }
  0x4c   :  { %1005 = vmatmul.mubr.bf16.gmra.mrb[20].mxu1 %v1308_v49  ;;  %924 = vmatprep.mubr.bf16.mxu0 %v1315_v50 }
  0x4d   :  { %1012 = vmatprep.mubr.bf16.mxu1 %v1317_v51 }
  0x53   :  { %925 = vmatmul.mubr.bf16.gmra.mrb[24].mxu0 %v1314_v56 }
  0x54   :  { %1013 = vmatmul.mubr.bf16.gmra.mrb[24].mxu1 %v1316_v57  ;;  %1052 = vmatprep.mubr.bf16.mxu0 %v1271_v58 }
  0x55   :  { %1140 = vmatprep.mubr.bf16.mxu1 %v1273_v59 }
  0x5b   :  { %1053 = vmatmul.mubr.bf16.vlgmr.msra.gmra.mrb[28].mxu0 %v1270_v0 }
  0x5c   :  { %1141 = vmatmul.mubr.bf16.vlgmr.msra.gmra.mrb[28].mxu1 %v1272_v1  ;;  %1060 = vmatprep.mubr.bf16.mxu0 %v1279_v2 }
  0x5d   :  { %1148 = vmatprep.mubr.bf16.mxu1 %v1281_v3 }
  0x63   :  { %1061 = vmatmul.mubr.bf16.gmra.mrb[32].mxu0 %v1278_v8 }
  0x64   :  { %1149 = vmatmul.mubr.bf16.gmra.mrb[32].mxu1 %v1280_v9  ;;  %1068 = vmatprep.mubr.bf16.mxu0 %v1287_v10 }
  0x65   :  { %1156 = vmatprep.mubr.bf16.mxu1 %v1289_v11 }
  0x6b   :  { %1069 = vmatmul.mubr.bf16.gmra.mrb[36].mxu0 %v1286_v16 }
  0x6c   :  { %1157 = vmatmul.mubr.bf16.gmra.mrb[36].mxu1 %v1288_v17  ;;  %1076 = vmatprep.mubr.bf16.mxu0 %v1295_v18 }
  0x6d   :  { %1164 = vmatprep.mubr.bf16.mxu1 %v1297_v19 }
  0x73   :  { %1077 = vmatmul.mubr.bf16.gmra.mrb[40].mxu0 %v1294_v24 }
  0x74   :  { %1165 = vmatmul.mubr.bf16.gmra.mrb[40].mxu1 %v1296_v25  ;;  %1084 = vmatprep.mubr.bf16.mxu0 %v1303_v26 }
  0x75   :  { %1172 = vmatprep.mubr.bf16.mxu1 %v1305_v27 }
  0x7b   :  { %1085 = vmatmul.mubr.bf16.gmra.mrb[44].mxu0 %v1302_v32 }
  0x7c   :  { %1173 = vmatmul.mubr.bf16.gmra.mrb[44].mxu1 %v1304_v33  ;;  %1092 = vmatprep.mubr.bf16.mxu0 %v1311_v34 }
  0x7d   :  { %1180 = vmatprep.mubr.bf16.mxu1 %v1313_v35 }
  0x83   :  { %1093 = vmatmul.mubr.bf16.gmra.mrb[48].mxu0 %v1310_v38 }
  0x84   :  { %1181 = vmatmul.mubr.bf16.gmra.mrb[48].mxu1 %v1312_v39  ;;  %1100 = vmatprep.mubr.bf16.mxu0 %v1319_v40 }
  0x85   :  { %1188 = vmatprep.mubr.bf16.mxu1 %v1321_v41 }
  0x8b   :  { %1101 = vmatmul.mubr.bf16.gmra.mrb[52].mxu0 %v1318_v42 }
  0x8c   :  { %1189 = vmatmul.mubr.bf16.gmra.mrb[52].mxu1 %v1320_v43 }
  0xf6   :  { %v1463_v44 = vpop.f32.mrb[0].mxu0 }
  0xf7   :  { %v1521_v45 = vpop.f32.mrb[0].mxu1  ;;  %v1464_v46 = vpop.f32.mrb[1].mxu0 }
  0xf8   :  { %v1465_v47 = vadd.f32 %v1464_v46, %v1463_v44  ;;  %v1522_v48 = vpop.f32.mrb[1].mxu1  ;;  %v1466_v49 = vpop.f32.mrb[2].mxu0 }
  0xf9   :  { %v1523_v50 = vadd.f32 %v1522_v48, %v1521_v45  ;;  %v1524_v51 = vpop.f32.mrb[2].mxu1  ;;  %v1467_v52 = vpop.f32.mrb[3].mxu0 }
  0xfa   :  { %v1468_v53 = vadd.f32 %v1467_v52, %v1466_v49  ;;  %v1525_v54 = vpop.f32.mrb[3].mxu1 }
  0xfb   :  { %v2114_v55 = vadd.f32 %v1523_v50, %v1465_v47  ;;  %v1526_v56 = vadd.f32 %v1525_v54, %v1524_v51 }
  0xfd   :  { %v2116_v57 = vadd.f32 %v1526_v56, %v1468_v53 }
  0xfe   :  { %v1469_v58 = vpop.f32.mrb[4].mxu0 }
  0xff   :  { %v1527_v59 = vpop.f32.mrb[4].mxu1  ;;  %v1470_v60 = vpop.f32.mrb[5].mxu0 }
 0x100   :  { %v1471_v61 = vadd.f32 %v1470_v60, %v1469_v58  ;;  %v1528_v62 = vpop.f32.mrb[5].mxu1  ;;  %v1472_v63 = vpop.f32.mrb[6].mxu0 }
 0x101   :  { %v1529_v0 = vadd.f32 %v1528_v62, %v1527_v59  ;;  %v1530_v1 = vpop.f32.mrb[6].mxu1  ;;  %v1473_v2 = vpop.f32.mrb[7].mxu0 }
 0x102   :  { %v1474_v3 = vadd.f32 %v1473_v2, %v1472_v63  ;;  %v1531_v4 = vpop.f32.mrb[7].mxu1 }
 0x103   :  { %v2118_v5 = vadd.f32 %v1529_v0, %v1471_v61  ;;  %v1532_v6 = vadd.f32 %v1531_v4, %v1530_v1 }
 0x105   :  { %v2120_v7 = vadd.f32 %v1532_v6, %v1474_v3 }
 0x106   :  { %v1475_v8 = vpop.f32.mrb[8].mxu0 }
 0x107   :  { %v1533_v9 = vpop.f32.mrb[8].mxu1  ;;  %v1476_v10 = vpop.f32.mrb[9].mxu0 }
 0x108   :  { %v1477_v11 = vadd.f32 %v1476_v10, %v1475_v8  ;;  %v1534_v12 = vpop.f32.mrb[9].mxu1  ;;  %v1478_v13 = vpop.f32.mrb[10].mxu0 }
 0x109   :  { %v1535_v14 = vadd.f32 %v1534_v12, %v1533_v9  ;;  %v1536_v15 = vpop.f32.mrb[10].mxu1  ;;  %v1479_v16 = vpop.f32.mrb[11].mxu0 }
 0x10a   :  { %v1480_v17 = vadd.f32 %v1479_v16, %v1478_v13  ;;  %v1537_v18 = vpop.f32.mrb[11].mxu1 }
 0x10b   :  { %v2122_v19 = vadd.f32 %v1535_v14, %v1477_v11  ;;  %v1538_v20 = vadd.f32 %v1537_v18, %v1536_v15 }
 0x10d   :  { %v2124_v21 = vadd.f32 %v1538_v20, %v1480_v17 }
 0x10e   :  { %v1481_v22 = vpop.f32.mrb[12].mxu0 }
 0x10f   :  { %v1539_v23 = vpop.f32.mrb[12].mxu1  ;;  %v1482_v24 = vpop.f32.mrb[13].mxu0 }
 0x110   :  { %v1483_v25 = vadd.f32 %v1482_v24, %v1481_v22  ;;  %v1540_v26 = vpop.f32.mrb[13].mxu1  ;;  %v1484_v27 = vpop.f32.mrb[14].mxu0 }
 0x111   :  { %v1541_v28 = vadd.f32 %v1540_v26, %v1539_v23  ;;  %v1542_v29 = vpop.f32.mrb[14].mxu1  ;;  %v1485_v30 = vpop.f32.mrb[15].mxu0 }
 0x112   :  { %v1486_v31 = vadd.f32 %v1485_v30, %v1484_v27  ;;  %v1543_v32 = vpop.f32.mrb[15].mxu1 }
 0x113   :  { %v2126_v33 = vadd.f32 %v1541_v28, %v1483_v25  ;;  %v1544_v34 = vadd.f32 %v1543_v32, %v1542_v29 }
 0x115   :  { %v2128_v35 = vadd.f32 %v1544_v34, %v1486_v31 }
 0x116   :  { %v1487_v36 = vpop.f32.mrb[16].mxu0 }
 0x117   :  { %v1545_v37 = vpop.f32.mrb[16].mxu1  ;;  %v1488_v38 = vpop.f32.mrb[17].mxu0 }
 0x118   :  { %v1489_v39 = vadd.f32 %v1488_v38, %v1487_v36  ;;  %v1546_v40 = vpop.f32.mrb[17].mxu1  ;;  %v1490_v41 = vpop.f32.mrb[18].mxu0 }
 0x119   :  { %v1547_v42 = vadd.f32 %v1546_v40, %v1545_v37  ;;  %v1548_v43 = vpop.f32.mrb[18].mxu1  ;;  %v1491_v44 = vpop.f32.mrb[19].mxu0 }
 0x11a   :  { %v1492_v45 = vadd.f32 %v1491_v44, %v1490_v41  ;;  %v1549_v46 = vpop.f32.mrb[19].mxu1 }
 0x11b   :  { %v2130_v47 = vadd.f32 %v1547_v42, %v1489_v39  ;;  %v1550_v48 = vadd.f32 %v1549_v46, %v1548_v43 }
 0x11d   :  { %v2132_v49 = vadd.f32 %v1550_v48, %v1492_v45 }
 0x11e   :  { %v1493_v50 = vpop.f32.mrb[20].mxu0 }
 0x11f   :  { %v1551_v51 = vpop.f32.mrb[20].mxu1  ;;  %v1494_v52 = vpop.f32.mrb[21].mxu0 }
 0x120   :  { %v1495_v53 = vadd.f32 %v1494_v52, %v1493_v50  ;;  %v1552_v54 = vpop.f32.mrb[21].mxu1  ;;  %v1496_v56 = vpop.f32.mrb[22].mxu0 }
 0x121   :  { %v1553_v58 = vadd.f32 %v1552_v54, %v1551_v51  ;;  %v1554_v59 = vpop.f32.mrb[22].mxu1  ;;  %v1497_v60 = vpop.f32.mrb[23].mxu0 }
 0x122   :  { %v1498_v61 = vadd.f32 %v1497_v60, %v1496_v56  ;;  %v1555_v62 = vpop.f32.mrb[23].mxu1 }
 0x123   :  { %v2134_v63 = vadd.f32 %v1553_v58, %v1495_v53  ;;  %v1556_v0 = vadd.f32 %v1555_v62, %v1554_v59 }
 0x125   :  { %v2136_v1 = vadd.f32 %v1556_v0, %v1498_v61 }
 0x126   :  { %v1499_v2 = vpop.f32.mrb[24].mxu0 }
 0x127   :  { %v1557_v3 = vpop.f32.mrb[24].mxu1  ;;  %v1500_v4 = vpop.f32.mrb[25].mxu0 }
 0x128   :  { %v1501_v6 = vadd.f32 %v1500_v4, %v1499_v2  ;;  %v1558_v8 = vpop.f32.mrb[25].mxu1  ;;  %v1502_v9 = vpop.f32.mrb[26].mxu0 }
 0x129   :  { %v1559_v10 = vadd.f32 %v1558_v8, %v1557_v3  ;;  %v1560_v11 = vpop.f32.mrb[26].mxu1  ;;  %v1503_v12 = vpop.f32.mrb[27].mxu0 }
 0x12a   :  { %v1561_v13 = vpop.f32.mrb[27].mxu1 }
 0x12b   :  { %v2138_v14 = vadd.f32 %v1559_v10, %v1501_v6 }
 0x12e   :  { %v1579_v15 = vpop.f32.mrb[28].mxu0 }
 0x12f   :  { %v1637_v16 = vpop.f32.mrb[28].mxu1  ;;  %v1580_v17 = vpop.f32.mrb[29].mxu0 }
 0x130   :  { %v1581_v18 = vadd.f32 %v1580_v17, %v1579_v15  ;;  %v1638_v20 = vpop.f32.mrb[29].mxu1  ;;  %v1582_v22 = vpop.f32.mrb[30].mxu0 }
 0x131   :  { %v1639_v23 = vadd.f32 %v1638_v20, %v1637_v16  ;;  %v1640_v24 = vpop.f32.mrb[30].mxu1  ;;  %v1583_v25 = vpop.f32.mrb[31].mxu0 }
 0x132   :  { %v1055_v26 = vadd.f32 %v1581_v18, %v2114_v55  ;;  %v1584_v27 = vadd.f32 %v1583_v25, %v1582_v22  ;;  %v1641_v28 = vpop.f32.mrb[31].mxu1 }
 0x133   :  { %v1642_v29 = vadd.f32 %v1641_v28, %v1640_v24 }
 0x134   :  { %v1143_v30 = vadd.f32 %v1639_v23, %v1055_v26  ;;  %v1058_v31 = vadd.f32 %v1584_v27, %v2116_v57 }
 0x136   :  { %v1146_v32 = vadd.f32 %v1642_v29, %v1058_v31  ;;  %v1585_v34 = vpop.f32.mrb[32].mxu0 }
 0x137   :  { %v1643_v36 = vpop.f32.mrb[32].mxu1  ;;  %v1586_v37 = vpop.f32.mrb[33].mxu0 }
 0x138   :  { %v1415_v38 = vpack.c.bf16 %v1146_v32, %v1143_v30  ;;  %v1587_v39 = vadd.f32 %v1586_v37, %v1585_v34  ;;  %v1644_v40 = vpop.f32.mrb[33].mxu1  ;;  %v1588_v41 = vpop.f32.mrb[34].mxu0 }
 0x139   :  { %v1645_v42 = vadd.f32 %v1644_v40, %v1643_v36  ;;  %v1646_v43 = vpop.f32.mrb[34].mxu1  ;;  %v1589_v44 = vpop.f32.mrb[35].mxu0 }
 0x13a   :  { %1416 = vst [vmem:[%s2176_s2] sm:$0xff] %v1415_v38   ;;  %v1063_v55 = vadd.f32 %v1587_v39, %v2118_v5  ;;  %v1590_v45 = vadd.f32 %v1589_v44, %v1588_v41  ;;  %v1647_v46 = vpop.f32.mrb[35].mxu1 }
 0x13b   :  { %v1648_v57 = vadd.f32 %v1647_v46, %v1646_v43 }
 0x13c   :  { %v1151_v48 = vadd.f32 %v1645_v42, %v1063_v55  ;;  %v1066_v50 = vadd.f32 %v1590_v45, %v2120_v7 }
 0x13e   :  { %v1154_v51 = vadd.f32 %v1648_v57, %v1066_v50  ;;  %v1591_v52 = vpop.f32.mrb[36].mxu0 }
 0x13f   :  { %v1649_v53 = vpop.f32.mrb[36].mxu1  ;;  %v1592_v54 = vpop.f32.mrb[37].mxu0 }
 0x140   :  { %v1420_v56 = vpack.c.bf16 %v1154_v51, %v1151_v48  ;;  %v1593_v58 = vadd.f32 %v1592_v54, %v1591_v52  ;;  %v1650_v59 = vpop.f32.mrb[37].mxu1  ;;  %v1594_v60 = vpop.f32.mrb[38].mxu0 }
 0x141   :  { %v1651_v61 = vadd.f32 %v1650_v59, %v1649_v53  ;;  %v1652_v62 = vpop.f32.mrb[38].mxu1  ;;  %v1595_v0 = vpop.f32.mrb[39].mxu0 }
 0x142   :  { %1442 = vst [vmem:[%s2176_s2 + $0x8] sm:$0xff] %v1420_v56   ;;  %v1071_v5 = vadd.f32 %v1593_v58, %v2122_v19  ;;  %v1596_v2 = vadd.f32 %v1595_v0, %v1594_v60  ;;  %v1653_v3 = vpop.f32.mrb[39].mxu1 }
 0x143   :  { %v1654_v7 = vadd.f32 %v1653_v3, %v1652_v62 }
 0x144   :  { %v1159_v4 = vadd.f32 %v1651_v61, %v1071_v5  ;;  %v1074_v6 = vadd.f32 %v1596_v2, %v2124_v21 }
 0x146   :  { %v1162_v8 = vadd.f32 %v1654_v7, %v1074_v6  ;;  %v1597_v9 = vpop.f32.mrb[40].mxu0 }
 0x147   :  { %v1655_v10 = vpop.f32.mrb[40].mxu1  ;;  %v1598_v11 = vpop.f32.mrb[41].mxu0 }
 0x148   :  { %v1425_v12 = vpack.c.bf16 %v1162_v8, %v1159_v4  ;;  %v1599_v13 = vadd.f32 %v1598_v11, %v1597_v9  ;;  %v1656_v15 = vpop.f32.mrb[41].mxu1  ;;  %v1600_v16 = vpop.f32.mrb[42].mxu0 }
 0x149   :  { %v1657_v17 = vadd.f32 %v1656_v15, %v1655_v10  ;;  %v1658_v18 = vpop.f32.mrb[42].mxu1  ;;  %v1601_v20 = vpop.f32.mrb[43].mxu0 }
 0x14a   :  { %1443 = vst [vmem:[%s2176_s2 + $0x10] sm:$0xff] %v1425_v12   ;;  %v1079_v19 = vadd.f32 %v1599_v13, %v2126_v33  ;;  %v1602_v22 = vadd.f32 %v1601_v20, %v1600_v16  ;;  %v1659_v23 = vpop.f32.mrb[43].mxu1 }
 0x14b   :  { %v1660_v21 = vadd.f32 %v1659_v23, %v1658_v18 }
 0x14c   :  { %v1167_v24 = vadd.f32 %v1657_v17, %v1079_v19  ;;  %v1082_v25 = vadd.f32 %v1602_v22, %v2128_v35 }
 0x14e   :  { %v1170_v26 = vadd.f32 %v1660_v21, %v1082_v25  ;;  %v1603_v27 = vpop.f32.mrb[44].mxu0 }
 0x14f   :  { %v1661_v28 = vpop.f32.mrb[44].mxu1  ;;  %v1604_v29 = vpop.f32.mrb[45].mxu0 }
 0x150   :  { %v1430_v30 = vpack.c.bf16 %v1170_v26, %v1167_v24  ;;  %v1605_v31 = vadd.f32 %v1604_v29, %v1603_v27  ;;  %v1662_v32 = vpop.f32.mrb[45].mxu1  ;;  %v1606_v34 = vpop.f32.mrb[46].mxu0 }
 0x151   :  { %v1663_v36 = vadd.f32 %v1662_v32, %v1661_v28  ;;  %v1664_v37 = vpop.f32.mrb[46].mxu1  ;;  %v1607_v38 = vpop.f32.mrb[47].mxu0 }
 0x152   :  { %1444 = vst [vmem:[%s2176_s2 + $0x18] sm:$0xff] %v1430_v30   ;;  %v1087_v33 = vadd.f32 %v1605_v31, %v2130_v47  ;;  %v1608_v39 = vadd.f32 %v1607_v38, %v1606_v34  ;;  %v1665_v40 = vpop.f32.mrb[47].mxu1 }
 0x153   :  { %v1666_v35 = vadd.f32 %v1665_v40, %v1664_v37 }
 0x154   :  { %v1175_v41 = vadd.f32 %v1663_v36, %v1087_v33  ;;  %v1090_v42 = vadd.f32 %v1608_v39, %v2132_v49 }
 0x156   :  { %v1178_v43 = vadd.f32 %v1666_v35, %v1090_v42  ;;  %v1609_v44 = vpop.f32.mrb[48].mxu0 }
 0x157   :  { %v1667_v55 = vpop.f32.mrb[48].mxu1  ;;  %v1610_v45 = vpop.f32.mrb[49].mxu0 }
 0x158   :  { %v1435_v46 = vpack.c.bf16 %v1178_v43, %v1175_v41  ;;  %v1611_v57 = vadd.f32 %v1610_v45, %v1609_v44  ;;  %v1668_v48 = vpop.f32.mrb[49].mxu1  ;;  %v1612_v50 = vpop.f32.mrb[50].mxu0 }
 0x159   :  { %v1669_v51 = vadd.f32 %v1668_v48, %v1667_v55  ;;  %v1670_v52 = vpop.f32.mrb[50].mxu1  ;;  %v1613_v53 = vpop.f32.mrb[51].mxu0 }
 0x15a   :  { %1445 = vst [vmem:[%s2176_s2 + $0x20] sm:$0xff] %v1435_v46   ;;  %v1095_v47 = vadd.f32 %v1611_v57, %v2134_v63  ;;  %v1614_v54 = vadd.f32 %v1613_v53, %v1612_v50  ;;  %v1671_v56 = vpop.f32.mrb[51].mxu1 }
 0x15b   :  { %v1672_v49 = vadd.f32 %v1671_v56, %v1670_v52 }
 0x15c   :  { %v1183_v58 = vadd.f32 %v1669_v51, %v1095_v47  ;;  %v1098_v59 = vadd.f32 %v1614_v54, %v2136_v1 }
 0x15e   :  { %v1186_v60 = vadd.f32 %v1672_v49, %v1098_v59  ;;  %v1615_v61 = vpop.f32.mrb[52].mxu0 }
 0x15f   :  { %v1673_v62 = vpop.f32.mrb[52].mxu1  ;;  %v1616_v0 = vpop.f32.mrb[53].mxu0 }
 0x160   :  { %v1440_v5 = vpack.c.bf16 %v1186_v60, %v1183_v58  ;;  %v1617_v2 = vadd.f32 %v1616_v0, %v1615_v61  ;;  %v1674_v3 = vpop.f32.mrb[53].mxu1  ;;  %v1618_v7 = vpop.f32.mrb[54].mxu0 }
 0x161   :  { %v1675_v4 = vadd.f32 %v1674_v3, %v1673_v62  ;;  %v1676_v6 = vpop.f32.mrb[54].mxu1  ;;  %v1619_v8 = vpop.f32.mrb[55].mxu0 }
 0x162   :  { %1446 = vst [vmem:[%s2176_s2 + $0x28] sm:$0xff] %v1440_v5   ;;  %v1103_v63 = vadd.f32 %v1617_v2, %v2138_v14  ;;  %v1677_v9 = vpop.f32.mrb[55].mxu1 }
 0x164   :  { %v1191_v10 = vadd.f32 %v1675_v4, %v1103_v63 }
 0x166   :  { %v1411_v1 = vpack.c.bf16 %v1191_v10, %v1191_v10 }
 0x168   :  { %1261 = vst [vmem:[%s2176_s2 + $0x30] sm:$0xf] %v1411_v1 }

// kernel: infogan_forward.26
= control target key start
LH: loop header
LB: loop body
LE: loop exit
PB: predicated region body
PF: predicated region fallthrough
CT: control target
= control target key end

     0   :  { %v23_v0 = vlaneseq  ;;  %v641_v2 = vmov 1983009808   ;;  %vm61_vm0 = vcmask 1041408   ;;  %s763_s0 = inlined_call_operand.vmem [shape: bf16[2,1024], index: 0, kind: input, shape index: {}]   ;;  %s764_s1 = inlined_call_operand.vmem [shape: f32[1,1024], index: 1, kind: input, shape index: {}]   ;;  %s765_s2 = inlined_call_operand.vmem [shape: f32[1,1024], index: 2, kind: input, shape index: {}]   ;;  %s766_s3 = inlined_call_operand.vmem [shape: bf16[2,1024], index: 3, kind: output, shape index: {}]  }
   0x1   :  { %v14_v1 = vld [vmem:[%s763_s0] sm:$0xff]  ;;  %v21_v3 = vunpack.c.l.s4 %v641_v2 }
   0x2   :  { %v666_v4 = vunpack.c.l.bf16 %v14_v1  ;;  %v668_v5 = vunpack.c.h.bf16 %v14_v1  ;;  %v670_v6 = vshrl.u32 %v23_v0, 7 }
   0x3   :  { %v22_v7 = vunpack.c.0.s8 %v21_v3 }
   0x4   :  { %v19_v8 = vcombine.high %v666_v4, %v666_v4  ;;  %v36_v9 = vcombine.high %v668_v5, %v668_v5 }
   0x5   :  { %v677_v10 = vsub.s32 %v22_v7, %v670_v6 }
   0x7   :  { %v26_v11 = vrot.slane %v666_v4, %v677_v10  ;;  %v33_v12 = vrot.slane %v19_v8, %v677_v10  ;;  %v43_v13 = vrot.slane %v668_v5, %v677_v10  ;;  %v50_v14 = vrot.slane %v36_v9, %v677_v10 }
   0x9   :  { %v34_v15 = vcombine.high %v26_v11, %v26_v11  ;;  %v35_v16 = vcombine.high %v33_v12, %v33_v12  ;;  %v51_v17 = vcombine.high %v43_v13, %v43_v13  ;;  %v52_v18 = vcombine.high %v50_v14, %v50_v14 }
   0xa   :  { %v62_v19 = vsel %vm61_vm0, %v26_v11, 0.0  ;;  %v76_v20 = vsel %vm61_vm0, %v33_v12, 0.0  ;;  %v90_v21 = vsel %vm61_vm0, %v43_v13, 0.0  ;;  %v104_v22 = vsel %vm61_vm0, %v50_v14, 0.0 }
   0xb   :  { %v63_v23 = vrot.slane %v62_v19, 4  ;;  %v69_v24 = vsel %vm61_vm0, %v34_v15, 0.0  ;;  %v77_v25 = vrot.slane %v76_v20, 4  ;;  %v83_v26 = vsel %vm61_vm0, %v35_v16, 0.0 }
   0xc   :  { %v70_v27 = vrot.slane %v69_v24, 4  ;;  %v84_v28 = vrot.slane %v83_v26, 4  ;;  %v91_v29 = vrot.slane %v90_v21, 4  ;;  %v97_v30 = vsel %vm61_vm0, %v51_v17, 0.0 }
   0xd   :  { %v64_v31 = vadd.f32 %v63_v23, %v62_v19  ;;  %v78_v32 = vadd.f32 %v77_v25, %v76_v20  ;;  %v98_v33 = vrot.slane %v97_v30, 4  ;;  %v105_v34 = vrot.slane %v104_v22, 4 }
   0xe   :  { %v71_v35 = vadd.f32 %v70_v27, %v69_v24  ;;  %v85_v36 = vadd.f32 %v84_v28, %v83_v26  ;;  %v92_v37 = vadd.f32 %v91_v29, %v90_v21  ;;  %v111_v38 = vsel %vm61_vm0, %v52_v18, 0.0 }
   0xf   :  { %v65_v39 = vrot.slane %v64_v31, 2  ;;  %v79_v40 = vrot.slane %v78_v32, 2  ;;  %v99_v41 = vadd.f32 %v98_v33, %v97_v30  ;;  %v106_v42 = vadd.f32 %v105_v34, %v104_v22 }
  0x10   :  { %v72_v43 = vrot.slane %v71_v35, 2  ;;  %v86_v44 = vrot.slane %v85_v36, 2  ;;  %v93_v45 = vrot.slane %v92_v37, 2  ;;  %v112_v46 = vrot.slane %v111_v38, 4 }
  0x11   :  { %v66_v47 = vadd.f32 %v65_v39, %v64_v31  ;;  %v80_v48 = vadd.f32 %v79_v40, %v78_v32  ;;  %v100_v49 = vrot.slane %v99_v41, 2  ;;  %v107_v50 = vrot.slane %v106_v42, 2 }
  0x12   :  { %v73_v51 = vadd.f32 %v72_v43, %v71_v35  ;;  %v87_v52 = vadd.f32 %v86_v44, %v85_v36  ;;  %v94_v53 = vadd.f32 %v93_v45, %v92_v37  ;;  %v113_v54 = vadd.f32 %v112_v46, %v111_v38 }
  0x13   :  { %v67_v55 = vrot.slane %v66_v47, 1  ;;  %v81_v56 = vrot.slane %v80_v48, 1  ;;  %v101_v57 = vadd.f32 %v100_v49, %v99_v41  ;;  %v108_v58 = vadd.f32 %v107_v50, %v106_v42 }
  0x14   :  { %v74_v59 = vrot.slane %v73_v51, 1  ;;  %v88_v60 = vrot.slane %v87_v52, 1  ;;  %v95_v61 = vrot.slane %v94_v53, 1  ;;  %v114_v62 = vrot.slane %v113_v54, 2 }
  0x15   :  { %v68_v63 = vadd.f32 %v67_v55, %v66_v47  ;;  %v82_v0 = vadd.f32 %v81_v56, %v80_v48  ;;  %v102_v1 = vrot.slane %v101_v57, 1  ;;  %v109_v2 = vrot.slane %v108_v58, 1 }
  0x16   :  { %v75_v3 = vadd.f32 %v74_v59, %v73_v51  ;;  %v89_v7 = vadd.f32 %v88_v60, %v87_v52  ;;  %v96_v8 = vadd.f32 %v95_v61, %v94_v53  ;;  %v115_v9 = vadd.f32 %v114_v62, %v113_v54 }
  0x17   :  { %v103_v11 = vadd.f32 %v102_v1, %v101_v57  ;;  %v110_v12 = vadd.f32 %v109_v2, %v108_v58  ;;  %v118_v13 = vmul.f32 0.5, %v68_v63  ;;  %v120_v14 = vmul.f32 0.5, %v82_v0 }
  0x18   :  { %v116_v15 = vrot.slane %v115_v9, 1  ;;  %v119_v16 = vmul.f32 0.5, %v75_v3  ;;  %v121_v17 = vmul.f32 0.5, %v89_v7  ;;  %v122_v18 = vmul.f32 0.5, %v96_v8 }
  0x19   :  { %v123_v19 = vmul.f32 0.5, %v103_v11  ;;  %v124_v21 = vmul.f32 0.5, %v110_v12 }
  0x1a   :  { %v117_v20 = vadd.f32 %v116_v15, %v115_v9  ;;  %v134_v22 = vcombine.low %v118_v13, %v119_v16  ;;  %v135_v23 = vcombine.low %v120_v14, %v121_v17 }
  0x1b   :  { %v151_v24 = vcombine.low %v122_v18, %v123_v19 }
  0x1c   :  { %v125_v25 = vmul.f32 0.5, %v117_v20  ;;  %v142_v26 = vrot.slane %v134_v22, %v677_v10  ;;  %v149_v27 = vrot.slane %v135_v23, %v677_v10 }
  0x1d   :  { %v159_v30 = vrot.slane %v151_v24, %v677_v10 }
  0x1e   :  { %v150_v28 = vcombine.low %v142_v26, %v149_v27  ;;  %v152_v29 = vcombine.low %v124_v21, %v125_v25 }
  0x20   :  { %v166_v31 = vrot.slane %v152_v29, %v677_v10  ;;  %v698_v32 = vsub.f32 %v666_v4, %v150_v28 }
  0x22   :  { %v167_v33 = vcombine.low %v159_v30, %v166_v31  ;;  %v172_v34 = vmul.f32 %v698_v32, %v698_v32 }
  0x24   :  { %v703_v35 = vsub.f32 %v668_v5, %v167_v33  ;;  %v176_v36 = vcombine.high %v172_v34, %v172_v34  ;;  %v183_v37 = vrot.slane %v172_v34, %v677_v10 }
  0x26   :  { %v173_v38 = vmul.f32 %v703_v35, %v703_v35  ;;  %v190_v39 = vrot.slane %v176_v36, %v677_v10  ;;  %v191_v40 = vcombine.high %v183_v37, %v183_v37  ;;  %v218_v41 = vsel %vm61_vm0, %v183_v37, 0.0 }
  0x27   :  { %v219_v4 = vrot.slane %v218_v41, 4 }
  0x28   :  { %v192_v42 = vcombine.high %v190_v39, %v190_v39  ;;  %v193_v43 = vcombine.high %v173_v38, %v173_v38  ;;  %v200_v44 = vrot.slane %v173_v38, %v677_v10  ;;  %v225_v45 = vsel %vm61_vm0, %v191_v40, 0.0 }
  0x29   :  { %v220_v5 = vadd.f32 %v219_v4, %v218_v41  ;;  %v226_v46 = vrot.slane %v225_v45, 4  ;;  %v232_v47 = vsel %vm61_vm0, %v190_v39, 0.0 }
  0x2a   :  { %v207_v48 = vrot.slane %v193_v43, %v677_v10  ;;  %v208_v49 = vcombine.high %v200_v44, %v200_v44  ;;  %v233_v50 = vrot.slane %v232_v47, 4  ;;  %v239_v51 = vsel %vm61_vm0, %v192_v42, 0.0 }
  0x2b   :  { %v221_v52 = vrot.slane %v220_v5, 2  ;;  %v227_v53 = vadd.f32 %v226_v46, %v225_v45  ;;  %v240_v54 = vrot.slane %v239_v51, 4  ;;  %v246_v55 = vsel %vm61_vm0, %v200_v44, 0.0 }
  0x2c   :  { %v209_v56 = vcombine.high %v207_v48, %v207_v48  ;;  %v234_v57 = vadd.f32 %v233_v50, %v232_v47  ;;  %v247_v58 = vrot.slane %v246_v55, 4  ;;  %v253_v59 = vsel %vm61_vm0, %v208_v49, 0.0 }
  0x2d   :  { %v222_v60 = vadd.f32 %v221_v52, %v220_v5  ;;  %v228_v61 = vrot.slane %v227_v53, 2  ;;  %v241_v62 = vadd.f32 %v240_v54, %v239_v51  ;;  %v254_v63 = vrot.slane %v253_v59, 4  ;;  %v298_v54 = vld [vmem:[%s764_s1] sm:$0xff] }
  0x2e   :  { %v235_v0 = vrot.slane %v234_v57, 2  ;;  %v248_v1 = vadd.f32 %v247_v58, %v246_v55  ;;  %v260_v2 = vsel %vm61_vm0, %v207_v48, 0.0  ;;  %v267_v3 = vsel %vm61_vm0, %v209_v56, 0.0 }
  0x2f   :  { %v223_v7 = vrot.slane %v222_v60, 1  ;;  %v229_v8 = vadd.f32 %v228_v61, %v227_v53  ;;  %v242_v9 = vrot.slane %v241_v62, 2  ;;  %v255_v11 = vadd.f32 %v254_v63, %v253_v59  ;;  %v426_v63 = vld [vmem:[%s765_s2] sm:$0xff] }
  0x30   :  { %v236_v12 = vadd.f32 %v235_v0, %v234_v57  ;;  %v249_v13 = vrot.slane %v248_v1, 2  ;;  %v261_v14 = vrot.slane %v260_v2, 4  ;;  %v268_v15 = vrot.slane %v267_v3, 4 }
  0x31   :  { %v224_v16 = vadd.f32 %v223_v7, %v222_v60  ;;  %v230_v17 = vrot.slane %v229_v8, 1  ;;  %v243_v18 = vadd.f32 %v242_v9, %v241_v62  ;;  %v256_v19 = vrot.slane %v255_v11, 2 }
  0x32   :  { %v237_v20 = vrot.slane %v236_v12, 1  ;;  %v250_v21 = vadd.f32 %v249_v13, %v248_v1  ;;  %v262_v22 = vadd.f32 %v261_v14, %v260_v2  ;;  %v269_v23 = vadd.f32 %v268_v15, %v267_v3 }
  0x33   :  { %v231_v24 = vadd.f32 %v230_v17, %v229_v8  ;;  %v244_v25 = vrot.slane %v243_v18, 1  ;;  %v257_v26 = vadd.f32 %v256_v19, %v255_v11  ;;  %v274_v27 = vmul.f32 0.5, %v224_v16 }
  0x34   :  { %v238_v28 = vadd.f32 %v237_v20, %v236_v12  ;;  %v251_v29 = vrot.slane %v250_v21, 1  ;;  %v263_v30 = vrot.slane %v262_v22, 2  ;;  %v270_v31 = vrot.slane %v269_v23, 2 }
  0x35   :  { %v245_v33 = vadd.f32 %v244_v25, %v243_v18  ;;  %v258_v34 = vrot.slane %v257_v26, 1  ;;  %v275_v36 = vmul.f32 0.5, %v231_v24  ;;  %v282_v37 = vadd.f32 1e-05, %v274_v27 }
  0x36   :  { %v252_v38 = vadd.f32 %v251_v29, %v250_v21  ;;  %v264_v39 = vadd.f32 %v263_v30, %v262_v22  ;;  %v271_v40 = vadd.f32 %v270_v31, %v269_v23  ;;  %v276_v41 = vmul.f32 0.5, %v238_v28 }
  0x37   :  { %v259_v4 = vadd.f32 %v258_v34, %v257_v26  ;;  %v277_v42 = vmul.f32 0.5, %v245_v33  ;;  %v283_v43 = vadd.f32 1e-05, %v275_v36  ;;  %625 = vrsqrt.f32 %v282_v37 }
  0x38   :  { %v265_v44 = vrot.slane %v264_v39, 1  ;;  %v272_v45 = vrot.slane %v271_v40, 1  ;;  %v278_v5 = vmul.f32 0.5, %v252_v38  ;;  %v284_v46 = vadd.f32 1e-05, %v276_v41 }
  0x39   :  { %v279_v47 = vmul.f32 0.5, %v259_v4  ;;  %v285_v48 = vadd.f32 1e-05, %v277_v42  ;;  %627 = vrsqrt.f32 %v283_v43  ;;  %v720_v49 = vsub.s32 0, %v670_v6 }
  0x3a   :  { %v266_v50 = vadd.f32 %v265_v44, %v264_v39  ;;  %v273_v51 = vadd.f32 %v272_v45, %v271_v40  ;;  %v286_v52 = vadd.f32 1e-05, %v278_v5  ;;  %629 = vrsqrt.f32 %v284_v46 }
  0x3b   :  { %v287_v53 = vadd.f32 1e-05, %v279_v47  ;;  %631 = vrsqrt.f32 %v285_v48  ;;  %v306_v55 = vsub.s32 1, %v670_v6  ;;  %v310_v58 = vsub.s32 2, %v670_v6 }
  0x3c   :  { %v280_v56 = vmul.f32 0.5, %v266_v50  ;;  %v281_v57 = vmul.f32 0.5, %v273_v51  ;;  %633 = vrsqrt.f32 %v286_v52  ;;  %v303_v61 = vrot.slane %v298_v54, %v720_v49 }
  0x3d   :  { %635 = vrsqrt.f32 %v287_v53  ;;  %v314_v62 = vsub.s32 3, %v670_v6  ;;  %v307_v0 = vrot.slane %v298_v54, %v306_v55  ;;  %v318_v1 = vsub.s32 4, %v670_v6 }
  0x3e   :  { %v288_v59 = vadd.f32 1e-05, %v280_v56  ;;  %v289_v60 = vadd.f32 1e-05, %v281_v57  ;;  %v311_v2 = vrot.slane %v298_v54, %v310_v58  ;;  %v322_v3 = vsub.s32 5, %v670_v6 }
  0x3f   :  { %v326_v7 = vsub.s32 6, %v670_v6  ;;  %v330_v9 = vsub.s32 7, %v670_v6  ;;  %v431_v11 = vrot.slane %v426_v63, %v720_v49  ;;  %v435_v12 = vrot.slane %v426_v63, %v306_v55 }
  0x40   :  { %637 = vrsqrt.f32 %v288_v59  ;;  %v315_v13 = vrot.slane %v298_v54, %v314_v62  ;;  %v439_v15 = vrot.slane %v426_v63, %v310_v58  ;;  %v443_v16 = vrot.slane %v426_v63, %v314_v62 }
  0x41   :  { %v626_v8 = vpop.eup %625  ;;  %639 = vrsqrt.f32 %v289_v60  ;;  %v319_v18 = vrot.slane %v298_v54, %v318_v1  ;;  %v323_v20 = vrot.slane %v298_v54, %v322_v3  ;;  %v327_v24 = vrot.slane %v298_v54, %v326_v7 }
  0x42   :  { %v340_v14 = vmul.f32 %v626_v8, %v303_v61  ;;  %v331_v25 = vrot.slane %v298_v54, %v330_v9  ;;  %v460_v27 = vcombine.low %v431_v11, %v435_v12  ;;  %v447_v31 = vrot.slane %v426_v63, %v318_v1 }
  0x43   :  { %v628_v17 = vpop.eup %627  ;;  %v461_v33 = vcombine.low %v439_v15, %v443_v16  ;;  %v451_v38 = vrot.slane %v426_v63, %v322_v3  ;;  %v455_v39 = vrot.slane %v426_v63, %v326_v7  ;;  %v459_v42 = vrot.slane %v426_v63, %v330_v9 }
  0x44   :  { %v630_v19 = vpop.eup %629  ;;  %v341_v21 = vmul.f32 %v628_v17, %v307_v0  ;;  %v351_v22 = vrot.slane %v340_v14, %v720_v49  ;;  %v468_v44 = vrot.slane %v460_v27, %v677_v10  ;;  %v642_v7 = vmov 1966171168  }
  0x45   :  { %v632_v23 = vpop.eup %631  ;;  %v342_v26 = vmul.f32 %v630_v19, %v311_v2  ;;  %v475_v48 = vrot.slane %v461_v33, %v677_v10  ;;  %v477_v52 = vcombine.low %v447_v31, %v451_v38  ;;  %v478_v56 = vcombine.low %v455_v39, %v459_v42 }
  0x46   :  { %v634_v28 = vpop.eup %633  ;;  %v343_v29 = vmul.f32 %v632_v23, %v315_v13  ;;  %v355_v30 = vrot.slane %v341_v21, %v720_v49  ;;  %v569_v8 = vunpack.c.l.s4 %v642_v7 }
  0x47   :  { %v636_v34 = vpop.eup %635  ;;  %v344_v36 = vmul.f32 %v634_v28, %v319_v18  ;;  %v359_v37 = vrot.slane %v342_v26, %v720_v49  ;;  %v476_v60 = vcombine.low %v468_v44, %v475_v48  ;;  %v485_v61 = vrot.slane %v477_v52, %v677_v10 }
  0x48   :  { %v345_v40 = vmul.f32 %v636_v34, %v323_v20  ;;  %v363_v41 = vrot.slane %v343_v29, %v720_v49  ;;  %v388_v4 = vcombine.low %v351_v22, %v355_v30  ;;  %v492_v1 = vrot.slane %v478_v56, %v677_v10 }
  0x49   :  { %v367_v43 = vrot.slane %v344_v36, %v720_v49  ;;  %v570_v16 = vunpack.c.0.s8 %v569_v8 }
  0x4a   :  { %v638_v45 = vpop.eup %637  ;;  %v371_v5 = vrot.slane %v345_v40, %v720_v49  ;;  %v389_v46 = vcombine.low %v359_v37, %v363_v41  ;;  %v396_v47 = vrot.slane %v388_v4, %v677_v10  ;;  %v493_v11 = vcombine.low %v485_v61, %v492_v1 }
  0x4b   :  { %v640_v50 = vpop.eup %639  ;;  %v346_v51 = vmul.f32 %v638_v45, %v327_v24  ;;  %v573_v22 = vsub.s32 %v570_v16, %v670_v6 }
  0x4c   :  { %v347_v53 = vmul.f32 %v640_v50, %v331_v25  ;;  %v403_v54 = vrot.slane %v389_v46, %v677_v10  ;;  %v405_v55 = vcombine.low %v367_v43, %v371_v5 }
  0x4d   :  { %v375_v57 = vrot.slane %v346_v51, %v720_v49 }
  0x4e   :  { %v379_v58 = vrot.slane %v347_v53, %v720_v49  ;;  %v404_v59 = vcombine.low %v396_v47, %v403_v54  ;;  %v413_v63 = vrot.slane %v405_v55, %v677_v10 }
  0x50   :  { %v406_v62 = vcombine.low %v375_v57, %v379_v58  ;;  %v424_v0 = vmul.f32 %v404_v59, %v698_v32 }
  0x52   :  { %v420_v2 = vrot.slane %v406_v62, %v677_v10  ;;  %v496_v3 = vadd.f32 %v476_v60, %v424_v0 }
  0x54   :  { %v421_v9 = vcombine.low %v413_v63, %v420_v2  ;;  %vm498_vm1 = vcmp.gt.f32.partialorder %v496_v3, 0.0  ;;  %v500_v49 = vmul.f32 0.1, %v496_v3 }
  0x56   :  { %v425_v12 = vmul.f32 %v421_v9, %v703_v35  ;;  %v502_v13 = vsel %vm498_vm1, %v496_v3, %v500_v49 }
  0x57   :  { %v506_v14 = vcombine.high %v502_v13, %v502_v13  ;;  %v513_v15 = vrot.slane %v502_v13, %v677_v10 }
  0x58   :  { %v497_v17 = vadd.f32 %v493_v11, %v425_v12 }
  0x59   :  { %v520_v32 = vrot.slane %v506_v14, %v677_v10  ;;  %v521_v18 = vcombine.high %v513_v15, %v513_v15 }
  0x5a   :  { %vm499_vm2 = vcmp.gt.f32.partialorder %v497_v17, 0.0  ;;  %v501_v19 = vmul.f32 0.1, %v497_v17 }
  0x5b   :  { %v522_v20 = vcombine.high %v520_v32, %v520_v32  ;;  %v619_v21 = vpack.c.bf16 %v521_v18, %v513_v15 }
  0x5c   :  { %v503_v23 = vsel %vm499_vm2, %v497_v17, %v501_v19 }
  0x5d   :  { %v523_v24 = vcombine.high %v503_v23, %v503_v23  ;;  %v530_v25 = vrot.slane %v503_v23, %v677_v10  ;;  %v620_v35 = vpack.c.bf16 %v522_v20, %v520_v32  ;;  %v574_v28 = vrot.slane %v619_v21, %v573_v22 }
  0x5f   :  { %v537_v26 = vrot.slane %v523_v24, %v677_v10  ;;  %v538_v27 = vcombine.high %v530_v25, %v530_v25  ;;  %v581_v29 = vrot.slane %v620_v35, %v573_v22 }
  0x61   :  { %v539_v30 = vcombine.high %v537_v26, %v537_v26  ;;  %v621_v31 = vpack.c.bf16 %v538_v27, %v530_v25  ;;  %v596_v36 = vcombine.low %v574_v28, %v581_v29 }
  0x63   :  { %v622_v33 = vpack.c.bf16 %v539_v30, %v537_v26  ;;  %v588_v34 = vrot.slane %v621_v31, %v573_v22  ;;  %v604_v39 = vrot.slane %v596_v36, %v573_v22 }
  0x65   :  { %v595_v37 = vrot.slane %v622_v33, %v573_v22 }
  0x67   :  { %v597_v38 = vcombine.low %v588_v34, %v595_v37 }
  0x69   :  { %v611_v40 = vrot.slane %v597_v38, %v573_v22 }
  0x6b   :  { %v612_v6 = vcombine.low %v604_v39, %v611_v40 }
  0x6d   :  { %614 = vst [vmem:[%s766_s3] sm:$0xff] %v612_v6 }

// kernel: infogan_forward.25
= control target key start
LH: loop header
LB: loop body
LE: loop exit
PB: predicated region body
PF: predicated region fallthrough
CT: control target
= control target key end

     0   :  { %s3272_s9 = smov 0   ;;  %s3274_s10 = smov 0   ;;  %s4090_s0 = inlined_call_operand.vmem [shape: bf16[8,6272], index: 0, kind: input, shape index: {}]   ;;  %s4091_s1 = inlined_call_operand.vmem [shape: bf16[6272,1024], index: 1, kind: input, shape index: {}]   ;;  %s4092_s2 = inlined_call_operand.vmem [shape: bf16[8,1024], index: 2, kind: output, shape index: {}]  }
   0x1   :  { %s3276_s11 = smov 0   ;;  %s3278_s12 = smov 0  }
   0x2   :  { %s3280_s13 = smov 0   ;;  %s3282_s14 = smov 0  }
   0x3   :  { %s3284_s15 = smov 0  }
   0x4 LB: > { %s24_s16 = sadd.s32 1, %s3245_s13  ;;  %s27_s17 = sadd.s32 1, %s3249_s14  ;;  %s3253_s15 = sphi %s3284_s15, %s12_s15   ;;  %s3249_s14 = sphi %s3282_s14, %s4098_s14   ;;  %s3245_s13 = sphi %s3280_s13, %s4097_s13   ;;  %s3241_s12 = sphi %s3278_s12, %s4096_s12   ;;  %s3237_s11 = sphi %s3276_s11, %s4095_s11   ;;  %s3233_s10 = sphi %s3274_s10, %s4094_s10   ;;  %s3229_s9 = sphi %s3272_s9, %s4093_s9  }
   0x5   : > { %p25_p0 = scmp.ge.s32.totalorder %s24_s16, 7  ;;  %p75_p1 = scmp.ne.s32.totalorder %s3233_s10, %s3229_s9 }
   0x6   : > { %p76_p2 = scmp.eq.s32.totalorder %s3253_s15, 0  ;;  %s68_s21 = sadd.s32 1, %s3233_s10 }
   0x7   : > { %s4100_s16 = smov (%p25_p0, %s24_s16), 0  ;;  %s4102_s17 = smov (!%p25_p0, %s27_s17), %s3249_s14 }
   0x8   : > { %p77_p3 = por %p76_p2, %p75_p1  ;;  %p29_p4 = scmp.ge.s32.totalorder %s4102_s17, 2 }
   0x9   : > { %s63_s18 = ssub.s32 %s3245_s13, %s4100_s16  ;;  %p2548_p6 = scmp.ge.s32.totalorder %s3253_s15, 14 }
   0xa   : > { %s4104_s17 = smov (%p29_p4, %s4102_s17), 0 }
   0xb   : > { %s64_s19 = ssub.s32 %s3249_s14, %s4104_s17  ;;  %129 = sbr.rel (%p2548_p6) target bundleno = 138 (0x8a), region = 16 }
   0xc   : > { %s65_s20 = sor.u32 %s64_s19, %s63_s18 }
   0xd   : > { %p66_p5 = scmp.eq.s32.totalorder %s65_s20, 0 }
   0xf   : > { %s3323_s22 = scalar_select %p66_p5, %s3233_s10, %s68_s21  }
  0x12   : > { %145 = sbr.rel (!%p77_p3) target bundleno = 138 (0x8a), region = 24  ;;  %s147_s23 = sand.u32 (%p77_p3), 1, %s3233_s10  }
  0x13   : > { %s2796_s24 = smul.u32 (%p77_p3), 1792, %s147_s23  ;;  %s2549_s25 = sshll.u32 (%p77_p3), %s3249_s14, 2 }
  0x14   : > { %s2793_s26 = smul.u32 (%p77_p3), 896, %s3245_s13 }
  0x15   : > { %s3337_s4 = scalar_lea.vmem (%p77_p3), [#allocation3], %s2796_s24 }
  0x16   : > { %s153_s27 = sadd.s32 (%p77_p3), %s2793_s26, %s2549_s25 }
  0x17   : > { %s2551_s28 = sshll.u32 (%p77_p3), %s153_s27, 2 }
  0x18   : > { %s3332_s3 = scalar_lea.vmem (%p77_p3), %s4091_s1, %s2551_s28 }
  0x19   : > { %v168_v0 = vld [vmem:[%s3332_s3] sm:$0xff]  ;;  %v170_v1 = vld [vmem:[%s3332_s3 + $0x8] sm:$0xff] }
  0x1a   : > { %v172_v2 = vld [vmem:[%s3332_s3 + $0x20] sm:$0xff]  ;;  %169 = vst [vmem:[%s3337_s4] sm:$0xff] %v168_v0  ;;  %171 = vst [vmem:[%s3337_s4 + $0x8] sm:$0xff] %v170_v1  ;;  %v174_v3 = vld [vmem:[%s3332_s3 + $0x28] sm:$0xff] }
  0x1b   : > { %173 = vst [vmem:[%s3337_s4 + $0x10] sm:$0xff] %v172_v2  ;;  %v176_v4 = vld [vmem:[%s3332_s3 + $0x40] sm:$0xff]  ;;  %v178_v5 = vld [vmem:[%s3332_s3 + $0x48] sm:$0xff]  ;;  %175 = vst [vmem:[%s3337_s4 + $0x18] sm:$0xff] %v174_v3 }
  0x1c   : > { %177 = vst [vmem:[%s3337_s4 + $0x20] sm:$0xff] %v176_v4  ;;  %179 = vst [vmem:[%s3337_s4 + $0x28] sm:$0xff] %v178_v5  ;;  %v180_v6 = vld [vmem:[%s3332_s3 + $0x60] sm:$0xff]  ;;  %v182_v7 = vld [vmem:[%s3332_s3 + $0x68] sm:$0xff] }
  0x1d   : > { %v184_v8 = vld [vmem:[%s3332_s3 + $0x80] sm:$0xff]  ;;  %181 = vst [vmem:[%s3337_s4 + $0x30] sm:$0xff] %v180_v6  ;;  %183 = vst [vmem:[%s3337_s4 + $0x38] sm:$0xff] %v182_v7  ;;  %v186_v9 = vld [vmem:[%s3332_s3 + $0x88] sm:$0xff] }
  0x1e   : > { %185 = vst [vmem:[%s3337_s4 + $0x40] sm:$0xff] %v184_v8  ;;  %v188_v10 = vld [vmem:[%s3332_s3 + $0xa0] sm:$0xff]  ;;  %v190_v11 = vld [vmem:[%s3332_s3 + $0xa8] sm:$0xff]  ;;  %187 = vst [vmem:[%s3337_s4 + $0x48] sm:$0xff] %v186_v9 }
  0x1f   : > { %189 = vst [vmem:[%s3337_s4 + $0x50] sm:$0xff] %v188_v10  ;;  %191 = vst [vmem:[%s3337_s4 + $0x58] sm:$0xff] %v190_v11  ;;  %v192_v12 = vld [vmem:[%s3332_s3 + $0xc0] sm:$0xff]  ;;  %v194_v13 = vld [vmem:[%s3332_s3 + $0xc8] sm:$0xff] }
  0x20   : > { %v196_v14 = vld [vmem:[%s3332_s3 + $0xe0] sm:$0xff]  ;;  %193 = vst [vmem:[%s3337_s4 + $0x60] sm:$0xff] %v192_v12  ;;  %195 = vst [vmem:[%s3337_s4 + $0x68] sm:$0xff] %v194_v13  ;;  %v198_v15 = vld [vmem:[%s3332_s3 + $0xe8] sm:$0xff] }
  0x21   : > { %197 = vst [vmem:[%s3337_s4 + $0x70] sm:$0xff] %v196_v14  ;;  %v200_v16 = vld [vmem:[%s3332_s3 + $0x100] sm:$0xff]  ;;  %v202_v17 = vld [vmem:[%s3332_s3 + $0x108] sm:$0xff]  ;;  %199 = vst [vmem:[%s3337_s4 + $0x78] sm:$0xff] %v198_v15 }
  0x22   : > { %201 = vst [vmem:[%s3337_s4 + $0x80] sm:$0xff] %v200_v16  ;;  %203 = vst [vmem:[%s3337_s4 + $0x88] sm:$0xff] %v202_v17  ;;  %v204_v18 = vld [vmem:[%s3332_s3 + $0x120] sm:$0xff]  ;;  %v206_v19 = vld [vmem:[%s3332_s3 + $0x128] sm:$0xff] }
  0x23   : > { %v208_v20 = vld [vmem:[%s3332_s3 + $0x140] sm:$0xff]  ;;  %205 = vst [vmem:[%s3337_s4 + $0x90] sm:$0xff] %v204_v18  ;;  %207 = vst [vmem:[%s3337_s4 + $0x98] sm:$0xff] %v206_v19  ;;  %v210_v21 = vld [vmem:[%s3332_s3 + $0x148] sm:$0xff] }
  0x24   : > { %209 = vst [vmem:[%s3337_s4 + $0xa0] sm:$0xff] %v208_v20  ;;  %v212_v22 = vld [vmem:[%s3332_s3 + $0x160] sm:$0xff]  ;;  %v214_v23 = vld [vmem:[%s3332_s3 + $0x168] sm:$0xff]  ;;  %211 = vst [vmem:[%s3337_s4 + $0xa8] sm:$0xff] %v210_v21 }
  0x25   : > { %213 = vst [vmem:[%s3337_s4 + $0xb0] sm:$0xff] %v212_v22  ;;  %215 = vst [vmem:[%s3337_s4 + $0xb8] sm:$0xff] %v214_v23  ;;  %v216_v24 = vld [vmem:[%s3332_s3 + $0x180] sm:$0xff]  ;;  %v218_v25 = vld [vmem:[%s3332_s3 + $0x188] sm:$0xff] }
  0x26   : > { %v220_v26 = vld [vmem:[%s3332_s3 + $0x1a0] sm:$0xff]  ;;  %217 = vst [vmem:[%s3337_s4 + $0xc0] sm:$0xff] %v216_v24  ;;  %219 = vst [vmem:[%s3337_s4 + $0xc8] sm:$0xff] %v218_v25  ;;  %v222_v27 = vld [vmem:[%s3332_s3 + $0x1a8] sm:$0xff] }
  0x27   : > { %221 = vst [vmem:[%s3337_s4 + $0xd0] sm:$0xff] %v220_v26  ;;  %v224_v28 = vld [vmem:[%s3332_s3 + $0x1c0] sm:$0xff]  ;;  %v226_v29 = vld [vmem:[%s3332_s3 + $0x1c8] sm:$0xff]  ;;  %223 = vst [vmem:[%s3337_s4 + $0xd8] sm:$0xff] %v222_v27 }
  0x28   : > { %225 = vst [vmem:[%s3337_s4 + $0xe0] sm:$0xff] %v224_v28  ;;  %227 = vst [vmem:[%s3337_s4 + $0xe8] sm:$0xff] %v226_v29  ;;  %v228_v30 = vld [vmem:[%s3332_s3 + $0x1e0] sm:$0xff]  ;;  %v230_v31 = vld [vmem:[%s3332_s3 + $0x1e8] sm:$0xff] }
  0x29   : > { %v232_v32 = vld [vmem:[%s3332_s3 + $0x200] sm:$0xff]  ;;  %229 = vst [vmem:[%s3337_s4 + $0xf0] sm:$0xff] %v228_v30  ;;  %231 = vst [vmem:[%s3337_s4 + $0xf8] sm:$0xff] %v230_v31  ;;  %v234_v33 = vld [vmem:[%s3332_s3 + $0x208] sm:$0xff] }
  0x2a   : > { %233 = vst [vmem:[%s3337_s4 + $0x100] sm:$0xff] %v232_v32  ;;  %v236_v34 = vld [vmem:[%s3332_s3 + $0x220] sm:$0xff]  ;;  %v238_v35 = vld [vmem:[%s3332_s3 + $0x228] sm:$0xff]  ;;  %235 = vst [vmem:[%s3337_s4 + $0x108] sm:$0xff] %v234_v33 }
  0x2b   : > { %237 = vst [vmem:[%s3337_s4 + $0x110] sm:$0xff] %v236_v34  ;;  %239 = vst [vmem:[%s3337_s4 + $0x118] sm:$0xff] %v238_v35  ;;  %v240_v36 = vld [vmem:[%s3332_s3 + $0x240] sm:$0xff]  ;;  %v242_v37 = vld [vmem:[%s3332_s3 + $0x248] sm:$0xff] }
  0x2c   : > { %v244_v38 = vld [vmem:[%s3332_s3 + $0x260] sm:$0xff]  ;;  %241 = vst [vmem:[%s3337_s4 + $0x120] sm:$0xff] %v240_v36  ;;  %243 = vst [vmem:[%s3337_s4 + $0x128] sm:$0xff] %v242_v37  ;;  %v246_v39 = vld [vmem:[%s3332_s3 + $0x268] sm:$0xff] }
  0x2d   : > { %245 = vst [vmem:[%s3337_s4 + $0x130] sm:$0xff] %v244_v38  ;;  %v248_v40 = vld [vmem:[%s3332_s3 + $0x280] sm:$0xff]  ;;  %v250_v41 = vld [vmem:[%s3332_s3 + $0x288] sm:$0xff]  ;;  %247 = vst [vmem:[%s3337_s4 + $0x138] sm:$0xff] %v246_v39 }
  0x2e   : > { %249 = vst [vmem:[%s3337_s4 + $0x140] sm:$0xff] %v248_v40  ;;  %251 = vst [vmem:[%s3337_s4 + $0x148] sm:$0xff] %v250_v41  ;;  %v252_v42 = vld [vmem:[%s3332_s3 + $0x2a0] sm:$0xff]  ;;  %v254_v43 = vld [vmem:[%s3332_s3 + $0x2a8] sm:$0xff] }
  0x2f   : > { %v256_v44 = vld [vmem:[%s3332_s3 + $0x2c0] sm:$0xff]  ;;  %253 = vst [vmem:[%s3337_s4 + $0x150] sm:$0xff] %v252_v42  ;;  %255 = vst [vmem:[%s3337_s4 + $0x158] sm:$0xff] %v254_v43  ;;  %v258_v45 = vld [vmem:[%s3332_s3 + $0x2c8] sm:$0xff] }
  0x30   : > { %257 = vst [vmem:[%s3337_s4 + $0x160] sm:$0xff] %v256_v44  ;;  %v260_v46 = vld [vmem:[%s3332_s3 + $0x2e0] sm:$0xff]  ;;  %v262_v47 = vld [vmem:[%s3332_s3 + $0x2e8] sm:$0xff]  ;;  %259 = vst [vmem:[%s3337_s4 + $0x168] sm:$0xff] %v258_v45 }
  0x31   : > { %261 = vst [vmem:[%s3337_s4 + $0x170] sm:$0xff] %v260_v46  ;;  %263 = vst [vmem:[%s3337_s4 + $0x178] sm:$0xff] %v262_v47  ;;  %v264_v48 = vld [vmem:[%s3332_s3 + $0x300] sm:$0xff]  ;;  %v266_v49 = vld [vmem:[%s3332_s3 + $0x308] sm:$0xff] }
  0x32   : > { %v268_v50 = vld [vmem:[%s3332_s3 + $0x320] sm:$0xff]  ;;  %265 = vst [vmem:[%s3337_s4 + $0x180] sm:$0xff] %v264_v48  ;;  %267 = vst [vmem:[%s3337_s4 + $0x188] sm:$0xff] %v266_v49  ;;  %v270_v51 = vld [vmem:[%s3332_s3 + $0x328] sm:$0xff] }
  0x33   : > { %269 = vst [vmem:[%s3337_s4 + $0x190] sm:$0xff] %v268_v50  ;;  %v272_v52 = vld [vmem:[%s3332_s3 + $0x340] sm:$0xff]  ;;  %v274_v53 = vld [vmem:[%s3332_s3 + $0x348] sm:$0xff]  ;;  %271 = vst [vmem:[%s3337_s4 + $0x198] sm:$0xff] %v270_v51 }
  0x34   : > { %273 = vst [vmem:[%s3337_s4 + $0x1a0] sm:$0xff] %v272_v52  ;;  %275 = vst [vmem:[%s3337_s4 + $0x1a8] sm:$0xff] %v274_v53  ;;  %v276_v54 = vld [vmem:[%s3332_s3 + $0x360] sm:$0xff]  ;;  %v278_v55 = vld [vmem:[%s3332_s3 + $0x368] sm:$0xff] }
  0x35   : > { %v280_v56 = vld [vmem:[%s3332_s3 + $0x380] sm:$0xff]  ;;  %277 = vst [vmem:[%s3337_s4 + $0x1b0] sm:$0xff] %v276_v54  ;;  %279 = vst [vmem:[%s3337_s4 + $0x1b8] sm:$0xff] %v278_v55  ;;  %v282_v57 = vld [vmem:[%s3332_s3 + $0x388] sm:$0xff] }
  0x36   : > { %281 = vst [vmem:[%s3337_s4 + $0x1c0] sm:$0xff] %v280_v56  ;;  %v284_v58 = vld [vmem:[%s3332_s3 + $0x3a0] sm:$0xff]  ;;  %v286_v59 = vld [vmem:[%s3332_s3 + $0x3a8] sm:$0xff]  ;;  %283 = vst [vmem:[%s3337_s4 + $0x1c8] sm:$0xff] %v282_v57 }
  0x37   : > { %285 = vst [vmem:[%s3337_s4 + $0x1d0] sm:$0xff] %v284_v58  ;;  %287 = vst [vmem:[%s3337_s4 + $0x1d8] sm:$0xff] %v286_v59  ;;  %v288_v60 = vld [vmem:[%s3332_s3 + $0x3c0] sm:$0xff]  ;;  %v290_v61 = vld [vmem:[%s3332_s3 + $0x3c8] sm:$0xff] }
  0x38   : > { %v292_v62 = vld [vmem:[%s3332_s3 + $0x3e0] sm:$0xff]  ;;  %289 = vst [vmem:[%s3337_s4 + $0x1e0] sm:$0xff] %v288_v60  ;;  %291 = vst [vmem:[%s3337_s4 + $0x1e8] sm:$0xff] %v290_v61  ;;  %v294_v63 = vld [vmem:[%s3332_s3 + $0x3e8] sm:$0xff] }
  0x39   : > { %293 = vst [vmem:[%s3337_s4 + $0x1f0] sm:$0xff] %v292_v62  ;;  %v296_v0 = vld [vmem:[%s3332_s3 + $0x400] sm:$0xff]  ;;  %v298_v1 = vld [vmem:[%s3332_s3 + $0x408] sm:$0xff]  ;;  %295 = vst [vmem:[%s3337_s4 + $0x1f8] sm:$0xff] %v294_v63 }
  0x3a   : > { %297 = vst [vmem:[%s3337_s4 + $0x200] sm:$0xff] %v296_v0  ;;  %299 = vst [vmem:[%s3337_s4 + $0x208] sm:$0xff] %v298_v1  ;;  %v300_v2 = vld [vmem:[%s3332_s3 + $0x420] sm:$0xff]  ;;  %v302_v3 = vld [vmem:[%s3332_s3 + $0x428] sm:$0xff] }
  0x3b   : > { %v304_v4 = vld [vmem:[%s3332_s3 + $0x440] sm:$0xff]  ;;  %301 = vst [vmem:[%s3337_s4 + $0x210] sm:$0xff] %v300_v2  ;;  %303 = vst [vmem:[%s3337_s4 + $0x218] sm:$0xff] %v302_v3  ;;  %v306_v5 = vld [vmem:[%s3332_s3 + $0x448] sm:$0xff] }
  0x3c   : > { %305 = vst [vmem:[%s3337_s4 + $0x220] sm:$0xff] %v304_v4  ;;  %v308_v6 = vld [vmem:[%s3332_s3 + $0x460] sm:$0xff]  ;;  %v310_v7 = vld [vmem:[%s3332_s3 + $0x468] sm:$0xff]  ;;  %307 = vst [vmem:[%s3337_s4 + $0x228] sm:$0xff] %v306_v5 }
  0x3d   : > { %309 = vst [vmem:[%s3337_s4 + $0x230] sm:$0xff] %v308_v6  ;;  %311 = vst [vmem:[%s3337_s4 + $0x238] sm:$0xff] %v310_v7  ;;  %v312_v8 = vld [vmem:[%s3332_s3 + $0x480] sm:$0xff]  ;;  %v314_v9 = vld [vmem:[%s3332_s3 + $0x488] sm:$0xff] }
  0x3e   : > { %v316_v10 = vld [vmem:[%s3332_s3 + $0x4a0] sm:$0xff]  ;;  %313 = vst [vmem:[%s3337_s4 + $0x240] sm:$0xff] %v312_v8  ;;  %315 = vst [vmem:[%s3337_s4 + $0x248] sm:$0xff] %v314_v9  ;;  %v318_v11 = vld [vmem:[%s3332_s3 + $0x4a8] sm:$0xff] }
  0x3f   : > { %317 = vst [vmem:[%s3337_s4 + $0x250] sm:$0xff] %v316_v10  ;;  %v320_v12 = vld [vmem:[%s3332_s3 + $0x4c0] sm:$0xff]  ;;  %v322_v13 = vld [vmem:[%s3332_s3 + $0x4c8] sm:$0xff]  ;;  %319 = vst [vmem:[%s3337_s4 + $0x258] sm:$0xff] %v318_v11 }
  0x40   : > { %321 = vst [vmem:[%s3337_s4 + $0x260] sm:$0xff] %v320_v12  ;;  %323 = vst [vmem:[%s3337_s4 + $0x268] sm:$0xff] %v322_v13  ;;  %v324_v14 = vld [vmem:[%s3332_s3 + $0x4e0] sm:$0xff]  ;;  %v326_v15 = vld [vmem:[%s3332_s3 + $0x4e8] sm:$0xff] }
  0x41   : > { %v328_v16 = vld [vmem:[%s3332_s3 + $0x500] sm:$0xff]  ;;  %325 = vst [vmem:[%s3337_s4 + $0x270] sm:$0xff] %v324_v14  ;;  %327 = vst [vmem:[%s3337_s4 + $0x278] sm:$0xff] %v326_v15  ;;  %v330_v17 = vld [vmem:[%s3332_s3 + $0x508] sm:$0xff] }
  0x42   : > { %329 = vst [vmem:[%s3337_s4 + $0x280] sm:$0xff] %v328_v16  ;;  %v332_v18 = vld [vmem:[%s3332_s3 + $0x520] sm:$0xff]  ;;  %v334_v19 = vld [vmem:[%s3332_s3 + $0x528] sm:$0xff]  ;;  %331 = vst [vmem:[%s3337_s4 + $0x288] sm:$0xff] %v330_v17 }
  0x43   : > { %333 = vst [vmem:[%s3337_s4 + $0x290] sm:$0xff] %v332_v18  ;;  %335 = vst [vmem:[%s3337_s4 + $0x298] sm:$0xff] %v334_v19  ;;  %v336_v20 = vld [vmem:[%s3332_s3 + $0x540] sm:$0xff]  ;;  %v338_v21 = vld [vmem:[%s3332_s3 + $0x548] sm:$0xff] }
  0x44   : > { %v340_v22 = vld [vmem:[%s3332_s3 + $0x560] sm:$0xff]  ;;  %337 = vst [vmem:[%s3337_s4 + $0x2a0] sm:$0xff] %v336_v20  ;;  %339 = vst [vmem:[%s3337_s4 + $0x2a8] sm:$0xff] %v338_v21  ;;  %v342_v23 = vld [vmem:[%s3332_s3 + $0x568] sm:$0xff] }
  0x45   : > { %341 = vst [vmem:[%s3337_s4 + $0x2b0] sm:$0xff] %v340_v22  ;;  %v344_v24 = vld [vmem:[%s3332_s3 + $0x580] sm:$0xff]  ;;  %v346_v25 = vld [vmem:[%s3332_s3 + $0x588] sm:$0xff]  ;;  %343 = vst [vmem:[%s3337_s4 + $0x2b8] sm:$0xff] %v342_v23 }
  0x46   : > { %345 = vst [vmem:[%s3337_s4 + $0x2c0] sm:$0xff] %v344_v24  ;;  %347 = vst [vmem:[%s3337_s4 + $0x2c8] sm:$0xff] %v346_v25  ;;  %v348_v26 = vld [vmem:[%s3332_s3 + $0x5a0] sm:$0xff]  ;;  %v350_v27 = vld [vmem:[%s3332_s3 + $0x5a8] sm:$0xff] }
  0x47   : > { %v352_v28 = vld [vmem:[%s3332_s3 + $0x5c0] sm:$0xff]  ;;  %349 = vst [vmem:[%s3337_s4 + $0x2d0] sm:$0xff] %v348_v26  ;;  %351 = vst [vmem:[%s3337_s4 + $0x2d8] sm:$0xff] %v350_v27  ;;  %v354_v29 = vld [vmem:[%s3332_s3 + $0x5c8] sm:$0xff] }
  0x48   : > { %353 = vst [vmem:[%s3337_s4 + $0x2e0] sm:$0xff] %v352_v28  ;;  %v356_v30 = vld [vmem:[%s3332_s3 + $0x5e0] sm:$0xff]  ;;  %v358_v31 = vld [vmem:[%s3332_s3 + $0x5e8] sm:$0xff]  ;;  %355 = vst [vmem:[%s3337_s4 + $0x2e8] sm:$0xff] %v354_v29 }
  0x49   : > { %357 = vst [vmem:[%s3337_s4 + $0x2f0] sm:$0xff] %v356_v30  ;;  %359 = vst [vmem:[%s3337_s4 + $0x2f8] sm:$0xff] %v358_v31  ;;  %v360_v32 = vld [vmem:[%s3332_s3 + $0x600] sm:$0xff]  ;;  %v362_v33 = vld [vmem:[%s3332_s3 + $0x608] sm:$0xff] }
  0x4a   : > { %v364_v34 = vld [vmem:[%s3332_s3 + $0x620] sm:$0xff]  ;;  %361 = vst [vmem:[%s3337_s4 + $0x300] sm:$0xff] %v360_v32  ;;  %363 = vst [vmem:[%s3337_s4 + $0x308] sm:$0xff] %v362_v33  ;;  %v366_v35 = vld [vmem:[%s3332_s3 + $0x628] sm:$0xff] }
  0x4b   : > { %365 = vst [vmem:[%s3337_s4 + $0x310] sm:$0xff] %v364_v34  ;;  %v368_v36 = vld [vmem:[%s3332_s3 + $0x640] sm:$0xff]  ;;  %v370_v37 = vld [vmem:[%s3332_s3 + $0x648] sm:$0xff]  ;;  %367 = vst [vmem:[%s3337_s4 + $0x318] sm:$0xff] %v366_v35 }
  0x4c   : > { %369 = vst [vmem:[%s3337_s4 + $0x320] sm:$0xff] %v368_v36  ;;  %371 = vst [vmem:[%s3337_s4 + $0x328] sm:$0xff] %v370_v37  ;;  %v372_v38 = vld [vmem:[%s3332_s3 + $0x660] sm:$0xff]  ;;  %v374_v39 = vld [vmem:[%s3332_s3 + $0x668] sm:$0xff] }
  0x4d   : > { %v376_v40 = vld [vmem:[%s3332_s3 + $0x680] sm:$0xff]  ;;  %373 = vst [vmem:[%s3337_s4 + $0x330] sm:$0xff] %v372_v38  ;;  %375 = vst [vmem:[%s3337_s4 + $0x338] sm:$0xff] %v374_v39  ;;  %v378_v41 = vld [vmem:[%s3332_s3 + $0x688] sm:$0xff] }
  0x4e   : > { %377 = vst [vmem:[%s3337_s4 + $0x340] sm:$0xff] %v376_v40  ;;  %v380_v42 = vld [vmem:[%s3332_s3 + $0x6a0] sm:$0xff]  ;;  %v382_v43 = vld [vmem:[%s3332_s3 + $0x6a8] sm:$0xff]  ;;  %379 = vst [vmem:[%s3337_s4 + $0x348] sm:$0xff] %v378_v41 }
  0x4f   : > { %381 = vst [vmem:[%s3337_s4 + $0x350] sm:$0xff] %v380_v42  ;;  %383 = vst [vmem:[%s3337_s4 + $0x358] sm:$0xff] %v382_v43  ;;  %v384_v44 = vld [vmem:[%s3332_s3 + $0x6c0] sm:$0xff]  ;;  %v386_v45 = vld [vmem:[%s3332_s3 + $0x6c8] sm:$0xff] }
  0x50   : > { %v388_v46 = vld [vmem:[%s3332_s3 + $0x6e0] sm:$0xff]  ;;  %385 = vst [vmem:[%s3337_s4 + $0x360] sm:$0xff] %v384_v44  ;;  %387 = vst [vmem:[%s3337_s4 + $0x368] sm:$0xff] %v386_v45  ;;  %v390_v47 = vld [vmem:[%s3332_s3 + $0x6e8] sm:$0xff] }
  0x51   : > { %389 = vst [vmem:[%s3337_s4 + $0x370] sm:$0xff] %v388_v46  ;;  %v392_v48 = vld [vmem:[%s3332_s3 + $0x700] sm:$0xff]  ;;  %v394_v49 = vld [vmem:[%s3332_s3 + $0x708] sm:$0xff]  ;;  %391 = vst [vmem:[%s3337_s4 + $0x378] sm:$0xff] %v390_v47 }
  0x52   : > { %393 = vst [vmem:[%s3337_s4 + $0x380] sm:$0xff] %v392_v48  ;;  %395 = vst [vmem:[%s3337_s4 + $0x388] sm:$0xff] %v394_v49  ;;  %v396_v50 = vld [vmem:[%s3332_s3 + $0x720] sm:$0xff]  ;;  %v398_v51 = vld [vmem:[%s3332_s3 + $0x728] sm:$0xff] }
  0x53   : > { %v400_v52 = vld [vmem:[%s3332_s3 + $0x740] sm:$0xff]  ;;  %397 = vst [vmem:[%s3337_s4 + $0x390] sm:$0xff] %v396_v50  ;;  %399 = vst [vmem:[%s3337_s4 + $0x398] sm:$0xff] %v398_v51  ;;  %v402_v53 = vld [vmem:[%s3332_s3 + $0x748] sm:$0xff] }
  0x54   : > { %401 = vst [vmem:[%s3337_s4 + $0x3a0] sm:$0xff] %v400_v52  ;;  %v404_v54 = vld [vmem:[%s3332_s3 + $0x760] sm:$0xff]  ;;  %v406_v55 = vld [vmem:[%s3332_s3 + $0x768] sm:$0xff]  ;;  %403 = vst [vmem:[%s3337_s4 + $0x3a8] sm:$0xff] %v402_v53 }
  0x55   : > { %405 = vst [vmem:[%s3337_s4 + $0x3b0] sm:$0xff] %v404_v54  ;;  %407 = vst [vmem:[%s3337_s4 + $0x3b8] sm:$0xff] %v406_v55  ;;  %v408_v56 = vld [vmem:[%s3332_s3 + $0x780] sm:$0xff]  ;;  %v410_v57 = vld [vmem:[%s3332_s3 + $0x788] sm:$0xff] }
  0x56   : > { %v412_v58 = vld [vmem:[%s3332_s3 + $0x7a0] sm:$0xff]  ;;  %409 = vst [vmem:[%s3337_s4 + $0x3c0] sm:$0xff] %v408_v56  ;;  %411 = vst [vmem:[%s3337_s4 + $0x3c8] sm:$0xff] %v410_v57  ;;  %v414_v59 = vld [vmem:[%s3332_s3 + $0x7a8] sm:$0xff] }
  0x57   : > { %413 = vst [vmem:[%s3337_s4 + $0x3d0] sm:$0xff] %v412_v58  ;;  %v416_v60 = vld [vmem:[%s3332_s3 + $0x7c0] sm:$0xff]  ;;  %v418_v61 = vld [vmem:[%s3332_s3 + $0x7c8] sm:$0xff]  ;;  %415 = vst [vmem:[%s3337_s4 + $0x3d8] sm:$0xff] %v414_v59 }
  0x58   : > { %417 = vst [vmem:[%s3337_s4 + $0x3e0] sm:$0xff] %v416_v60  ;;  %419 = vst [vmem:[%s3337_s4 + $0x3e8] sm:$0xff] %v418_v61  ;;  %v420_v62 = vld [vmem:[%s3332_s3 + $0x7e0] sm:$0xff]  ;;  %v422_v63 = vld [vmem:[%s3332_s3 + $0x7e8] sm:$0xff] }
  0x59   : > { %v424_v0 = vld [vmem:[%s3332_s3 + $0x800] sm:$0xff]  ;;  %421 = vst [vmem:[%s3337_s4 + $0x3f0] sm:$0xff] %v420_v62  ;;  %423 = vst [vmem:[%s3337_s4 + $0x3f8] sm:$0xff] %v422_v63  ;;  %v426_v1 = vld [vmem:[%s3332_s3 + $0x808] sm:$0xff] }
  0x5a   : > { %425 = vst [vmem:[%s3337_s4 + $0x400] sm:$0xff] %v424_v0  ;;  %v428_v2 = vld [vmem:[%s3332_s3 + $0x820] sm:$0xff]  ;;  %v430_v3 = vld [vmem:[%s3332_s3 + $0x828] sm:$0xff]  ;;  %427 = vst [vmem:[%s3337_s4 + $0x408] sm:$0xff] %v426_v1 }
  0x5b   : > { %429 = vst [vmem:[%s3337_s4 + $0x410] sm:$0xff] %v428_v2  ;;  %431 = vst [vmem:[%s3337_s4 + $0x418] sm:$0xff] %v430_v3  ;;  %v432_v4 = vld [vmem:[%s3332_s3 + $0x840] sm:$0xff]  ;;  %v434_v5 = vld [vmem:[%s3332_s3 + $0x848] sm:$0xff] }
  0x5c   : > { %v436_v6 = vld [vmem:[%s3332_s3 + $0x860] sm:$0xff]  ;;  %433 = vst [vmem:[%s3337_s4 + $0x420] sm:$0xff] %v432_v4  ;;  %435 = vst [vmem:[%s3337_s4 + $0x428] sm:$0xff] %v434_v5  ;;  %v438_v7 = vld [vmem:[%s3332_s3 + $0x868] sm:$0xff] }
  0x5d   : > { %437 = vst [vmem:[%s3337_s4 + $0x430] sm:$0xff] %v436_v6  ;;  %v440_v8 = vld [vmem:[%s3332_s3 + $0x880] sm:$0xff]  ;;  %v442_v9 = vld [vmem:[%s3332_s3 + $0x888] sm:$0xff]  ;;  %439 = vst [vmem:[%s3337_s4 + $0x438] sm:$0xff] %v438_v7 }
  0x5e   : > { %441 = vst [vmem:[%s3337_s4 + $0x440] sm:$0xff] %v440_v8  ;;  %443 = vst [vmem:[%s3337_s4 + $0x448] sm:$0xff] %v442_v9  ;;  %v444_v10 = vld [vmem:[%s3332_s3 + $0x8a0] sm:$0xff]  ;;  %v446_v11 = vld [vmem:[%s3332_s3 + $0x8a8] sm:$0xff] }
  0x5f   : > { %v448_v12 = vld [vmem:[%s3332_s3 + $0x8c0] sm:$0xff]  ;;  %445 = vst [vmem:[%s3337_s4 + $0x450] sm:$0xff] %v444_v10  ;;  %447 = vst [vmem:[%s3337_s4 + $0x458] sm:$0xff] %v446_v11  ;;  %v450_v13 = vld [vmem:[%s3332_s3 + $0x8c8] sm:$0xff] }
  0x60   : > { %449 = vst [vmem:[%s3337_s4 + $0x460] sm:$0xff] %v448_v12  ;;  %v452_v14 = vld [vmem:[%s3332_s3 + $0x8e0] sm:$0xff]  ;;  %v454_v15 = vld [vmem:[%s3332_s3 + $0x8e8] sm:$0xff]  ;;  %451 = vst [vmem:[%s3337_s4 + $0x468] sm:$0xff] %v450_v13 }
  0x61   : > { %453 = vst [vmem:[%s3337_s4 + $0x470] sm:$0xff] %v452_v14  ;;  %455 = vst [vmem:[%s3337_s4 + $0x478] sm:$0xff] %v454_v15  ;;  %v456_v16 = vld [vmem:[%s3332_s3 + $0x900] sm:$0xff]  ;;  %v458_v17 = vld [vmem:[%s3332_s3 + $0x908] sm:$0xff] }
  0x62   : > { %v460_v18 = vld [vmem:[%s3332_s3 + $0x920] sm:$0xff]  ;;  %457 = vst [vmem:[%s3337_s4 + $0x480] sm:$0xff] %v456_v16  ;;  %459 = vst [vmem:[%s3337_s4 + $0x488] sm:$0xff] %v458_v17  ;;  %v462_v19 = vld [vmem:[%s3332_s3 + $0x928] sm:$0xff] }
  0x63   : > { %461 = vst [vmem:[%s3337_s4 + $0x490] sm:$0xff] %v460_v18  ;;  %v464_v20 = vld [vmem:[%s3332_s3 + $0x940] sm:$0xff]  ;;  %v466_v21 = vld [vmem:[%s3332_s3 + $0x948] sm:$0xff]  ;;  %463 = vst [vmem:[%s3337_s4 + $0x498] sm:$0xff] %v462_v19 }
  0x64   : > { %465 = vst [vmem:[%s3337_s4 + $0x4a0] sm:$0xff] %v464_v20  ;;  %467 = vst [vmem:[%s3337_s4 + $0x4a8] sm:$0xff] %v466_v21  ;;  %v468_v22 = vld [vmem:[%s3332_s3 + $0x960] sm:$0xff]  ;;  %v470_v23 = vld [vmem:[%s3332_s3 + $0x968] sm:$0xff] }
  0x65   : > { %v472_v24 = vld [vmem:[%s3332_s3 + $0x980] sm:$0xff]  ;;  %469 = vst [vmem:[%s3337_s4 + $0x4b0] sm:$0xff] %v468_v22  ;;  %471 = vst [vmem:[%s3337_s4 + $0x4b8] sm:$0xff] %v470_v23  ;;  %v474_v25 = vld [vmem:[%s3332_s3 + $0x988] sm:$0xff] }
  0x66   : > { %473 = vst [vmem:[%s3337_s4 + $0x4c0] sm:$0xff] %v472_v24  ;;  %v476_v26 = vld [vmem:[%s3332_s3 + $0x9a0] sm:$0xff]  ;;  %v478_v27 = vld [vmem:[%s3332_s3 + $0x9a8] sm:$0xff]  ;;  %475 = vst [vmem:[%s3337_s4 + $0x4c8] sm:$0xff] %v474_v25 }
  0x67   : > { %477 = vst [vmem:[%s3337_s4 + $0x4d0] sm:$0xff] %v476_v26  ;;  %479 = vst [vmem:[%s3337_s4 + $0x4d8] sm:$0xff] %v478_v27  ;;  %v480_v28 = vld [vmem:[%s3332_s3 + $0x9c0] sm:$0xff]  ;;  %v482_v29 = vld [vmem:[%s3332_s3 + $0x9c8] sm:$0xff] }
  0x68   : > { %v484_v30 = vld [vmem:[%s3332_s3 + $0x9e0] sm:$0xff]  ;;  %481 = vst [vmem:[%s3337_s4 + $0x4e0] sm:$0xff] %v480_v28  ;;  %483 = vst [vmem:[%s3337_s4 + $0x4e8] sm:$0xff] %v482_v29  ;;  %v486_v31 = vld [vmem:[%s3332_s3 + $0x9e8] sm:$0xff] }
  0x69   : > { %485 = vst [vmem:[%s3337_s4 + $0x4f0] sm:$0xff] %v484_v30  ;;  %v488_v32 = vld [vmem:[%s3332_s3 + $0xa00] sm:$0xff]  ;;  %v490_v33 = vld [vmem:[%s3332_s3 + $0xa08] sm:$0xff]  ;;  %487 = vst [vmem:[%s3337_s4 + $0x4f8] sm:$0xff] %v486_v31 }
  0x6a   : > { %489 = vst [vmem:[%s3337_s4 + $0x500] sm:$0xff] %v488_v32  ;;  %491 = vst [vmem:[%s3337_s4 + $0x508] sm:$0xff] %v490_v33  ;;  %v492_v34 = vld [vmem:[%s3332_s3 + $0xa20] sm:$0xff]  ;;  %v494_v35 = vld [vmem:[%s3332_s3 + $0xa28] sm:$0xff] }
  0x6b   : > { %v496_v36 = vld [vmem:[%s3332_s3 + $0xa40] sm:$0xff]  ;;  %493 = vst [vmem:[%s3337_s4 + $0x510] sm:$0xff] %v492_v34  ;;  %495 = vst [vmem:[%s3337_s4 + $0x518] sm:$0xff] %v494_v35  ;;  %v498_v37 = vld [vmem:[%s3332_s3 + $0xa48] sm:$0xff] }
  0x6c   : > { %497 = vst [vmem:[%s3337_s4 + $0x520] sm:$0xff] %v496_v36  ;;  %v500_v38 = vld [vmem:[%s3332_s3 + $0xa60] sm:$0xff]  ;;  %v502_v39 = vld [vmem:[%s3332_s3 + $0xa68] sm:$0xff]  ;;  %499 = vst [vmem:[%s3337_s4 + $0x528] sm:$0xff] %v498_v37 }
  0x6d   : > { %501 = vst [vmem:[%s3337_s4 + $0x530] sm:$0xff] %v500_v38  ;;  %503 = vst [vmem:[%s3337_s4 + $0x538] sm:$0xff] %v502_v39  ;;  %v504_v40 = vld [vmem:[%s3332_s3 + $0xa80] sm:$0xff]  ;;  %v506_v41 = vld [vmem:[%s3332_s3 + $0xa88] sm:$0xff] }
  0x6e   : > { %v508_v42 = vld [vmem:[%s3332_s3 + $0xaa0] sm:$0xff]  ;;  %505 = vst [vmem:[%s3337_s4 + $0x540] sm:$0xff] %v504_v40  ;;  %507 = vst [vmem:[%s3337_s4 + $0x548] sm:$0xff] %v506_v41  ;;  %v510_v43 = vld [vmem:[%s3332_s3 + $0xaa8] sm:$0xff] }
  0x6f   : > { %509 = vst [vmem:[%s3337_s4 + $0x550] sm:$0xff] %v508_v42  ;;  %v512_v44 = vld [vmem:[%s3332_s3 + $0xac0] sm:$0xff]  ;;  %v514_v45 = vld [vmem:[%s3332_s3 + $0xac8] sm:$0xff]  ;;  %511 = vst [vmem:[%s3337_s4 + $0x558] sm:$0xff] %v510_v43 }
  0x70   : > { %513 = vst [vmem:[%s3337_s4 + $0x560] sm:$0xff] %v512_v44  ;;  %515 = vst [vmem:[%s3337_s4 + $0x568] sm:$0xff] %v514_v45  ;;  %v516_v46 = vld [vmem:[%s3332_s3 + $0xae0] sm:$0xff]  ;;  %v518_v47 = vld [vmem:[%s3332_s3 + $0xae8] sm:$0xff] }
  0x71   : > { %v520_v48 = vld [vmem:[%s3332_s3 + $0xb00] sm:$0xff]  ;;  %517 = vst [vmem:[%s3337_s4 + $0x570] sm:$0xff] %v516_v46  ;;  %519 = vst [vmem:[%s3337_s4 + $0x578] sm:$0xff] %v518_v47  ;;  %v522_v49 = vld [vmem:[%s3332_s3 + $0xb08] sm:$0xff] }
  0x72   : > { %521 = vst [vmem:[%s3337_s4 + $0x580] sm:$0xff] %v520_v48  ;;  %v524_v50 = vld [vmem:[%s3332_s3 + $0xb20] sm:$0xff]  ;;  %v526_v51 = vld [vmem:[%s3332_s3 + $0xb28] sm:$0xff]  ;;  %523 = vst [vmem:[%s3337_s4 + $0x588] sm:$0xff] %v522_v49 }
  0x73   : > { %525 = vst [vmem:[%s3337_s4 + $0x590] sm:$0xff] %v524_v50  ;;  %527 = vst [vmem:[%s3337_s4 + $0x598] sm:$0xff] %v526_v51  ;;  %v528_v52 = vld [vmem:[%s3332_s3 + $0xb40] sm:$0xff]  ;;  %v530_v53 = vld [vmem:[%s3332_s3 + $0xb48] sm:$0xff] }
  0x74   : > { %v532_v54 = vld [vmem:[%s3332_s3 + $0xb60] sm:$0xff]  ;;  %529 = vst [vmem:[%s3337_s4 + $0x5a0] sm:$0xff] %v528_v52  ;;  %531 = vst [vmem:[%s3337_s4 + $0x5a8] sm:$0xff] %v530_v53  ;;  %v534_v55 = vld [vmem:[%s3332_s3 + $0xb68] sm:$0xff] }
  0x75   : > { %533 = vst [vmem:[%s3337_s4 + $0x5b0] sm:$0xff] %v532_v54  ;;  %v536_v56 = vld [vmem:[%s3332_s3 + $0xb80] sm:$0xff]  ;;  %v538_v57 = vld [vmem:[%s3332_s3 + $0xb88] sm:$0xff]  ;;  %535 = vst [vmem:[%s3337_s4 + $0x5b8] sm:$0xff] %v534_v55 }
  0x76   : > { %537 = vst [vmem:[%s3337_s4 + $0x5c0] sm:$0xff] %v536_v56  ;;  %539 = vst [vmem:[%s3337_s4 + $0x5c8] sm:$0xff] %v538_v57  ;;  %v540_v58 = vld [vmem:[%s3332_s3 + $0xba0] sm:$0xff]  ;;  %v542_v59 = vld [vmem:[%s3332_s3 + $0xba8] sm:$0xff] }
  0x77   : > { %v544_v60 = vld [vmem:[%s3332_s3 + $0xbc0] sm:$0xff]  ;;  %541 = vst [vmem:[%s3337_s4 + $0x5d0] sm:$0xff] %v540_v58  ;;  %543 = vst [vmem:[%s3337_s4 + $0x5d8] sm:$0xff] %v542_v59  ;;  %v546_v61 = vld [vmem:[%s3332_s3 + $0xbc8] sm:$0xff] }
  0x78   : > { %545 = vst [vmem:[%s3337_s4 + $0x5e0] sm:$0xff] %v544_v60  ;;  %v548_v62 = vld [vmem:[%s3332_s3 + $0xbe0] sm:$0xff]  ;;  %v550_v63 = vld [vmem:[%s3332_s3 + $0xbe8] sm:$0xff]  ;;  %547 = vst [vmem:[%s3337_s4 + $0x5e8] sm:$0xff] %v546_v61 }
  0x79   : > { %549 = vst [vmem:[%s3337_s4 + $0x5f0] sm:$0xff] %v548_v62  ;;  %551 = vst [vmem:[%s3337_s4 + $0x5f8] sm:$0xff] %v550_v63  ;;  %v552_v0 = vld [vmem:[%s3332_s3 + $0xc00] sm:$0xff]  ;;  %v554_v1 = vld [vmem:[%s3332_s3 + $0xc08] sm:$0xff] }
  0x7a   : > { %v556_v2 = vld [vmem:[%s3332_s3 + $0xc20] sm:$0xff]  ;;  %553 = vst [vmem:[%s3337_s4 + $0x600] sm:$0xff] %v552_v0  ;;  %555 = vst [vmem:[%s3337_s4 + $0x608] sm:$0xff] %v554_v1  ;;  %v558_v3 = vld [vmem:[%s3332_s3 + $0xc28] sm:$0xff] }
  0x7b   : > { %557 = vst [vmem:[%s3337_s4 + $0x610] sm:$0xff] %v556_v2  ;;  %v560_v4 = vld [vmem:[%s3332_s3 + $0xc40] sm:$0xff]  ;;  %v562_v5 = vld [vmem:[%s3332_s3 + $0xc48] sm:$0xff]  ;;  %559 = vst [vmem:[%s3337_s4 + $0x618] sm:$0xff] %v558_v3 }
  0x7c   : > { %561 = vst [vmem:[%s3337_s4 + $0x620] sm:$0xff] %v560_v4  ;;  %563 = vst [vmem:[%s3337_s4 + $0x628] sm:$0xff] %v562_v5  ;;  %v564_v6 = vld [vmem:[%s3332_s3 + $0xc60] sm:$0xff]  ;;  %v566_v7 = vld [vmem:[%s3332_s3 + $0xc68] sm:$0xff] }
  0x7d   : > { %v568_v8 = vld [vmem:[%s3332_s3 + $0xc80] sm:$0xff]  ;;  %565 = vst [vmem:[%s3337_s4 + $0x630] sm:$0xff] %v564_v6  ;;  %567 = vst [vmem:[%s3337_s4 + $0x638] sm:$0xff] %v566_v7  ;;  %v570_v9 = vld [vmem:[%s3332_s3 + $0xc88] sm:$0xff] }
  0x7e   : > { %569 = vst [vmem:[%s3337_s4 + $0x640] sm:$0xff] %v568_v8  ;;  %v572_v10 = vld [vmem:[%s3332_s3 + $0xca0] sm:$0xff]  ;;  %v574_v11 = vld [vmem:[%s3332_s3 + $0xca8] sm:$0xff]  ;;  %571 = vst [vmem:[%s3337_s4 + $0x648] sm:$0xff] %v570_v9 }
  0x7f   : > { %573 = vst [vmem:[%s3337_s4 + $0x650] sm:$0xff] %v572_v10  ;;  %575 = vst [vmem:[%s3337_s4 + $0x658] sm:$0xff] %v574_v11  ;;  %v576_v12 = vld [vmem:[%s3332_s3 + $0xcc0] sm:$0xff]  ;;  %v578_v13 = vld [vmem:[%s3332_s3 + $0xcc8] sm:$0xff] }
  0x80   : > { %v580_v14 = vld [vmem:[%s3332_s3 + $0xce0] sm:$0xff]  ;;  %577 = vst [vmem:[%s3337_s4 + $0x660] sm:$0xff] %v576_v12  ;;  %579 = vst [vmem:[%s3337_s4 + $0x668] sm:$0xff] %v578_v13  ;;  %v582_v15 = vld [vmem:[%s3332_s3 + $0xce8] sm:$0xff] }
  0x81   : > { %581 = vst [vmem:[%s3337_s4 + $0x670] sm:$0xff] %v580_v14  ;;  %v584_v16 = vld [vmem:[%s3332_s3 + $0xd00] sm:$0xff]  ;;  %v586_v17 = vld [vmem:[%s3332_s3 + $0xd08] sm:$0xff]  ;;  %583 = vst [vmem:[%s3337_s4 + $0x678] sm:$0xff] %v582_v15 }
  0x82   : > { %585 = vst [vmem:[%s3337_s4 + $0x680] sm:$0xff] %v584_v16  ;;  %587 = vst [vmem:[%s3337_s4 + $0x688] sm:$0xff] %v586_v17  ;;  %v588_v18 = vld [vmem:[%s3332_s3 + $0xd20] sm:$0xff]  ;;  %v590_v19 = vld [vmem:[%s3332_s3 + $0xd28] sm:$0xff] }
  0x83   : > { %v592_v20 = vld [vmem:[%s3332_s3 + $0xd40] sm:$0xff]  ;;  %589 = vst [vmem:[%s3337_s4 + $0x690] sm:$0xff] %v588_v18  ;;  %591 = vst [vmem:[%s3337_s4 + $0x698] sm:$0xff] %v590_v19  ;;  %v594_v21 = vld [vmem:[%s3332_s3 + $0xd48] sm:$0xff] }
  0x84   : > { %593 = vst [vmem:[%s3337_s4 + $0x6a0] sm:$0xff] %v592_v20  ;;  %v596_v22 = vld [vmem:[%s3332_s3 + $0xd60] sm:$0xff]  ;;  %v598_v23 = vld [vmem:[%s3332_s3 + $0xd68] sm:$0xff]  ;;  %595 = vst [vmem:[%s3337_s4 + $0x6a8] sm:$0xff] %v594_v21 }
  0x85   : > { %597 = vst [vmem:[%s3337_s4 + $0x6b0] sm:$0xff] %v596_v22  ;;  %599 = vst [vmem:[%s3337_s4 + $0x6b8] sm:$0xff] %v598_v23  ;;  %v600_v24 = vld [vmem:[%s3332_s3 + $0xd80] sm:$0xff]  ;;  %v602_v25 = vld [vmem:[%s3332_s3 + $0xd88] sm:$0xff] }
  0x86   : > { %v604_v26 = vld [vmem:[%s3332_s3 + $0xda0] sm:$0xff]  ;;  %601 = vst [vmem:[%s3337_s4 + $0x6c0] sm:$0xff] %v600_v24  ;;  %603 = vst [vmem:[%s3337_s4 + $0x6c8] sm:$0xff] %v602_v25  ;;  %v606_v27 = vld [vmem:[%s3332_s3 + $0xda8] sm:$0xff] }
  0x87   : > { %605 = vst [vmem:[%s3337_s4 + $0x6d0] sm:$0xff] %v604_v26  ;;  %v608_v28 = vld [vmem:[%s3332_s3 + $0xdc0] sm:$0xff]  ;;  %v610_v29 = vld [vmem:[%s3332_s3 + $0xdc8] sm:$0xff]  ;;  %607 = vst [vmem:[%s3337_s4 + $0x6d8] sm:$0xff] %v606_v27 }
  0x88   : > { %609 = vst [vmem:[%s3337_s4 + $0x6e0] sm:$0xff] %v608_v28  ;;  %611 = vst [vmem:[%s3337_s4 + $0x6e8] sm:$0xff] %v610_v29  ;;  %v612_v30 = vld [vmem:[%s3332_s3 + $0xde0] sm:$0xff]  ;;  %v614_v31 = vld [vmem:[%s3332_s3 + $0xde8] sm:$0xff] }
  0x89   : > { %613 = vst [vmem:[%s3337_s4 + $0x6f0] sm:$0xff] %v612_v30  ;;  %615 = vst [vmem:[%s3337_s4 + $0x6f8] sm:$0xff] %v614_v31 }
  0x8a PF: > { %p2552_p7 = scmp.ge.s32.totalorder %s3253_s15, 1  ;;  %p620_p8 = scmp.lt.s32.totalorder %s3253_s15, 15 }
  0x8c   : > { %p621_p9 = pnand %p2552_p7, %p620_p8 }
  0x8d   : > { %s627_s5 = sand.u32 (!%p621_p9), 1, %s3229_s9   ;;  %s661_s6 = smul.u32 (!%p621_p9), 7, %s3237_s11 }
  0x8e   : > { %624 = sbr.rel (%p621_p9) target bundleno = 615 (0x267), region = 47  ;;  %s2554_s8 = sshll.u32 (!%p621_p9), %s3241_s12, 2 }
  0x8f   : > { %s2797_s7 = smul.u32 (!%p621_p9), 1792, %s627_s5  ;;  %p664_p10 = scmp.lt.s32.totalorder (!%p621_p9), %s661_s6, 48 }
  0x90   : > { %p676_p11 = scmp.lt.s32.totalorder (!%p621_p9), %s2554_s8, 7  ;;  %p2556_p12 = scmp.ne.s32.totalorder (!%p621_p9), %s3237_s11, 0 }
  0x91   : > { %s3799_s9 = scalar_lea.vmem (!%p621_p9), [#allocation3], %s2797_s7 }
  0x95   : > { %s4106_s6 = smov (!%p664_p10, %s661_s6), 48  ;;  %s4108_s8 = smov (!%p676_p11, %s2554_s8), 7 }
  0x96   : > { %s2553_s18 = sshll.u32 %s4106_s6, 2  ;;  %s2555_s23 = sshll.u32 %s4108_s8, 2  ;;  %v3255_v32 = vmov (!%p2556_p12), 0.0  }
  0x97   : > { %s3792_s21 = scalar_lea.vmem %s4090_s0, %s2553_s18  ;;  %s3797_s26 = scalar_lea.vmem %s4092_s2, %s2555_s23  ;;  %688 = vst [vmem:[#allocation2] sm:$0xff] (!%p2556_p12), %v3255_v32  ;;  %689 = vst [vmem:[#allocation2 + $0x8] sm:$0xff] (!%p2556_p12), %v3255_v32 }
  0x98   : > { %687 = sbr.rel (%p2556_p12) target bundleno = 159 (0x9f), region = 55  ;;  %690 = vst [vmem:[#allocation2 + $0x10] sm:$0xff] (!%p2556_p12), %v3255_v32  ;;  %691 = vst [vmem:[#allocation2 + $0x18] sm:$0xff] (!%p2556_p12), %v3255_v32 }
  0x9f PF: > { %v2856_v33 = vld [vmem:[%s3799_s9 + $0x4] ss:$16 sps:$4 sm:$0xff]   ;;  %v2860_v35 = vld [vmem:[%s3799_s9] ss:$16 sps:$4 sm:$0xff]   ;;  %v697_v17 = vld [vmem:[%s3792_s21 + $0x8] sm:$0xff]  ;;  %p2788_p13 = scmp.ne.s32.totalorder %s3237_s11, 6 }
  0xa0   : > { %v2858_v34 = vld [vmem:[%s3799_s9 + $0x204] ss:$16 sps:$4 sm:$0xff]   ;;  %2069 = vmatprep.subr.bf16.mxu0 %v2856_v33  ;;  %v2861_v36 = vld [vmem:[%s3799_s9 + $0x200] ss:$16 sps:$4 sm:$0xff]   ;;  %v3854_v20 = vcombine.high %v697_v17, %v697_v17 }
  0xa1   : > { %2110 = vmatprep.subr.bf16.mxu1 %v2858_v34  ;;  %v2862_v37 = vld [vmem:[%s3799_s9 + $0x24] ss:$16 sps:$4 sm:$0xff]   ;;  %2070 = vmatpush1.bf16.msra.mxu0 %v2860_v35  ;;  %v2866_v39 = vld [vmem:[%s3799_s9 + $0x20] ss:$16 sps:$4 sm:$0xff]  }
  0xa2   : > { %2111 = vmatpush1.bf16.msra.mxu1 %v2861_v36  ;;  %v2864_v38 = vld [vmem:[%s3799_s9 + $0x224] ss:$16 sps:$4 sm:$0xff]   ;;  %2071 = vmatprep.subr.bf16.mxu0 %v2862_v37  ;;  %v2867_v40 = vld [vmem:[%s3799_s9 + $0x220] ss:$16 sps:$4 sm:$0xff]  }
  0xa3   : > { %2112 = vmatprep.subr.bf16.mxu1 %v2864_v38  ;;  %v2868_v41 = vld [vmem:[%s3799_s9 + $0x44] ss:$16 sps:$4 sm:$0xff]   ;;  %v2872_v43 = vld [vmem:[%s3799_s9 + $0x40] ss:$16 sps:$4 sm:$0xff]   ;;  %2142 = vmatprep.mubr.bf16.mxu1 %v3854_v20 }
  0xa4   : > { %v2870_v42 = vld [vmem:[%s3799_s9 + $0x244] ss:$16 sps:$4 sm:$0xff]   ;;  %v2873_v44 = vld [vmem:[%s3799_s9 + $0x240] ss:$16 sps:$4 sm:$0xff]  }
  0xa5   : > { %2072 = vmatpush1.bf16.msra.mxu0 %v2866_v39  ;;  %v2874_v45 = vld [vmem:[%s3799_s9 + $0x64] ss:$16 sps:$4 sm:$0xff]   ;;  %v2878_v47 = vld [vmem:[%s3799_s9 + $0x60] ss:$16 sps:$4 sm:$0xff]  }
  0xa6   : > { %2113 = vmatpush1.bf16.msra.mxu1 %v2867_v40  ;;  %2073 = vmatprep.subr.bf16.mxu0 %v2868_v41  ;;  %v2876_v46 = vld [vmem:[%s3799_s9 + $0x264] ss:$16 sps:$4 sm:$0xff]   ;;  %v2879_v48 = vld [vmem:[%s3799_s9 + $0x260] ss:$16 sps:$4 sm:$0xff]   ;;  %v3878_v40 = vcombine.low %v697_v17, %v697_v17  ;;  %v3016_v17 = vld [vmem:[%s3799_s9 + $0x2c] ss:$16 sps:$4 sm:$0xff]  }
  0xa7   : > { %2114 = vmatprep.subr.bf16.mxu1 %v2870_v42  ;;  %v2880_v49 = vld [vmem:[%s3799_s9 + $0x84] ss:$16 sps:$4 sm:$0xff]   ;;  %v2884_v51 = vld [vmem:[%s3799_s9 + $0x80] ss:$16 sps:$4 sm:$0xff]  }
  0xa8   : > { %v2882_v50 = vld [vmem:[%s3799_s9 + $0x284] ss:$16 sps:$4 sm:$0xff]   ;;  %v2885_v52 = vld [vmem:[%s3799_s9 + $0x280] ss:$16 sps:$4 sm:$0xff]  }
  0xa9   : > { %2074 = vmatpush1.bf16.msra.mxu0 %v2872_v43  ;;  %v2886_v53 = vld [vmem:[%s3799_s9 + $0xa4] ss:$16 sps:$4 sm:$0xff]   ;;  %v2890_v55 = vld [vmem:[%s3799_s9 + $0xa0] ss:$16 sps:$4 sm:$0xff]  }
  0xaa   : > { %2115 = vmatpush1.bf16.msra.mxu1 %v2873_v44  ;;  %2075 = vmatprep.subr.bf16.mxu0 %v2874_v45  ;;  %v2888_v54 = vld [vmem:[%s3799_s9 + $0x2a4] ss:$16 sps:$4 sm:$0xff]   ;;  %v2891_v56 = vld [vmem:[%s3799_s9 + $0x2a0] ss:$16 sps:$4 sm:$0xff]  }
  0xab   : > { %2116 = vmatprep.subr.bf16.mxu1 %v2876_v46  ;;  %v2892_v57 = vld [vmem:[%s3799_s9 + $0xc4] ss:$16 sps:$4 sm:$0xff]   ;;  %v2896_v59 = vld [vmem:[%s3799_s9 + $0xc0] ss:$16 sps:$4 sm:$0xff]  }
  0xac   : > { %v2894_v58 = vld [vmem:[%s3799_s9 + $0x2c4] ss:$16 sps:$4 sm:$0xff]   ;;  %v2897_v60 = vld [vmem:[%s3799_s9 + $0x2c0] ss:$16 sps:$4 sm:$0xff]  }
  0xad   : > { %2076 = vmatpush1.bf16.msra.mxu0 %v2878_v47  ;;  %v2898_v61 = vld [vmem:[%s3799_s9 + $0xe4] ss:$16 sps:$4 sm:$0xff]   ;;  %v2902_v63 = vld [vmem:[%s3799_s9 + $0xe0] ss:$16 sps:$4 sm:$0xff]  }
  0xae   : > { %2117 = vmatpush1.bf16.msra.mxu1 %v2879_v48  ;;  %2077 = vmatprep.subr.bf16.mxu0 %v2880_v49  ;;  %v2900_v62 = vld [vmem:[%s3799_s9 + $0x2e4] ss:$16 sps:$4 sm:$0xff]   ;;  %v2903_v0 = vld [vmem:[%s3799_s9 + $0x2e0] ss:$16 sps:$4 sm:$0xff]   ;;  %v3256_v49 = vmov 0  }
  0xaf   : > { %2118 = vmatprep.subr.bf16.mxu1 %v2882_v50  ;;  %v2904_v1 = vld [vmem:[%s3799_s9 + $0x104] ss:$16 sps:$4 sm:$0xff]   ;;  %v2908_v3 = vld [vmem:[%s3799_s9 + $0x100] ss:$16 sps:$4 sm:$0xff]  }
  0xb0   : > { %v2906_v2 = vld [vmem:[%s3799_s9 + $0x304] ss:$16 sps:$4 sm:$0xff]   ;;  %v2909_v4 = vld [vmem:[%s3799_s9 + $0x300] ss:$16 sps:$4 sm:$0xff]  }
  0xb1   : > { %2078 = vmatpush1.bf16.msra.mxu0 %v2884_v51  ;;  %v2910_v5 = vld [vmem:[%s3799_s9 + $0x124] ss:$16 sps:$4 sm:$0xff]   ;;  %v2914_v7 = vld [vmem:[%s3799_s9 + $0x120] ss:$16 sps:$4 sm:$0xff]  }
  0xb2   : > { %2119 = vmatpush1.bf16.msra.mxu1 %v2885_v52  ;;  %2079 = vmatprep.subr.bf16.mxu0 %v2886_v53  ;;  %v2912_v6 = vld [vmem:[%s3799_s9 + $0x324] ss:$16 sps:$4 sm:$0xff]   ;;  %v2915_v8 = vld [vmem:[%s3799_s9 + $0x320] ss:$16 sps:$4 sm:$0xff]  }
  0xb3   : > { %2120 = vmatprep.subr.bf16.mxu1 %v2888_v54  ;;  %v2916_v9 = vld [vmem:[%s3799_s9 + $0x144] ss:$16 sps:$4 sm:$0xff]   ;;  %v2920_v11 = vld [vmem:[%s3799_s9 + $0x140] ss:$16 sps:$4 sm:$0xff]  }
  0xb4   : > { %v2918_v10 = vld [vmem:[%s3799_s9 + $0x344] ss:$16 sps:$4 sm:$0xff]   ;;  %v2921_v12 = vld [vmem:[%s3799_s9 + $0x340] ss:$16 sps:$4 sm:$0xff]  }
  0xb5   : > { %2080 = vmatpush1.bf16.msra.mxu0 %v2890_v55  ;;  %v2922_v13 = vld [vmem:[%s3799_s9 + $0x164] ss:$16 sps:$4 sm:$0xff]   ;;  %v2926_v18 = vld [vmem:[%s3799_s9 + $0x160] ss:$16 sps:$4 sm:$0xff]  }
  0xb6   : > { %2121 = vmatpush1.bf16.msra.mxu1 %v2891_v56  ;;  %2081 = vmatprep.subr.bf16.mxu0 %v2892_v57  ;;  %v2924_v14 = vld [vmem:[%s3799_s9 + $0x364] ss:$16 sps:$4 sm:$0xff]   ;;  %v2927_v19 = vld [vmem:[%s3799_s9 + $0x360] ss:$16 sps:$4 sm:$0xff]  }
  0xb7   : > { %2122 = vmatprep.subr.bf16.mxu1 %v2894_v58  ;;  %v696_v15 = vld [vmem:[%s3792_s21] sm:$0xff] }
  0xb8   : > { %v3849_v16 = vcombine.high %v696_v15, %v696_v15  ;;  %v2928_v21 = vld [vmem:[%s3799_s9 + $0x184] ss:$16 sps:$4 sm:$0xff]   ;;  %v2932_v23 = vld [vmem:[%s3799_s9 + $0x180] ss:$16 sps:$4 sm:$0xff]   ;;  %v3876_v39 = vcombine.low %v696_v15, %v696_v15 }
  0xb9   : > { %2082 = vmatpush1.bf16.msra.mxu0 %v2896_v59  ;;  %v2930_v22 = vld [vmem:[%s3799_s9 + $0x384] ss:$16 sps:$4 sm:$0xff]   ;;  %v2933_v24 = vld [vmem:[%s3799_s9 + $0x380] ss:$16 sps:$4 sm:$0xff]  }
  0xba   : > { %2123 = vmatpush1.bf16.msra.mxu1 %v2897_v60  ;;  %2083 = vmatprep.subr.bf16.mxu0 %v2898_v61  ;;  %v2934_v25 = vld [vmem:[%s3799_s9 + $0x1a4] ss:$16 sps:$4 sm:$0xff]   ;;  %v2938_v27 = vld [vmem:[%s3799_s9 + $0x1a0] ss:$16 sps:$4 sm:$0xff]  }
  0xbb   : > { %2124 = vmatprep.subr.bf16.mxu1 %v2900_v62  ;;  %2101 = vmatprep.mubr.bf16.mxu0 %v3849_v16  ;;  %v2936_v26 = vld [vmem:[%s3799_s9 + $0x3a4] ss:$16 sps:$4 sm:$0xff]   ;;  %v2939_v28 = vld [vmem:[%s3799_s9 + $0x3a0] ss:$16 sps:$4 sm:$0xff]  }
  0xbc   : > { %v2940_v29 = vld [vmem:[%s3799_s9 + $0x1c4] ss:$16 sps:$4 sm:$0xff]   ;;  %v2944_v31 = vld [vmem:[%s3799_s9 + $0x1c0] ss:$16 sps:$4 sm:$0xff]  }
  0xbd   : > { %2084 = vmatpush1.bf16.msra.mxu0 %v2902_v63  ;;  %v2942_v30 = vld [vmem:[%s3799_s9 + $0x3c4] ss:$16 sps:$4 sm:$0xff]   ;;  %v2945_v32 = vld [vmem:[%s3799_s9 + $0x3c0] ss:$16 sps:$4 sm:$0xff]  }
  0xbe   : > { %2125 = vmatpush1.bf16.msra.mxu1 %v2903_v0  ;;  %2085 = vmatprep.subr.bf16.mxu0 %v2904_v1  ;;  %v2946_v33 = vld [vmem:[%s3799_s9 + $0x1e4] ss:$16 sps:$4 sm:$0xff]   ;;  %v2950_v35 = vld [vmem:[%s3799_s9 + $0x1e0] ss:$16 sps:$4 sm:$0xff]  }
  0xbf   : > { %2126 = vmatprep.subr.bf16.mxu1 %v2906_v2  ;;  %v2948_v34 = vld [vmem:[%s3799_s9 + $0x3e4] ss:$16 sps:$4 sm:$0xff]   ;;  %v2951_v36 = vld [vmem:[%s3799_s9 + $0x3e0] ss:$16 sps:$4 sm:$0xff]  }
  0xc0   : > { %v2958_v37 = vld [vmem:[%s3799_s9 + $0x404] ss:$16 sps:$4 sm:$0xff]   ;;  %v2956_v41 = vld [vmem:[%s3799_s9 + $0x400] ss:$16 sps:$4 sm:$0xff]  }
  0xc1   : > { %2086 = vmatpush1.bf16.msra.mxu0 %v2908_v3  ;;  %v2961_v38 = vld [vmem:[%s3799_s9 + $0x604] ss:$16 sps:$4 sm:$0xff]   ;;  %v2959_v42 = vld [vmem:[%s3799_s9 + $0x600] ss:$16 sps:$4 sm:$0xff]  }
  0xc2   : > { %2127 = vmatpush1.bf16.msra.mxu1 %v2909_v4  ;;  %2087 = vmatprep.subr.bf16.mxu0 %v2910_v5  ;;  %v2964_v43 = vld [vmem:[%s3799_s9 + $0x424] ss:$16 sps:$4 sm:$0xff]   ;;  %v2962_v45 = vld [vmem:[%s3799_s9 + $0x420] ss:$16 sps:$4 sm:$0xff]  }
  0xc3   : > { %2128 = vmatprep.subr.bf16.mxu1 %v2912_v6  ;;  %v2967_v44 = vld [vmem:[%s3799_s9 + $0x624] ss:$16 sps:$4 sm:$0xff]   ;;  %v2965_v46 = vld [vmem:[%s3799_s9 + $0x620] ss:$16 sps:$4 sm:$0xff]  }
  0xc4   : > { %v2970_v47 = vld [vmem:[%s3799_s9 + $0x444] ss:$16 sps:$4 sm:$0xff]   ;;  %v2968_v50 = vld [vmem:[%s3799_s9 + $0x440] ss:$16 sps:$4 sm:$0xff]  }
  0xc5   : > { %2088 = vmatpush1.bf16.msra.mxu0 %v2914_v7  ;;  %v2973_v48 = vld [vmem:[%s3799_s9 + $0x644] ss:$16 sps:$4 sm:$0xff]   ;;  %v2971_v51 = vld [vmem:[%s3799_s9 + $0x640] ss:$16 sps:$4 sm:$0xff]  }
  0xc6   : > { %2129 = vmatpush1.bf16.msra.mxu1 %v2915_v8  ;;  %2089 = vmatprep.subr.bf16.mxu0 %v2916_v9  ;;  %v2976_v52 = vld [vmem:[%s3799_s9 + $0x464] ss:$16 sps:$4 sm:$0xff]   ;;  %v2974_v54 = vld [vmem:[%s3799_s9 + $0x460] ss:$16 sps:$4 sm:$0xff]  }
  0xc7   : > { %2130 = vmatprep.subr.bf16.mxu1 %v2918_v10  ;;  %v2979_v53 = vld [vmem:[%s3799_s9 + $0x664] ss:$16 sps:$4 sm:$0xff]   ;;  %v2977_v55 = vld [vmem:[%s3799_s9 + $0x660] ss:$16 sps:$4 sm:$0xff]  }
  0xc8   : > { %v2982_v56 = vld [vmem:[%s3799_s9 + $0x484] ss:$16 sps:$4 sm:$0xff]   ;;  %v2980_v58 = vld [vmem:[%s3799_s9 + $0x480] ss:$16 sps:$4 sm:$0xff]  }
  0xc9   : > { %2090 = vmatpush1.bf16.msra.mxu0 %v2920_v11  ;;  %v2985_v57 = vld [vmem:[%s3799_s9 + $0x684] ss:$16 sps:$4 sm:$0xff]   ;;  %v2983_v59 = vld [vmem:[%s3799_s9 + $0x680] ss:$16 sps:$4 sm:$0xff]   ;;  %v3010_v11 = vld [vmem:[%s3799_s9 + $0xc] ss:$16 sps:$4 sm:$0xff]  }
  0xca   : > { %2131 = vmatpush1.bf16.msra.mxu1 %v2921_v12  ;;  %2091 = vmatprep.subr.bf16.mxu0 %v2922_v13  ;;  %v2988_v60 = vld [vmem:[%s3799_s9 + $0x4a4] ss:$16 sps:$4 sm:$0xff]   ;;  %v2986_v62 = vld [vmem:[%s3799_s9 + $0x4a0] ss:$16 sps:$4 sm:$0xff]   ;;  %v3925_v13 = vld [vmem:[%s3792_s21 + $0x18] ss:$0 sps:$4 sm:$0xff]  }
  0xcb   : > { %2132 = vmatprep.subr.bf16.mxu1 %v2924_v14  ;;  %v2991_v61 = vld [vmem:[%s3799_s9 + $0x6a4] ss:$16 sps:$4 sm:$0xff]   ;;  %v2989_v63 = vld [vmem:[%s3799_s9 + $0x6a0] ss:$16 sps:$4 sm:$0xff]   ;;  %v3008_v14 = vld [vmem:[%s3799_s9 + $0x8] ss:$16 sps:$4 sm:$0xff]  }
  0xcc   : > { %v2994_v0 = vld [vmem:[%s3799_s9 + $0x4c4] ss:$16 sps:$4 sm:$0xff]   ;;  %v2992_v3 = vld [vmem:[%s3799_s9 + $0x4c0] ss:$16 sps:$4 sm:$0xff]  }
  0xcd   : > { %2092 = vmatpush1.bf16.msra.mxu0 %v2926_v18  ;;  %v2997_v1 = vld [vmem:[%s3799_s9 + $0x6c4] ss:$16 sps:$4 sm:$0xff]   ;;  %v2995_v5 = vld [vmem:[%s3799_s9 + $0x6c0] ss:$16 sps:$4 sm:$0xff]  }
  0xce   : > { %2133 = vmatpush1.bf16.msra.mxu1 %v2927_v19  ;;  %2093 = vmatprep.subr.bf16.mxu0 %v2928_v21  ;;  %v3908_v2 = vld [vmem:[%s3792_s21 + $0x10] sm:$0xff]  ;;  %v3014_v19 = vld [vmem:[%s3799_s9 + $0x28] ss:$16 sps:$4 sm:$0xff]  }
  0xcf   : > { %2134 = vmatprep.subr.bf16.mxu1 %v2930_v22  ;;  %v3913_v4 = vcombine.high %v3908_v2, %v3908_v2  ;;  %v3000_v6 = vld [vmem:[%s3799_s9 + $0x4e4] ss:$16 sps:$4 sm:$0xff]   ;;  %v2998_v8 = vld [vmem:[%s3799_s9 + $0x4e0] ss:$16 sps:$4 sm:$0xff]   ;;  %v3022_v22 = vld [vmem:[%s3799_s9 + $0x4c] ss:$16 sps:$4 sm:$0xff]  }
  0xd0   : > { %v3003_v7 = vld [vmem:[%s3799_s9 + $0x6e4] ss:$16 sps:$4 sm:$0xff]   ;;  %v3001_v9 = vld [vmem:[%s3799_s9 + $0x6e0] ss:$16 sps:$4 sm:$0xff]  }
  0xd1   : > { %2094 = vmatpush1.bf16.msra.mxu0 %v2932_v23  ;;  %v3006_v10 = vld [vmem:[%s3799_s9 + $0x504] ss:$16 sps:$4 sm:$0xff]   ;;  %v3004_v12 = vld [vmem:[%s3799_s9 + $0x500] ss:$16 sps:$4 sm:$0xff]  }
  0xd2   : > { %2135 = vmatpush1.bf16.msra.mxu1 %v2933_v24  ;;  %2095 = vmatprep.subr.bf16.mxu0 %v2934_v25  ;;  %v3013_v15 = vld [vmem:[%s3799_s9 + $0x524] ss:$16 sps:$4 sm:$0xff]   ;;  %v3011_v18 = vld [vmem:[%s3799_s9 + $0x520] ss:$16 sps:$4 sm:$0xff]   ;;  %v3020_v24 = vld [vmem:[%s3799_s9 + $0x48] ss:$16 sps:$4 sm:$0xff]  }
  0xd3   : > { %2136 = vmatprep.subr.bf16.mxu1 %v2936_v26  ;;  %v3019_v21 = vld [vmem:[%s3799_s9 + $0x544] ss:$16 sps:$4 sm:$0xff]   ;;  %v3017_v23 = vld [vmem:[%s3799_s9 + $0x540] ss:$16 sps:$4 sm:$0xff]   ;;  %v3028_v26 = vld [vmem:[%s3799_s9 + $0x6c] ss:$16 sps:$4 sm:$0xff]  }
  0xd4   : > { %v3025_v25 = vld [vmem:[%s3799_s9 + $0x564] ss:$16 sps:$4 sm:$0xff]  }
  0xd5   : > { %2096 = vmatpush1.bf16.msra.mxu0 %v2938_v27  ;;  %v3023_v27 = vld [vmem:[%s3799_s9 + $0x560] ss:$16 sps:$4 sm:$0xff]  }
  0xd6   : > { %2137 = vmatpush1.bf16.msra.mxu1 %v2939_v28  ;;  %2097 = vmatprep.subr.bf16.mxu0 %v2940_v29  ;;  %v3026_v28 = vld [vmem:[%s3799_s9 + $0x68] ss:$16 sps:$4 sm:$0xff]   ;;  %v3034_v29 = vld [vmem:[%s3799_s9 + $0x8c] ss:$16 sps:$4 sm:$0xff]  }
  0xd7   : > { %2138 = vmatprep.subr.bf16.mxu1 %v2942_v30  ;;  %v3029_v30 = vld [vmem:[%s3799_s9 + $0x580] ss:$16 sps:$4 sm:$0xff]  }
  0xd9   : > { %2098 = vmatpush1.bf16.msra.mxu0 %v2944_v31  ;;  %v3032_v31 = vld [vmem:[%s3799_s9 + $0x88] ss:$16 sps:$4 sm:$0xff]  }
  0xda   : > { %2139 = vmatpush1.bf16.msra.mxu1 %v2945_v32  ;;  %2099 = vmatprep.subr.bf16.mxu0 %v2946_v33  ;;  %v3037_v32 = vld [vmem:[%s3799_s9 + $0x5a4] ss:$16 sps:$4 sm:$0xff]   ;;  %v3040_v33 = vld [vmem:[%s3799_s9 + $0xac] ss:$16 sps:$4 sm:$0xff]  }
  0xdb   : > { %2140 = vmatprep.subr.bf16.mxu1 %v2948_v34  ;;  %v3035_v34 = vld [vmem:[%s3799_s9 + $0x5a0] ss:$16 sps:$4 sm:$0xff]  }
  0xdd   : > { %2100 = vmatpush1.bf16.msra.mxu0 %v2950_v35  ;;  %v3038_v35 = vld [vmem:[%s3799_s9 + $0xa8] ss:$16 sps:$4 sm:$0xff]  }
  0xde   : > { %2141 = vmatpush1.bf16.msra.mxu1 %v2951_v36  ;;  %2151 = vmatprep.subr.bf16.mxu0 %v2958_v37  ;;  %v3043_v36 = vld [vmem:[%s3799_s9 + $0x5c4] ss:$16 sps:$4 sm:$0xff]   ;;  %v3046_v37 = vld [vmem:[%s3799_s9 + $0xcc] ss:$16 sps:$4 sm:$0xff]  }
  0xdf   : > { %2192 = vmatprep.subr.bf16.mxu1 %v2961_v38  ;;  %v3041_v38 = vld [vmem:[%s3799_s9 + $0x5c0] ss:$16 sps:$4 sm:$0xff]  }
  0xe0   : > { %2102 = vmatmul.mubr.bf16.vlgmr.msra.gmra.mrb[0].mxu0 %v3876_v39 }
  0xe1   : > { %2143 = vmatmul.mubr.bf16.vlgmr.msra.gmra.mrb[0].mxu1 %v3878_v40  ;;  %2152 = vmatpush1.bf16.msra.mxu0 %v2956_v41  ;;  %v3044_v41 = vld [vmem:[%s3799_s9 + $0xc8] ss:$16 sps:$4 sm:$0xff]  }
  0xe2   : > { %2193 = vmatpush1.bf16.msra.mxu1 %v2959_v42  ;;  %2153 = vmatprep.subr.bf16.mxu0 %v2964_v43  ;;  %v3049_v42 = vld [vmem:[%s3799_s9 + $0x5e4] ss:$16 sps:$4 sm:$0xff]   ;;  %v3052_v43 = vld [vmem:[%s3799_s9 + $0xec] ss:$16 sps:$4 sm:$0xff]  }
  0xe3   : > { %2194 = vmatprep.subr.bf16.mxu1 %v2967_v44  ;;  %2224 = vmatprep.mubr.bf16.mxu1 %v3256_v49  ;;  %v3047_v44 = vld [vmem:[%s3799_s9 + $0x5e0] ss:$16 sps:$4 sm:$0xff]  }
  0xe4   : > { %2183 = vmatprep.mubr.bf16.mxu0 %v3913_v4 }
  0xe5   : > { %2154 = vmatpush1.bf16.msra.mxu0 %v2962_v45  ;;  %v3050_v45 = vld [vmem:[%s3799_s9 + $0xe8] ss:$16 sps:$4 sm:$0xff]  }
  0xe6   : > { %2195 = vmatpush1.bf16.msra.mxu1 %v2965_v46  ;;  %2155 = vmatprep.subr.bf16.mxu0 %v2970_v47  ;;  %v3057_v46 = vld [vmem:[%s3799_s9 + $0x10c] ss:$16 sps:$4 sm:$0xff]  }
  0xe7   : > { %2196 = vmatprep.subr.bf16.mxu1 %v2973_v48  ;;  %v3060_v47 = vld [vmem:[%s3799_s9 + $0x20c] ss:$16 sps:$4 sm:$0xff]   ;;  %v3962_v48 = vcombine.low %v3908_v2, %v3908_v2  ;;  %v3082_v2 = vld [vmem:[%s3799_s9 + $0x288] ss:$16 sps:$4 sm:$0xff]  }
  0xe9   : > { %2156 = vmatpush1.bf16.msra.mxu0 %v2968_v50  ;;  %v3055_v50 = vld [vmem:[%s3799_s9 + $0x108] ss:$16 sps:$4 sm:$0xff]  }
  0xea   : > { %2197 = vmatpush1.bf16.msra.mxu1 %v2971_v51  ;;  %2157 = vmatprep.subr.bf16.mxu0 %v2976_v52  ;;  %v3058_v51 = vld [vmem:[%s3799_s9 + $0x208] ss:$16 sps:$4 sm:$0xff]   ;;  %v3063_v52 = vld [vmem:[%s3799_s9 + $0x12c] ss:$16 sps:$4 sm:$0xff]  }
  0xeb   : > { %2198 = vmatprep.subr.bf16.mxu1 %v2979_v53  ;;  %v3066_v53 = vld [vmem:[%s3799_s9 + $0x22c] ss:$16 sps:$4 sm:$0xff]  }
  0xed   : > { %2158 = vmatpush1.bf16.msra.mxu0 %v2974_v54  ;;  %v3061_v54 = vld [vmem:[%s3799_s9 + $0x128] ss:$16 sps:$4 sm:$0xff]  }
  0xee   : > { %2199 = vmatpush1.bf16.msra.mxu1 %v2977_v55  ;;  %2159 = vmatprep.subr.bf16.mxu0 %v2982_v56  ;;  %v3064_v55 = vld [vmem:[%s3799_s9 + $0x228] ss:$16 sps:$4 sm:$0xff]   ;;  %v3069_v56 = vld [vmem:[%s3799_s9 + $0x14c] ss:$16 sps:$4 sm:$0xff]  }
  0xef   : > { %2200 = vmatprep.subr.bf16.mxu1 %v2985_v57  ;;  %v3072_v57 = vld [vmem:[%s3799_s9 + $0x24c] ss:$16 sps:$4 sm:$0xff]  }
  0xf1   : > { %2160 = vmatpush1.bf16.msra.mxu0 %v2980_v58  ;;  %v3067_v58 = vld [vmem:[%s3799_s9 + $0x148] ss:$16 sps:$4 sm:$0xff]  }
  0xf2   : > { %2201 = vmatpush1.bf16.msra.mxu1 %v2983_v59  ;;  %2161 = vmatprep.subr.bf16.mxu0 %v2988_v60  ;;  %v3070_v59 = vld [vmem:[%s3799_s9 + $0x248] ss:$16 sps:$4 sm:$0xff]   ;;  %v3075_v60 = vld [vmem:[%s3799_s9 + $0x16c] ss:$16 sps:$4 sm:$0xff]  }
  0xf3   : > { %2202 = vmatprep.subr.bf16.mxu1 %v2991_v61  ;;  %v3078_v61 = vld [vmem:[%s3799_s9 + $0x26c] ss:$16 sps:$4 sm:$0xff]  }
  0xf5   : > { %2162 = vmatpush1.bf16.msra.mxu0 %v2986_v62  ;;  %v3073_v62 = vld [vmem:[%s3799_s9 + $0x168] ss:$16 sps:$4 sm:$0xff]  }
  0xf6   : > { %2203 = vmatpush1.bf16.msra.mxu1 %v2989_v63  ;;  %2163 = vmatprep.subr.bf16.mxu0 %v2994_v0  ;;  %v3076_v63 = vld [vmem:[%s3799_s9 + $0x268] ss:$16 sps:$4 sm:$0xff]   ;;  %v3084_v0 = vld [vmem:[%s3799_s9 + $0x28c] ss:$16 sps:$4 sm:$0xff]  }
  0xf7   : > { %2204 = vmatprep.subr.bf16.mxu1 %v2997_v1  ;;  %v3079_v1 = vld [vmem:[%s3799_s9 + $0x188] ss:$16 sps:$4 sm:$0xff]  }
  0xf9   : > { %2164 = vmatpush1.bf16.msra.mxu0 %v2992_v3  ;;  %v3087_v3 = vld [vmem:[%s3799_s9 + $0x1ac] ss:$16 sps:$4 sm:$0xff]  }
  0xfa   : > { %2205 = vmatpush1.bf16.msra.mxu1 %v2995_v5  ;;  %2165 = vmatprep.subr.bf16.mxu0 %v3000_v6  ;;  %v3090_v5 = vld [vmem:[%s3799_s9 + $0x2ac] ss:$16 sps:$4 sm:$0xff]   ;;  %v3085_v6 = vld [vmem:[%s3799_s9 + $0x1a8] ss:$16 sps:$4 sm:$0xff]  }
  0xfb   : > { %2206 = vmatprep.subr.bf16.mxu1 %v3003_v7  ;;  %v3088_v7 = vld [vmem:[%s3799_s9 + $0x2a8] ss:$16 sps:$4 sm:$0xff]  }
  0xfd   : > { %2166 = vmatpush1.bf16.msra.mxu0 %v2998_v8  ;;  %v3093_v8 = vld [vmem:[%s3799_s9 + $0x1cc] ss:$16 sps:$4 sm:$0xff]  }
  0xfe   : > { %2207 = vmatpush1.bf16.msra.mxu1 %v3001_v9  ;;  %2167 = vmatprep.subr.bf16.mxu0 %v3006_v10  ;;  %v3096_v9 = vld [vmem:[%s3799_s9 + $0x2cc] ss:$16 sps:$4 sm:$0xff]   ;;  %v3091_v10 = vld [vmem:[%s3799_s9 + $0x1c8] ss:$16 sps:$4 sm:$0xff]  }
  0xff   : > { %2233 = vmatprep.subr.bf16.mxu1 %v3010_v11  ;;  %v3094_v11 = vld [vmem:[%s3799_s9 + $0x2c8] ss:$16 sps:$4 sm:$0xff]  }
 0x101   : > { %2225 = vmatmul.mubr.bf16.vlgmr.msra.gmra.mrb[4].mxu1 %v3925_v13  ;;  %2168 = vmatpush1.bf16.msra.mxu0 %v3004_v12  ;;  %v3099_v12 = vld [vmem:[%s3799_s9 + $0x1ec] ss:$16 sps:$4 sm:$0xff]  }
 0x102   : > { %2234 = vmatpush1.bf16.msra.mxu1 %v3008_v14  ;;  %2169 = vmatprep.subr.bf16.mxu0 %v3013_v15  ;;  %v3102_v14 = vld [vmem:[%s3799_s9 + $0x2ec] ss:$16 sps:$4 sm:$0xff]   ;;  %v3097_v15 = vld [vmem:[%s3799_s9 + $0x1e8] ss:$16 sps:$4 sm:$0xff]  }
 0x103   : > { %2235 = vmatprep.subr.bf16.mxu1 %v3016_v17  ;;  %2265 = vmatprep.mubr.bf16.mxu1 %v3849_v16  ;;  %v3031_v16 = vld [vmem:[%s3799_s9 + $0x584] ss:$16 sps:$4 sm:$0xff]   ;;  %v3100_v17 = vld [vmem:[%s3799_s9 + $0x2e8] ss:$16 sps:$4 sm:$0xff]  }
 0x105   : > { %2170 = vmatpush1.bf16.msra.mxu0 %v3011_v18  ;;  %v3105_v18 = vld [vmem:[%s3799_s9 + $0x30c] ss:$16 sps:$4 sm:$0xff]  }
 0x106   : > { %2236 = vmatpush1.bf16.msra.mxu1 %v3014_v19  ;;  %2171 = vmatprep.subr.bf16.mxu0 %v3019_v21  ;;  %v3108_v19 = vld [vmem:[%s3799_s9 + $0x40c] ss:$16 sps:$4 sm:$0xff]   ;;  %v3103_v21 = vld [vmem:[%s3799_s9 + $0x308] ss:$16 sps:$4 sm:$0xff]  }
 0x107   : > { %2237 = vmatprep.subr.bf16.mxu1 %v3022_v22  ;;  %v3106_v22 = vld [vmem:[%s3799_s9 + $0x408] ss:$16 sps:$4 sm:$0xff]  }
 0x109   : > { %2172 = vmatpush1.bf16.msra.mxu0 %v3017_v23  ;;  %v3111_v23 = vld [vmem:[%s3799_s9 + $0x32c] ss:$16 sps:$4 sm:$0xff]  }
 0x10a   : > { %2238 = vmatpush1.bf16.msra.mxu1 %v3020_v24  ;;  %2173 = vmatprep.subr.bf16.mxu0 %v3025_v25  ;;  %v3114_v24 = vld [vmem:[%s3799_s9 + $0x42c] ss:$16 sps:$4 sm:$0xff]   ;;  %v3109_v25 = vld [vmem:[%s3799_s9 + $0x328] ss:$16 sps:$4 sm:$0xff]  }
 0x10b   : > { %2239 = vmatprep.subr.bf16.mxu1 %v3028_v26  ;;  %v3112_v26 = vld [vmem:[%s3799_s9 + $0x428] ss:$16 sps:$4 sm:$0xff]  }
 0x10d   : > { %2174 = vmatpush1.bf16.msra.mxu0 %v3023_v27  ;;  %v3117_v27 = vld [vmem:[%s3799_s9 + $0x34c] ss:$16 sps:$4 sm:$0xff]  }
 0x10e   : > { %2240 = vmatpush1.bf16.msra.mxu1 %v3026_v28  ;;  %2175 = vmatprep.subr.bf16.mxu0 %v3031_v16  ;;  %v3120_v28 = vld [vmem:[%s3799_s9 + $0x44c] ss:$16 sps:$4 sm:$0xff]   ;;  %v3115_v16 = vld [vmem:[%s3799_s9 + $0x348] ss:$16 sps:$4 sm:$0xff]  }
 0x10f   : > { %2241 = vmatprep.subr.bf16.mxu1 %v3034_v29  ;;  %v3123_v29 = vld [vmem:[%s3799_s9 + $0x36c] ss:$16 sps:$4 sm:$0xff]  }
 0x111   : > { %2176 = vmatpush1.bf16.msra.mxu0 %v3029_v30  ;;  %v3126_v30 = vld [vmem:[%s3799_s9 + $0x46c] ss:$16 sps:$4 sm:$0xff]  }
 0x112   : > { %2242 = vmatpush1.bf16.msra.mxu1 %v3032_v31  ;;  %2177 = vmatprep.subr.bf16.mxu0 %v3037_v32  ;;  %v3121_v31 = vld [vmem:[%s3799_s9 + $0x368] ss:$16 sps:$4 sm:$0xff]  }
 0x113   : > { %2243 = vmatprep.subr.bf16.mxu1 %v3040_v33  ;;  %v3124_v32 = vld [vmem:[%s3799_s9 + $0x468] ss:$16 sps:$4 sm:$0xff]   ;;  %v3132_v33 = vld [vmem:[%s3799_s9 + $0x48c] ss:$16 sps:$4 sm:$0xff]  }
 0x115   : > { %2178 = vmatpush1.bf16.msra.mxu0 %v3035_v34  ;;  %v3127_v34 = vld [vmem:[%s3799_s9 + $0x388] ss:$16 sps:$4 sm:$0xff]  }
 0x116   : > { %2244 = vmatpush1.bf16.msra.mxu1 %v3038_v35  ;;  %2179 = vmatprep.subr.bf16.mxu0 %v3043_v36  ;;  %v3130_v35 = vld [vmem:[%s3799_s9 + $0x488] ss:$16 sps:$4 sm:$0xff]   ;;  %v3135_v36 = vld [vmem:[%s3799_s9 + $0x3ac] ss:$16 sps:$4 sm:$0xff]  }
 0x117   : > { %2245 = vmatprep.subr.bf16.mxu1 %v3046_v37  ;;  %v3138_v37 = vld [vmem:[%s3799_s9 + $0x4ac] ss:$16 sps:$4 sm:$0xff]  }
 0x119   : > { %2180 = vmatpush1.bf16.msra.mxu0 %v3041_v38  ;;  %v3133_v38 = vld [vmem:[%s3799_s9 + $0x3a8] ss:$16 sps:$4 sm:$0xff]  }
 0x11a   : > { %2246 = vmatpush1.bf16.msra.mxu1 %v3044_v41  ;;  %2181 = vmatprep.subr.bf16.mxu0 %v3049_v42  ;;  %v3136_v41 = vld [vmem:[%s3799_s9 + $0x4a8] ss:$16 sps:$4 sm:$0xff]   ;;  %v3141_v42 = vld [vmem:[%s3799_s9 + $0x3cc] ss:$16 sps:$4 sm:$0xff]  }
 0x11b   : > { %2247 = vmatprep.subr.bf16.mxu1 %v3052_v43  ;;  %v3144_v43 = vld [vmem:[%s3799_s9 + $0x4cc] ss:$16 sps:$4 sm:$0xff]  }
 0x11d   : > { %2182 = vmatpush1.bf16.msra.mxu0 %v3047_v44  ;;  %v3139_v44 = vld [vmem:[%s3799_s9 + $0x3c8] ss:$16 sps:$4 sm:$0xff]  }
 0x11e   : > { %2248 = vmatpush1.bf16.msra.mxu1 %v3050_v45  ;;  %2274 = vmatprep.subr.bf16.mxu0 %v3060_v47  ;;  %v3142_v45 = vld [vmem:[%s3799_s9 + $0x4c8] ss:$16 sps:$4 sm:$0xff]   ;;  %v3150_v47 = vld [vmem:[%s3799_s9 + $0x4ec] ss:$16 sps:$4 sm:$0xff]  }
 0x11f   : > { %2249 = vmatprep.subr.bf16.mxu1 %v3057_v46  ;;  %v3147_v46 = vld [vmem:[%s3799_s9 + $0x3ec] ss:$16 sps:$4 sm:$0xff]  }
 0x120   : > { %2184 = vmatmul.mubr.bf16.vlgmr.msra.gmra.mrb[4].mxu0 %v3962_v48 }
 0x121   : > { %2275 = vmatpush1.bf16.msra.mxu0 %v3058_v51  ;;  %2306 = vmatprep.mubr.bf16.mxu0 %v3854_v20  ;;  %v3081_v20 = vld [vmem:[%s3799_s9 + $0x18c] ss:$16 sps:$4 sm:$0xff]   ;;  %v3148_v51 = vld [vmem:[%s3799_s9 + $0x4e8] ss:$16 sps:$4 sm:$0xff]  }
 0x122   : > { %2250 = vmatpush1.bf16.msra.mxu1 %v3055_v50  ;;  %2276 = vmatprep.subr.bf16.mxu0 %v3066_v53  ;;  %v3145_v50 = vld [vmem:[%s3799_s9 + $0x3e8] ss:$16 sps:$4 sm:$0xff]   ;;  %v3156_v53 = vld [vmem:[%s3799_s9 + $0x60c] ss:$16 sps:$4 sm:$0xff]  }
 0x123   : > { %2251 = vmatprep.subr.bf16.mxu1 %v3063_v52  ;;  %v3153_v52 = vld [vmem:[%s3799_s9 + $0x50c] ss:$16 sps:$4 sm:$0xff]  }
 0x125   : > { %2277 = vmatpush1.bf16.msra.mxu0 %v3064_v55  ;;  %v3154_v55 = vld [vmem:[%s3799_s9 + $0x608] ss:$16 sps:$4 sm:$0xff]  }
 0x126   : > { %2252 = vmatpush1.bf16.msra.mxu1 %v3061_v54  ;;  %2278 = vmatprep.subr.bf16.mxu0 %v3072_v57  ;;  %v3151_v54 = vld [vmem:[%s3799_s9 + $0x508] ss:$16 sps:$4 sm:$0xff]   ;;  %v3162_v57 = vld [vmem:[%s3799_s9 + $0x62c] ss:$16 sps:$4 sm:$0xff]  }
 0x127   : > { %2253 = vmatprep.subr.bf16.mxu1 %v3069_v56  ;;  %v3159_v56 = vld [vmem:[%s3799_s9 + $0x52c] ss:$16 sps:$4 sm:$0xff]  }
 0x129   : > { %2279 = vmatpush1.bf16.msra.mxu0 %v3070_v59  ;;  %v3160_v59 = vld [vmem:[%s3799_s9 + $0x628] ss:$16 sps:$4 sm:$0xff]  }
 0x12a   : > { %2254 = vmatpush1.bf16.msra.mxu1 %v3067_v58  ;;  %2280 = vmatprep.subr.bf16.mxu0 %v3078_v61  ;;  %v3157_v58 = vld [vmem:[%s3799_s9 + $0x528] ss:$16 sps:$4 sm:$0xff]   ;;  %v3168_v61 = vld [vmem:[%s3799_s9 + $0x64c] ss:$16 sps:$4 sm:$0xff]  }
 0x12b   : > { %2255 = vmatprep.subr.bf16.mxu1 %v3075_v60  ;;  %v3165_v60 = vld [vmem:[%s3799_s9 + $0x54c] ss:$16 sps:$4 sm:$0xff]  }
 0x12d   : > { %2281 = vmatpush1.bf16.msra.mxu0 %v3076_v63  ;;  %v3171_v63 = vld [vmem:[%s3799_s9 + $0x56c] ss:$16 sps:$4 sm:$0xff]  }
 0x12e   : > { %2256 = vmatpush1.bf16.msra.mxu1 %v3073_v62  ;;  %2282 = vmatprep.subr.bf16.mxu0 %v3084_v0  ;;  %v3163_v62 = vld [vmem:[%s3799_s9 + $0x548] ss:$16 sps:$4 sm:$0xff]  }
 0x12f   : > { %2257 = vmatprep.subr.bf16.mxu1 %v3081_v20  ;;  %v3174_v20 = vld [vmem:[%s3799_s9 + $0x66c] ss:$16 sps:$4 sm:$0xff]   ;;  %v3169_v0 = vld [vmem:[%s3799_s9 + $0x568] ss:$16 sps:$4 sm:$0xff]  }
 0x131   : > { %2283 = vmatpush1.bf16.msra.mxu0 %v3082_v2  ;;  %v3180_v2 = vld [vmem:[%s3799_s9 + $0x68c] ss:$16 sps:$4 sm:$0xff]  }
 0x132   : > { %2258 = vmatpush1.bf16.msra.mxu1 %v3079_v1  ;;  %2284 = vmatprep.subr.bf16.mxu0 %v3090_v5  ;;  %v3172_v1 = vld [vmem:[%s3799_s9 + $0x668] ss:$16 sps:$4 sm:$0xff]  }
 0x133   : > { %2259 = vmatprep.subr.bf16.mxu1 %v3087_v3  ;;  %v3175_v3 = vld [vmem:[%s3799_s9 + $0x588] ss:$16 sps:$4 sm:$0xff]  }
 0x134   : > { %v3178_v5 = vld [vmem:[%s3799_s9 + $0x688] ss:$16 sps:$4 sm:$0xff]  }
 0x135   : > { %2285 = vmatpush1.bf16.msra.mxu0 %v3088_v7  ;;  %v3186_v7 = vld [vmem:[%s3799_s9 + $0x6ac] ss:$16 sps:$4 sm:$0xff]  }
 0x136   : > { %2260 = vmatpush1.bf16.msra.mxu1 %v3085_v6  ;;  %2286 = vmatprep.subr.bf16.mxu0 %v3096_v9  ;;  %v3183_v6 = vld [vmem:[%s3799_s9 + $0x5ac] ss:$16 sps:$4 sm:$0xff]   ;;  %v3184_v9 = vld [vmem:[%s3799_s9 + $0x6a8] ss:$16 sps:$4 sm:$0xff]  }
 0x137   : > { %2261 = vmatprep.subr.bf16.mxu1 %v3093_v8  ;;  %v3181_v8 = vld [vmem:[%s3799_s9 + $0x5a8] ss:$16 sps:$4 sm:$0xff]  }
 0x139   : > { %2287 = vmatpush1.bf16.msra.mxu0 %v3094_v11  ;;  %v3192_v11 = vld [vmem:[%s3799_s9 + $0x6cc] ss:$16 sps:$4 sm:$0xff]  }
 0x13a   : > { %2262 = vmatpush1.bf16.msra.mxu1 %v3091_v10  ;;  %2288 = vmatprep.subr.bf16.mxu0 %v3102_v14  ;;  %v3189_v10 = vld [vmem:[%s3799_s9 + $0x5cc] ss:$16 sps:$4 sm:$0xff]   ;;  %v3190_v14 = vld [vmem:[%s3799_s9 + $0x6c8] ss:$16 sps:$4 sm:$0xff]  }
 0x13b   : > { %2263 = vmatprep.subr.bf16.mxu1 %v3099_v12  ;;  %v3187_v12 = vld [vmem:[%s3799_s9 + $0x5c8] ss:$16 sps:$4 sm:$0xff]  }
 0x13d   : > { %2289 = vmatpush1.bf16.msra.mxu0 %v3100_v17  ;;  %v3198_v17 = vld [vmem:[%s3799_s9 + $0x6ec] ss:$16 sps:$4 sm:$0xff]  }
 0x13e   : > { %2264 = vmatpush1.bf16.msra.mxu1 %v3097_v15  ;;  %2290 = vmatprep.subr.bf16.mxu0 %v3105_v18  ;;  %v3195_v15 = vld [vmem:[%s3799_s9 + $0x5ec] ss:$16 sps:$4 sm:$0xff]   ;;  %v3193_v18 = vld [vmem:[%s3799_s9 + $0x5e8] ss:$16 sps:$4 sm:$0xff]  }
 0x13f   : > { %2315 = vmatprep.subr.bf16.mxu1 %v3108_v19  ;;  %v3196_v19 = vld [vmem:[%s3799_s9 + $0x6e8] ss:$16 sps:$4 sm:$0xff]  }
 0x141   : > { %2266 = vmatmul.mubr.bf16.vlgmr.msra.gmra.mrb[8].mxu1 %v3876_v39  ;;  %2291 = vmatpush1.bf16.msra.mxu0 %v3103_v21  ;;  %v3118_v39 = vld [vmem:[%s3799_s9 + $0x448] ss:$16 sps:$4 sm:$0xff]  }
 0x142   : > { %2316 = vmatpush1.bf16.msra.mxu1 %v3106_v22  ;;  %2292 = vmatprep.subr.bf16.mxu0 %v3111_v23 }
 0x143   : > { %2317 = vmatprep.subr.bf16.mxu1 %v3114_v24  ;;  %2347 = vmatprep.mubr.bf16.mxu1 %v3913_v4  ;;  %v3129_v4 = vld [vmem:[%s3799_s9 + $0x38c] ss:$16 sps:$4 sm:$0xff]  }
 0x145   : > { %2293 = vmatpush1.bf16.msra.mxu0 %v3109_v25 }
 0x146   : > { %2318 = vmatpush1.bf16.msra.mxu1 %v3112_v26  ;;  %2294 = vmatprep.subr.bf16.mxu0 %v3117_v27 }
 0x147   : > { %2319 = vmatprep.subr.bf16.mxu1 %v3120_v28 }
 0x149   : > { %2295 = vmatpush1.bf16.msra.mxu0 %v3115_v16 }
 0x14a   : > { %2320 = vmatpush1.bf16.msra.mxu1 %v3118_v39  ;;  %2296 = vmatprep.subr.bf16.mxu0 %v3123_v29 }
 0x14b   : > { %2321 = vmatprep.subr.bf16.mxu1 %v3126_v30 }
 0x14d   : > { %2297 = vmatpush1.bf16.msra.mxu0 %v3121_v31 }
 0x14e   : > { %2322 = vmatpush1.bf16.msra.mxu1 %v3124_v32  ;;  %2298 = vmatprep.subr.bf16.mxu0 %v3129_v4 }
 0x14f   : > { %2323 = vmatprep.subr.bf16.mxu1 %v3132_v33 }
 0x151   : > { %2299 = vmatpush1.bf16.msra.mxu0 %v3127_v34 }
 0x152   : > { %2324 = vmatpush1.bf16.msra.mxu1 %v3130_v35  ;;  %2300 = vmatprep.subr.bf16.mxu0 %v3135_v36 }
 0x153   : > { %2325 = vmatprep.subr.bf16.mxu1 %v3138_v37  ;;  %v693_v37 = vld [vmem:[#allocation2 + $0x8] sm:$0xff] }
 0x155   : > { %2301 = vmatpush1.bf16.msra.mxu0 %v3133_v38 }
 0x156   : > { %2326 = vmatpush1.bf16.msra.mxu1 %v3136_v41  ;;  %2302 = vmatprep.subr.bf16.mxu0 %v3141_v42 }
 0x157   : > { %2327 = vmatprep.subr.bf16.mxu1 %v3144_v43 }
 0x159   : > { %2303 = vmatpush1.bf16.msra.mxu0 %v3139_v44 }
 0x15a   : > { %2328 = vmatpush1.bf16.msra.mxu1 %v3142_v45  ;;  %2304 = vmatprep.subr.bf16.mxu0 %v3147_v46 }
 0x15b   : > { %2329 = vmatprep.subr.bf16.mxu1 %v3150_v47 }
 0x15d   : > { %2305 = vmatpush1.bf16.msra.mxu0 %v3145_v50 }
 0x15e   : > { %2330 = vmatpush1.bf16.msra.mxu1 %v3148_v51  ;;  %2356 = vmatprep.subr.bf16.mxu0 %v3156_v53 }
 0x15f   : > { %2331 = vmatprep.subr.bf16.mxu1 %v3153_v52 }
 0x160   : > { %2307 = vmatmul.mubr.bf16.vlgmr.msra.gmra.mrb[8].mxu0 %v3878_v40  ;;  %v3166_v40 = vld [vmem:[%s3799_s9 + $0x648] ss:$16 sps:$4 sm:$0xff]  }
 0x161   : > { %2357 = vmatpush1.bf16.msra.mxu0 %v3154_v55  ;;  %2388 = vmatprep.mubr.bf16.mxu0 %v3256_v49  ;;  %v3177_v49 = vld [vmem:[%s3799_s9 + $0x58c] ss:$16 sps:$4 sm:$0xff]  }
 0x162   : > { %2332 = vmatpush1.bf16.msra.mxu1 %v3151_v54  ;;  %2358 = vmatprep.subr.bf16.mxu0 %v3162_v57 }
 0x163   : > { %2333 = vmatprep.subr.bf16.mxu1 %v3159_v56 }
 0x165   : > { %2359 = vmatpush1.bf16.msra.mxu0 %v3160_v59 }
 0x166   : > { %2334 = vmatpush1.bf16.msra.mxu1 %v3157_v58  ;;  %2360 = vmatprep.subr.bf16.mxu0 %v3168_v61  ;;  %v694_v61 = vld [vmem:[#allocation2 + $0x10] sm:$0xff] }
 0x167   : > { %2335 = vmatprep.subr.bf16.mxu1 %v3165_v60 }
 0x169   : > { %2361 = vmatpush1.bf16.msra.mxu0 %v3166_v40 }
 0x16a   : > { %2336 = vmatpush1.bf16.msra.mxu1 %v3163_v62  ;;  %2362 = vmatprep.subr.bf16.mxu0 %v3174_v20 }
 0x16b   : > { %2337 = vmatprep.subr.bf16.mxu1 %v3171_v63 }
 0x16d   : > { %2363 = vmatpush1.bf16.msra.mxu0 %v3172_v1 }
 0x16e   : > { %2338 = vmatpush1.bf16.msra.mxu1 %v3169_v0  ;;  %2364 = vmatprep.subr.bf16.mxu0 %v3180_v2  ;;  %v695_v0 = vld [vmem:[#allocation2 + $0x18] sm:$0xff] }
 0x16f   : > { %2339 = vmatprep.subr.bf16.mxu1 %v3177_v49 }
 0x171   : > { %2365 = vmatpush1.bf16.msra.mxu0 %v3178_v5 }
 0x172   : > { %2340 = vmatpush1.bf16.msra.mxu1 %v3175_v3  ;;  %2366 = vmatprep.subr.bf16.mxu0 %v3186_v7 }
 0x173   : > { %2341 = vmatprep.subr.bf16.mxu1 %v3183_v6 }
 0x175   : > { %2367 = vmatpush1.bf16.msra.mxu0 %v3184_v9 }
 0x176   : > { %2342 = vmatpush1.bf16.msra.mxu1 %v3181_v8  ;;  %2368 = vmatprep.subr.bf16.mxu0 %v3192_v11 }
 0x177   : > { %2343 = vmatprep.subr.bf16.mxu1 %v3189_v10 }
 0x179   : > { %2369 = vmatpush1.bf16.msra.mxu0 %v3190_v14 }
 0x17a   : > { %2344 = vmatpush1.bf16.msra.mxu1 %v3187_v12  ;;  %2370 = vmatprep.subr.bf16.mxu0 %v3198_v17 }
 0x17b   : > { %2345 = vmatprep.subr.bf16.mxu1 %v3195_v15 }
 0x17d   : > { %2371 = vmatpush1.bf16.msra.mxu0 %v3196_v19 }
 0x17e   : > { %2346 = vmatpush1.bf16.msra.mxu1 %v3193_v18 }
 0x180   : > { %2389 = vmatmul.mubr.bf16.vlgmr.msra.gmra.mrb[12].mxu0 %v3925_v13 }
 0x181   : > { %2348 = vmatmul.mubr.bf16.vlgmr.msra.gmra.mrb[12].mxu1 %v3962_v48  ;;  %v692_v48 = vld [vmem:[#allocation2] sm:$0xff] }
 0x1b3   : > { %v2103_v21 = vpop.f32.mrb[0].mxu0 }
 0x1b4   : > { %v2144_v22 = vpop.f32.mrb[0].mxu1  ;;  %v2105_v24 = vpop.f32.mrb[1].mxu0 }
 0x1b5   : > { %v2145_v23 = vadd.f32 %v2144_v22, %v2103_v21  ;;  %v2146_v25 = vpop.f32.mrb[1].mxu1  ;;  %v2107_v27 = vpop.f32.mrb[2].mxu0 }
 0x1b6   : > { %v2147_v26 = vadd.f32 %v2146_v25, %v2105_v24  ;;  %v2148_v28 = vpop.f32.mrb[2].mxu1  ;;  %v2108_v16 = vpop.f32.mrb[3].mxu0 }
 0x1b7   : > { %v2149_v39 = vpop.f32.mrb[3].mxu1 }
 0x1d4   : > { %v2226_v29 = vpop.f32.mrb[4].mxu1 }
 0x1d5   : > { %v2228_v30 = vpop.f32.mrb[5].mxu1 }
 0x1d6   : > { %v2230_v31 = vpop.f32.mrb[6].mxu1 }
 0x1d7   : > { %v2231_v32 = vpop.f32.mrb[7].mxu1 }
 0x1f3   : > { %v2185_v4 = vpop.f32.mrb[4].mxu0 }
 0x1f4   : > { %v2186_v33 = vadd.f32 %v2185_v4, %v2145_v23  ;;  %v2187_v34 = vpop.f32.mrb[5].mxu0 }
 0x1f5   : > { %v2188_v35 = vadd.f32 %v2187_v34, %v2147_v26  ;;  %v2189_v13 = vpop.f32.mrb[6].mxu0 }
 0x1f6   : > { %v2227_v36 = vadd.f32 %v2226_v29, %v2186_v33  ;;  %v2190_v38 = vpop.f32.mrb[7].mxu0 }
 0x1f7   : > { %v2229_v41 = vadd.f32 %v2228_v30, %v2188_v35 }
 0x1f8   : > { %v2397_v42 = vadd.f32 %v2227_v36, %v692_v48 }
 0x1f9   : > { %v2398_v43 = vadd.f32 %v2229_v41, %v693_v37 }
 0x1fa   : > { %2401 = vst [vmem:[#allocation2] sm:$0xff] %v2397_v42 }
 0x1fb   : > { %2402 = vst [vmem:[#allocation2 + $0x8] sm:$0xff] %v2398_v43 }
 0x201   : > { %v2409_v6 = vld [vmem:[#allocation2] sm:$0xff] (!%p2788_p13) }
 0x202   : > { %v2410_v7 = vld [vmem:[#allocation2 + $0x8] sm:$0xff] (!%p2788_p13) }
 0x203   : > { %v2794_v9 = vpack.c.bf16 (!%p2788_p13), %v2410_v7, %v2409_v6 }
 0x205   : > { %2429 = vst [vmem:[%s3797_s26] sm:$0xff] (!%p2788_p13), %v2794_v9 }
 0x214   : > { %v2267_v44 = vpop.f32.mrb[8].mxu1 }
 0x215   : > { %v2269_v45 = vpop.f32.mrb[9].mxu1 }
 0x216   : > { %v2271_v46 = vpop.f32.mrb[10].mxu1 }
 0x217   : > { %v2272_v47 = vpop.f32.mrb[11].mxu1 }
 0x233   : > { %v2308_v50 = vpop.f32.mrb[8].mxu0 }
 0x234   : > { %v2309_v51 = vadd.f32 %v2308_v50, %v2267_v44  ;;  %v2310_v52 = vpop.f32.mrb[9].mxu0 }
 0x235   : > { %v2311_v53 = vadd.f32 %v2310_v52, %v2269_v45  ;;  %v2312_v54 = vpop.f32.mrb[10].mxu0 }
 0x236   : > { %v2313_v55 = vpop.f32.mrb[11].mxu0 }
 0x253   : > { %v2390_v57 = vpop.f32.mrb[12].mxu0 }
 0x254   : > { %v2349_v56 = vpop.f32.mrb[12].mxu1  ;;  %v2392_v60 = vpop.f32.mrb[13].mxu0 }
 0x255   : > { %v2350_v58 = vadd.f32 %v2349_v56, %v2309_v51  ;;  %v2351_v59 = vpop.f32.mrb[13].mxu1  ;;  %v2394_v63 = vpop.f32.mrb[14].mxu0 }
 0x256   : > { %v2352_v62 = vadd.f32 %v2351_v59, %v2311_v53  ;;  %v2353_v40 = vpop.f32.mrb[14].mxu1  ;;  %v2395_v49 = vpop.f32.mrb[15].mxu0  ;;  %2408 = sbr.rel (%p2788_p13) target bundleno = 615 (0x267), region = 59 }
 0x257   : > { %v2391_v20 = vadd.f32 %v2390_v57, %v2350_v58  ;;  %v2354_v1 = vpop.f32.mrb[15].mxu1 }
 0x258   : > { %v2393_v2 = vadd.f32 %v2392_v60, %v2352_v62 }
 0x259   : > { %v2399_v3 = vadd.f32 %v2391_v20, %v694_v61 }
 0x25a   : > { %v2400_v5 = vadd.f32 %v2393_v2, %v695_v0 }
 0x25b   : > { %2403 = vst [vmem:[#allocation2 + $0x10] sm:$0xff] %v2399_v3 }
 0x25c   : > { %2404 = vst [vmem:[#allocation2 + $0x18] sm:$0xff] %v2400_v5 }
 0x262   : > { %v2411_v8 = vld [vmem:[#allocation2 + $0x10] sm:$0xff] }
 0x263   : > { %v2412_v10 = vld [vmem:[#allocation2 + $0x18] sm:$0xff] }
 0x264   : > { %v2795_v11 = vpack.c.bf16 %v2412_v10, %v2411_v8 }
 0x266   : > { %2430 = vst [vmem:[%s3797_s26 + $0x8] sm:$0xff] %v2795_v11 }
 0x267 PF: > { %s12_s15 = sadd.s32 1, %s3253_s15   ;;  %s4093_s9 = smov %s3233_s10 }
 0x268   : > { %p9_p0 = scmp.ge.s32.totalorder %s12_s15, 16   ;;  %s4094_s10 = smov %s3323_s22 }
 0x269   : > { %s4095_s11 = smov %s3245_s13  ;;  %s4096_s12 = smov %s3249_s14 }
 0x26a   : > { %s4097_s13 = smov %s4100_s16  ;;  %s4098_s14 = smov %s4104_s17 }
 0x26b   :  { %11 = sbr.rel (!%p9_p0) target bundleno = 4 (0x4), region = 97 }

// kernel: infogan_forward.28
= control target key start
LH: loop header
LB: loop body
LE: loop exit
PB: predicated region body
PF: predicated region fallthrough
CT: control target
= control target key end

     0   :  { %vm15_vm0 = vcmask 1041408   ;;  %v38_v20 = vlaneseq  ;;  %s95_s0 = inlined_call_operand.vmem [shape: f32[2,128], index: 0, kind: input, shape index: {}]   ;;  %s96_s1 = inlined_call_operand.vmem [shape: f32[1,128], index: 1, kind: input, shape index: {}]   ;;  %s97_s2 = inlined_call_operand.vmem [shape: f32[1,128], index: 2, kind: input, shape index: {}]   ;;  %s98_s3 = inlined_call_operand.vmem [shape: bf16[2,128], index: 3, kind: output, shape index: {}]  }
   0x1   :  { %v14_v0 = vld [vmem:[%s95_s0] sm:$0x3] }
   0x2   :  { %v16_v1 = vsel %vm15_vm0, %v14_v0, 0.0  ;;  %v39_v21 = vshrl.u32 %v38_v20, 7  ;;  %v36_v22 = vld [vmem:[%s96_s1] sm:$0x1] }
   0x3   :  { %v17_v2 = vrot.slane %v16_v1, 4  ;;  %v60_v27 = vld [vmem:[%s97_s2] ss:$0 sm:$0xff] }
   0x4   :  { %v40_v23 = vsub.s32 0, %v39_v21 }
   0x5   :  { %v18_v3 = vadd.f32 %v17_v2, %v16_v1 }
   0x7   :  { %v19_v4 = vrot.slane %v18_v3, 2 }
   0x9   :  { %v20_v5 = vadd.f32 %v19_v4, %v18_v3 }
   0xb   :  { %v21_v6 = vrot.slane %v20_v5, 1 }
   0xd   :  { %v22_v7 = vadd.f32 %v21_v6, %v20_v5 }
   0xf   :  { %v23_v8 = vmul.f32 0.5, %v22_v7 }
  0x11   :  { %v24_v9 = vsub.f32 %v14_v0, %v23_v8 }
  0x13   :  { %v25_v10 = vmul.f32 %v24_v9, %v24_v9 }
  0x15   :  { %v26_v11 = vsel %vm15_vm0, %v25_v10, 0.0 }
  0x16   :  { %v27_v12 = vrot.slane %v26_v11, 4 }
  0x18   :  { %v28_v13 = vadd.f32 %v27_v12, %v26_v11 }
  0x1a   :  { %v29_v14 = vrot.slane %v28_v13, 2 }
  0x1c   :  { %v30_v15 = vadd.f32 %v29_v14, %v28_v13 }
  0x1e   :  { %v31_v16 = vrot.slane %v30_v15, 1 }
  0x20   :  { %v32_v17 = vadd.f32 %v31_v16, %v30_v15 }
  0x22   :  { %v33_v18 = vmul.f32 0.5, %v32_v17 }
  0x24   :  { %v34_v19 = vadd.f32 1e-05, %v33_v18 }
  0x26   :  { %61 = vrsqrt.f32 %v34_v19 }
  0x30   :  { %v62_v24 = vpop.eup %61 }
  0x31   :  { %v37_v25 = vmul.f32 %v62_v24, %v36_v22 }
  0x33   :  { %v41_v26 = vrot.slane %v37_v25, %v40_v23 }
  0x35   :  { %v42_v28 = vmul.f32 %v41_v26, %v24_v9 }
  0x37   :  { %v50_v29 = vadd.f32 %v60_v27, %v42_v28 }
  0x39   :  { %vm51_vm1 = vcmp.gt.f32.partialorder %v50_v29, 0.0  ;;  %v52_v30 = vmul.f32 0.1, %v50_v29 }
  0x3b   :  { %v53_v31 = vsel %vm51_vm1, %v50_v29, %v52_v30 }
  0x3c   :  { %v54_v32 = vpack.c.bf16 %v53_v31, %v53_v31 }
  0x3e   :  { %55 = vst [vmem:[%s98_s3] sm:$0x1] %v54_v32 }

// kernel: infogan_forward.27
= control target key start
LH: loop header
LB: loop body
LE: loop exit
PB: predicated region body
PF: predicated region fallthrough
CT: control target
= control target key end

     0   :  { %s1940_s12 = smov 0   ;;  %s1942_s13 = smov 0   ;;  %s2371_s0 = inlined_call_operand.vmem [shape: bf16[8,1024], index: 0, kind: input, shape index: {}]   ;;  %s2372_s1 = inlined_call_operand.vmem [shape: bf16[1024,256], index: 1, kind: input, shape index: {}]   ;;  %s2373_s2 = inlined_call_operand.vmem [shape: f32[1,256], index: 2, kind: input, shape index: {}]   ;;  %s2374_s3 = inlined_call_operand.vmem [shape: f32[8,256], index: 3, kind: output, shape index: {}]  }
   0x1   :  { %s1944_s14 = smov 0   ;;  %s1946_s15 = smov 0  }
   0x2   :  { %s1948_s16 = smov 0  }
   0x3 LB: > { %s22_s17 = sadd.s32 1, %s1914_s15  ;;  %p65_p1 = scmp.ne.s32.totalorder %s1906_s13, %s1902_s12  ;;  %s1918_s16 = sphi %s1948_s16, %s13_s16   ;;  %s1914_s15 = sphi %s1946_s15, %s2378_s15   ;;  %s1910_s14 = sphi %s1944_s14, %s2377_s14   ;;  %s1906_s13 = sphi %s1942_s13, %s2376_s13   ;;  %s1902_s12 = sphi %s1940_s12, %s2375_s12  }
   0x4   : > { %p23_p0 = scmp.ge.s32.totalorder %s22_s17, 2  ;;  %p66_p2 = scmp.eq.s32.totalorder %s1918_s16, 0 }
   0x5   : > { %s58_s19 = sadd.s32 1, %s1906_s13  ;;  %p1599_p5 = scmp.ge.s32.totalorder %s1918_s16, 2 }
   0x6   : > { %s2380_s17 = smov (%p23_p0, %s22_s17), 0  ;;  %p67_p3 = por %p66_p2, %p65_p1 }
   0x7   : > { %s55_s18 = ssub.s32 %s1914_s15, %s2380_s17  ;;  %153 = sbr.rel (%p1599_p5) target bundleno = 103 (0x67), region = 20 }
   0x8   : > { %p56_p4 = scmp.eq.s32.totalorder %s55_s18, 0 }
   0xa   : > { %s1975_s20 = scalar_select %p56_p4, %s1906_s13, %s58_s19  }
   0xe   : > { %156 = sbr.rel (!%p67_p3) target bundleno = 103 (0x67), region = 24  ;;  %s158_s21 = sand.u32 (%p67_p3), 1, %s1906_s13  }
   0xf   : > { %s1601_s22 = sshll.u32 (%p67_p3), %s1914_s15, 2  ;;  %s1600_s23 = sshll.u32 (%p67_p3), %s158_s21, 9 }
  0x10   : > { %s1983_s26 = scalar_lea.vmem (%p67_p3), %s2372_s1, %s1601_s22  ;;  %s1987_s27 = scalar_lea.vmem (%p67_p3), [#allocation2], %s1600_s23 }
  0x11   : > { %v178_v0 = vld [vmem:[%s1983_s26] sm:$0xf] (%p67_p3)  ;;  %v180_v1 = vld [vmem:[%s1983_s26 + $0x8] sm:$0xf] (%p67_p3)  ;;  %v182_v2 = vld [vmem:[%s1983_s26 + $0x10] sm:$0xf] (%p67_p3) }
  0x12   : > { %179 = vst [vmem:[%s1987_s27] sm:$0xf] (%p67_p3), %v178_v0  ;;  %181 = vst [vmem:[%s1987_s27 + $0x4] sm:$0xf] (%p67_p3), %v180_v1  ;;  %v184_v3 = vld [vmem:[%s1983_s26 + $0x18] sm:$0xf] (%p67_p3) }
  0x13   : > { %v186_v4 = vld [vmem:[%s1983_s26 + $0x20] sm:$0xf] (%p67_p3)  ;;  %183 = vst [vmem:[%s1987_s27 + $0x8] sm:$0xf] (%p67_p3), %v182_v2  ;;  %185 = vst [vmem:[%s1987_s27 + $0xc] sm:$0xf] (%p67_p3), %v184_v3 }
  0x14   : > { %187 = vst [vmem:[%s1987_s27 + $0x10] sm:$0xf] (%p67_p3), %v186_v4  ;;  %v188_v5 = vld [vmem:[%s1983_s26 + $0x28] sm:$0xf] (%p67_p3)  ;;  %v190_v6 = vld [vmem:[%s1983_s26 + $0x30] sm:$0xf] (%p67_p3) }
  0x15   : > { %v192_v7 = vld [vmem:[%s1983_s26 + $0x38] sm:$0xf]  ;;  %189 = vst [vmem:[%s1987_s27 + $0x14] sm:$0xf] %v188_v5  ;;  %191 = vst [vmem:[%s1987_s27 + $0x18] sm:$0xf] %v190_v6 }
  0x16   : > { %193 = vst [vmem:[%s1987_s27 + $0x1c] sm:$0xf] %v192_v7  ;;  %v194_v8 = vld [vmem:[%s1983_s26 + $0x40] sm:$0xf]  ;;  %v196_v9 = vld [vmem:[%s1983_s26 + $0x48] sm:$0xf] }
  0x17   : > { %v198_v10 = vld [vmem:[%s1983_s26 + $0x50] sm:$0xf]  ;;  %195 = vst [vmem:[%s1987_s27 + $0x20] sm:$0xf] %v194_v8  ;;  %197 = vst [vmem:[%s1987_s27 + $0x24] sm:$0xf] %v196_v9 }
  0x18   : > { %199 = vst [vmem:[%s1987_s27 + $0x28] sm:$0xf] %v198_v10  ;;  %v200_v11 = vld [vmem:[%s1983_s26 + $0x58] sm:$0xf]  ;;  %v202_v12 = vld [vmem:[%s1983_s26 + $0x60] sm:$0xf] }
  0x19   : > { %v204_v13 = vld [vmem:[%s1983_s26 + $0x68] sm:$0xf]  ;;  %201 = vst [vmem:[%s1987_s27 + $0x2c] sm:$0xf] %v200_v11  ;;  %203 = vst [vmem:[%s1987_s27 + $0x30] sm:$0xf] %v202_v12 }
  0x1a   : > { %205 = vst [vmem:[%s1987_s27 + $0x34] sm:$0xf] %v204_v13  ;;  %v206_v14 = vld [vmem:[%s1983_s26 + $0x70] sm:$0xf]  ;;  %v208_v15 = vld [vmem:[%s1983_s26 + $0x78] sm:$0xf] }
  0x1b   : > { %v210_v16 = vld [vmem:[%s1983_s26 + $0x80] sm:$0xf]  ;;  %207 = vst [vmem:[%s1987_s27 + $0x38] sm:$0xf] %v206_v14  ;;  %209 = vst [vmem:[%s1987_s27 + $0x3c] sm:$0xf] %v208_v15 }
  0x1c   : > { %211 = vst [vmem:[%s1987_s27 + $0x40] sm:$0xf] %v210_v16  ;;  %v212_v17 = vld [vmem:[%s1983_s26 + $0x88] sm:$0xf]  ;;  %v214_v18 = vld [vmem:[%s1983_s26 + $0x90] sm:$0xf] }
  0x1d   : > { %v216_v19 = vld [vmem:[%s1983_s26 + $0x98] sm:$0xf]  ;;  %213 = vst [vmem:[%s1987_s27 + $0x44] sm:$0xf] %v212_v17  ;;  %215 = vst [vmem:[%s1987_s27 + $0x48] sm:$0xf] %v214_v18 }
  0x1e   : > { %217 = vst [vmem:[%s1987_s27 + $0x4c] sm:$0xf] %v216_v19  ;;  %v218_v20 = vld [vmem:[%s1983_s26 + $0xa0] sm:$0xf]  ;;  %v220_v21 = vld [vmem:[%s1983_s26 + $0xa8] sm:$0xf] }
  0x1f   : > { %v222_v22 = vld [vmem:[%s1983_s26 + $0xb0] sm:$0xf]  ;;  %219 = vst [vmem:[%s1987_s27 + $0x50] sm:$0xf] %v218_v20  ;;  %221 = vst [vmem:[%s1987_s27 + $0x54] sm:$0xf] %v220_v21 }
  0x20   : > { %223 = vst [vmem:[%s1987_s27 + $0x58] sm:$0xf] %v222_v22  ;;  %v224_v23 = vld [vmem:[%s1983_s26 + $0xb8] sm:$0xf]  ;;  %v226_v24 = vld [vmem:[%s1983_s26 + $0xc0] sm:$0xf] }
  0x21   : > { %v228_v25 = vld [vmem:[%s1983_s26 + $0xc8] sm:$0xf]  ;;  %225 = vst [vmem:[%s1987_s27 + $0x5c] sm:$0xf] %v224_v23  ;;  %227 = vst [vmem:[%s1987_s27 + $0x60] sm:$0xf] %v226_v24 }
  0x22   : > { %229 = vst [vmem:[%s1987_s27 + $0x64] sm:$0xf] %v228_v25  ;;  %v230_v26 = vld [vmem:[%s1983_s26 + $0xd0] sm:$0xf]  ;;  %v232_v27 = vld [vmem:[%s1983_s26 + $0xd8] sm:$0xf] }
  0x23   : > { %v234_v28 = vld [vmem:[%s1983_s26 + $0xe0] sm:$0xf]  ;;  %231 = vst [vmem:[%s1987_s27 + $0x68] sm:$0xf] %v230_v26  ;;  %233 = vst [vmem:[%s1987_s27 + $0x6c] sm:$0xf] %v232_v27 }
  0x24   : > { %235 = vst [vmem:[%s1987_s27 + $0x70] sm:$0xf] %v234_v28  ;;  %v236_v29 = vld [vmem:[%s1983_s26 + $0xe8] sm:$0xf]  ;;  %v238_v30 = vld [vmem:[%s1983_s26 + $0xf0] sm:$0xf] }
  0x25   : > { %v240_v31 = vld [vmem:[%s1983_s26 + $0xf8] sm:$0xf]  ;;  %237 = vst [vmem:[%s1987_s27 + $0x74] sm:$0xf] %v236_v29  ;;  %239 = vst [vmem:[%s1987_s27 + $0x78] sm:$0xf] %v238_v30 }
  0x26   : > { %241 = vst [vmem:[%s1987_s27 + $0x7c] sm:$0xf] %v240_v31  ;;  %v242_v32 = vld [vmem:[%s1983_s26 + $0x100] sm:$0xf]  ;;  %v244_v33 = vld [vmem:[%s1983_s26 + $0x108] sm:$0xf] }
  0x27   : > { %v246_v34 = vld [vmem:[%s1983_s26 + $0x110] sm:$0xf]  ;;  %243 = vst [vmem:[%s1987_s27 + $0x80] sm:$0xf] %v242_v32  ;;  %245 = vst [vmem:[%s1987_s27 + $0x84] sm:$0xf] %v244_v33 }
  0x28   : > { %247 = vst [vmem:[%s1987_s27 + $0x88] sm:$0xf] %v246_v34  ;;  %v248_v35 = vld [vmem:[%s1983_s26 + $0x118] sm:$0xf]  ;;  %v250_v36 = vld [vmem:[%s1983_s26 + $0x120] sm:$0xf] }
  0x29   : > { %v252_v37 = vld [vmem:[%s1983_s26 + $0x128] sm:$0xf]  ;;  %249 = vst [vmem:[%s1987_s27 + $0x8c] sm:$0xf] %v248_v35  ;;  %251 = vst [vmem:[%s1987_s27 + $0x90] sm:$0xf] %v250_v36 }
  0x2a   : > { %253 = vst [vmem:[%s1987_s27 + $0x94] sm:$0xf] %v252_v37  ;;  %v254_v38 = vld [vmem:[%s1983_s26 + $0x130] sm:$0xf]  ;;  %v256_v39 = vld [vmem:[%s1983_s26 + $0x138] sm:$0xf] }
  0x2b   : > { %v258_v40 = vld [vmem:[%s1983_s26 + $0x140] sm:$0xf]  ;;  %255 = vst [vmem:[%s1987_s27 + $0x98] sm:$0xf] %v254_v38  ;;  %257 = vst [vmem:[%s1987_s27 + $0x9c] sm:$0xf] %v256_v39 }
  0x2c   : > { %259 = vst [vmem:[%s1987_s27 + $0xa0] sm:$0xf] %v258_v40  ;;  %v260_v41 = vld [vmem:[%s1983_s26 + $0x148] sm:$0xf]  ;;  %v262_v42 = vld [vmem:[%s1983_s26 + $0x150] sm:$0xf] }
  0x2d   : > { %v264_v43 = vld [vmem:[%s1983_s26 + $0x158] sm:$0xf]  ;;  %261 = vst [vmem:[%s1987_s27 + $0xa4] sm:$0xf] %v260_v41  ;;  %263 = vst [vmem:[%s1987_s27 + $0xa8] sm:$0xf] %v262_v42 }
  0x2e   : > { %265 = vst [vmem:[%s1987_s27 + $0xac] sm:$0xf] %v264_v43  ;;  %v266_v44 = vld [vmem:[%s1983_s26 + $0x160] sm:$0xf]  ;;  %v268_v45 = vld [vmem:[%s1983_s26 + $0x168] sm:$0xf] }
  0x2f   : > { %v270_v46 = vld [vmem:[%s1983_s26 + $0x170] sm:$0xf]  ;;  %267 = vst [vmem:[%s1987_s27 + $0xb0] sm:$0xf] %v266_v44  ;;  %269 = vst [vmem:[%s1987_s27 + $0xb4] sm:$0xf] %v268_v45 }
  0x30   : > { %271 = vst [vmem:[%s1987_s27 + $0xb8] sm:$0xf] %v270_v46  ;;  %v272_v47 = vld [vmem:[%s1983_s26 + $0x178] sm:$0xf]  ;;  %v274_v48 = vld [vmem:[%s1983_s26 + $0x180] sm:$0xf] }
  0x31   : > { %v276_v49 = vld [vmem:[%s1983_s26 + $0x188] sm:$0xf]  ;;  %273 = vst [vmem:[%s1987_s27 + $0xbc] sm:$0xf] %v272_v47  ;;  %275 = vst [vmem:[%s1987_s27 + $0xc0] sm:$0xf] %v274_v48 }
  0x32   : > { %277 = vst [vmem:[%s1987_s27 + $0xc4] sm:$0xf] %v276_v49  ;;  %v278_v50 = vld [vmem:[%s1983_s26 + $0x190] sm:$0xf]  ;;  %v280_v51 = vld [vmem:[%s1983_s26 + $0x198] sm:$0xf] }
  0x33   : > { %v282_v52 = vld [vmem:[%s1983_s26 + $0x1a0] sm:$0xf]  ;;  %279 = vst [vmem:[%s1987_s27 + $0xc8] sm:$0xf] %v278_v50  ;;  %281 = vst [vmem:[%s1987_s27 + $0xcc] sm:$0xf] %v280_v51 }
  0x34   : > { %283 = vst [vmem:[%s1987_s27 + $0xd0] sm:$0xf] %v282_v52  ;;  %v284_v53 = vld [vmem:[%s1983_s26 + $0x1a8] sm:$0xf]  ;;  %v286_v54 = vld [vmem:[%s1983_s26 + $0x1b0] sm:$0xf] }
  0x35   : > { %v288_v55 = vld [vmem:[%s1983_s26 + $0x1b8] sm:$0xf]  ;;  %285 = vst [vmem:[%s1987_s27 + $0xd4] sm:$0xf] %v284_v53  ;;  %287 = vst [vmem:[%s1987_s27 + $0xd8] sm:$0xf] %v286_v54 }
  0x36   : > { %289 = vst [vmem:[%s1987_s27 + $0xdc] sm:$0xf] %v288_v55  ;;  %v290_v56 = vld [vmem:[%s1983_s26 + $0x1c0] sm:$0xf]  ;;  %v292_v57 = vld [vmem:[%s1983_s26 + $0x1c8] sm:$0xf] }
  0x37   : > { %v294_v58 = vld [vmem:[%s1983_s26 + $0x1d0] sm:$0xf]  ;;  %291 = vst [vmem:[%s1987_s27 + $0xe0] sm:$0xf] %v290_v56  ;;  %293 = vst [vmem:[%s1987_s27 + $0xe4] sm:$0xf] %v292_v57 }
  0x38   : > { %295 = vst [vmem:[%s1987_s27 + $0xe8] sm:$0xf] %v294_v58  ;;  %v296_v59 = vld [vmem:[%s1983_s26 + $0x1d8] sm:$0xf]  ;;  %v298_v60 = vld [vmem:[%s1983_s26 + $0x1e0] sm:$0xf] }
  0x39   : > { %v300_v61 = vld [vmem:[%s1983_s26 + $0x1e8] sm:$0xf]  ;;  %297 = vst [vmem:[%s1987_s27 + $0xec] sm:$0xf] %v296_v59  ;;  %299 = vst [vmem:[%s1987_s27 + $0xf0] sm:$0xf] %v298_v60 }
  0x3a   : > { %301 = vst [vmem:[%s1987_s27 + $0xf4] sm:$0xf] %v300_v61  ;;  %v302_v62 = vld [vmem:[%s1983_s26 + $0x1f0] sm:$0xf]  ;;  %v304_v63 = vld [vmem:[%s1983_s26 + $0x1f8] sm:$0xf] }
  0x3b   : > { %v306_v0 = vld [vmem:[%s1983_s26 + $0x200] sm:$0xf]  ;;  %303 = vst [vmem:[%s1987_s27 + $0xf8] sm:$0xf] %v302_v62  ;;  %305 = vst [vmem:[%s1987_s27 + $0xfc] sm:$0xf] %v304_v63 }
  0x3c   : > { %307 = vst [vmem:[%s1987_s27 + $0x100] sm:$0xf] %v306_v0  ;;  %v308_v1 = vld [vmem:[%s1983_s26 + $0x208] sm:$0xf]  ;;  %v310_v2 = vld [vmem:[%s1983_s26 + $0x210] sm:$0xf] }
  0x3d   : > { %v312_v3 = vld [vmem:[%s1983_s26 + $0x218] sm:$0xf]  ;;  %309 = vst [vmem:[%s1987_s27 + $0x104] sm:$0xf] %v308_v1  ;;  %311 = vst [vmem:[%s1987_s27 + $0x108] sm:$0xf] %v310_v2 }
  0x3e   : > { %313 = vst [vmem:[%s1987_s27 + $0x10c] sm:$0xf] %v312_v3  ;;  %v314_v4 = vld [vmem:[%s1983_s26 + $0x220] sm:$0xf]  ;;  %v316_v5 = vld [vmem:[%s1983_s26 + $0x228] sm:$0xf] }
  0x3f   : > { %v318_v6 = vld [vmem:[%s1983_s26 + $0x230] sm:$0xf]  ;;  %315 = vst [vmem:[%s1987_s27 + $0x110] sm:$0xf] %v314_v4  ;;  %317 = vst [vmem:[%s1987_s27 + $0x114] sm:$0xf] %v316_v5 }
  0x40   : > { %319 = vst [vmem:[%s1987_s27 + $0x118] sm:$0xf] %v318_v6  ;;  %v320_v7 = vld [vmem:[%s1983_s26 + $0x238] sm:$0xf]  ;;  %v322_v8 = vld [vmem:[%s1983_s26 + $0x240] sm:$0xf] }
  0x41   : > { %v324_v9 = vld [vmem:[%s1983_s26 + $0x248] sm:$0xf]  ;;  %321 = vst [vmem:[%s1987_s27 + $0x11c] sm:$0xf] %v320_v7  ;;  %323 = vst [vmem:[%s1987_s27 + $0x120] sm:$0xf] %v322_v8 }
  0x42   : > { %325 = vst [vmem:[%s1987_s27 + $0x124] sm:$0xf] %v324_v9  ;;  %v326_v10 = vld [vmem:[%s1983_s26 + $0x250] sm:$0xf]  ;;  %v328_v11 = vld [vmem:[%s1983_s26 + $0x258] sm:$0xf] }
  0x43   : > { %v330_v12 = vld [vmem:[%s1983_s26 + $0x260] sm:$0xf]  ;;  %327 = vst [vmem:[%s1987_s27 + $0x128] sm:$0xf] %v326_v10  ;;  %329 = vst [vmem:[%s1987_s27 + $0x12c] sm:$0xf] %v328_v11 }
  0x44   : > { %331 = vst [vmem:[%s1987_s27 + $0x130] sm:$0xf] %v330_v12  ;;  %v332_v13 = vld [vmem:[%s1983_s26 + $0x268] sm:$0xf]  ;;  %v334_v14 = vld [vmem:[%s1983_s26 + $0x270] sm:$0xf] }
  0x45   : > { %v336_v15 = vld [vmem:[%s1983_s26 + $0x278] sm:$0xf]  ;;  %333 = vst [vmem:[%s1987_s27 + $0x134] sm:$0xf] %v332_v13  ;;  %335 = vst [vmem:[%s1987_s27 + $0x138] sm:$0xf] %v334_v14 }
  0x46   : > { %337 = vst [vmem:[%s1987_s27 + $0x13c] sm:$0xf] %v336_v15  ;;  %v338_v16 = vld [vmem:[%s1983_s26 + $0x280] sm:$0xf]  ;;  %v340_v17 = vld [vmem:[%s1983_s26 + $0x288] sm:$0xf] }
  0x47   : > { %v342_v18 = vld [vmem:[%s1983_s26 + $0x290] sm:$0xf]  ;;  %339 = vst [vmem:[%s1987_s27 + $0x140] sm:$0xf] %v338_v16  ;;  %341 = vst [vmem:[%s1987_s27 + $0x144] sm:$0xf] %v340_v17 }
  0x48   : > { %343 = vst [vmem:[%s1987_s27 + $0x148] sm:$0xf] %v342_v18  ;;  %v344_v19 = vld [vmem:[%s1983_s26 + $0x298] sm:$0xf]  ;;  %v346_v20 = vld [vmem:[%s1983_s26 + $0x2a0] sm:$0xf] }
  0x49   : > { %v348_v21 = vld [vmem:[%s1983_s26 + $0x2a8] sm:$0xf]  ;;  %345 = vst [vmem:[%s1987_s27 + $0x14c] sm:$0xf] %v344_v19  ;;  %347 = vst [vmem:[%s1987_s27 + $0x150] sm:$0xf] %v346_v20 }
  0x4a   : > { %349 = vst [vmem:[%s1987_s27 + $0x154] sm:$0xf] %v348_v21  ;;  %v350_v22 = vld [vmem:[%s1983_s26 + $0x2b0] sm:$0xf]  ;;  %v352_v23 = vld [vmem:[%s1983_s26 + $0x2b8] sm:$0xf] }
  0x4b   : > { %v354_v24 = vld [vmem:[%s1983_s26 + $0x2c0] sm:$0xf]  ;;  %351 = vst [vmem:[%s1987_s27 + $0x158] sm:$0xf] %v350_v22  ;;  %353 = vst [vmem:[%s1987_s27 + $0x15c] sm:$0xf] %v352_v23 }
  0x4c   : > { %355 = vst [vmem:[%s1987_s27 + $0x160] sm:$0xf] %v354_v24  ;;  %v356_v25 = vld [vmem:[%s1983_s26 + $0x2c8] sm:$0xf]  ;;  %v358_v26 = vld [vmem:[%s1983_s26 + $0x2d0] sm:$0xf] }
  0x4d   : > { %v360_v27 = vld [vmem:[%s1983_s26 + $0x2d8] sm:$0xf]  ;;  %357 = vst [vmem:[%s1987_s27 + $0x164] sm:$0xf] %v356_v25  ;;  %359 = vst [vmem:[%s1987_s27 + $0x168] sm:$0xf] %v358_v26 }
  0x4e   : > { %361 = vst [vmem:[%s1987_s27 + $0x16c] sm:$0xf] %v360_v27  ;;  %v362_v28 = vld [vmem:[%s1983_s26 + $0x2e0] sm:$0xf]  ;;  %v364_v29 = vld [vmem:[%s1983_s26 + $0x2e8] sm:$0xf] }
  0x4f   : > { %v366_v30 = vld [vmem:[%s1983_s26 + $0x2f0] sm:$0xf]  ;;  %363 = vst [vmem:[%s1987_s27 + $0x170] sm:$0xf] %v362_v28  ;;  %365 = vst [vmem:[%s1987_s27 + $0x174] sm:$0xf] %v364_v29 }
  0x50   : > { %367 = vst [vmem:[%s1987_s27 + $0x178] sm:$0xf] %v366_v30  ;;  %v368_v31 = vld [vmem:[%s1983_s26 + $0x2f8] sm:$0xf]  ;;  %v370_v32 = vld [vmem:[%s1983_s26 + $0x300] sm:$0xf] }
  0x51   : > { %v372_v33 = vld [vmem:[%s1983_s26 + $0x308] sm:$0xf]  ;;  %369 = vst [vmem:[%s1987_s27 + $0x17c] sm:$0xf] %v368_v31  ;;  %371 = vst [vmem:[%s1987_s27 + $0x180] sm:$0xf] %v370_v32 }
  0x52   : > { %373 = vst [vmem:[%s1987_s27 + $0x184] sm:$0xf] %v372_v33  ;;  %v374_v34 = vld [vmem:[%s1983_s26 + $0x310] sm:$0xf]  ;;  %v376_v35 = vld [vmem:[%s1983_s26 + $0x318] sm:$0xf] }
  0x53   : > { %v378_v36 = vld [vmem:[%s1983_s26 + $0x320] sm:$0xf]  ;;  %375 = vst [vmem:[%s1987_s27 + $0x188] sm:$0xf] %v374_v34  ;;  %377 = vst [vmem:[%s1987_s27 + $0x18c] sm:$0xf] %v376_v35 }
  0x54   : > { %379 = vst [vmem:[%s1987_s27 + $0x190] sm:$0xf] %v378_v36  ;;  %v380_v37 = vld [vmem:[%s1983_s26 + $0x328] sm:$0xf]  ;;  %v382_v38 = vld [vmem:[%s1983_s26 + $0x330] sm:$0xf] }
  0x55   : > { %v384_v39 = vld [vmem:[%s1983_s26 + $0x338] sm:$0xf]  ;;  %381 = vst [vmem:[%s1987_s27 + $0x194] sm:$0xf] %v380_v37  ;;  %383 = vst [vmem:[%s1987_s27 + $0x198] sm:$0xf] %v382_v38 }
  0x56   : > { %385 = vst [vmem:[%s1987_s27 + $0x19c] sm:$0xf] %v384_v39  ;;  %v386_v40 = vld [vmem:[%s1983_s26 + $0x340] sm:$0xf]  ;;  %v388_v41 = vld [vmem:[%s1983_s26 + $0x348] sm:$0xf] }
  0x57   : > { %v390_v42 = vld [vmem:[%s1983_s26 + $0x350] sm:$0xf]  ;;  %387 = vst [vmem:[%s1987_s27 + $0x1a0] sm:$0xf] %v386_v40  ;;  %389 = vst [vmem:[%s1987_s27 + $0x1a4] sm:$0xf] %v388_v41 }
  0x58   : > { %391 = vst [vmem:[%s1987_s27 + $0x1a8] sm:$0xf] %v390_v42  ;;  %v392_v43 = vld [vmem:[%s1983_s26 + $0x358] sm:$0xf]  ;;  %v394_v44 = vld [vmem:[%s1983_s26 + $0x360] sm:$0xf] }
  0x59   : > { %v396_v45 = vld [vmem:[%s1983_s26 + $0x368] sm:$0xf]  ;;  %393 = vst [vmem:[%s1987_s27 + $0x1ac] sm:$0xf] %v392_v43  ;;  %395 = vst [vmem:[%s1987_s27 + $0x1b0] sm:$0xf] %v394_v44 }
  0x5a   : > { %397 = vst [vmem:[%s1987_s27 + $0x1b4] sm:$0xf] %v396_v45  ;;  %v398_v46 = vld [vmem:[%s1983_s26 + $0x370] sm:$0xf]  ;;  %v400_v47 = vld [vmem:[%s1983_s26 + $0x378] sm:$0xf] }
  0x5b   : > { %v402_v48 = vld [vmem:[%s1983_s26 + $0x380] sm:$0xf]  ;;  %399 = vst [vmem:[%s1987_s27 + $0x1b8] sm:$0xf] %v398_v46  ;;  %401 = vst [vmem:[%s1987_s27 + $0x1bc] sm:$0xf] %v400_v47 }
  0x5c   : > { %403 = vst [vmem:[%s1987_s27 + $0x1c0] sm:$0xf] %v402_v48  ;;  %v404_v49 = vld [vmem:[%s1983_s26 + $0x388] sm:$0xf]  ;;  %v406_v50 = vld [vmem:[%s1983_s26 + $0x390] sm:$0xf] }
  0x5d   : > { %v408_v51 = vld [vmem:[%s1983_s26 + $0x398] sm:$0xf]  ;;  %405 = vst [vmem:[%s1987_s27 + $0x1c4] sm:$0xf] %v404_v49  ;;  %407 = vst [vmem:[%s1987_s27 + $0x1c8] sm:$0xf] %v406_v50 }
  0x5e   : > { %409 = vst [vmem:[%s1987_s27 + $0x1cc] sm:$0xf] %v408_v51  ;;  %v410_v52 = vld [vmem:[%s1983_s26 + $0x3a0] sm:$0xf]  ;;  %v412_v53 = vld [vmem:[%s1983_s26 + $0x3a8] sm:$0xf] }
  0x5f   : > { %v414_v54 = vld [vmem:[%s1983_s26 + $0x3b0] sm:$0xf]  ;;  %411 = vst [vmem:[%s1987_s27 + $0x1d0] sm:$0xf] %v410_v52  ;;  %413 = vst [vmem:[%s1987_s27 + $0x1d4] sm:$0xf] %v412_v53 }
  0x60   : > { %415 = vst [vmem:[%s1987_s27 + $0x1d8] sm:$0xf] %v414_v54  ;;  %v416_v55 = vld [vmem:[%s1983_s26 + $0x3b8] sm:$0xf]  ;;  %v418_v56 = vld [vmem:[%s1983_s26 + $0x3c0] sm:$0xf] }
  0x61   : > { %v420_v57 = vld [vmem:[%s1983_s26 + $0x3c8] sm:$0xf]  ;;  %417 = vst [vmem:[%s1987_s27 + $0x1dc] sm:$0xf] %v416_v55  ;;  %419 = vst [vmem:[%s1987_s27 + $0x1e0] sm:$0xf] %v418_v56 }
  0x62   : > { %421 = vst [vmem:[%s1987_s27 + $0x1e4] sm:$0xf] %v420_v57  ;;  %v422_v58 = vld [vmem:[%s1983_s26 + $0x3d0] sm:$0xf]  ;;  %v424_v59 = vld [vmem:[%s1983_s26 + $0x3d8] sm:$0xf] }
  0x63   : > { %v426_v60 = vld [vmem:[%s1983_s26 + $0x3e0] sm:$0xf]  ;;  %423 = vst [vmem:[%s1987_s27 + $0x1e8] sm:$0xf] %v422_v58  ;;  %425 = vst [vmem:[%s1987_s27 + $0x1ec] sm:$0xf] %v424_v59 }
  0x64   : > { %427 = vst [vmem:[%s1987_s27 + $0x1f0] sm:$0xf] %v426_v60  ;;  %v428_v61 = vld [vmem:[%s1983_s26 + $0x3e8] sm:$0xf]  ;;  %v430_v62 = vld [vmem:[%s1983_s26 + $0x3f0] sm:$0xf] }
  0x65   : > { %v432_v63 = vld [vmem:[%s1983_s26 + $0x3f8] sm:$0xf]  ;;  %429 = vst [vmem:[%s1987_s27 + $0x1f4] sm:$0xf] %v428_v61  ;;  %431 = vst [vmem:[%s1987_s27 + $0x1f8] sm:$0xf] %v430_v62 }
  0x66   : > { %433 = vst [vmem:[%s1987_s27 + $0x1fc] sm:$0xf] %v432_v63 }
  0x67 PF: > { %p1602_p6 = scmp.ge.s32.totalorder %s1918_s16, 1  ;;  %p717_p7 = scmp.lt.s32.totalorder %s1918_s16, 3 }
  0x69   : > { %p718_p8 = pnand %p1602_p6, %p717_p7 }
  0x6a   : > { %s724_s28 = sand.u32 (!%p718_p8), 1, %s1902_s12   ;;  %v2249_v0 = vld [vmem:[%s2371_s0] sm:$0xff] (!%p718_p8)  ;;  %v2254_v1 = vld [vmem:[%s2371_s0 + $0x8] sm:$0xff] (!%p718_p8)  ;;  %v2294_v33 = vld [vmem:[%s2371_s0 + $0x10] sm:$0xff] (!%p718_p8)  ;;  %p763_p9 = scmp.lt.s32.totalorder (!%p718_p8), %s1910_s14, 1 }
  0x6b   : > { %721 = sbr.rel (%p718_p8) target bundleno = 395 (0x18b), region = 69  ;;  %s1603_s6 = sshll.u32 (!%p718_p8), %s724_s28, 9  ;;  %v1607_v2 = vcombine.high (!%p718_p8), %v2249_v0, %v2249_v0  ;;  %v1609_v3 = vcombine.high (!%p718_p8), %v2254_v1, %v2254_v1  ;;  %v2300_v35 = vld [vmem:[%s2371_s0 + $0x18] sm:$0xff] (!%p718_p8)  ;;  %v1606_v38 = vcombine.low (!%p718_p8), %v2249_v0, %v2249_v0  ;;  %v1608_v39 = vcombine.low (!%p718_p8), %v2254_v1, %v2254_v1 }
  0x6c   : > { %s2260_s7 = scalar_lea.vmem (!%p718_p8), [#allocation2], %s1603_s6  ;;  %v1611_v42 = vcombine.high (!%p718_p8), %v2294_v33, %v2294_v33  ;;  %v1613_v44 = vcombine.high (!%p718_p8), %v2300_v35, %v2300_v35 }
  0x6d   : > { %v1808_v4 = vld [vmem:[%s2260_s7 + $0x40] sm:$0xff] (!%p718_p8)   ;;  %1358 = vmatprep.mubr.bf16.mxu0 (!%p718_p8), %v1607_v2  ;;  %1398 = vmatprep.mubr.bf16.mxu1 (!%p718_p8), %v1609_v3  ;;  %v1812_v8 = vld [vmem:[%s2260_s7 + $0x48] sm:$0xff] (!%p718_p8)   ;;  %v1816_v12 = vld [vmem:[%s2260_s7 + $0x50] sm:$0xff] (!%p718_p8)  }
  0x6e   : > { %v1809_v5 = vld [vmem:[%s2260_s7 + $0xc0] sm:$0xff] (!%p718_p8)   ;;  %1680 = vmatprep.subr.bf16.mxu0 (!%p718_p8), %v1808_v4  ;;  %v1813_v9 = vld [vmem:[%s2260_s7 + $0xc8] sm:$0xff] (!%p718_p8)   ;;  %v1817_v13 = vld [vmem:[%s2260_s7 + $0xd0] sm:$0xff] (!%p718_p8)  }
  0x6f   : > { %v1810_v6 = vld [vmem:[%s2260_s7] sm:$0xff] (!%p718_p8)   ;;  %1702 = vmatprep.subr.bf16.mxu1 (!%p718_p8), %v1809_v5  ;;  %v1814_v10 = vld [vmem:[%s2260_s7 + $0x8] sm:$0xff] (!%p718_p8)   ;;  %v1818_v14 = vld [vmem:[%s2260_s7 + $0x10] sm:$0xff] (!%p718_p8)  }
  0x70   : > { %v1811_v7 = vld [vmem:[%s2260_s7 + $0x80] sm:$0xff] (!%p718_p8)   ;;  %1681 = vmatpush3.bf16.msra.mxu0 (!%p718_p8), %v1810_v6  ;;  %v1815_v11 = vld [vmem:[%s2260_s7 + $0x88] sm:$0xff] (!%p718_p8)   ;;  %v1819_v15 = vld [vmem:[%s2260_s7 + $0x90] sm:$0xff] (!%p718_p8)  }
  0x71   : > { %1703 = vmatpush3.bf16.msra.mxu1 (!%p718_p8), %v1811_v7  ;;  %1682 = vmatprep.subr.bf16.mxu0 (!%p718_p8), %v1812_v8  ;;  %v1820_v16 = vld [vmem:[%s2260_s7 + $0x58] sm:$0xff] (!%p718_p8)   ;;  %v1824_v20 = vld [vmem:[%s2260_s7 + $0x60] sm:$0xff] (!%p718_p8)   ;;  %v1828_v24 = vld [vmem:[%s2260_s7 + $0x68] sm:$0xff] (!%p718_p8)  }
  0x72   : > { %1704 = vmatprep.subr.bf16.mxu1 %v1813_v9  ;;  %v1821_v17 = vld [vmem:[%s2260_s7 + $0xd8] sm:$0xff]   ;;  %v1825_v21 = vld [vmem:[%s2260_s7 + $0xe0] sm:$0xff]   ;;  %v1829_v25 = vld [vmem:[%s2260_s7 + $0xe8] sm:$0xff]   ;;  %s2382_s14 = smov (!%p763_p9, %s1910_s14), 1 }
  0x73   : > { %v1822_v18 = vld [vmem:[%s2260_s7 + $0x18] sm:$0xff]   ;;  %v1826_v22 = vld [vmem:[%s2260_s7 + $0x20] sm:$0xff]   ;;  %v1830_v26 = vld [vmem:[%s2260_s7 + $0x28] sm:$0xff]   ;;  %s765_s19 = scalar_lea.vmem %s2373_s2, %s2382_s14  ;;  %s1604_s21 = sshll.u32 %s2382_s14, 3 }
  0x74   : > { %1683 = vmatpush3.bf16.msra.mxu0 %v1814_v10  ;;  %v1823_v19 = vld [vmem:[%s2260_s7 + $0x98] sm:$0xff]   ;;  %v1827_v23 = vld [vmem:[%s2260_s7 + $0xa0] sm:$0xff]   ;;  %v1831_v27 = vld [vmem:[%s2260_s7 + $0xa8] sm:$0xff]   ;;  %v1610_v10 = vcombine.low %v2294_v33, %v2294_v33  ;;  %s773_s24 = scalar_lea.vmem %s2374_s3, %s1604_s21 }
  0x75   : > { %1705 = vmatpush3.bf16.msra.mxu1 %v1815_v11  ;;  %1684 = vmatprep.subr.bf16.mxu0 %v1816_v12  ;;  %v1832_v28 = vld [vmem:[%s2260_s7 + $0x70] sm:$0xff]   ;;  %v1836_v32 = vld [vmem:[%s2260_s7 + $0x78] sm:$0xff]   ;;  %v1844_v40 = vld [vmem:[%s2260_s7 + $0x140] sm:$0xff]   ;;  %v1612_v11 = vcombine.low %v2300_v35, %v2300_v35 }
  0x76   : > { %1706 = vmatprep.subr.bf16.mxu1 %v1817_v13  ;;  %v1833_v29 = vld [vmem:[%s2260_s7 + $0xf0] sm:$0xff]   ;;  %v1837_v34 = vld [vmem:[%s2260_s7 + $0xf8] sm:$0xff]   ;;  %v1845_v41 = vld [vmem:[%s2260_s7 + $0x1c0] sm:$0xff]  }
  0x77   : > { %v1834_v30 = vld [vmem:[%s2260_s7 + $0x30] sm:$0xff]   ;;  %v1838_v36 = vld [vmem:[%s2260_s7 + $0x38] sm:$0xff]   ;;  %v1846_v43 = vld [vmem:[%s2260_s7 + $0x100] sm:$0xff]  }
  0x78   : > { %1685 = vmatpush3.bf16.msra.mxu0 %v1818_v14  ;;  %v1835_v31 = vld [vmem:[%s2260_s7 + $0xb0] sm:$0xff]   ;;  %v1839_v37 = vld [vmem:[%s2260_s7 + $0xb8] sm:$0xff]   ;;  %v1847_v45 = vld [vmem:[%s2260_s7 + $0x180] sm:$0xff]  }
  0x79   : > { %1707 = vmatpush3.bf16.msra.mxu1 %v1819_v15  ;;  %1686 = vmatprep.subr.bf16.mxu0 %v1820_v16  ;;  %v1848_v46 = vld [vmem:[%s2260_s7 + $0x148] sm:$0xff]   ;;  %v1852_v50 = vld [vmem:[%s2260_s7 + $0x150] sm:$0xff]   ;;  %v1856_v54 = vld [vmem:[%s2260_s7 + $0x158] sm:$0xff]  }
  0x7a   : > { %1708 = vmatprep.subr.bf16.mxu1 %v1821_v17  ;;  %v1849_v47 = vld [vmem:[%s2260_s7 + $0x1c8] sm:$0xff]   ;;  %v1853_v51 = vld [vmem:[%s2260_s7 + $0x1d0] sm:$0xff]   ;;  %v1857_v55 = vld [vmem:[%s2260_s7 + $0x1d8] sm:$0xff]  }
  0x7b   : > { %v1850_v48 = vld [vmem:[%s2260_s7 + $0x108] sm:$0xff]   ;;  %v1854_v52 = vld [vmem:[%s2260_s7 + $0x110] sm:$0xff]   ;;  %v1858_v56 = vld [vmem:[%s2260_s7 + $0x118] sm:$0xff]  }
  0x7c   : > { %1687 = vmatpush3.bf16.msra.mxu0 %v1822_v18  ;;  %v1851_v49 = vld [vmem:[%s2260_s7 + $0x188] sm:$0xff]   ;;  %v1855_v53 = vld [vmem:[%s2260_s7 + $0x190] sm:$0xff]   ;;  %v1859_v57 = vld [vmem:[%s2260_s7 + $0x198] sm:$0xff]  }
  0x7d   : > { %1709 = vmatpush3.bf16.msra.mxu1 %v1823_v19  ;;  %1688 = vmatprep.subr.bf16.mxu0 %v1824_v20  ;;  %v1860_v58 = vld [vmem:[%s2260_s7 + $0x160] sm:$0xff]   ;;  %v1864_v62 = vld [vmem:[%s2260_s7 + $0x168] sm:$0xff]   ;;  %v1868_v2 = vld [vmem:[%s2260_s7 + $0x170] sm:$0xff]  }
  0x7e   : > { %1710 = vmatprep.subr.bf16.mxu1 %v1825_v21  ;;  %v1861_v59 = vld [vmem:[%s2260_s7 + $0x1e0] sm:$0xff]   ;;  %v1865_v63 = vld [vmem:[%s2260_s7 + $0x1e8] sm:$0xff]   ;;  %v1869_v3 = vld [vmem:[%s2260_s7 + $0x1f0] sm:$0xff]  }
  0x7f   : > { %v1862_v60 = vld [vmem:[%s2260_s7 + $0x120] sm:$0xff]   ;;  %v1866_v0 = vld [vmem:[%s2260_s7 + $0x128] sm:$0xff]   ;;  %v1870_v4 = vld [vmem:[%s2260_s7 + $0x130] sm:$0xff]  }
  0x80   : > { %1689 = vmatpush3.bf16.msra.mxu0 %v1826_v22  ;;  %v1863_v61 = vld [vmem:[%s2260_s7 + $0x1a0] sm:$0xff]   ;;  %v1867_v1 = vld [vmem:[%s2260_s7 + $0x1a8] sm:$0xff]   ;;  %v1871_v5 = vld [vmem:[%s2260_s7 + $0x1b0] sm:$0xff]  }
  0x81   : > { %1711 = vmatpush3.bf16.msra.mxu1 %v1827_v23  ;;  %1690 = vmatprep.subr.bf16.mxu0 %v1828_v24  ;;  %v1872_v6 = vld [vmem:[%s2260_s7 + $0x178] sm:$0xff]   ;;  %v1605_v14 = vld [vmem:[%s765_s19] ss:$0 sm:$0xff] }
  0x82   : > { %1712 = vmatprep.subr.bf16.mxu1 %v1829_v25  ;;  %v1873_v7 = vld [vmem:[%s2260_s7 + $0x1f8] sm:$0xff]  }
  0x83   : > { %v1874_v8 = vld [vmem:[%s2260_s7 + $0x138] sm:$0xff]  }
  0x84   : > { %1691 = vmatpush3.bf16.msra.mxu0 %v1830_v26  ;;  %v1875_v9 = vld [vmem:[%s2260_s7 + $0x1b8] sm:$0xff]  }
  0x85   : > { %1713 = vmatpush3.bf16.msra.mxu1 %v1831_v27  ;;  %1692 = vmatprep.subr.bf16.mxu0 %v1832_v28 }
  0x86   : > { %1714 = vmatprep.subr.bf16.mxu1 %v1833_v29 }
  0x88   : > { %1693 = vmatpush3.bf16.msra.mxu0 %v1834_v30 }
  0x89   : > { %1715 = vmatpush3.bf16.msra.mxu1 %v1835_v31  ;;  %1694 = vmatprep.subr.bf16.mxu0 %v1836_v32 }
  0x8a   : > { %1716 = vmatprep.subr.bf16.mxu1 %v1837_v34 }
  0x8c   : > { %1695 = vmatpush3.bf16.msra.mxu0 %v1838_v36 }
  0x8d   : > { %1717 = vmatpush3.bf16.msra.mxu1 %v1839_v37  ;;  %1724 = vmatprep.subr.bf16.mxu0 %v1844_v40 }
  0x8e   : > { %1746 = vmatprep.subr.bf16.mxu1 %v1845_v41 }
  0x8f   : > { %1359 = vmatmul.mubr.bf16.vlgmr.msra.gmra.mrb[0].mxu0 %v1606_v38 }
  0x90   : > { %1399 = vmatmul.mubr.bf16.vlgmr.msra.gmra.mrb[0].mxu1 %v1608_v39  ;;  %1725 = vmatpush3.bf16.msra.mxu0 %v1846_v43 }
  0x91   : > { %1747 = vmatpush3.bf16.msra.mxu1 %v1847_v45  ;;  %1438 = vmatprep.mubr.bf16.mxu0 %v1611_v42 }
  0x92   : > { %1726 = vmatprep.subr.bf16.mxu0 %v1848_v46  ;;  %1478 = vmatprep.mubr.bf16.mxu1 %v1613_v44 }
  0x93   : > { %1748 = vmatprep.subr.bf16.mxu1 %v1849_v47 }
  0x94   : > { %1727 = vmatpush3.bf16.msra.mxu0 %v1850_v48 }
  0x95   : > { %1749 = vmatpush3.bf16.msra.mxu1 %v1851_v49  ;;  %1728 = vmatprep.subr.bf16.mxu0 %v1852_v50 }
  0x96   : > { %1750 = vmatprep.subr.bf16.mxu1 %v1853_v51 }
  0x98   : > { %1729 = vmatpush3.bf16.msra.mxu0 %v1854_v52 }
  0x99   : > { %1751 = vmatpush3.bf16.msra.mxu1 %v1855_v53  ;;  %1730 = vmatprep.subr.bf16.mxu0 %v1856_v54 }
  0x9a   : > { %1752 = vmatprep.subr.bf16.mxu1 %v1857_v55 }
  0x9c   : > { %1731 = vmatpush3.bf16.msra.mxu0 %v1858_v56 }
  0x9d   : > { %1753 = vmatpush3.bf16.msra.mxu1 %v1859_v57  ;;  %1732 = vmatprep.subr.bf16.mxu0 %v1860_v58 }
  0x9e   : > { %1754 = vmatprep.subr.bf16.mxu1 %v1861_v59 }
  0xa0   : > { %1733 = vmatpush3.bf16.msra.mxu0 %v1862_v60 }
  0xa1   : > { %1755 = vmatpush3.bf16.msra.mxu1 %v1863_v61  ;;  %1734 = vmatprep.subr.bf16.mxu0 %v1864_v62 }
  0xa2   : > { %1756 = vmatprep.subr.bf16.mxu1 %v1865_v63 }
  0xa4   : > { %1735 = vmatpush3.bf16.msra.mxu0 %v1866_v0 }
  0xa5   : > { %1757 = vmatpush3.bf16.msra.mxu1 %v1867_v1  ;;  %1736 = vmatprep.subr.bf16.mxu0 %v1868_v2 }
  0xa6   : > { %1758 = vmatprep.subr.bf16.mxu1 %v1869_v3 }
  0xa8   : > { %1737 = vmatpush3.bf16.msra.mxu0 %v1870_v4 }
  0xa9   : > { %1759 = vmatpush3.bf16.msra.mxu1 %v1871_v5  ;;  %1738 = vmatprep.subr.bf16.mxu0 %v1872_v6 }
  0xaa   : > { %1760 = vmatprep.subr.bf16.mxu1 %v1873_v7 }
  0xac   : > { %1739 = vmatpush3.bf16.msra.mxu0 %v1874_v8 }
  0xad   : > { %1761 = vmatpush3.bf16.msra.mxu1 %v1875_v9 }
  0xaf   : > { %1439 = vmatmul.mubr.bf16.vlgmr.msra.gmra.mrb[4].mxu0 %v1610_v10 }
  0xb0   : > { %1479 = vmatmul.mubr.bf16.vlgmr.msra.gmra.mrb[4].mxu1 %v1612_v11 }
 0x162   : > { %v1696_v12 = vpop.f32.mrb[0].mxu0 }
 0x163   : > { %v1718_v13 = vpop.f32.mrb[0].mxu1  ;;  %v1697_v15 = vpop.f32.mrb[1].mxu0 }
 0x164   : > { %v1698_v16 = vadd.f32 %v1697_v15, %v1696_v12  ;;  %v1719_v17 = vpop.f32.mrb[1].mxu1  ;;  %v1699_v18 = vpop.f32.mrb[2].mxu0 }
 0x165   : > { %v1720_v19 = vadd.f32 %v1719_v17, %v1718_v13  ;;  %v1721_v20 = vpop.f32.mrb[2].mxu1  ;;  %v1700_v21 = vpop.f32.mrb[3].mxu0 }
 0x166   : > { %v1361_v22 = vadd.f32 %v1698_v16, %v1605_v14  ;;  %v1722_v23 = vpop.f32.mrb[3].mxu1 }
 0x168   : > { %v1401_v24 = vadd.f32 %v1720_v19, %v1361_v22 }
 0x182   : > { %v1740_v25 = vpop.f32.mrb[4].mxu0 }
 0x183   : > { %v1762_v26 = vpop.f32.mrb[4].mxu1  ;;  %v1741_v27 = vpop.f32.mrb[5].mxu0 }
 0x184   : > { %v1742_v28 = vadd.f32 %v1741_v27, %v1740_v25  ;;  %v1763_v29 = vpop.f32.mrb[5].mxu1  ;;  %v1743_v30 = vpop.f32.mrb[6].mxu0 }
 0x185   : > { %v1764_v31 = vadd.f32 %v1763_v29, %v1762_v26  ;;  %v1765_v32 = vpop.f32.mrb[6].mxu1  ;;  %v1744_v33 = vpop.f32.mrb[7].mxu0 }
 0x186   : > { %v1441_v34 = vadd.f32 %v1742_v28, %v1401_v24  ;;  %v1766_v35 = vpop.f32.mrb[7].mxu1 }
 0x188   : > { %v1481_v36 = vadd.f32 %v1764_v31, %v1441_v34 }
 0x18a   : > { %1486 = vst [vmem:[%s773_s24] sm:$0xff] %v1481_v36 }
 0x18b PF: > { %s13_s16 = sadd.s32 1, %s1918_s16   ;;  %s2375_s12 = smov %s1906_s13 }
 0x18c   : > { %p10_p10 = scmp.ge.s32.totalorder %s13_s16, 4   ;;  %s2376_s13 = smov %s1975_s20 }
 0x18d   : > { %s2377_s14 = smov %s1914_s15  ;;  %s2378_s15 = smov %s2380_s17 }
 0x18e   :  { %12 = sbr.rel (!%p10_p10) target bundleno = 3 (0x3), region = 114 }

// kernel: infogan_forward.29
= control target key start
LH: loop header
LB: loop body
LE: loop exit
PB: predicated region body
PF: predicated region fallthrough
CT: control target
= control target key end

     0   :  { %v180_v0 = vmov 0.0   ;;  %vm181_vm0 = vmmov 0   ;;  %s235_s1 = inlined_call_operand.vmem [shape: bf16[128,128], index: 1, kind: input, shape index: {}]   ;;  %s236_s0 = inlined_call_operand.vmem [shape: bf16[8,128], index: 0, kind: input, shape index: {}]   ;;  %s237_s2 = inlined_call_operand.vmem [shape: f32[1,128], index: 2, kind: input, shape index: {}]   ;;  %s238_s3 = inlined_call_operand.vmem [shape: f32[8,128], index: 3, kind: output, shape index: {}]  }
   0x1   :  { %150 = vmatprep.subr.bf16.mxu0 %v180_v0  ;;  %v172_v1 = vld [vmem:[%s235_s1] sm:$0xff]   ;;  %166 = vmatprep.mubr.msk.bf16.mxu0 %vm181_vm0, %v180_v0  ;;  %v173_v2 = vld [vmem:[%s235_s1 + $0x8] sm:$0xff]   ;;  %v174_v3 = vld [vmem:[%s235_s1 + $0x10] sm:$0xff]  }
   0x2   :  { %151 = vmatpush3.bf16.msra.mxu0 %v172_v1  ;;  %v175_v4 = vld [vmem:[%s235_s1 + $0x18] sm:$0xff]   ;;  %v176_v5 = vld [vmem:[%s235_s1 + $0x20] sm:$0xff]   ;;  %v177_v6 = vld [vmem:[%s235_s1 + $0x28] sm:$0xff]  }
   0x3   :  { %152 = vmatprep.subr.bf16.mxu0 %v180_v0  ;;  %v178_v7 = vld [vmem:[%s235_s1 + $0x30] sm:$0xff]   ;;  %v179_v8 = vld [vmem:[%s235_s1 + $0x38] sm:$0xff]   ;;  %v15_v9 = vld [vmem:[%s236_s0] sm:$0xf] }
   0x4   :  { %v132_v10 = vld [vmem:[%s237_s2] ss:$0 sm:$0xff] }
   0x6   :  { %153 = vmatpush3.bf16.msra.mxu0 %v173_v2 }
   0x7   :  { %154 = vmatprep.subr.bf16.mxu0 %v180_v0 }
   0xa   :  { %155 = vmatpush3.bf16.msra.mxu0 %v174_v3 }
   0xb   :  { %156 = vmatprep.subr.bf16.mxu0 %v180_v0 }
   0xe   :  { %157 = vmatpush3.bf16.msra.mxu0 %v175_v4 }
   0xf   :  { %158 = vmatprep.subr.bf16.mxu0 %v180_v0 }
  0x12   :  { %159 = vmatpush3.bf16.msra.mxu0 %v176_v5 }
  0x13   :  { %160 = vmatprep.subr.bf16.mxu0 %v180_v0 }
  0x16   :  { %161 = vmatpush3.bf16.msra.mxu0 %v177_v6 }
  0x17   :  { %162 = vmatprep.subr.bf16.mxu0 %v180_v0 }
  0x1a   :  { %163 = vmatpush3.bf16.msra.mxu0 %v178_v7 }
  0x1b   :  { %164 = vmatprep.subr.bf16.mxu0 %v180_v0 }
  0x1e   :  { %165 = vmatpush3.bf16.msra.mxu0 %v179_v8 }
  0x21   :  { %167 = vmatmul.mubr.bf16.vlgmr.msra.gmra.mrb[0].mxu0 %v15_v9 }
  0xf4   :  { %v121_v11 = vpop.f32.mrb[0].mxu0 }
  0xf5   :  { %v122_v12 = vadd.f32 %v132_v10, %v121_v11  ;;  %v168_v13 = vpop.f32.mrb[1].mxu0 }
  0xf6   :  { %v124_v14 = vpop.f32.mrb[2].mxu0 }
  0xf7   :  { %127 = vst [vmem:[%s238_s3] sm:$0xff] %v122_v12  ;;  %v169_v15 = vpop.f32.mrb[3].mxu0 }

</bundles_post_ra>
